<compile_context>
chip_gen: v7x
topology: tpu7x:2x2x1
jax: 0.10.0
libtpu: 0.0.40
codegen_flags: <defaults>
</compile_context>

<pallas_src>
import numpy as np

import jax
import jax.numpy as jnp
from jax.experimental import pallas as pl
from jax.experimental.pallas import tpu as pltpu


LEAKY_ALPHA = 0.1


def _make_conv_kernel(dh_offsets, ho_sz, alpha):
    """Kernel computing one (batch, output-depth) slice of a 3D conv.

    Per grid step (n, do):
        acc(Ho, Wo*Cout) = sum_g  slab_g(Ho, Wq*Cin) @ T_g(Wq*Cin, Wo*Cout)
        out              = leaky_relu(acc + bias)
    where slab_g is the input row-band for tap group g = (kd, kh) and the kw
    taps (and the conv stride) are folded into the Toeplitz weight T_g.
    Exactly one lane-dense store per grid step.
    """

    def kernel(x_ref, w_ref, b_ref, o_ref):
        do = pl.program_id(1)
        kdim = x_ref.shape[-1]
        ndim = o_ref.shape[-1]

        acc = jnp.zeros((ho_sz, ndim), dtype=jnp.float32)
        for g, (doff, hoff) in enumerate(dh_offsets):
            slab = x_ref[0, pl.ds(do + doff, 1), pl.ds(hoff, ho_sz), :]
            slab = slab.reshape(ho_sz, kdim).astype(jnp.bfloat16)
            acc = acc + jnp.dot(slab, w_ref[g],
                                preferred_element_type=jnp.float32)

        y = acc + b_ref[...]                       # bias added once, at the end
        y = jnp.where(y >= 0.0, y, alpha * y)      # leaky relu (VPU)
        o_ref[0, 0, :, :] = y.astype(o_ref.dtype)  # single lane-dense store

    return kernel


def conv3d_leaky_pallas(x, w, b, stride, ksize, alpha=LEAKY_ALPHA):
    """3D conv (pad=1 iff ksize==3) + bias + leaky relu.

    x: (N, D, H, W, Cin) float32 channels-last
    w: (k, k, k, Cin, Cout), b: (Cout,)
    returns (N, Do, Ho, Wo, Cout) float32
    """
    n = x.shape[0]
    cin = x.shape[-1]
    cout = w.shape[-1]

    # Pad Cin up to a multiple of 8 (only hits the first layer, 3 -> 8).
    cin_p = ((cin + 7) // 8) * 8
    if cin_p != cin:
        x = jnp.pad(x, ((0, 0), (0, 0), (0, 0), (0, 0), (0, cin_p - cin)))
        w = jnp.pad(w, ((0, 0), (0, 0), (0, 0), (0, cin_p - cin), (0, 0)))

    # Explicit zero padding, matching func.pad(..., [1,1,1,1,1,1]) for 3x3x3.
    if ksize == 3:
        x = jnp.pad(x, ((0, 0), (1, 1), (1, 1), (1, 1), (0, 0)))

    dp, hp, wp = x.shape[1:4]
    do_sz = (dp - ksize) // stride + 1
    ho_sz = (hp - ksize) // stride + 1
    wo_sz = (wp - ksize) // stride + 1

    if stride == 2:
        # Polyphase (parity) reorganisation so stride-2 taps become unit-stride
        # slices in the kernel -> no discarded outputs are ever computed.
        pe = [(-dp) % 2, (-hp) % 2, (-wp) % 2]
        if any(pe):
            x = jnp.pad(x, ((0, 0), (0, pe[0]), (0, pe[1]), (0, pe[2]), (0, 0)))
        dp, hp, wp = x.shape[1:4]
        dh, hh, wh = dp // 2, hp // 2, wp // 2
        x = x.reshape(n, dh, 2, hh, 2, wh, 2, cin_p)
        x = jnp.transpose(x, (0, 2, 1, 4, 3, 6, 5, 7))
        x = x.reshape(n, dp, hp, wp, cin_p)
        d_off = lambda t: (t % 2) * dh + t // 2
        h_off = lambda t: (t % 2) * hh + t // 2
        w_off = lambda t: (t % 2) * wh + t // 2
    else:
        d_off = lambda t: t
        h_off = lambda t: t
        w_off = lambda t: t

    dq, hq, wq = x.shape[1:4]
    kdim = wq * cin_p          # MXU contraction size (~144..256 here)
    ndim = wo_sz * cout        # lane-dense output width (=128 for this config)

    # Flatten (Wq, Cin) into the minor dim (free XLA reshape).
    x2 = x.reshape(n, dq, hq, kdim)

    # Toeplitz-style weight: fold the kw taps (and stride) into the K dim.
    sel = np.zeros((ksize, wq, wo_sz), np.float32)
    for kw in range(ksize):
        for wo in range(wo_sz):
            sel[kw, wo + w_off(kw), wo] = 1.0
    t_w = jnp.einsum('kpw,abkio->abpiwo',
                     jnp.asarray(sel), w.astype(jnp.float32))
    t_w = t_w.reshape(ksize * ksize, kdim, ndim).astype(jnp.bfloat16)

    b_t = jnp.tile(b.astype(jnp.float32), (wo_sz,)).reshape(1, ndim)

    dh_offsets = tuple((d_off(kd), h_off(kh))
                       for kd in range(ksize) for kh in range(ksize))
    g = ksize * ksize

    kernel = _make_conv_kernel(dh_offsets, ho_sz, alpha)

    y = pl.pallas_call(
        kernel,
        out_shape=jax.ShapeDtypeStruct((n, do_sz, ho_sz, ndim), jnp.float32),
        grid=(n, do_sz),
        in_specs=[
            # whole prepared volume for batch i, resident across the do axis
            pl.BlockSpec((1, dq, hq, kdim), lambda i, j: (i, 0, 0, 0)),
            # Toeplitz weight stack and tiled bias, resident across the grid
            pl.BlockSpec((g, kdim, ndim), lambda i, j: (0, 0, 0)),
            pl.BlockSpec((1, ndim), lambda i, j: (0, 0)),
        ],
        out_specs=pl.BlockSpec((1, 1, ho_sz, ndim), lambda i, j: (i, j, 0, 0)),
        compiler_params=pltpu.CompilerParams(
            dimension_semantics=("parallel", "parallel"),
            vmem_limit_bytes=32 * 1024 * 1024),
    )(x2, t_w, b_t)

    return y.reshape(n, do_sz, ho_sz, wo_sz, cout)


def build_pyramid_params(key,
                         num_levels=3,
                         num_channels=3,
                         channel_multiplier=1.0,
                         level1_num_layers=3,
                         level1_num_filters=32,
                         level1_num_1x1=0,
                         original_layer_sizes=True,
                         pyramid_resolution='half'):
    """Deterministic parameter construction mirroring RRNFeaturePyramid.__init__."""
    if original_layer_sizes:
        filters = ((3, 16), (3, 32), (3, 64), (3, 96), (3, 128), (3, 196))[:num_levels]
    else:
        filters = ((level1_num_layers, level1_num_filters),
                   (3, 32), (3, 32), (3, 32), (3, 32), (3, 32))[:num_levels]

    params = []
    c = num_channels
    for level, (num_layers, num_filters) in enumerate(filters):
        group = []
        for i in range(num_layers):
            stride = 1
            if i == 0 or (i == 1 and level == 0 and pyramid_resolution == 'quarter'):
                stride = 2
            ksize = 3 if level > 0 or i < num_layers - level1_num_1x1 else 1
            cout = int(num_filters * channel_multiplier)
            key, kw_key, kb_key = jax.random.split(key, 3)
            fan_in = c * ksize ** 3
            bound = 1.0 / (fan_in ** 0.5)  # matches PyTorch Conv3d default init bound
            w = jax.random.uniform(kw_key, (ksize, ksize, ksize, c, cout),
                                   jnp.float32, minval=-bound, maxval=bound)
            b = jax.random.uniform(kb_key, (cout,), jnp.float32,
                                   minval=-bound, maxval=bound)
            group.append((w, b, stride, ksize))
            c = cout
        params.append(group)
    return params


def rrn_feature_pyramid_forward(x_ncdhw, params, alpha=LEAKY_ALPHA):
    """Forward pass of RRNFeaturePyramid.

    x_ncdhw: (N, C, D, H, W) like the PyTorch module input.
    Returns a list of pyramid features in NCDHW layout like PyTorch.
    """
    # NCDHW -> NDHWC (channels-last for the TPU kernels)
    x = jnp.transpose(x_ncdhw, (0, 2, 3, 4, 1)).astype(jnp.float32)
    x = x * 2.0 - 1.0  # input normalization

    features = []
    for group in params:
        for (w, b, stride, ksize) in group:
            x = conv3d_leaky_pallas(x, w, b, stride, ksize, alpha)
        features.append(jnp.transpose(x, (0, 4, 1, 2, 3)))  # back to NCDHW
    return features


if __name__ == "__main__":
    key = jax.random.PRNGKey(0)
    kx, kp = jax.random.split(key)

    # small but consistent shapes: batch=2, channels=3, spatial volume 16^3
    x = jax.random.uniform(kx, (2, 3, 16, 16, 16), jnp.float32)

    params = build_pyramid_params(kp, num_levels=3)

    fwd = jax.jit(lambda inp: rrn_feature_pyramid_forward(inp, params))
    feats = fwd(x)
    for f in feats:
        jax.block_until_ready(f)

    # expected shapes: (2,16,8,8,8), (2,32,4,4,4), (2,64,2,2,2)
    assert feats[0].shape == (2, 16, 8, 8, 8)
    assert feats[1].shape == (2, 32, 4, 4, 4)
    assert feats[2].shape == (2, 64, 2, 2, 2)

    print("KERNEL_OK")
</pallas_src>

<mosaic_0001>
module attributes {stable_mosaic.version = 11 : i64} {
  func.func @kernel(%arg0: i32, %arg1: i32, %arg2: memref<1x18x18x144xf32, #tpu.memory_space<vmem>>, %arg3: memref<9x144x128xbf16, #tpu.memory_space<vmem>>, %arg4: memref<1x128xf32, #tpu.memory_space<vmem>>, %arg5: memref<1x1x8x128xf32, #tpu.memory_space<vmem>>) attributes {dimension_semantics = [#tpu.dimension_semantics<parallel>, #tpu.dimension_semantics<parallel>], iteration_bounds = array<i64: 2, 8>, scalar_prefetch = 0 : i64, scratch_operands = 0 : i64, tpu.core_type = #tpu.core_type<tc>, window_params = [{transform_indices = @transform_0, window_bounds = array<i64: 1, 18, 18, 144>}, {pipeline_mode = #tpu.pipeline_mode<synchronous>, transform_indices = @transform_1, window_bounds = array<i64: 9, 144, 128>}, {pipeline_mode = #tpu.pipeline_mode<synchronous>, transform_indices = @transform_2, window_bounds = array<i64: 1, 128>}, {transform_indices = @transform_3, window_bounds = array<i64: 1, 1, 8, 128>}]} {
    %cst = arith.constant 0.000000e+00 : f32
    %0 = vector.broadcast %cst : f32 to vector<8x128xf32>
    %c0_i32 = arith.constant 0 : i32
    %1 = arith.addi %arg1, %c0_i32 : i32
    %c0 = arith.constant 0 : index
    %2 = arith.index_cast %1 : i32 to index
    %c0_0 = arith.constant 0 : index
    %c0_1 = arith.constant 0 : index
    %3 = vector.load %arg2[%c0, %2, %c0_0, %c0_1] : memref<1x18x18x144xf32, #tpu.memory_space<vmem>>, vector<1x1x8x144xf32>
    %4 = vector.shape_cast %3 : vector<1x1x8x144xf32> to vector<1x8x144xf32>
    %5 = vector.shape_cast %4 : vector<1x8x144xf32> to vector<8x144xf32>
    %6 = arith.truncf %5 : vector<8x144xf32> to vector<8x144xbf16>
    %c0_2 = arith.constant 0 : index
    %c0_3 = arith.constant 0 : index
    %c0_4 = arith.constant 0 : index
    %7 = vector.load %arg3[%c0_2, %c0_3, %c0_4] : memref<9x144x128xbf16, #tpu.memory_space<vmem>>, vector<1x144x128xbf16>
    %8 = vector.shape_cast %7 : vector<1x144x128xbf16> to vector<144x128xbf16>
    %cst_5 = arith.constant dense<0.000000e+00> : vector<8x128xf32>
    %9 = tpu.matmul %6, %8, %cst_5 {dimension_numbers = #tpu.dot_dimension_numbers<[1], [0], [0], [1], [0, 0, 1, 1], [], []>} : vector<8x144xbf16>, vector<144x128xbf16>, vector<8x128xf32> -> vector<8x128xf32>
    %10 = arith.addf %0, %9 : vector<8x128xf32>
    %c0_i32_6 = arith.constant 0 : i32
    %11 = arith.addi %arg1, %c0_i32_6 : i32
    %c0_7 = arith.constant 0 : index
    %12 = arith.index_cast %11 : i32 to index
    %c9 = arith.constant 9 : index
    %c0_8 = arith.constant 0 : index
    %13 = vector.load %arg2[%c0_7, %12, %c9, %c0_8] : memref<1x18x18x144xf32, #tpu.memory_space<vmem>>, vector<1x1x8x144xf32>
    %14 = vector.shape_cast %13 : vector<1x1x8x144xf32> to vector<1x8x144xf32>
    %15 = vector.shape_cast %14 : vector<1x8x144xf32> to vector<8x144xf32>
    %16 = arith.truncf %15 : vector<8x144xf32> to vector<8x144xbf16>
    %c1 = arith.constant 1 : index
    %c0_9 = arith.constant 0 : index
    %c0_10 = arith.constant 0 : index
    %17 = vector.load %arg3[%c1, %c0_9, %c0_10] : memref<9x144x128xbf16, #tpu.memory_space<vmem>>, vector<1x144x128xbf16>
    %18 = vector.shape_cast %17 : vector<1x144x128xbf16> to vector<144x128xbf16>
    %cst_11 = arith.constant dense<0.000000e+00> : vector<8x128xf32>
    %19 = tpu.matmul %16, %18, %cst_11 {dimension_numbers = #tpu.dot_dimension_numbers<[1], [0], [0], [1], [0, 0, 1, 1], [], []>} : vector<8x144xbf16>, vector<144x128xbf16>, vector<8x128xf32> -> vector<8x128xf32>
    %20 = arith.addf %10, %19 : vector<8x128xf32>
    %c0_i32_12 = arith.constant 0 : i32
    %21 = arith.addi %arg1, %c0_i32_12 : i32
    %c0_13 = arith.constant 0 : index
    %22 = arith.index_cast %21 : i32 to index
    %c1_14 = arith.constant 1 : index
    %c0_15 = arith.constant 0 : index
    %23 = vector.load %arg2[%c0_13, %22, %c1_14, %c0_15] : memref<1x18x18x144xf32, #tpu.memory_space<vmem>>, vector<1x1x8x144xf32>
    %24 = vector.shape_cast %23 : vector<1x1x8x144xf32> to vector<1x8x144xf32>
    %25 = vector.shape_cast %24 : vector<1x8x144xf32> to vector<8x144xf32>
    %26 = arith.truncf %25 : vector<8x144xf32> to vector<8x144xbf16>
    %c2 = arith.constant 2 : index
    %c0_16 = arith.constant 0 : index
    %c0_17 = arith.constant 0 : index
    %27 = vector.load %arg3[%c2, %c0_16, %c0_17] : memref<9x144x128xbf16, #tpu.memory_space<vmem>>, vector<1x144x128xbf16>
    %28 = vector.shape_cast %27 : vector<1x144x128xbf16> to vector<144x128xbf16>
    %cst_18 = arith.constant dense<0.000000e+00> : vector<8x128xf32>
    %29 = tpu.matmul %26, %28, %cst_18 {dimension_numbers = #tpu.dot_dimension_numbers<[1], [0], [0], [1], [0, 0, 1, 1], [], []>} : vector<8x144xbf16>, vector<144x128xbf16>, vector<8x128xf32> -> vector<8x128xf32>
    %30 = arith.addf %20, %29 : vector<8x128xf32>
    %c9_i32 = arith.constant 9 : i32
    %31 = arith.addi %arg1, %c9_i32 : i32
    %c0_19 = arith.constant 0 : index
    %32 = arith.index_cast %31 : i32 to index
    %c0_20 = arith.constant 0 : index
    %c0_21 = arith.constant 0 : index
    %33 = vector.load %arg2[%c0_19, %32, %c0_20, %c0_21] : memref<1x18x18x144xf32, #tpu.memory_space<vmem>>, vector<1x1x8x144xf32>
    %34 = vector.shape_cast %33 : vector<1x1x8x144xf32> to vector<1x8x144xf32>
    %35 = vector.shape_cast %34 : vector<1x8x144xf32> to vector<8x144xf32>
    %36 = arith.truncf %35 : vector<8x144xf32> to vector<8x144xbf16>
    %c3 = arith.constant 3 : index
    %c0_22 = arith.constant 0 : index
    %c0_23 = arith.constant 0 : index
    %37 = vector.load %arg3[%c3, %c0_22, %c0_23] : memref<9x144x128xbf16, #tpu.memory_space<vmem>>, vector<1x144x128xbf16>
    %38 = vector.shape_cast %37 : vector<1x144x128xbf16> to vector<144x128xbf16>
    %cst_24 = arith.constant dense<0.000000e+00> : vector<8x128xf32>
    %39 = tpu.matmul %36, %38, %cst_24 {dimension_numbers = #tpu.dot_dimension_numbers<[1], [0], [0], [1], [0, 0, 1, 1], [], []>} : vector<8x144xbf16>, vector<144x128xbf16>, vector<8x128xf32> -> vector<8x128xf32>
    %40 = arith.addf %30, %39 : vector<8x128xf32>
    %c9_i32_25 = arith.constant 9 : i32
    %41 = arith.addi %arg1, %c9_i32_25 : i32
    %c0_26 = arith.constant 0 : index
    %42 = arith.index_cast %41 : i32 to index
    %c9_27 = arith.constant 9 : index
    %c0_28 = arith.constant 0 : index
    %43 = vector.load %arg2[%c0_26, %42, %c9_27, %c0_28] : memref<1x18x18x144xf32, #tpu.memory_space<vmem>>, vector<1x1x8x144xf32>
    %44 = vector.shape_cast %43 : vector<1x1x8x144xf32> to vector<1x8x144xf32>
    %45 = vector.shape_cast %44 : vector<1x8x144xf32> to vector<8x144xf32>
    %46 = arith.truncf %45 : vector<8x144xf32> to vector<8x144xbf16>
    %c4 = arith.constant 4 : index
    %c0_29 = arith.constant 0 : index
    %c0_30 = arith.constant 0 : index
    %47 = vector.load %arg3[%c4, %c0_29, %c0_30] : memref<9x144x128xbf16, #tpu.memory_space<vmem>>, vector<1x144x128xbf16>
    %48 = vector.shape_cast %47 : vector<1x144x128xbf16> to vector<144x128xbf16>
    %cst_31 = arith.constant dense<0.000000e+00> : vector<8x128xf32>
    %49 = tpu.matmul %46, %48, %cst_31 {dimension_numbers = #tpu.dot_dimension_numbers<[1], [0], [0], [1], [0, 0, 1, 1], [], []>} : vector<8x144xbf16>, vector<144x128xbf16>, vector<8x128xf32> -> vector<8x128xf32>
    %50 = arith.addf %40, %49 : vector<8x128xf32>
    %c9_i32_32 = arith.constant 9 : i32
    %51 = arith.addi %arg1, %c9_i32_32 : i32
    %c0_33 = arith.constant 0 : index
    %52 = arith.index_cast %51 : i32 to index
    %c1_34 = arith.constant 1 : index
    %c0_35 = arith.constant 0 : index
    %53 = vector.load %arg2[%c0_33, %52, %c1_34, %c0_35] : memref<1x18x18x144xf32, #tpu.memory_space<vmem>>, vector<1x1x8x144xf32>
    %54 = vector.shape_cast %53 : vector<1x1x8x144xf32> to vector<1x8x144xf32>
    %55 = vector.shape_cast %54 : vector<1x8x144xf32> to vector<8x144xf32>
    %56 = arith.truncf %55 : vector<8x144xf32> to vector<8x144xbf16>
    %c5 = arith.constant 5 : index
    %c0_36 = arith.constant 0 : index
    %c0_37 = arith.constant 0 : index
    %57 = vector.load %arg3[%c5, %c0_36, %c0_37] : memref<9x144x128xbf16, #tpu.memory_space<vmem>>, vector<1x144x128xbf16>
    %58 = vector.shape_cast %57 : vector<1x144x128xbf16> to vector<144x128xbf16>
    %cst_38 = arith.constant dense<0.000000e+00> : vector<8x128xf32>
    %59 = tpu.matmul %56, %58, %cst_38 {dimension_numbers = #tpu.dot_dimension_numbers<[1], [0], [0], [1], [0, 0, 1, 1], [], []>} : vector<8x144xbf16>, vector<144x128xbf16>, vector<8x128xf32> -> vector<8x128xf32>
    %60 = arith.addf %50, %59 : vector<8x128xf32>
    %c1_i32 = arith.constant 1 : i32
    %61 = arith.addi %arg1, %c1_i32 : i32
    %c0_39 = arith.constant 0 : index
    %62 = arith.index_cast %61 : i32 to index
    %c0_40 = arith.constant 0 : index
    %c0_41 = arith.constant 0 : index
    %63 = vector.load %arg2[%c0_39, %62, %c0_40, %c0_41] : memref<1x18x18x144xf32, #tpu.memory_space<vmem>>, vector<1x1x8x144xf32>
    %64 = vector.shape_cast %63 : vector<1x1x8x144xf32> to vector<1x8x144xf32>
    %65 = vector.shape_cast %64 : vector<1x8x144xf32> to vector<8x144xf32>
    %66 = arith.truncf %65 : vector<8x144xf32> to vector<8x144xbf16>
    %c6 = arith.constant 6 : index
    %c0_42 = arith.constant 0 : index
    %c0_43 = arith.constant 0 : index
    %67 = vector.load %arg3[%c6, %c0_42, %c0_43] : memref<9x144x128xbf16, #tpu.memory_space<vmem>>, vector<1x144x128xbf16>
    %68 = vector.shape_cast %67 : vector<1x144x128xbf16> to vector<144x128xbf16>
    %cst_44 = arith.constant dense<0.000000e+00> : vector<8x128xf32>
    %69 = tpu.matmul %66, %68, %cst_44 {dimension_numbers = #tpu.dot_dimension_numbers<[1], [0], [0], [1], [0, 0, 1, 1], [], []>} : vector<8x144xbf16>, vector<144x128xbf16>, vector<8x128xf32> -> vector<8x128xf32>
    %70 = arith.addf %60, %69 : vector<8x128xf32>
    %c1_i32_45 = arith.constant 1 : i32
    %71 = arith.addi %arg1, %c1_i32_45 : i32
    %c0_46 = arith.constant 0 : index
    %72 = arith.index_cast %71 : i32 to index
    %c9_47 = arith.constant 9 : index
    %c0_48 = arith.constant 0 : index
    %73 = vector.load %arg2[%c0_46, %72, %c9_47, %c0_48] : memref<1x18x18x144xf32, #tpu.memory_space<vmem>>, vector<1x1x8x144xf32>
    %74 = vector.shape_cast %73 : vector<1x1x8x144xf32> to vector<1x8x144xf32>
    %75 = vector.shape_cast %74 : vector<1x8x144xf32> to vector<8x144xf32>
    %76 = arith.truncf %75 : vector<8x144xf32> to vector<8x144xbf16>
    %c7 = arith.constant 7 : index
    %c0_49 = arith.constant 0 : index
    %c0_50 = arith.constant 0 : index
    %77 = vector.load %arg3[%c7, %c0_49, %c0_50] : memref<9x144x128xbf16, #tpu.memory_space<vmem>>, vector<1x144x128xbf16>
    %78 = vector.shape_cast %77 : vector<1x144x128xbf16> to vector<144x128xbf16>
    %cst_51 = arith.constant dense<0.000000e+00> : vector<8x128xf32>
    %79 = tpu.matmul %76, %78, %cst_51 {dimension_numbers = #tpu.dot_dimension_numbers<[1], [0], [0], [1], [0, 0, 1, 1], [], []>} : vector<8x144xbf16>, vector<144x128xbf16>, vector<8x128xf32> -> vector<8x128xf32>
    %80 = arith.addf %70, %79 : vector<8x128xf32>
    %c1_i32_52 = arith.constant 1 : i32
    %81 = arith.addi %arg1, %c1_i32_52 : i32
    %c0_53 = arith.constant 0 : index
    %82 = arith.index_cast %81 : i32 to index
    %c1_54 = arith.constant 1 : index
    %c0_55 = arith.constant 0 : index
    %83 = vector.load %arg2[%c0_53, %82, %c1_54, %c0_55] : memref<1x18x18x144xf32, #tpu.memory_space<vmem>>, vector<1x1x8x144xf32>
    %84 = vector.shape_cast %83 : vector<1x1x8x144xf32> to vector<1x8x144xf32>
    %85 = vector.shape_cast %84 : vector<1x8x144xf32> to vector<8x144xf32>
    %86 = arith.truncf %85 : vector<8x144xf32> to vector<8x144xbf16>
    %c8 = arith.constant 8 : index
    %c0_56 = arith.constant 0 : index
    %c0_57 = arith.constant 0 : index
    %87 = vector.load %arg3[%c8, %c0_56, %c0_57] : memref<9x144x128xbf16, #tpu.memory_space<vmem>>, vector<1x144x128xbf16>
    %88 = vector.shape_cast %87 : vector<1x144x128xbf16> to vector<144x128xbf16>
    %cst_58 = arith.constant dense<0.000000e+00> : vector<8x128xf32>
    %89 = tpu.matmul %86, %88, %cst_58 {dimension_numbers = #tpu.dot_dimension_numbers<[1], [0], [0], [1], [0, 0, 1, 1], [], []>} : vector<8x144xbf16>, vector<144x128xbf16>, vector<8x128xf32> -> vector<8x128xf32>
    %90 = arith.addf %80, %89 : vector<8x128xf32>
    %c0_59 = arith.constant 0 : index
    %c0_60 = arith.constant 0 : index
    %91 = vector.load %arg4[%c0_59, %c0_60] : memref<1x128xf32, #tpu.memory_space<vmem>>, vector<1x128xf32>
    %92 = vector.broadcast %91 : vector<1x128xf32> to vector<8x128xf32>
    %93 = arith.addf %90, %92 : vector<8x128xf32>
    %cst_61 = arith.constant 0.000000e+00 : f32
    %94 = vector.broadcast %cst_61 : f32 to vector<8x128xf32>
    %95 = arith.cmpf oge, %93, %94 : vector<8x128xf32>
    %cst_62 = arith.constant 1.000000e-01 : f32
    %96 = vector.broadcast %cst_62 : f32 to vector<8x128xf32>
    %97 = arith.mulf %96, %93 : vector<8x128xf32>
    %98 = arith.select %95, %93, %97 : vector<8x128xi1>, vector<8x128xf32>
    %c0_63 = arith.constant 0 : index
    %c0_64 = arith.constant 0 : index
    %c0_65 = arith.constant 0 : index
    %c0_66 = arith.constant 0 : index
    %99 = vector.load %arg5[%c0_63, %c0_64, %c0_65, %c0_66] : memref<1x1x8x128xf32, #tpu.memory_space<vmem>>, vector<1x1x8x128xf32>
    %100 = vector.shape_cast %99 : vector<1x1x8x128xf32> to vector<8x128xf32>
    %101 = vector.shape_cast %98 : vector<8x128xf32> to vector<1x1x8x128xf32>
    tpu.vector_store %arg5[%c0_63, %c0_64, %c0_65, %c0_66], %101 {strides = array<i32>} : memref<1x1x8x128xf32, #tpu.memory_space<vmem>>, vector<1x1x8x128xf32>,
    return
  }
  func.func @transform_0(%arg0: i32, %arg1: i32) -> (i32, i32, i32, i32) {
    %c0_i32 = arith.constant 0 : i32
    %c0_i32_0 = arith.constant 0 : i32
    %c0_i32_1 = arith.constant 0 : i32
    %c0_i32_2 = arith.constant 0 : i32
    return %arg0, %c0_i32, %c0_i32_0, %c0_i32_1 : i32, i32, i32, i32
  }
  func.func @transform_1(%arg0: i32, %arg1: i32) -> (i32, i32, i32) {
    %c0_i32 = arith.constant 0 : i32
    %c0_i32_0 = arith.constant 0 : i32
    %c0_i32_1 = arith.constant 0 : i32
    %c0_i32_2 = arith.constant 0 : i32
    return %c0_i32, %c0_i32_0, %c0_i32_1 : i32, i32, i32
  }
  func.func @transform_2(%arg0: i32, %arg1: i32) -> (i32, i32) {
    %c0_i32 = arith.constant 0 : i32
    %c0_i32_0 = arith.constant 0 : i32
    %c0_i32_1 = arith.constant 0 : i32
    return %c0_i32, %c0_i32_0 : i32, i32
  }
  func.func @transform_3(%arg0: i32, %arg1: i32) -> (i32, i32, i32, i32) {
    %c0_i32 = arith.constant 0 : i32
    %c0_i32_0 = arith.constant 0 : i32
    %c0_i32_1 = arith.constant 0 : i32
    return %arg0, %arg1, %c0_i32, %c0_i32_0 : i32, i32, i32, i32
  }
}

module attributes {stable_mosaic.version = 11 : i64} {
  func.func @kernel(%arg0: i32, %arg1: i32, %arg2: memref<1x10x10x160xf32, #tpu.memory_space<vmem>>, %arg3: memref<9x160x128xbf16, #tpu.memory_space<vmem>>, %arg4: memref<1x128xf32, #tpu.memory_space<vmem>>, %arg5: memref<1x1x8x128xf32, #tpu.memory_space<vmem>>) attributes {dimension_semantics = [#tpu.dimension_semantics<parallel>, #tpu.dimension_semantics<parallel>], iteration_bounds = array<i64: 2, 8>, scalar_prefetch = 0 : i64, scratch_operands = 0 : i64, tpu.core_type = #tpu.core_type<tc>, window_params = [{transform_indices = @transform_0, window_bounds = array<i64: 1, 10, 10, 160>}, {pipeline_mode = #tpu.pipeline_mode<synchronous>, transform_indices = @transform_1, window_bounds = array<i64: 9, 160, 128>}, {pipeline_mode = #tpu.pipeline_mode<synchronous>, transform_indices = @transform_2, window_bounds = array<i64: 1, 128>}, {transform_indices = @transform_3, window_bounds = array<i64: 1, 1, 8, 128>}]} {
    %cst = arith.constant 0.000000e+00 : f32
    %0 = vector.broadcast %cst : f32 to vector<8x128xf32>
    %c0_i32 = arith.constant 0 : i32
    %1 = arith.addi %arg1, %c0_i32 : i32
    %c0 = arith.constant 0 : index
    %2 = arith.index_cast %1 : i32 to index
    %c0_0 = arith.constant 0 : index
    %c0_1 = arith.constant 0 : index
    %3 = vector.load %arg2[%c0, %2, %c0_0, %c0_1] : memref<1x10x10x160xf32, #tpu.memory_space<vmem>>, vector<1x1x8x160xf32>
    %4 = vector.shape_cast %3 : vector<1x1x8x160xf32> to vector<1x8x160xf32>
    %5 = vector.shape_cast %4 : vector<1x8x160xf32> to vector<8x160xf32>
    %6 = arith.truncf %5 : vector<8x160xf32> to vector<8x160xbf16>
    %c0_2 = arith.constant 0 : index
    %c0_3 = arith.constant 0 : index
    %c0_4 = arith.constant 0 : index
    %7 = vector.load %arg3[%c0_2, %c0_3, %c0_4] : memref<9x160x128xbf16, #tpu.memory_space<vmem>>, vector<1x160x128xbf16>
    %8 = vector.shape_cast %7 : vector<1x160x128xbf16> to vector<160x128xbf16>
    %cst_5 = arith.constant dense<0.000000e+00> : vector<8x128xf32>
    %9 = tpu.matmul %6, %8, %cst_5 {dimension_numbers = #tpu.dot_dimension_numbers<[1], [0], [0], [1], [0, 0, 1, 1], [], []>} : vector<8x160xbf16>, vector<160x128xbf16>, vector<8x128xf32> -> vector<8x128xf32>
    %10 = arith.addf %0, %9 : vector<8x128xf32>
    %c0_i32_6 = arith.constant 0 : i32
    %11 = arith.addi %arg1, %c0_i32_6 : i32
    %c0_7 = arith.constant 0 : index
    %12 = arith.index_cast %11 : i32 to index
    %c1 = arith.constant 1 : index
    %c0_8 = arith.constant 0 : index
    %13 = vector.load %arg2[%c0_7, %12, %c1, %c0_8] : memref<1x10x10x160xf32, #tpu.memory_space<vmem>>, vector<1x1x8x160xf32>
    %14 = vector.shape_cast %13 : vector<1x1x8x160xf32> to vector<1x8x160xf32>
    %15 = vector.shape_cast %14 : vector<1x8x160xf32> to vector<8x160xf32>
    %16 = arith.truncf %15 : vector<8x160xf32> to vector<8x160xbf16>
    %c1_9 = arith.constant 1 : index
    %c0_10 = arith.constant 0 : index
    %c0_11 = arith.constant 0 : index
    %17 = vector.load %arg3[%c1_9, %c0_10, %c0_11] : memref<9x160x128xbf16, #tpu.memory_space<vmem>>, vector<1x160x128xbf16>
    %18 = vector.shape_cast %17 : vector<1x160x128xbf16> to vector<160x128xbf16>
    %cst_12 = arith.constant dense<0.000000e+00> : vector<8x128xf32>
    %19 = tpu.matmul %16, %18, %cst_12 {dimension_numbers = #tpu.dot_dimension_numbers<[1], [0], [0], [1], [0, 0, 1, 1], [], []>} : vector<8x160xbf16>, vector<160x128xbf16>, vector<8x128xf32> -> vector<8x128xf32>
    %20 = arith.addf %10, %19 : vector<8x128xf32>
    %c0_i32_13 = arith.constant 0 : i32
    %21 = arith.addi %arg1, %c0_i32_13 : i32
    %c0_14 = arith.constant 0 : index
    %22 = arith.index_cast %21 : i32 to index
    %c2 = arith.constant 2 : index
    %c0_15 = arith.constant 0 : index
    %23 = vector.load %arg2[%c0_14, %22, %c2, %c0_15] : memref<1x10x10x160xf32, #tpu.memory_space<vmem>>, vector<1x1x8x160xf32>
    %24 = vector.shape_cast %23 : vector<1x1x8x160xf32> to vector<1x8x160xf32>
    %25 = vector.shape_cast %24 : vector<1x8x160xf32> to vector<8x160xf32>
    %26 = arith.truncf %25 : vector<8x160xf32> to vector<8x160xbf16>
    %c2_16 = arith.constant 2 : index
    %c0_17 = arith.constant 0 : index
    %c0_18 = arith.constant 0 : index
    %27 = vector.load %arg3[%c2_16, %c0_17, %c0_18] : memref<9x160x128xbf16, #tpu.memory_space<vmem>>, vector<1x160x128xbf16>
    %28 = vector.shape_cast %27 : vector<1x160x128xbf16> to vector<160x128xbf16>
    %cst_19 = arith.constant dense<0.000000e+00> : vector<8x128xf32>
    %29 = tpu.matmul %26, %28, %cst_19 {dimension_numbers = #tpu.dot_dimension_numbers<[1], [0], [0], [1], [0, 0, 1, 1], [], []>} : vector<8x160xbf16>, vector<160x128xbf16>, vector<8x128xf32> -> vector<8x128xf32>
    %30 = arith.addf %20, %29 : vector<8x128xf32>
    %c1_i32 = arith.constant 1 : i32
    %31 = arith.addi %arg1, %c1_i32 : i32
    %c0_20 = arith.constant 0 : index
    %32 = arith.index_cast %31 : i32 to index
    %c0_21 = arith.constant 0 : index
    %c0_22 = arith.constant 0 : index
    %33 = vector.load %arg2[%c0_20, %32, %c0_21, %c0_22] : memref<1x10x10x160xf32, #tpu.memory_space<vmem>>, vector<1x1x8x160xf32>
    %34 = vector.shape_cast %33 : vector<1x1x8x160xf32> to vector<1x8x160xf32>
    %35 = vector.shape_cast %34 : vector<1x8x160xf32> to vector<8x160xf32>
    %36 = arith.truncf %35 : vector<8x160xf32> to vector<8x160xbf16>
    %c3 = arith.constant 3 : index
    %c0_23 = arith.constant 0 : index
    %c0_24 = arith.constant 0 : index
    %37 = vector.load %arg3[%c3, %c0_23, %c0_24] : memref<9x160x128xbf16, #tpu.memory_space<vmem>>, vector<1x160x128xbf16>
    %38 = vector.shape_cast %37 : vector<1x160x128xbf16> to vector<160x128xbf16>
    %cst_25 = arith.constant dense<0.000000e+00> : vector<8x128xf32>
    %39 = tpu.matmul %36, %38, %cst_25 {dimension_numbers = #tpu.dot_dimension_numbers<[1], [0], [0], [1], [0, 0, 1, 1], [], []>} : vector<8x160xbf16>, vector<160x128xbf16>, vector<8x128xf32> -> vector<8x128xf32>
    %40 = arith.addf %30, %39 : vector<8x128xf32>
    %c1_i32_26 = arith.constant 1 : i32
    %41 = arith.addi %arg1, %c1_i32_26 : i32
    %c0_27 = arith.constant 0 : index
    %42 = arith.index_cast %41 : i32 to index
    %c1_28 = arith.constant 1 : index
    %c0_29 = arith.constant 0 : index
    %43 = vector.load %arg2[%c0_27, %42, %c1_28, %c0_29] : memref<1x10x10x160xf32, #tpu.memory_space<vmem>>, vector<1x1x8x160xf32>
    %44 = vector.shape_cast %43 : vector<1x1x8x160xf32> to vector<1x8x160xf32>
    %45 = vector.shape_cast %44 : vector<1x8x160xf32> to vector<8x160xf32>
    %46 = arith.truncf %45 : vector<8x160xf32> to vector<8x160xbf16>
    %c4 = arith.constant 4 : index
    %c0_30 = arith.constant 0 : index
    %c0_31 = arith.constant 0 : index
    %47 = vector.load %arg3[%c4, %c0_30, %c0_31] : memref<9x160x128xbf16, #tpu.memory_space<vmem>>, vector<1x160x128xbf16>
    %48 = vector.shape_cast %47 : vector<1x160x128xbf16> to vector<160x128xbf16>
    %cst_32 = arith.constant dense<0.000000e+00> : vector<8x128xf32>
    %49 = tpu.matmul %46, %48, %cst_32 {dimension_numbers = #tpu.dot_dimension_numbers<[1], [0], [0], [1], [0, 0, 1, 1], [], []>} : vector<8x160xbf16>, vector<160x128xbf16>, vector<8x128xf32> -> vector<8x128xf32>
    %50 = arith.addf %40, %49 : vector<8x128xf32>
    %c1_i32_33 = arith.constant 1 : i32
    %51 = arith.addi %arg1, %c1_i32_33 : i32
    %c0_34 = arith.constant 0 : index
    %52 = arith.index_cast %51 : i32 to index
    %c2_35 = arith.constant 2 : index
    %c0_36 = arith.constant 0 : index
    %53 = vector.load %arg2[%c0_34, %52, %c2_35, %c0_36] : memref<1x10x10x160xf32, #tpu.memory_space<vmem>>, vector<1x1x8x160xf32>
    %54 = vector.shape_cast %53 : vector<1x1x8x160xf32> to vector<1x8x160xf32>
    %55 = vector.shape_cast %54 : vector<1x8x160xf32> to vector<8x160xf32>
    %56 = arith.truncf %55 : vector<8x160xf32> to vector<8x160xbf16>
    %c5 = arith.constant 5 : index
    %c0_37 = arith.constant 0 : index
    %c0_38 = arith.constant 0 : index
    %57 = vector.load %arg3[%c5, %c0_37, %c0_38] : memref<9x160x128xbf16, #tpu.memory_space<vmem>>, vector<1x160x128xbf16>
    %58 = vector.shape_cast %57 : vector<1x160x128xbf16> to vector<160x128xbf16>
    %cst_39 = arith.constant dense<0.000000e+00> : vector<8x128xf32>
    %59 = tpu.matmul %56, %58, %cst_39 {dimension_numbers = #tpu.dot_dimension_numbers<[1], [0], [0], [1], [0, 0, 1, 1], [], []>} : vector<8x160xbf16>, vector<160x128xbf16>, vector<8x128xf32> -> vector<8x128xf32>
    %60 = arith.addf %50, %59 : vector<8x128xf32>
    %c2_i32 = arith.constant 2 : i32
    %61 = arith.addi %arg1, %c2_i32 : i32
    %c0_40 = arith.constant 0 : index
    %62 = arith.index_cast %61 : i32 to index
    %c0_41 = arith.constant 0 : index
    %c0_42 = arith.constant 0 : index
    %63 = vector.load %arg2[%c0_40, %62, %c0_41, %c0_42] : memref<1x10x10x160xf32, #tpu.memory_space<vmem>>, vector<1x1x8x160xf32>
    %64 = vector.shape_cast %63 : vector<1x1x8x160xf32> to vector<1x8x160xf32>
    %65 = vector.shape_cast %64 : vector<1x8x160xf32> to vector<8x160xf32>
    %66 = arith.truncf %65 : vector<8x160xf32> to vector<8x160xbf16>
    %c6 = arith.constant 6 : index
    %c0_43 = arith.constant 0 : index
    %c0_44 = arith.constant 0 : index
    %67 = vector.load %arg3[%c6, %c0_43, %c0_44] : memref<9x160x128xbf16, #tpu.memory_space<vmem>>, vector<1x160x128xbf16>
    %68 = vector.shape_cast %67 : vector<1x160x128xbf16> to vector<160x128xbf16>
    %cst_45 = arith.constant dense<0.000000e+00> : vector<8x128xf32>
    %69 = tpu.matmul %66, %68, %cst_45 {dimension_numbers = #tpu.dot_dimension_numbers<[1], [0], [0], [1], [0, 0, 1, 1], [], []>} : vector<8x160xbf16>, vector<160x128xbf16>, vector<8x128xf32> -> vector<8x128xf32>
    %70 = arith.addf %60, %69 : vector<8x128xf32>
    %c2_i32_46 = arith.constant 2 : i32
    %71 = arith.addi %arg1, %c2_i32_46 : i32
    %c0_47 = arith.constant 0 : index
    %72 = arith.index_cast %71 : i32 to index
    %c1_48 = arith.constant 1 : index
    %c0_49 = arith.constant 0 : index
    %73 = vector.load %arg2[%c0_47, %72, %c1_48, %c0_49] : memref<1x10x10x160xf32, #tpu.memory_space<vmem>>, vector<1x1x8x160xf32>
    %74 = vector.shape_cast %73 : vector<1x1x8x160xf32> to vector<1x8x160xf32>
    %75 = vector.shape_cast %74 : vector<1x8x160xf32> to vector<8x160xf32>
    %76 = arith.truncf %75 : vector<8x160xf32> to vector<8x160xbf16>
    %c7 = arith.constant 7 : index
    %c0_50 = arith.constant 0 : index
    %c0_51 = arith.constant 0 : index
    %77 = vector.load %arg3[%c7, %c0_50, %c0_51] : memref<9x160x128xbf16, #tpu.memory_space<vmem>>, vector<1x160x128xbf16>
    %78 = vector.shape_cast %77 : vector<1x160x128xbf16> to vector<160x128xbf16>
    %cst_52 = arith.constant dense<0.000000e+00> : vector<8x128xf32>
    %79 = tpu.matmul %76, %78, %cst_52 {dimension_numbers = #tpu.dot_dimension_numbers<[1], [0], [0], [1], [0, 0, 1, 1], [], []>} : vector<8x160xbf16>, vector<160x128xbf16>, vector<8x128xf32> -> vector<8x128xf32>
    %80 = arith.addf %70, %79 : vector<8x128xf32>
    %c2_i32_53 = arith.constant 2 : i32
    %81 = arith.addi %arg1, %c2_i32_53 : i32
    %c0_54 = arith.constant 0 : index
    %82 = arith.index_cast %81 : i32 to index
    %c2_55 = arith.constant 2 : index
    %c0_56 = arith.constant 0 : index
    %83 = vector.load %arg2[%c0_54, %82, %c2_55, %c0_56] : memref<1x10x10x160xf32, #tpu.memory_space<vmem>>, vector<1x1x8x160xf32>
    %84 = vector.shape_cast %83 : vector<1x1x8x160xf32> to vector<1x8x160xf32>
    %85 = vector.shape_cast %84 : vector<1x8x160xf32> to vector<8x160xf32>
    %86 = arith.truncf %85 : vector<8x160xf32> to vector<8x160xbf16>
    %c8 = arith.constant 8 : index
    %c0_57 = arith.constant 0 : index
    %c0_58 = arith.constant 0 : index
    %87 = vector.load %arg3[%c8, %c0_57, %c0_58] : memref<9x160x128xbf16, #tpu.memory_space<vmem>>, vector<1x160x128xbf16>
    %88 = vector.shape_cast %87 : vector<1x160x128xbf16> to vector<160x128xbf16>
    %cst_59 = arith.constant dense<0.000000e+00> : vector<8x128xf32>
    %89 = tpu.matmul %86, %88, %cst_59 {dimension_numbers = #tpu.dot_dimension_numbers<[1], [0], [0], [1], [0, 0, 1, 1], [], []>} : vector<8x160xbf16>, vector<160x128xbf16>, vector<8x128xf32> -> vector<8x128xf32>
    %90 = arith.addf %80, %89 : vector<8x128xf32>
    %c0_60 = arith.constant 0 : index
    %c0_61 = arith.constant 0 : index
    %91 = vector.load %arg4[%c0_60, %c0_61] : memref<1x128xf32, #tpu.memory_space<vmem>>, vector<1x128xf32>
    %92 = vector.broadcast %91 : vector<1x128xf32> to vector<8x128xf32>
    %93 = arith.addf %90, %92 : vector<8x128xf32>
    %cst_62 = arith.constant 0.000000e+00 : f32
    %94 = vector.broadcast %cst_62 : f32 to vector<8x128xf32>
    %95 = arith.cmpf oge, %93, %94 : vector<8x128xf32>
    %cst_63 = arith.constant 1.000000e-01 : f32
    %96 = vector.broadcast %cst_63 : f32 to vector<8x128xf32>
    %97 = arith.mulf %96, %93 : vector<8x128xf32>
    %98 = arith.select %95, %93, %97 : vector<8x128xi1>, vector<8x128xf32>
    %c0_64 = arith.constant 0 : index
    %c0_65 = arith.constant 0 : index
    %c0_66 = arith.constant 0 : index
    %c0_67 = arith.constant 0 : index
    %99 = vector.load %arg5[%c0_64, %c0_65, %c0_66, %c0_67] : memref<1x1x8x128xf32, #tpu.memory_space<vmem>>, vector<1x1x8x128xf32>
    %100 = vector.shape_cast %99 : vector<1x1x8x128xf32> to vector<8x128xf32>
    %101 = vector.shape_cast %98 : vector<8x128xf32> to vector<1x1x8x128xf32>
    tpu.vector_store %arg5[%c0_64, %c0_65, %c0_66, %c0_67], %101 {strides = array<i32>} : memref<1x1x8x128xf32, #tpu.memory_space<vmem>>, vector<1x1x8x128xf32>,
    return
  }
  func.func @transform_0(%arg0: i32, %arg1: i32) -> (i32, i32, i32, i32) {
    %c0_i32 = arith.constant 0 : i32
    %c0_i32_0 = arith.constant 0 : i32
    %c0_i32_1 = arith.constant 0 : i32
    %c0_i32_2 = arith.constant 0 : i32
    return %arg0, %c0_i32, %c0_i32_0, %c0_i32_1 : i32, i32, i32, i32
  }
  func.func @transform_1(%arg0: i32, %arg1: i32) -> (i32, i32, i32) {
    %c0_i32 = arith.constant 0 : i32
    %c0_i32_0 = arith.constant 0 : i32
    %c0_i32_1 = arith.constant 0 : i32
    %c0_i32_2 = arith.constant 0 : i32
    return %c0_i32, %c0_i32_0, %c0_i32_1 : i32, i32, i32
  }
  func.func @transform_2(%arg0: i32, %arg1: i32) -> (i32, i32) {
    %c0_i32 = arith.constant 0 : i32
    %c0_i32_0 = arith.constant 0 : i32
    %c0_i32_1 = arith.constant 0 : i32
    return %c0_i32, %c0_i32_0 : i32, i32
  }
  func.func @transform_3(%arg0: i32, %arg1: i32) -> (i32, i32, i32, i32) {
    %c0_i32 = arith.constant 0 : i32
    %c0_i32_0 = arith.constant 0 : i32
    %c0_i32_1 = arith.constant 0 : i32
    return %arg0, %arg1, %c0_i32, %c0_i32_0 : i32, i32, i32, i32
  }
}

module attributes {stable_mosaic.version = 11 : i64} {
  func.func @kernel(%arg0: i32, %arg1: i32, %arg2: memref<1x10x10x160xf32, #tpu.memory_space<vmem>>, %arg3: memref<9x160x128xbf16, #tpu.memory_space<vmem>>, %arg4: memref<1x128xf32, #tpu.memory_space<vmem>>, %arg5: memref<1x1x4x128xf32, #tpu.memory_space<vmem>>) attributes {dimension_semantics = [#tpu.dimension_semantics<parallel>, #tpu.dimension_semantics<parallel>], iteration_bounds = array<i64: 2, 4>, scalar_prefetch = 0 : i64, scratch_operands = 0 : i64, tpu.core_type = #tpu.core_type<tc>, window_params = [{transform_indices = @transform_0, window_bounds = array<i64: 1, 10, 10, 160>}, {pipeline_mode = #tpu.pipeline_mode<synchronous>, transform_indices = @transform_1, window_bounds = array<i64: 9, 160, 128>}, {pipeline_mode = #tpu.pipeline_mode<synchronous>, transform_indices = @transform_2, window_bounds = array<i64: 1, 128>}, {transform_indices = @transform_3, window_bounds = array<i64: 1, 1, 4, 128>}]} {
    %cst = arith.constant 0.000000e+00 : f32
    %0 = vector.broadcast %cst : f32 to vector<4x128xf32>
    %c0_i32 = arith.constant 0 : i32
    %1 = arith.addi %arg1, %c0_i32 : i32
    %c0 = arith.constant 0 : index
    %2 = arith.index_cast %1 : i32 to index
    %c0_0 = arith.constant 0 : index
    %c0_1 = arith.constant 0 : index
    %3 = vector.load %arg2[%c0, %2, %c0_0, %c0_1] : memref<1x10x10x160xf32, #tpu.memory_space<vmem>>, vector<1x1x4x160xf32>
    %4 = vector.shape_cast %3 : vector<1x1x4x160xf32> to vector<1x4x160xf32>
    %5 = vector.shape_cast %4 : vector<1x4x160xf32> to vector<4x160xf32>
    %6 = arith.truncf %5 : vector<4x160xf32> to vector<4x160xbf16>
    %c0_2 = arith.constant 0 : index
    %c0_3 = arith.constant 0 : index
    %c0_4 = arith.constant 0 : index
    %7 = vector.load %arg3[%c0_2, %c0_3, %c0_4] : memref<9x160x128xbf16, #tpu.memory_space<vmem>>, vector<1x160x128xbf16>
    %8 = vector.shape_cast %7 : vector<1x160x128xbf16> to vector<160x128xbf16>
    %cst_5 = arith.constant dense<0.000000e+00> : vector<4x128xf32>
    %9 = tpu.matmul %6, %8, %cst_5 {dimension_numbers = #tpu.dot_dimension_numbers<[1], [0], [0], [1], [0, 0, 1, 1], [], []>} : vector<4x160xbf16>, vector<160x128xbf16>, vector<4x128xf32> -> vector<4x128xf32>
    %10 = arith.addf %0, %9 : vector<4x128xf32>
    %c0_i32_6 = arith.constant 0 : i32
    %11 = arith.addi %arg1, %c0_i32_6 : i32
    %c0_7 = arith.constant 0 : index
    %12 = arith.index_cast %11 : i32 to index
    %c5 = arith.constant 5 : index
    %c0_8 = arith.constant 0 : index
    %13 = vector.load %arg2[%c0_7, %12, %c5, %c0_8] : memref<1x10x10x160xf32, #tpu.memory_space<vmem>>, vector<1x1x4x160xf32>
    %14 = vector.shape_cast %13 : vector<1x1x4x160xf32> to vector<1x4x160xf32>
    %15 = vector.shape_cast %14 : vector<1x4x160xf32> to vector<4x160xf32>
    %16 = arith.truncf %15 : vector<4x160xf32> to vector<4x160xbf16>
    %c1 = arith.constant 1 : index
    %c0_9 = arith.constant 0 : index
    %c0_10 = arith.constant 0 : index
    %17 = vector.load %arg3[%c1, %c0_9, %c0_10] : memref<9x160x128xbf16, #tpu.memory_space<vmem>>, vector<1x160x128xbf16>
    %18 = vector.shape_cast %17 : vector<1x160x128xbf16> to vector<160x128xbf16>
    %cst_11 = arith.constant dense<0.000000e+00> : vector<4x128xf32>
    %19 = tpu.matmul %16, %18, %cst_11 {dimension_numbers = #tpu.dot_dimension_numbers<[1], [0], [0], [1], [0, 0, 1, 1], [], []>} : vector<4x160xbf16>, vector<160x128xbf16>, vector<4x128xf32> -> vector<4x128xf32>
    %20 = arith.addf %10, %19 : vector<4x128xf32>
    %c0_i32_12 = arith.constant 0 : i32
    %21 = arith.addi %arg1, %c0_i32_12 : i32
    %c0_13 = arith.constant 0 : index
    %22 = arith.index_cast %21 : i32 to index
    %c1_14 = arith.constant 1 : index
    %c0_15 = arith.constant 0 : index
    %23 = vector.load %arg2[%c0_13, %22, %c1_14, %c0_15] : memref<1x10x10x160xf32, #tpu.memory_space<vmem>>, vector<1x1x4x160xf32>
    %24 = vector.shape_cast %23 : vector<1x1x4x160xf32> to vector<1x4x160xf32>
    %25 = vector.shape_cast %24 : vector<1x4x160xf32> to vector<4x160xf32>
    %26 = arith.truncf %25 : vector<4x160xf32> to vector<4x160xbf16>
    %c2 = arith.constant 2 : index
    %c0_16 = arith.constant 0 : index
    %c0_17 = arith.constant 0 : index
    %27 = vector.load %arg3[%c2, %c0_16, %c0_17] : memref<9x160x128xbf16, #tpu.memory_space<vmem>>, vector<1x160x128xbf16>
    %28 = vector.shape_cast %27 : vector<1x160x128xbf16> to vector<160x128xbf16>
    %cst_18 = arith.constant dense<0.000000e+00> : vector<4x128xf32>
    %29 = tpu.matmul %26, %28, %cst_18 {dimension_numbers = #tpu.dot_dimension_numbers<[1], [0], [0], [1], [0, 0, 1, 1], [], []>} : vector<4x160xbf16>, vector<160x128xbf16>, vector<4x128xf32> -> vector<4x128xf32>
    %30 = arith.addf %20, %29 : vector<4x128xf32>
    %c5_i32 = arith.constant 5 : i32
    %31 = arith.addi %arg1, %c5_i32 : i32
    %c0_19 = arith.constant 0 : index
    %32 = arith.index_cast %31 : i32 to index
    %c0_20 = arith.constant 0 : index
    %c0_21 = arith.constant 0 : index
    %33 = vector.load %arg2[%c0_19, %32, %c0_20, %c0_21] : memref<1x10x10x160xf32, #tpu.memory_space<vmem>>, vector<1x1x4x160xf32>
    %34 = vector.shape_cast %33 : vector<1x1x4x160xf32> to vector<1x4x160xf32>
    %35 = vector.shape_cast %34 : vector<1x4x160xf32> to vector<4x160xf32>
    %36 = arith.truncf %35 : vector<4x160xf32> to vector<4x160xbf16>
    %c3 = arith.constant 3 : index
    %c0_22 = arith.constant 0 : index
    %c0_23 = arith.constant 0 : index
    %37 = vector.load %arg3[%c3, %c0_22, %c0_23] : memref<9x160x128xbf16, #tpu.memory_space<vmem>>, vector<1x160x128xbf16>
    %38 = vector.shape_cast %37 : vector<1x160x128xbf16> to vector<160x128xbf16>
    %cst_24 = arith.constant dense<0.000000e+00> : vector<4x128xf32>
    %39 = tpu.matmul %36, %38, %cst_24 {dimension_numbers = #tpu.dot_dimension_numbers<[1], [0], [0], [1], [0, 0, 1, 1], [], []>} : vector<4x160xbf16>, vector<160x128xbf16>, vector<4x128xf32> -> vector<4x128xf32>
    %40 = arith.addf %30, %39 : vector<4x128xf32>
    %c5_i32_25 = arith.constant 5 : i32
    %41 = arith.addi %arg1, %c5_i32_25 : i32
    %c0_26 = arith.constant 0 : index
    %42 = arith.index_cast %41 : i32 to index
    %c5_27 = arith.constant 5 : index
    %c0_28 = arith.constant 0 : index
    %43 = vector.load %arg2[%c0_26, %42, %c5_27, %c0_28] : memref<1x10x10x160xf32, #tpu.memory_space<vmem>>, vector<1x1x4x160xf32>
    %44 = vector.shape_cast %43 : vector<1x1x4x160xf32> to vector<1x4x160xf32>
    %45 = vector.shape_cast %44 : vector<1x4x160xf32> to vector<4x160xf32>
    %46 = arith.truncf %45 : vector<4x160xf32> to vector<4x160xbf16>
    %c4 = arith.constant 4 : index
    %c0_29 = arith.constant 0 : index
    %c0_30 = arith.constant 0 : index
    %47 = vector.load %arg3[%c4, %c0_29, %c0_30] : memref<9x160x128xbf16, #tpu.memory_space<vmem>>, vector<1x160x128xbf16>
    %48 = vector.shape_cast %47 : vector<1x160x128xbf16> to vector<160x128xbf16>
    %cst_31 = arith.constant dense<0.000000e+00> : vector<4x128xf32>
    %49 = tpu.matmul %46, %48, %cst_31 {dimension_numbers = #tpu.dot_dimension_numbers<[1], [0], [0], [1], [0, 0, 1, 1], [], []>} : vector<4x160xbf16>, vector<160x128xbf16>, vector<4x128xf32> -> vector<4x128xf32>
    %50 = arith.addf %40, %49 : vector<4x128xf32>
    %c5_i32_32 = arith.constant 5 : i32
    %51 = arith.addi %arg1, %c5_i32_32 : i32
    %c0_33 = arith.constant 0 : index
    %52 = arith.index_cast %51 : i32 to index
    %c1_34 = arith.constant 1 : index
    %c0_35 = arith.constant 0 : index
    %53 = vector.load %arg2[%c0_33, %52, %c1_34, %c0_35] : memref<1x10x10x160xf32, #tpu.memory_space<vmem>>, vector<1x1x4x160xf32>
    %54 = vector.shape_cast %53 : vector<1x1x4x160xf32> to vector<1x4x160xf32>
    %55 = vector.shape_cast %54 : vector<1x4x160xf32> to vector<4x160xf32>
    %56 = arith.truncf %55 : vector<4x160xf32> to vector<4x160xbf16>
    %c5_36 = arith.constant 5 : index
    %c0_37 = arith.constant 0 : index
    %c0_38 = arith.constant 0 : index
    %57 = vector.load %arg3[%c5_36, %c0_37, %c0_38] : memref<9x160x128xbf16, #tpu.memory_space<vmem>>, vector<1x160x128xbf16>
    %58 = vector.shape_cast %57 : vector<1x160x128xbf16> to vector<160x128xbf16>
    %cst_39 = arith.constant dense<0.000000e+00> : vector<4x128xf32>
    %59 = tpu.matmul %56, %58, %cst_39 {dimension_numbers = #tpu.dot_dimension_numbers<[1], [0], [0], [1], [0, 0, 1, 1], [], []>} : vector<4x160xbf16>, vector<160x128xbf16>, vector<4x128xf32> -> vector<4x128xf32>
    %60 = arith.addf %50, %59 : vector<4x128xf32>
    %c1_i32 = arith.constant 1 : i32
    %61 = arith.addi %arg1, %c1_i32 : i32
    %c0_40 = arith.constant 0 : index
    %62 = arith.index_cast %61 : i32 to index
    %c0_41 = arith.constant 0 : index
    %c0_42 = arith.constant 0 : index
    %63 = vector.load %arg2[%c0_40, %62, %c0_41, %c0_42] : memref<1x10x10x160xf32, #tpu.memory_space<vmem>>, vector<1x1x4x160xf32>
    %64 = vector.shape_cast %63 : vector<1x1x4x160xf32> to vector<1x4x160xf32>
    %65 = vector.shape_cast %64 : vector<1x4x160xf32> to vector<4x160xf32>
    %66 = arith.truncf %65 : vector<4x160xf32> to vector<4x160xbf16>
    %c6 = arith.constant 6 : index
    %c0_43 = arith.constant 0 : index
    %c0_44 = arith.constant 0 : index
    %67 = vector.load %arg3[%c6, %c0_43, %c0_44] : memref<9x160x128xbf16, #tpu.memory_space<vmem>>, vector<1x160x128xbf16>
    %68 = vector.shape_cast %67 : vector<1x160x128xbf16> to vector<160x128xbf16>
    %cst_45 = arith.constant dense<0.000000e+00> : vector<4x128xf32>
    %69 = tpu.matmul %66, %68, %cst_45 {dimension_numbers = #tpu.dot_dimension_numbers<[1], [0], [0], [1], [0, 0, 1, 1], [], []>} : vector<4x160xbf16>, vector<160x128xbf16>, vector<4x128xf32> -> vector<4x128xf32>
    %70 = arith.addf %60, %69 : vector<4x128xf32>
    %c1_i32_46 = arith.constant 1 : i32
    %71 = arith.addi %arg1, %c1_i32_46 : i32
    %c0_47 = arith.constant 0 : index
    %72 = arith.index_cast %71 : i32 to index
    %c5_48 = arith.constant 5 : index
    %c0_49 = arith.constant 0 : index
    %73 = vector.load %arg2[%c0_47, %72, %c5_48, %c0_49] : memref<1x10x10x160xf32, #tpu.memory_space<vmem>>, vector<1x1x4x160xf32>
    %74 = vector.shape_cast %73 : vector<1x1x4x160xf32> to vector<1x4x160xf32>
    %75 = vector.shape_cast %74 : vector<1x4x160xf32> to vector<4x160xf32>
    %76 = arith.truncf %75 : vector<4x160xf32> to vector<4x160xbf16>
    %c7 = arith.constant 7 : index
    %c0_50 = arith.constant 0 : index
    %c0_51 = arith.constant 0 : index
    %77 = vector.load %arg3[%c7, %c0_50, %c0_51] : memref<9x160x128xbf16, #tpu.memory_space<vmem>>, vector<1x160x128xbf16>
    %78 = vector.shape_cast %77 : vector<1x160x128xbf16> to vector<160x128xbf16>
    %cst_52 = arith.constant dense<0.000000e+00> : vector<4x128xf32>
    %79 = tpu.matmul %76, %78, %cst_52 {dimension_numbers = #tpu.dot_dimension_numbers<[1], [0], [0], [1], [0, 0, 1, 1], [], []>} : vector<4x160xbf16>, vector<160x128xbf16>, vector<4x128xf32> -> vector<4x128xf32>
    %80 = arith.addf %70, %79 : vector<4x128xf32>
    %c1_i32_53 = arith.constant 1 : i32
    %81 = arith.addi %arg1, %c1_i32_53 : i32
    %c0_54 = arith.constant 0 : index
    %82 = arith.index_cast %81 : i32 to index
    %c1_55 = arith.constant 1 : index
    %c0_56 = arith.constant 0 : index
    %83 = vector.load %arg2[%c0_54, %82, %c1_55, %c0_56] : memref<1x10x10x160xf32, #tpu.memory_space<vmem>>, vector<1x1x4x160xf32>
    %84 = vector.shape_cast %83 : vector<1x1x4x160xf32> to vector<1x4x160xf32>
    %85 = vector.shape_cast %84 : vector<1x4x160xf32> to vector<4x160xf32>
    %86 = arith.truncf %85 : vector<4x160xf32> to vector<4x160xbf16>
    %c8 = arith.constant 8 : index
    %c0_57 = arith.constant 0 : index
    %c0_58 = arith.constant 0 : index
    %87 = vector.load %arg3[%c8, %c0_57, %c0_58] : memref<9x160x128xbf16, #tpu.memory_space<vmem>>, vector<1x160x128xbf16>
    %88 = vector.shape_cast %87 : vector<1x160x128xbf16> to vector<160x128xbf16>
    %cst_59 = arith.constant dense<0.000000e+00> : vector<4x128xf32>
    %89 = tpu.matmul %86, %88, %cst_59 {dimension_numbers = #tpu.dot_dimension_numbers<[1], [0], [0], [1], [0, 0, 1, 1], [], []>} : vector<4x160xbf16>, vector<160x128xbf16>, vector<4x128xf32> -> vector<4x128xf32>
    %90 = arith.addf %80, %89 : vector<4x128xf32>
    %c0_60 = arith.constant 0 : index
    %c0_61 = arith.constant 0 : index
    %91 = vector.load %arg4[%c0_60, %c0_61] : memref<1x128xf32, #tpu.memory_space<vmem>>, vector<1x128xf32>
    %92 = vector.broadcast %91 : vector<1x128xf32> to vector<4x128xf32>
    %93 = arith.addf %90, %92 : vector<4x128xf32>
    %cst_62 = arith.constant 0.000000e+00 : f32
    %94 = vector.broadcast %cst_62 : f32 to vector<4x128xf32>
    %95 = arith.cmpf oge, %93, %94 : vector<4x128xf32>
    %cst_63 = arith.constant 1.000000e-01 : f32
    %96 = vector.broadcast %cst_63 : f32 to vector<4x128xf32>
    %97 = arith.mulf %96, %93 : vector<4x128xf32>
    %98 = arith.select %95, %93, %97 : vector<4x128xi1>, vector<4x128xf32>
    %c0_64 = arith.constant 0 : index
    %c0_65 = arith.constant 0 : index
    %c0_66 = arith.constant 0 : index
    %c0_67 = arith.constant 0 : index
    %99 = vector.load %arg5[%c0_64, %c0_65, %c0_66, %c0_67] : memref<1x1x4x128xf32, #tpu.memory_space<vmem>>, vector<1x1x4x128xf32>
    %100 = vector.shape_cast %99 : vector<1x1x4x128xf32> to vector<4x128xf32>
    %101 = vector.shape_cast %98 : vector<4x128xf32> to vector<1x1x4x128xf32>
    tpu.vector_store %arg5[%c0_64, %c0_65, %c0_66, %c0_67], %101 {strides = array<i32>} : memref<1x1x4x128xf32, #tpu.memory_space<vmem>>, vector<1x1x4x128xf32>,
    return
  }
  func.func @transform_0(%arg0: i32, %arg1: i32) -> (i32, i32, i32, i32) {
    %c0_i32 = arith.constant 0 : i32
    %c0_i32_0 = arith.constant 0 : i32
    %c0_i32_1 = arith.constant 0 : i32
    %c0_i32_2 = arith.constant 0 : i32
    return %arg0, %c0_i32, %c0_i32_0, %c0_i32_1 : i32, i32, i32, i32
  }
  func.func @transform_1(%arg0: i32, %arg1: i32) -> (i32, i32, i32) {
    %c0_i32 = arith.constant 0 : i32
    %c0_i32_0 = arith.constant 0 : i32
    %c0_i32_1 = arith.constant 0 : i32
    %c0_i32_2 = arith.constant 0 : i32
    return %c0_i32, %c0_i32_0, %c0_i32_1 : i32, i32, i32
  }
  func.func @transform_2(%arg0: i32, %arg1: i32) -> (i32, i32) {
    %c0_i32 = arith.constant 0 : i32
    %c0_i32_0 = arith.constant 0 : i32
    %c0_i32_1 = arith.constant 0 : i32
    return %c0_i32, %c0_i32_0 : i32, i32
  }
  func.func @transform_3(%arg0: i32, %arg1: i32) -> (i32, i32, i32, i32) {
    %c0_i32 = arith.constant 0 : i32
    %c0_i32_0 = arith.constant 0 : i32
    %c0_i32_1 = arith.constant 0 : i32
    return %arg0, %arg1, %c0_i32, %c0_i32_0 : i32, i32, i32, i32
  }
}

module attributes {stable_mosaic.version = 11 : i64} {
  func.func @kernel(%arg0: i32, %arg1: i32, %arg2: memref<1x6x6x192xf32, #tpu.memory_space<vmem>>, %arg3: memref<9x192x128xbf16, #tpu.memory_space<vmem>>, %arg4: memref<1x128xf32, #tpu.memory_space<vmem>>, %arg5: memref<1x1x4x128xf32, #tpu.memory_space<vmem>>) attributes {dimension_semantics = [#tpu.dimension_semantics<parallel>, #tpu.dimension_semantics<parallel>], iteration_bounds = array<i64: 2, 4>, scalar_prefetch = 0 : i64, scratch_operands = 0 : i64, tpu.core_type = #tpu.core_type<tc>, window_params = [{transform_indices = @transform_0, window_bounds = array<i64: 1, 6, 6, 192>}, {pipeline_mode = #tpu.pipeline_mode<synchronous>, transform_indices = @transform_1, window_bounds = array<i64: 9, 192, 128>}, {pipeline_mode = #tpu.pipeline_mode<synchronous>, transform_indices = @transform_2, window_bounds = array<i64: 1, 128>}, {transform_indices = @transform_3, window_bounds = array<i64: 1, 1, 4, 128>}]} {
    %cst = arith.constant 0.000000e+00 : f32
    %0 = vector.broadcast %cst : f32 to vector<4x128xf32>
    %c0_i32 = arith.constant 0 : i32
    %1 = arith.addi %arg1, %c0_i32 : i32
    %c0 = arith.constant 0 : index
    %2 = arith.index_cast %1 : i32 to index
    %c0_0 = arith.constant 0 : index
    %c0_1 = arith.constant 0 : index
    %3 = vector.load %arg2[%c0, %2, %c0_0, %c0_1] : memref<1x6x6x192xf32, #tpu.memory_space<vmem>>, vector<1x1x4x192xf32>
    %4 = vector.shape_cast %3 : vector<1x1x4x192xf32> to vector<1x4x192xf32>
    %5 = vector.shape_cast %4 : vector<1x4x192xf32> to vector<4x192xf32>
    %6 = arith.truncf %5 : vector<4x192xf32> to vector<4x192xbf16>
    %c0_2 = arith.constant 0 : index
    %c0_3 = arith.constant 0 : index
    %c0_4 = arith.constant 0 : index
    %7 = vector.load %arg3[%c0_2, %c0_3, %c0_4] : memref<9x192x128xbf16, #tpu.memory_space<vmem>>, vector<1x192x128xbf16>
    %8 = vector.shape_cast %7 : vector<1x192x128xbf16> to vector<192x128xbf16>
    %cst_5 = arith.constant dense<0.000000e+00> : vector<4x128xf32>
    %9 = tpu.matmul %6, %8, %cst_5 {dimension_numbers = #tpu.dot_dimension_numbers<[1], [0], [0], [1], [0, 0, 1, 1], [], []>} : vector<4x192xbf16>, vector<192x128xbf16>, vector<4x128xf32> -> vector<4x128xf32>
    %10 = arith.addf %0, %9 : vector<4x128xf32>
    %c0_i32_6 = arith.constant 0 : i32
    %11 = arith.addi %arg1, %c0_i32_6 : i32
    %c0_7 = arith.constant 0 : index
    %12 = arith.index_cast %11 : i32 to index
    %c1 = arith.constant 1 : index
    %c0_8 = arith.constant 0 : index
    %13 = vector.load %arg2[%c0_7, %12, %c1, %c0_8] : memref<1x6x6x192xf32, #tpu.memory_space<vmem>>, vector<1x1x4x192xf32>
    %14 = vector.shape_cast %13 : vector<1x1x4x192xf32> to vector<1x4x192xf32>
    %15 = vector.shape_cast %14 : vector<1x4x192xf32> to vector<4x192xf32>
    %16 = arith.truncf %15 : vector<4x192xf32> to vector<4x192xbf16>
    %c1_9 = arith.constant 1 : index
    %c0_10 = arith.constant 0 : index
    %c0_11 = arith.constant 0 : index
    %17 = vector.load %arg3[%c1_9, %c0_10, %c0_11] : memref<9x192x128xbf16, #tpu.memory_space<vmem>>, vector<1x192x128xbf16>
    %18 = vector.shape_cast %17 : vector<1x192x128xbf16> to vector<192x128xbf16>
    %cst_12 = arith.constant dense<0.000000e+00> : vector<4x128xf32>
    %19 = tpu.matmul %16, %18, %cst_12 {dimension_numbers = #tpu.dot_dimension_numbers<[1], [0], [0], [1], [0, 0, 1, 1], [], []>} : vector<4x192xbf16>, vector<192x128xbf16>, vector<4x128xf32> -> vector<4x128xf32>
    %20 = arith.addf %10, %19 : vector<4x128xf32>
    %c0_i32_13 = arith.constant 0 : i32
    %21 = arith.addi %arg1, %c0_i32_13 : i32
    %c0_14 = arith.constant 0 : index
    %22 = arith.index_cast %21 : i32 to index
    %c2 = arith.constant 2 : index
    %c0_15 = arith.constant 0 : index
    %23 = vector.load %arg2[%c0_14, %22, %c2, %c0_15] : memref<1x6x6x192xf32, #tpu.memory_space<vmem>>, vector<1x1x4x192xf32>
    %24 = vector.shape_cast %23 : vector<1x1x4x192xf32> to vector<1x4x192xf32>
    %25 = vector.shape_cast %24 : vector<1x4x192xf32> to vector<4x192xf32>
    %26 = arith.truncf %25 : vector<4x192xf32> to vector<4x192xbf16>
    %c2_16 = arith.constant 2 : index
    %c0_17 = arith.constant 0 : index
    %c0_18 = arith.constant 0 : index
    %27 = vector.load %arg3[%c2_16, %c0_17, %c0_18] : memref<9x192x128xbf16, #tpu.memory_space<vmem>>, vector<1x192x128xbf16>
    %28 = vector.shape_cast %27 : vector<1x192x128xbf16> to vector<192x128xbf16>
    %cst_19 = arith.constant dense<0.000000e+00> : vector<4x128xf32>
    %29 = tpu.matmul %26, %28, %cst_19 {dimension_numbers = #tpu.dot_dimension_numbers<[1], [0], [0], [1], [0, 0, 1, 1], [], []>} : vector<4x192xbf16>, vector<192x128xbf16>, vector<4x128xf32> -> vector<4x128xf32>
    %30 = arith.addf %20, %29 : vector<4x128xf32>
    %c1_i32 = arith.constant 1 : i32
    %31 = arith.addi %arg1, %c1_i32 : i32
    %c0_20 = arith.constant 0 : index
    %32 = arith.index_cast %31 : i32 to index
    %c0_21 = arith.constant 0 : index
    %c0_22 = arith.constant 0 : index
    %33 = vector.load %arg2[%c0_20, %32, %c0_21, %c0_22] : memref<1x6x6x192xf32, #tpu.memory_space<vmem>>, vector<1x1x4x192xf32>
    %34 = vector.shape_cast %33 : vector<1x1x4x192xf32> to vector<1x4x192xf32>
    %35 = vector.shape_cast %34 : vector<1x4x192xf32> to vector<4x192xf32>
    %36 = arith.truncf %35 : vector<4x192xf32> to vector<4x192xbf16>
    %c3 = arith.constant 3 : index
    %c0_23 = arith.constant 0 : index
    %c0_24 = arith.constant 0 : index
    %37 = vector.load %arg3[%c3, %c0_23, %c0_24] : memref<9x192x128xbf16, #tpu.memory_space<vmem>>, vector<1x192x128xbf16>
    %38 = vector.shape_cast %37 : vector<1x192x128xbf16> to vector<192x128xbf16>
    %cst_25 = arith.constant dense<0.000000e+00> : vector<4x128xf32>
    %39 = tpu.matmul %36, %38, %cst_25 {dimension_numbers = #tpu.dot_dimension_numbers<[1], [0], [0], [1], [0, 0, 1, 1], [], []>} : vector<4x192xbf16>, vector<192x128xbf16>, vector<4x128xf32> -> vector<4x128xf32>
    %40 = arith.addf %30, %39 : vector<4x128xf32>
    %c1_i32_26 = arith.constant 1 : i32
    %41 = arith.addi %arg1, %c1_i32_26 : i32
    %c0_27 = arith.constant 0 : index
    %42 = arith.index_cast %41 : i32 to index
    %c1_28 = arith.constant 1 : index
    %c0_29 = arith.constant 0 : index
    %43 = vector.load %arg2[%c0_27, %42, %c1_28, %c0_29] : memref<1x6x6x192xf32, #tpu.memory_space<vmem>>, vector<1x1x4x192xf32>
    %44 = vector.shape_cast %43 : vector<1x1x4x192xf32> to vector<1x4x192xf32>
    %45 = vector.shape_cast %44 : vector<1x4x192xf32> to vector<4x192xf32>
    %46 = arith.truncf %45 : vector<4x192xf32> to vector<4x192xbf16>
    %c4 = arith.constant 4 : index
    %c0_30 = arith.constant 0 : index
    %c0_31 = arith.constant 0 : index
    %47 = vector.load %arg3[%c4, %c0_30, %c0_31] : memref<9x192x128xbf16, #tpu.memory_space<vmem>>, vector<1x192x128xbf16>
    %48 = vector.shape_cast %47 : vector<1x192x128xbf16> to vector<192x128xbf16>
    %cst_32 = arith.constant dense<0.000000e+00> : vector<4x128xf32>
    %49 = tpu.matmul %46, %48, %cst_32 {dimension_numbers = #tpu.dot_dimension_numbers<[1], [0], [0], [1], [0, 0, 1, 1], [], []>} : vector<4x192xbf16>, vector<192x128xbf16>, vector<4x128xf32> -> vector<4x128xf32>
    %50 = arith.addf %40, %49 : vector<4x128xf32>
    %c1_i32_33 = arith.constant 1 : i32
    %51 = arith.addi %arg1, %c1_i32_33 : i32
    %c0_34 = arith.constant 0 : index
    %52 = arith.index_cast %51 : i32 to index
    %c2_35 = arith.constant 2 : index
    %c0_36 = arith.constant 0 : index
    %53 = vector.load %arg2[%c0_34, %52, %c2_35, %c0_36] : memref<1x6x6x192xf32, #tpu.memory_space<vmem>>, vector<1x1x4x192xf32>
    %54 = vector.shape_cast %53 : vector<1x1x4x192xf32> to vector<1x4x192xf32>
    %55 = vector.shape_cast %54 : vector<1x4x192xf32> to vector<4x192xf32>
    %56 = arith.truncf %55 : vector<4x192xf32> to vector<4x192xbf16>
    %c5 = arith.constant 5 : index
    %c0_37 = arith.constant 0 : index
    %c0_38 = arith.constant 0 : index
    %57 = vector.load %arg3[%c5, %c0_37, %c0_38] : memref<9x192x128xbf16, #tpu.memory_space<vmem>>, vector<1x192x128xbf16>
    %58 = vector.shape_cast %57 : vector<1x192x128xbf16> to vector<192x128xbf16>
    %cst_39 = arith.constant dense<0.000000e+00> : vector<4x128xf32>
    %59 = tpu.matmul %56, %58, %cst_39 {dimension_numbers = #tpu.dot_dimension_numbers<[1], [0], [0], [1], [0, 0, 1, 1], [], []>} : vector<4x192xbf16>, vector<192x128xbf16>, vector<4x128xf32> -> vector<4x128xf32>
    %60 = arith.addf %50, %59 : vector<4x128xf32>
    %c2_i32 = arith.constant 2 : i32
    %61 = arith.addi %arg1, %c2_i32 : i32
    %c0_40 = arith.constant 0 : index
    %62 = arith.index_cast %61 : i32 to index
    %c0_41 = arith.constant 0 : index
    %c0_42 = arith.constant 0 : index
    %63 = vector.load %arg2[%c0_40, %62, %c0_41, %c0_42] : memref<1x6x6x192xf32, #tpu.memory_space<vmem>>, vector<1x1x4x192xf32>
    %64 = vector.shape_cast %63 : vector<1x1x4x192xf32> to vector<1x4x192xf32>
    %65 = vector.shape_cast %64 : vector<1x4x192xf32> to vector<4x192xf32>
    %66 = arith.truncf %65 : vector<4x192xf32> to vector<4x192xbf16>
    %c6 = arith.constant 6 : index
    %c0_43 = arith.constant 0 : index
    %c0_44 = arith.constant 0 : index
    %67 = vector.load %arg3[%c6, %c0_43, %c0_44] : memref<9x192x128xbf16, #tpu.memory_space<vmem>>, vector<1x192x128xbf16>
    %68 = vector.shape_cast %67 : vector<1x192x128xbf16> to vector<192x128xbf16>
    %cst_45 = arith.constant dense<0.000000e+00> : vector<4x128xf32>
    %69 = tpu.matmul %66, %68, %cst_45 {dimension_numbers = #tpu.dot_dimension_numbers<[1], [0], [0], [1], [0, 0, 1, 1], [], []>} : vector<4x192xbf16>, vector<192x128xbf16>, vector<4x128xf32> -> vector<4x128xf32>
    %70 = arith.addf %60, %69 : vector<4x128xf32>
    %c2_i32_46 = arith.constant 2 : i32
    %71 = arith.addi %arg1, %c2_i32_46 : i32
    %c0_47 = arith.constant 0 : index
    %72 = arith.index_cast %71 : i32 to index
    %c1_48 = arith.constant 1 : index
    %c0_49 = arith.constant 0 : index
    %73 = vector.load %arg2[%c0_47, %72, %c1_48, %c0_49] : memref<1x6x6x192xf32, #tpu.memory_space<vmem>>, vector<1x1x4x192xf32>
    %74 = vector.shape_cast %73 : vector<1x1x4x192xf32> to vector<1x4x192xf32>
    %75 = vector.shape_cast %74 : vector<1x4x192xf32> to vector<4x192xf32>
    %76 = arith.truncf %75 : vector<4x192xf32> to vector<4x192xbf16>
    %c7 = arith.constant 7 : index
    %c0_50 = arith.constant 0 : index
    %c0_51 = arith.constant 0 : index
    %77 = vector.load %arg3[%c7, %c0_50, %c0_51] : memref<9x192x128xbf16, #tpu.memory_space<vmem>>, vector<1x192x128xbf16>
    %78 = vector.shape_cast %77 : vector<1x192x128xbf16> to vector<192x128xbf16>
    %cst_52 = arith.constant dense<0.000000e+00> : vector<4x128xf32>
    %79 = tpu.matmul %76, %78, %cst_52 {dimension_numbers = #tpu.dot_dimension_numbers<[1], [0], [0], [1], [0, 0, 1, 1], [], []>} : vector<4x192xbf16>, vector<192x128xbf16>, vector<4x128xf32> -> vector<4x128xf32>
    %80 = arith.addf %70, %79 : vector<4x128xf32>
    %c2_i32_53 = arith.constant 2 : i32
    %81 = arith.addi %arg1, %c2_i32_53 : i32
    %c0_54 = arith.constant 0 : index
    %82 = arith.index_cast %81 : i32 to index
    %c2_55 = arith.constant 2 : index
    %c0_56 = arith.constant 0 : index
    %83 = vector.load %arg2[%c0_54, %82, %c2_55, %c0_56] : memref<1x6x6x192xf32, #tpu.memory_space<vmem>>, vector<1x1x4x192xf32>
    %84 = vector.shape_cast %83 : vector<1x1x4x192xf32> to vector<1x4x192xf32>
    %85 = vector.shape_cast %84 : vector<1x4x192xf32> to vector<4x192xf32>
    %86 = arith.truncf %85 : vector<4x192xf32> to vector<4x192xbf16>
    %c8 = arith.constant 8 : index
    %c0_57 = arith.constant 0 : index
    %c0_58 = arith.constant 0 : index
    %87 = vector.load %arg3[%c8, %c0_57, %c0_58] : memref<9x192x128xbf16, #tpu.memory_space<vmem>>, vector<1x192x128xbf16>
    %88 = vector.shape_cast %87 : vector<1x192x128xbf16> to vector<192x128xbf16>
    %cst_59 = arith.constant dense<0.000000e+00> : vector<4x128xf32>
    %89 = tpu.matmul %86, %88, %cst_59 {dimension_numbers = #tpu.dot_dimension_numbers<[1], [0], [0], [1], [0, 0, 1, 1], [], []>} : vector<4x192xbf16>, vector<192x128xbf16>, vector<4x128xf32> -> vector<4x128xf32>
    %90 = arith.addf %80, %89 : vector<4x128xf32>
    %c0_60 = arith.constant 0 : index
    %c0_61 = arith.constant 0 : index
    %91 = vector.load %arg4[%c0_60, %c0_61] : memref<1x128xf32, #tpu.memory_space<vmem>>, vector<1x128xf32>
    %92 = vector.broadcast %91 : vector<1x128xf32> to vector<4x128xf32>
    %93 = arith.addf %90, %92 : vector<4x128xf32>
    %cst_62 = arith.constant 0.000000e+00 : f32
    %94 = vector.broadcast %cst_62 : f32 to vector<4x128xf32>
    %95 = arith.cmpf oge, %93, %94 : vector<4x128xf32>
    %cst_63 = arith.constant 1.000000e-01 : f32
    %96 = vector.broadcast %cst_63 : f32 to vector<4x128xf32>
    %97 = arith.mulf %96, %93 : vector<4x128xf32>
    %98 = arith.select %95, %93, %97 : vector<4x128xi1>, vector<4x128xf32>
    %c0_64 = arith.constant 0 : index
    %c0_65 = arith.constant 0 : index
    %c0_66 = arith.constant 0 : index
    %c0_67 = arith.constant 0 : index
    %99 = vector.load %arg5[%c0_64, %c0_65, %c0_66, %c0_67] : memref<1x1x4x128xf32, #tpu.memory_space<vmem>>, vector<1x1x4x128xf32>
    %100 = vector.shape_cast %99 : vector<1x1x4x128xf32> to vector<4x128xf32>
    %101 = vector.shape_cast %98 : vector<4x128xf32> to vector<1x1x4x128xf32>
    tpu.vector_store %arg5[%c0_64, %c0_65, %c0_66, %c0_67], %101 {strides = array<i32>} : memref<1x1x4x128xf32, #tpu.memory_space<vmem>>, vector<1x1x4x128xf32>,
    return
  }
  func.func @transform_0(%arg0: i32, %arg1: i32) -> (i32, i32, i32, i32) {
    %c0_i32 = arith.constant 0 : i32
    %c0_i32_0 = arith.constant 0 : i32
    %c0_i32_1 = arith.constant 0 : i32
    %c0_i32_2 = arith.constant 0 : i32
    return %arg0, %c0_i32, %c0_i32_0, %c0_i32_1 : i32, i32, i32, i32
  }
  func.func @transform_1(%arg0: i32, %arg1: i32) -> (i32, i32, i32) {
    %c0_i32 = arith.constant 0 : i32
    %c0_i32_0 = arith.constant 0 : i32
    %c0_i32_1 = arith.constant 0 : i32
    %c0_i32_2 = arith.constant 0 : i32
    return %c0_i32, %c0_i32_0, %c0_i32_1 : i32, i32, i32
  }
  func.func @transform_2(%arg0: i32, %arg1: i32) -> (i32, i32) {
    %c0_i32 = arith.constant 0 : i32
    %c0_i32_0 = arith.constant 0 : i32
    %c0_i32_1 = arith.constant 0 : i32
    return %c0_i32, %c0_i32_0 : i32, i32
  }
  func.func @transform_3(%arg0: i32, %arg1: i32) -> (i32, i32, i32, i32) {
    %c0_i32 = arith.constant 0 : i32
    %c0_i32_0 = arith.constant 0 : i32
    %c0_i32_1 = arith.constant 0 : i32
    return %arg0, %arg1, %c0_i32, %c0_i32_0 : i32, i32, i32, i32
  }
}

module attributes {stable_mosaic.version = 11 : i64} {
  func.func @kernel(%arg0: i32, %arg1: i32, %arg2: memref<1x6x6x192xf32, #tpu.memory_space<vmem>>, %arg3: memref<9x192x128xbf16, #tpu.memory_space<vmem>>, %arg4: memref<1x128xf32, #tpu.memory_space<vmem>>, %arg5: memref<1x1x2x128xf32, #tpu.memory_space<vmem>>) attributes {dimension_semantics = [#tpu.dimension_semantics<parallel>, #tpu.dimension_semantics<parallel>], iteration_bounds = array<i64: 2, 2>, scalar_prefetch = 0 : i64, scratch_operands = 0 : i64, tpu.core_type = #tpu.core_type<tc>, window_params = [{transform_indices = @transform_0, window_bounds = array<i64: 1, 6, 6, 192>}, {pipeline_mode = #tpu.pipeline_mode<synchronous>, transform_indices = @transform_1, window_bounds = array<i64: 9, 192, 128>}, {pipeline_mode = #tpu.pipeline_mode<synchronous>, transform_indices = @transform_2, window_bounds = array<i64: 1, 128>}, {transform_indices = @transform_3, window_bounds = array<i64: 1, 1, 2, 128>}]} {
    %cst = arith.constant 0.000000e+00 : f32
    %0 = vector.broadcast %cst : f32 to vector<2x128xf32>
    %c0_i32 = arith.constant 0 : i32
    %1 = arith.addi %arg1, %c0_i32 : i32
    %c0 = arith.constant 0 : index
    %2 = arith.index_cast %1 : i32 to index
    %c0_0 = arith.constant 0 : index
    %c0_1 = arith.constant 0 : index
    %3 = vector.load %arg2[%c0, %2, %c0_0, %c0_1] : memref<1x6x6x192xf32, #tpu.memory_space<vmem>>, vector<1x1x2x192xf32>
    %4 = vector.shape_cast %3 : vector<1x1x2x192xf32> to vector<1x2x192xf32>
    %5 = vector.shape_cast %4 : vector<1x2x192xf32> to vector<2x192xf32>
    %6 = arith.truncf %5 : vector<2x192xf32> to vector<2x192xbf16>
    %c0_2 = arith.constant 0 : index
    %c0_3 = arith.constant 0 : index
    %c0_4 = arith.constant 0 : index
    %7 = vector.load %arg3[%c0_2, %c0_3, %c0_4] : memref<9x192x128xbf16, #tpu.memory_space<vmem>>, vector<1x192x128xbf16>
    %8 = vector.shape_cast %7 : vector<1x192x128xbf16> to vector<192x128xbf16>
    %cst_5 = arith.constant dense<0.000000e+00> : vector<2x128xf32>
    %9 = tpu.matmul %6, %8, %cst_5 {dimension_numbers = #tpu.dot_dimension_numbers<[1], [0], [0], [1], [0, 0, 1, 1], [], []>} : vector<2x192xbf16>, vector<192x128xbf16>, vector<2x128xf32> -> vector<2x128xf32>
    %10 = arith.addf %0, %9 : vector<2x128xf32>
    %c0_i32_6 = arith.constant 0 : i32
    %11 = arith.addi %arg1, %c0_i32_6 : i32
    %c0_7 = arith.constant 0 : index
    %12 = arith.index_cast %11 : i32 to index
    %c3 = arith.constant 3 : index
    %c0_8 = arith.constant 0 : index
    %13 = vector.load %arg2[%c0_7, %12, %c3, %c0_8] : memref<1x6x6x192xf32, #tpu.memory_space<vmem>>, vector<1x1x2x192xf32>
    %14 = vector.shape_cast %13 : vector<1x1x2x192xf32> to vector<1x2x192xf32>
    %15 = vector.shape_cast %14 : vector<1x2x192xf32> to vector<2x192xf32>
    %16 = arith.truncf %15 : vector<2x192xf32> to vector<2x192xbf16>
    %c1 = arith.constant 1 : index
    %c0_9 = arith.constant 0 : index
    %c0_10 = arith.constant 0 : index
    %17 = vector.load %arg3[%c1, %c0_9, %c0_10] : memref<9x192x128xbf16, #tpu.memory_space<vmem>>, vector<1x192x128xbf16>
    %18 = vector.shape_cast %17 : vector<1x192x128xbf16> to vector<192x128xbf16>
    %cst_11 = arith.constant dense<0.000000e+00> : vector<2x128xf32>
    %19 = tpu.matmul %16, %18, %cst_11 {dimension_numbers = #tpu.dot_dimension_numbers<[1], [0], [0], [1], [0, 0, 1, 1], [], []>} : vector<2x192xbf16>, vector<192x128xbf16>, vector<2x128xf32> -> vector<2x128xf32>
    %20 = arith.addf %10, %19 : vector<2x128xf32>
    %c0_i32_12 = arith.constant 0 : i32
    %21 = arith.addi %arg1, %c0_i32_12 : i32
    %c0_13 = arith.constant 0 : index
    %22 = arith.index_cast %21 : i32 to index
    %c1_14 = arith.constant 1 : index
    %c0_15 = arith.constant 0 : index
    %23 = vector.load %arg2[%c0_13, %22, %c1_14, %c0_15] : memref<1x6x6x192xf32, #tpu.memory_space<vmem>>, vector<1x1x2x192xf32>
    %24 = vector.shape_cast %23 : vector<1x1x2x192xf32> to vector<1x2x192xf32>
    %25 = vector.shape_cast %24 : vector<1x2x192xf32> to vector<2x192xf32>
    %26 = arith.truncf %25 : vector<2x192xf32> to vector<2x192xbf16>
    %c2 = arith.constant 2 : index
    %c0_16 = arith.constant 0 : index
    %c0_17 = arith.constant 0 : index
    %27 = vector.load %arg3[%c2, %c0_16, %c0_17] : memref<9x192x128xbf16, #tpu.memory_space<vmem>>, vector<1x192x128xbf16>
    %28 = vector.shape_cast %27 : vector<1x192x128xbf16> to vector<192x128xbf16>
    %cst_18 = arith.constant dense<0.000000e+00> : vector<2x128xf32>
    %29 = tpu.matmul %26, %28, %cst_18 {dimension_numbers = #tpu.dot_dimension_numbers<[1], [0], [0], [1], [0, 0, 1, 1], [], []>} : vector<2x192xbf16>, vector<192x128xbf16>, vector<2x128xf32> -> vector<2x128xf32>
    %30 = arith.addf %20, %29 : vector<2x128xf32>
    %c3_i32 = arith.constant 3 : i32
    %31 = arith.addi %arg1, %c3_i32 : i32
    %c0_19 = arith.constant 0 : index
    %32 = arith.index_cast %31 : i32 to index
    %c0_20 = arith.constant 0 : index
    %c0_21 = arith.constant 0 : index
    %33 = vector.load %arg2[%c0_19, %32, %c0_20, %c0_21] : memref<1x6x6x192xf32, #tpu.memory_space<vmem>>, vector<1x1x2x192xf32>
    %34 = vector.shape_cast %33 : vector<1x1x2x192xf32> to vector<1x2x192xf32>
    %35 = vector.shape_cast %34 : vector<1x2x192xf32> to vector<2x192xf32>
    %36 = arith.truncf %35 : vector<2x192xf32> to vector<2x192xbf16>
    %c3_22 = arith.constant 3 : index
    %c0_23 = arith.constant 0 : index
    %c0_24 = arith.constant 0 : index
    %37 = vector.load %arg3[%c3_22, %c0_23, %c0_24] : memref<9x192x128xbf16, #tpu.memory_space<vmem>>, vector<1x192x128xbf16>
    %38 = vector.shape_cast %37 : vector<1x192x128xbf16> to vector<192x128xbf16>
    %cst_25 = arith.constant dense<0.000000e+00> : vector<2x128xf32>
    %39 = tpu.matmul %36, %38, %cst_25 {dimension_numbers = #tpu.dot_dimension_numbers<[1], [0], [0], [1], [0, 0, 1, 1], [], []>} : vector<2x192xbf16>, vector<192x128xbf16>, vector<2x128xf32> -> vector<2x128xf32>
    %40 = arith.addf %30, %39 : vector<2x128xf32>
    %c3_i32_26 = arith.constant 3 : i32
    %41 = arith.addi %arg1, %c3_i32_26 : i32
    %c0_27 = arith.constant 0 : index
    %42 = arith.index_cast %41 : i32 to index
    %c3_28 = arith.constant 3 : index
    %c0_29 = arith.constant 0 : index
    %43 = vector.load %arg2[%c0_27, %42, %c3_28, %c0_29] : memref<1x6x6x192xf32, #tpu.memory_space<vmem>>, vector<1x1x2x192xf32>
    %44 = vector.shape_cast %43 : vector<1x1x2x192xf32> to vector<1x2x192xf32>
    %45 = vector.shape_cast %44 : vector<1x2x192xf32> to vector<2x192xf32>
    %46 = arith.truncf %45 : vector<2x192xf32> to vector<2x192xbf16>
    %c4 = arith.constant 4 : index
    %c0_30 = arith.constant 0 : index
    %c0_31 = arith.constant 0 : index
    %47 = vector.load %arg3[%c4, %c0_30, %c0_31] : memref<9x192x128xbf16, #tpu.memory_space<vmem>>, vector<1x192x128xbf16>
    %48 = vector.shape_cast %47 : vector<1x192x128xbf16> to vector<192x128xbf16>
    %cst_32 = arith.constant dense<0.000000e+00> : vector<2x128xf32>
    %49 = tpu.matmul %46, %48, %cst_32 {dimension_numbers = #tpu.dot_dimension_numbers<[1], [0], [0], [1], [0, 0, 1, 1], [], []>} : vector<2x192xbf16>, vector<192x128xbf16>, vector<2x128xf32> -> vector<2x128xf32>
    %50 = arith.addf %40, %49 : vector<2x128xf32>
    %c3_i32_33 = arith.constant 3 : i32
    %51 = arith.addi %arg1, %c3_i32_33 : i32
    %c0_34 = arith.constant 0 : index
    %52 = arith.index_cast %51 : i32 to index
    %c1_35 = arith.constant 1 : index
    %c0_36 = arith.constant 0 : index
    %53 = vector.load %arg2[%c0_34, %52, %c1_35, %c0_36] : memref<1x6x6x192xf32, #tpu.memory_space<vmem>>, vector<1x1x2x192xf32>
    %54 = vector.shape_cast %53 : vector<1x1x2x192xf32> to vector<1x2x192xf32>
    %55 = vector.shape_cast %54 : vector<1x2x192xf32> to vector<2x192xf32>
    %56 = arith.truncf %55 : vector<2x192xf32> to vector<2x192xbf16>
    %c5 = arith.constant 5 : index
    %c0_37 = arith.constant 0 : index
    %c0_38 = arith.constant 0 : index
    %57 = vector.load %arg3[%c5, %c0_37, %c0_38] : memref<9x192x128xbf16, #tpu.memory_space<vmem>>, vector<1x192x128xbf16>
    %58 = vector.shape_cast %57 : vector<1x192x128xbf16> to vector<192x128xbf16>
    %cst_39 = arith.constant dense<0.000000e+00> : vector<2x128xf32>
    %59 = tpu.matmul %56, %58, %cst_39 {dimension_numbers = #tpu.dot_dimension_numbers<[1], [0], [0], [1], [0, 0, 1, 1], [], []>} : vector<2x192xbf16>, vector<192x128xbf16>, vector<2x128xf32> -> vector<2x128xf32>
    %60 = arith.addf %50, %59 : vector<2x128xf32>
    %c1_i32 = arith.constant 1 : i32
    %61 = arith.addi %arg1, %c1_i32 : i32
    %c0_40 = arith.constant 0 : index
    %62 = arith.index_cast %61 : i32 to index
    %c0_41 = arith.constant 0 : index
    %c0_42 = arith.constant 0 : index
    %63 = vector.load %arg2[%c0_40, %62, %c0_41, %c0_42] : memref<1x6x6x192xf32, #tpu.memory_space<vmem>>, vector<1x1x2x192xf32>
    %64 = vector.shape_cast %63 : vector<1x1x2x192xf32> to vector<1x2x192xf32>
    %65 = vector.shape_cast %64 : vector<1x2x192xf32> to vector<2x192xf32>
    %66 = arith.truncf %65 : vector<2x192xf32> to vector<2x192xbf16>
    %c6 = arith.constant 6 : index
    %c0_43 = arith.constant 0 : index
    %c0_44 = arith.constant 0 : index
    %67 = vector.load %arg3[%c6, %c0_43, %c0_44] : memref<9x192x128xbf16, #tpu.memory_space<vmem>>, vector<1x192x128xbf16>
    %68 = vector.shape_cast %67 : vector<1x192x128xbf16> to vector<192x128xbf16>
    %cst_45 = arith.constant dense<0.000000e+00> : vector<2x128xf32>
    %69 = tpu.matmul %66, %68, %cst_45 {dimension_numbers = #tpu.dot_dimension_numbers<[1], [0], [0], [1], [0, 0, 1, 1], [], []>} : vector<2x192xbf16>, vector<192x128xbf16>, vector<2x128xf32> -> vector<2x128xf32>
    %70 = arith.addf %60, %69 : vector<2x128xf32>
    %c1_i32_46 = arith.constant 1 : i32
    %71 = arith.addi %arg1, %c1_i32_46 : i32
    %c0_47 = arith.constant 0 : index
    %72 = arith.index_cast %71 : i32 to index
    %c3_48 = arith.constant 3 : index
    %c0_49 = arith.constant 0 : index
    %73 = vector.load %arg2[%c0_47, %72, %c3_48, %c0_49] : memref<1x6x6x192xf32, #tpu.memory_space<vmem>>, vector<1x1x2x192xf32>
    %74 = vector.shape_cast %73 : vector<1x1x2x192xf32> to vector<1x2x192xf32>
    %75 = vector.shape_cast %74 : vector<1x2x192xf32> to vector<2x192xf32>
    %76 = arith.truncf %75 : vector<2x192xf32> to vector<2x192xbf16>
    %c7 = arith.constant 7 : index
    %c0_50 = arith.constant 0 : index
    %c0_51 = arith.constant 0 : index
    %77 = vector.load %arg3[%c7, %c0_50, %c0_51] : memref<9x192x128xbf16, #tpu.memory_space<vmem>>, vector<1x192x128xbf16>
    %78 = vector.shape_cast %77 : vector<1x192x128xbf16> to vector<192x128xbf16>
    %cst_52 = arith.constant dense<0.000000e+00> : vector<2x128xf32>
    %79 = tpu.matmul %76, %78, %cst_52 {dimension_numbers = #tpu.dot_dimension_numbers<[1], [0], [0], [1], [0, 0, 1, 1], [], []>} : vector<2x192xbf16>, vector<192x128xbf16>, vector<2x128xf32> -> vector<2x128xf32>
    %80 = arith.addf %70, %79 : vector<2x128xf32>
    %c1_i32_53 = arith.constant 1 : i32
    %81 = arith.addi %arg1, %c1_i32_53 : i32
    %c0_54 = arith.constant 0 : index
    %82 = arith.index_cast %81 : i32 to index
    %c1_55 = arith.constant 1 : index
    %c0_56 = arith.constant 0 : index
    %83 = vector.load %arg2[%c0_54, %82, %c1_55, %c0_56] : memref<1x6x6x192xf32, #tpu.memory_space<vmem>>, vector<1x1x2x192xf32>
    %84 = vector.shape_cast %83 : vector<1x1x2x192xf32> to vector<1x2x192xf32>
    %85 = vector.shape_cast %84 : vector<1x2x192xf32> to vector<2x192xf32>
    %86 = arith.truncf %85 : vector<2x192xf32> to vector<2x192xbf16>
    %c8 = arith.constant 8 : index
    %c0_57 = arith.constant 0 : index
    %c0_58 = arith.constant 0 : index
    %87 = vector.load %arg3[%c8, %c0_57, %c0_58] : memref<9x192x128xbf16, #tpu.memory_space<vmem>>, vector<1x192x128xbf16>
    %88 = vector.shape_cast %87 : vector<1x192x128xbf16> to vector<192x128xbf16>
    %cst_59 = arith.constant dense<0.000000e+00> : vector<2x128xf32>
    %89 = tpu.matmul %86, %88, %cst_59 {dimension_numbers = #tpu.dot_dimension_numbers<[1], [0], [0], [1], [0, 0, 1, 1], [], []>} : vector<2x192xbf16>, vector<192x128xbf16>, vector<2x128xf32> -> vector<2x128xf32>
    %90 = arith.addf %80, %89 : vector<2x128xf32>
    %c0_60 = arith.constant 0 : index
    %c0_61 = arith.constant 0 : index
    %91 = vector.load %arg4[%c0_60, %c0_61] : memref<1x128xf32, #tpu.memory_space<vmem>>, vector<1x128xf32>
    %92 = vector.broadcast %91 : vector<1x128xf32> to vector<2x128xf32>
    %93 = arith.addf %90, %92 : vector<2x128xf32>
    %cst_62 = arith.constant 0.000000e+00 : f32
    %94 = vector.broadcast %cst_62 : f32 to vector<2x128xf32>
    %95 = arith.cmpf oge, %93, %94 : vector<2x128xf32>
    %cst_63 = arith.constant 1.000000e-01 : f32
    %96 = vector.broadcast %cst_63 : f32 to vector<2x128xf32>
    %97 = arith.mulf %96, %93 : vector<2x128xf32>
    %98 = arith.select %95, %93, %97 : vector<2x128xi1>, vector<2x128xf32>
    %c0_64 = arith.constant 0 : index
    %c0_65 = arith.constant 0 : index
    %c0_66 = arith.constant 0 : index
    %c0_67 = arith.constant 0 : index
    %99 = vector.load %arg5[%c0_64, %c0_65, %c0_66, %c0_67] : memref<1x1x2x128xf32, #tpu.memory_space<vmem>>, vector<1x1x2x128xf32>
    %100 = vector.shape_cast %99 : vector<1x1x2x128xf32> to vector<2x128xf32>
    %101 = vector.shape_cast %98 : vector<2x128xf32> to vector<1x1x2x128xf32>
    tpu.vector_store %arg5[%c0_64, %c0_65, %c0_66, %c0_67], %101 {strides = array<i32>} : memref<1x1x2x128xf32, #tpu.memory_space<vmem>>, vector<1x1x2x128xf32>,
    return
  }
  func.func @transform_0(%arg0: i32, %arg1: i32) -> (i32, i32, i32, i32) {
    %c0_i32 = arith.constant 0 : i32
    %c0_i32_0 = arith.constant 0 : i32
    %c0_i32_1 = arith.constant 0 : i32
    %c0_i32_2 = arith.constant 0 : i32
    return %arg0, %c0_i32, %c0_i32_0, %c0_i32_1 : i32, i32, i32, i32
  }
  func.func @transform_1(%arg0: i32, %arg1: i32) -> (i32, i32, i32) {
    %c0_i32 = arith.constant 0 : i32
    %c0_i32_0 = arith.constant 0 : i32
    %c0_i32_1 = arith.constant 0 : i32
    %c0_i32_2 = arith.constant 0 : i32
    return %c0_i32, %c0_i32_0, %c0_i32_1 : i32, i32, i32
  }
  func.func @transform_2(%arg0: i32, %arg1: i32) -> (i32, i32) {
    %c0_i32 = arith.constant 0 : i32
    %c0_i32_0 = arith.constant 0 : i32
    %c0_i32_1 = arith.constant 0 : i32
    return %c0_i32, %c0_i32_0 : i32, i32
  }
  func.func @transform_3(%arg0: i32, %arg1: i32) -> (i32, i32, i32, i32) {
    %c0_i32 = arith.constant 0 : i32
    %c0_i32_0 = arith.constant 0 : i32
    %c0_i32_1 = arith.constant 0 : i32
    return %arg0, %arg1, %c0_i32, %c0_i32_0 : i32, i32, i32, i32
  }
}

module attributes {stable_mosaic.version = 11 : i64} {
  func.func @kernel(%arg0: i32, %arg1: i32, %arg2: memref<1x4x4x256xf32, #tpu.memory_space<vmem>>, %arg3: memref<9x256x128xbf16, #tpu.memory_space<vmem>>, %arg4: memref<1x128xf32, #tpu.memory_space<vmem>>, %arg5: memref<1x1x2x128xf32, #tpu.memory_space<vmem>>) attributes {dimension_semantics = [#tpu.dimension_semantics<parallel>, #tpu.dimension_semantics<parallel>], iteration_bounds = array<i64: 2, 2>, scalar_prefetch = 0 : i64, scratch_operands = 0 : i64, tpu.core_type = #tpu.core_type<tc>, window_params = [{transform_indices = @transform_0, window_bounds = array<i64: 1, 4, 4, 256>}, {pipeline_mode = #tpu.pipeline_mode<synchronous>, transform_indices = @transform_1, window_bounds = array<i64: 9, 256, 128>}, {pipeline_mode = #tpu.pipeline_mode<synchronous>, transform_indices = @transform_2, window_bounds = array<i64: 1, 128>}, {transform_indices = @transform_3, window_bounds = array<i64: 1, 1, 2, 128>}]} {
    %cst = arith.constant 0.000000e+00 : f32
    %0 = vector.broadcast %cst : f32 to vector<2x128xf32>
    %c0_i32 = arith.constant 0 : i32
    %1 = arith.addi %arg1, %c0_i32 : i32
    %c0 = arith.constant 0 : index
    %2 = arith.index_cast %1 : i32 to index
    %c0_0 = arith.constant 0 : index
    %c0_1 = arith.constant 0 : index
    %3 = vector.load %arg2[%c0, %2, %c0_0, %c0_1] : memref<1x4x4x256xf32, #tpu.memory_space<vmem>>, vector<1x1x2x256xf32>
    %4 = vector.shape_cast %3 : vector<1x1x2x256xf32> to vector<1x2x256xf32>
    %5 = vector.shape_cast %4 : vector<1x2x256xf32> to vector<2x256xf32>
    %6 = arith.truncf %5 : vector<2x256xf32> to vector<2x256xbf16>
    %c0_2 = arith.constant 0 : index
    %c0_3 = arith.constant 0 : index
    %c0_4 = arith.constant 0 : index
    %7 = vector.load %arg3[%c0_2, %c0_3, %c0_4] : memref<9x256x128xbf16, #tpu.memory_space<vmem>>, vector<1x256x128xbf16>
    %8 = vector.shape_cast %7 : vector<1x256x128xbf16> to vector<256x128xbf16>
    %cst_5 = arith.constant dense<0.000000e+00> : vector<2x128xf32>
    %9 = tpu.matmul %6, %8, %cst_5 {dimension_numbers = #tpu.dot_dimension_numbers<[1], [0], [0], [1], [0, 0, 1, 1], [], []>} : vector<2x256xbf16>, vector<256x128xbf16>, vector<2x128xf32> -> vector<2x128xf32>
    %10 = arith.addf %0, %9 : vector<2x128xf32>
    %c0_i32_6 = arith.constant 0 : i32
    %11 = arith.addi %arg1, %c0_i32_6 : i32
    %c0_7 = arith.constant 0 : index
    %12 = arith.index_cast %11 : i32 to index
    %c1 = arith.constant 1 : index
    %c0_8 = arith.constant 0 : index
    %13 = vector.load %arg2[%c0_7, %12, %c1, %c0_8] : memref<1x4x4x256xf32, #tpu.memory_space<vmem>>, vector<1x1x2x256xf32>
    %14 = vector.shape_cast %13 : vector<1x1x2x256xf32> to vector<1x2x256xf32>
    %15 = vector.shape_cast %14 : vector<1x2x256xf32> to vector<2x256xf32>
    %16 = arith.truncf %15 : vector<2x256xf32> to vector<2x256xbf16>
    %c1_9 = arith.constant 1 : index
    %c0_10 = arith.constant 0 : index
    %c0_11 = arith.constant 0 : index
    %17 = vector.load %arg3[%c1_9, %c0_10, %c0_11] : memref<9x256x128xbf16, #tpu.memory_space<vmem>>, vector<1x256x128xbf16>
    %18 = vector.shape_cast %17 : vector<1x256x128xbf16> to vector<256x128xbf16>
    %cst_12 = arith.constant dense<0.000000e+00> : vector<2x128xf32>
    %19 = tpu.matmul %16, %18, %cst_12 {dimension_numbers = #tpu.dot_dimension_numbers<[1], [0], [0], [1], [0, 0, 1, 1], [], []>} : vector<2x256xbf16>, vector<256x128xbf16>, vector<2x128xf32> -> vector<2x128xf32>
    %20 = arith.addf %10, %19 : vector<2x128xf32>
    %c0_i32_13 = arith.constant 0 : i32
    %21 = arith.addi %arg1, %c0_i32_13 : i32
    %c0_14 = arith.constant 0 : index
    %22 = arith.index_cast %21 : i32 to index
    %c2 = arith.constant 2 : index
    %c0_15 = arith.constant 0 : index
    %23 = vector.load %arg2[%c0_14, %22, %c2, %c0_15] : memref<1x4x4x256xf32, #tpu.memory_space<vmem>>, vector<1x1x2x256xf32>
    %24 = vector.shape_cast %23 : vector<1x1x2x256xf32> to vector<1x2x256xf32>
    %25 = vector.shape_cast %24 : vector<1x2x256xf32> to vector<2x256xf32>
    %26 = arith.truncf %25 : vector<2x256xf32> to vector<2x256xbf16>
    %c2_16 = arith.constant 2 : index
    %c0_17 = arith.constant 0 : index
    %c0_18 = arith.constant 0 : index
    %27 = vector.load %arg3[%c2_16, %c0_17, %c0_18] : memref<9x256x128xbf16, #tpu.memory_space<vmem>>, vector<1x256x128xbf16>
    %28 = vector.shape_cast %27 : vector<1x256x128xbf16> to vector<256x128xbf16>
    %cst_19 = arith.constant dense<0.000000e+00> : vector<2x128xf32>
    %29 = tpu.matmul %26, %28, %cst_19 {dimension_numbers = #tpu.dot_dimension_numbers<[1], [0], [0], [1], [0, 0, 1, 1], [], []>} : vector<2x256xbf16>, vector<256x128xbf16>, vector<2x128xf32> -> vector<2x128xf32>
    %30 = arith.addf %20, %29 : vector<2x128xf32>
    %c1_i32 = arith.constant 1 : i32
    %31 = arith.addi %arg1, %c1_i32 : i32
    %c0_20 = arith.constant 0 : index
    %32 = arith.index_cast %31 : i32 to index
    %c0_21 = arith.constant 0 : index
    %c0_22 = arith.constant 0 : index
    %33 = vector.load %arg2[%c0_20, %32, %c0_21, %c0_22] : memref<1x4x4x256xf32, #tpu.memory_space<vmem>>, vector<1x1x2x256xf32>
    %34 = vector.shape_cast %33 : vector<1x1x2x256xf32> to vector<1x2x256xf32>
    %35 = vector.shape_cast %34 : vector<1x2x256xf32> to vector<2x256xf32>
    %36 = arith.truncf %35 : vector<2x256xf32> to vector<2x256xbf16>
    %c3 = arith.constant 3 : index
    %c0_23 = arith.constant 0 : index
    %c0_24 = arith.constant 0 : index
    %37 = vector.load %arg3[%c3, %c0_23, %c0_24] : memref<9x256x128xbf16, #tpu.memory_space<vmem>>, vector<1x256x128xbf16>
    %38 = vector.shape_cast %37 : vector<1x256x128xbf16> to vector<256x128xbf16>
    %cst_25 = arith.constant dense<0.000000e+00> : vector<2x128xf32>
    %39 = tpu.matmul %36, %38, %cst_25 {dimension_numbers = #tpu.dot_dimension_numbers<[1], [0], [0], [1], [0, 0, 1, 1], [], []>} : vector<2x256xbf16>, vector<256x128xbf16>, vector<2x128xf32> -> vector<2x128xf32>
    %40 = arith.addf %30, %39 : vector<2x128xf32>
    %c1_i32_26 = arith.constant 1 : i32
    %41 = arith.addi %arg1, %c1_i32_26 : i32
    %c0_27 = arith.constant 0 : index
    %42 = arith.index_cast %41 : i32 to index
    %c1_28 = arith.constant 1 : index
    %c0_29 = arith.constant 0 : index
    %43 = vector.load %arg2[%c0_27, %42, %c1_28, %c0_29] : memref<1x4x4x256xf32, #tpu.memory_space<vmem>>, vector<1x1x2x256xf32>
    %44 = vector.shape_cast %43 : vector<1x1x2x256xf32> to vector<1x2x256xf32>
    %45 = vector.shape_cast %44 : vector<1x2x256xf32> to vector<2x256xf32>
    %46 = arith.truncf %45 : vector<2x256xf32> to vector<2x256xbf16>
    %c4 = arith.constant 4 : index
    %c0_30 = arith.constant 0 : index
    %c0_31 = arith.constant 0 : index
    %47 = vector.load %arg3[%c4, %c0_30, %c0_31] : memref<9x256x128xbf16, #tpu.memory_space<vmem>>, vector<1x256x128xbf16>
    %48 = vector.shape_cast %47 : vector<1x256x128xbf16> to vector<256x128xbf16>
    %cst_32 = arith.constant dense<0.000000e+00> : vector<2x128xf32>
    %49 = tpu.matmul %46, %48, %cst_32 {dimension_numbers = #tpu.dot_dimension_numbers<[1], [0], [0], [1], [0, 0, 1, 1], [], []>} : vector<2x256xbf16>, vector<256x128xbf16>, vector<2x128xf32> -> vector<2x128xf32>
    %50 = arith.addf %40, %49 : vector<2x128xf32>
    %c1_i32_33 = arith.constant 1 : i32
    %51 = arith.addi %arg1, %c1_i32_33 : i32
    %c0_34 = arith.constant 0 : index
    %52 = arith.index_cast %51 : i32 to index
    %c2_35 = arith.constant 2 : index
    %c0_36 = arith.constant 0 : index
    %53 = vector.load %arg2[%c0_34, %52, %c2_35, %c0_36] : memref<1x4x4x256xf32, #tpu.memory_space<vmem>>, vector<1x1x2x256xf32>
    %54 = vector.shape_cast %53 : vector<1x1x2x256xf32> to vector<1x2x256xf32>
    %55 = vector.shape_cast %54 : vector<1x2x256xf32> to vector<2x256xf32>
    %56 = arith.truncf %55 : vector<2x256xf32> to vector<2x256xbf16>
    %c5 = arith.constant 5 : index
    %c0_37 = arith.constant 0 : index
    %c0_38 = arith.constant 0 : index
    %57 = vector.load %arg3[%c5, %c0_37, %c0_38] : memref<9x256x128xbf16, #tpu.memory_space<vmem>>, vector<1x256x128xbf16>
    %58 = vector.shape_cast %57 : vector<1x256x128xbf16> to vector<256x128xbf16>
    %cst_39 = arith.constant dense<0.000000e+00> : vector<2x128xf32>
    %59 = tpu.matmul %56, %58, %cst_39 {dimension_numbers = #tpu.dot_dimension_numbers<[1], [0], [0], [1], [0, 0, 1, 1], [], []>} : vector<2x256xbf16>, vector<256x128xbf16>, vector<2x128xf32> -> vector<2x128xf32>
    %60 = arith.addf %50, %59 : vector<2x128xf32>
    %c2_i32 = arith.constant 2 : i32
    %61 = arith.addi %arg1, %c2_i32 : i32
    %c0_40 = arith.constant 0 : index
    %62 = arith.index_cast %61 : i32 to index
    %c0_41 = arith.constant 0 : index
    %c0_42 = arith.constant 0 : index
    %63 = vector.load %arg2[%c0_40, %62, %c0_41, %c0_42] : memref<1x4x4x256xf32, #tpu.memory_space<vmem>>, vector<1x1x2x256xf32>
    %64 = vector.shape_cast %63 : vector<1x1x2x256xf32> to vector<1x2x256xf32>
    %65 = vector.shape_cast %64 : vector<1x2x256xf32> to vector<2x256xf32>
    %66 = arith.truncf %65 : vector<2x256xf32> to vector<2x256xbf16>
    %c6 = arith.constant 6 : index
    %c0_43 = arith.constant 0 : index
    %c0_44 = arith.constant 0 : index
    %67 = vector.load %arg3[%c6, %c0_43, %c0_44] : memref<9x256x128xbf16, #tpu.memory_space<vmem>>, vector<1x256x128xbf16>
    %68 = vector.shape_cast %67 : vector<1x256x128xbf16> to vector<256x128xbf16>
    %cst_45 = arith.constant dense<0.000000e+00> : vector<2x128xf32>
    %69 = tpu.matmul %66, %68, %cst_45 {dimension_numbers = #tpu.dot_dimension_numbers<[1], [0], [0], [1], [0, 0, 1, 1], [], []>} : vector<2x256xbf16>, vector<256x128xbf16>, vector<2x128xf32> -> vector<2x128xf32>
    %70 = arith.addf %60, %69 : vector<2x128xf32>
    %c2_i32_46 = arith.constant 2 : i32
    %71 = arith.addi %arg1, %c2_i32_46 : i32
    %c0_47 = arith.constant 0 : index
    %72 = arith.index_cast %71 : i32 to index
    %c1_48 = arith.constant 1 : index
    %c0_49 = arith.constant 0 : index
    %73 = vector.load %arg2[%c0_47, %72, %c1_48, %c0_49] : memref<1x4x4x256xf32, #tpu.memory_space<vmem>>, vector<1x1x2x256xf32>
    %74 = vector.shape_cast %73 : vector<1x1x2x256xf32> to vector<1x2x256xf32>
    %75 = vector.shape_cast %74 : vector<1x2x256xf32> to vector<2x256xf32>
    %76 = arith.truncf %75 : vector<2x256xf32> to vector<2x256xbf16>
    %c7 = arith.constant 7 : index
    %c0_50 = arith.constant 0 : index
    %c0_51 = arith.constant 0 : index
    %77 = vector.load %arg3[%c7, %c0_50, %c0_51] : memref<9x256x128xbf16, #tpu.memory_space<vmem>>, vector<1x256x128xbf16>
    %78 = vector.shape_cast %77 : vector<1x256x128xbf16> to vector<256x128xbf16>
    %cst_52 = arith.constant dense<0.000000e+00> : vector<2x128xf32>
    %79 = tpu.matmul %76, %78, %cst_52 {dimension_numbers = #tpu.dot_dimension_numbers<[1], [0], [0], [1], [0, 0, 1, 1], [], []>} : vector<2x256xbf16>, vector<256x128xbf16>, vector<2x128xf32> -> vector<2x128xf32>
    %80 = arith.addf %70, %79 : vector<2x128xf32>
    %c2_i32_53 = arith.constant 2 : i32
    %81 = arith.addi %arg1, %c2_i32_53 : i32
    %c0_54 = arith.constant 0 : index
    %82 = arith.index_cast %81 : i32 to index
    %c2_55 = arith.constant 2 : index
    %c0_56 = arith.constant 0 : index
    %83 = vector.load %arg2[%c0_54, %82, %c2_55, %c0_56] : memref<1x4x4x256xf32, #tpu.memory_space<vmem>>, vector<1x1x2x256xf32>
    %84 = vector.shape_cast %83 : vector<1x1x2x256xf32> to vector<1x2x256xf32>
    %85 = vector.shape_cast %84 : vector<1x2x256xf32> to vector<2x256xf32>
    %86 = arith.truncf %85 : vector<2x256xf32> to vector<2x256xbf16>
    %c8 = arith.constant 8 : index
    %c0_57 = arith.constant 0 : index
    %c0_58 = arith.constant 0 : index
    %87 = vector.load %arg3[%c8, %c0_57, %c0_58] : memref<9x256x128xbf16, #tpu.memory_space<vmem>>, vector<1x256x128xbf16>
    %88 = vector.shape_cast %87 : vector<1x256x128xbf16> to vector<256x128xbf16>
    %cst_59 = arith.constant dense<0.000000e+00> : vector<2x128xf32>
    %89 = tpu.matmul %86, %88, %cst_59 {dimension_numbers = #tpu.dot_dimension_numbers<[1], [0], [0], [1], [0, 0, 1, 1], [], []>} : vector<2x256xbf16>, vector<256x128xbf16>, vector<2x128xf32> -> vector<2x128xf32>
    %90 = arith.addf %80, %89 : vector<2x128xf32>
    %c0_60 = arith.constant 0 : index
    %c0_61 = arith.constant 0 : index
    %91 = vector.load %arg4[%c0_60, %c0_61] : memref<1x128xf32, #tpu.memory_space<vmem>>, vector<1x128xf32>
    %92 = vector.broadcast %91 : vector<1x128xf32> to vector<2x128xf32>
    %93 = arith.addf %90, %92 : vector<2x128xf32>
    %cst_62 = arith.constant 0.000000e+00 : f32
    %94 = vector.broadcast %cst_62 : f32 to vector<2x128xf32>
    %95 = arith.cmpf oge, %93, %94 : vector<2x128xf32>
    %cst_63 = arith.constant 1.000000e-01 : f32
    %96 = vector.broadcast %cst_63 : f32 to vector<2x128xf32>
    %97 = arith.mulf %96, %93 : vector<2x128xf32>
    %98 = arith.select %95, %93, %97 : vector<2x128xi1>, vector<2x128xf32>
    %c0_64 = arith.constant 0 : index
    %c0_65 = arith.constant 0 : index
    %c0_66 = arith.constant 0 : index
    %c0_67 = arith.constant 0 : index
    %99 = vector.load %arg5[%c0_64, %c0_65, %c0_66, %c0_67] : memref<1x1x2x128xf32, #tpu.memory_space<vmem>>, vector<1x1x2x128xf32>
    %100 = vector.shape_cast %99 : vector<1x1x2x128xf32> to vector<2x128xf32>
    %101 = vector.shape_cast %98 : vector<2x128xf32> to vector<1x1x2x128xf32>
    tpu.vector_store %arg5[%c0_64, %c0_65, %c0_66, %c0_67], %101 {strides = array<i32>} : memref<1x1x2x128xf32, #tpu.memory_space<vmem>>, vector<1x1x2x128xf32>,
    return
  }
  func.func @transform_0(%arg0: i32, %arg1: i32) -> (i32, i32, i32, i32) {
    %c0_i32 = arith.constant 0 : i32
    %c0_i32_0 = arith.constant 0 : i32
    %c0_i32_1 = arith.constant 0 : i32
    %c0_i32_2 = arith.constant 0 : i32
    return %arg0, %c0_i32, %c0_i32_0, %c0_i32_1 : i32, i32, i32, i32
  }
  func.func @transform_1(%arg0: i32, %arg1: i32) -> (i32, i32, i32) {
    %c0_i32 = arith.constant 0 : i32
    %c0_i32_0 = arith.constant 0 : i32
    %c0_i32_1 = arith.constant 0 : i32
    %c0_i32_2 = arith.constant 0 : i32
    return %c0_i32, %c0_i32_0, %c0_i32_1 : i32, i32, i32
  }
  func.func @transform_2(%arg0: i32, %arg1: i32) -> (i32, i32) {
    %c0_i32 = arith.constant 0 : i32
    %c0_i32_0 = arith.constant 0 : i32
    %c0_i32_1 = arith.constant 0 : i32
    return %c0_i32, %c0_i32_0 : i32, i32
  }
  func.func @transform_3(%arg0: i32, %arg1: i32) -> (i32, i32, i32, i32) {
    %c0_i32 = arith.constant 0 : i32
    %c0_i32_0 = arith.constant 0 : i32
    %c0_i32_1 = arith.constant 0 : i32
    return %arg0, %arg1, %c0_i32, %c0_i32_0 : i32, i32, i32, i32
  }
}

</mosaic_0001>

<bundles_post_ra>
// kernel: tile.38
= control target key start
LH: loop header
LB: loop body
LE: loop exit
PB: predicated region body
PF: predicated region fallthrough
CT: control target
= control target key end

     0   :  { %s22_s0 = inlined_call_operand.vmem [shape: f32[16], index: 0, kind: input, shape index: {}]   ;;  %s23_s1 = inlined_call_operand.vmem [shape: f32[8,16], index: 1, kind: output, shape index: {}]  }
   0x1   :  { %v4_v0 = vld [vmem:[%s22_s0] ss:$0 sm:$0xff] }
   0x2   :  { %5 = vst [vmem:[%s23_s1] sm:$0xff] %v4_v0 }

// kernel: tile.39
= control target key start
LH: loop header
LB: loop body
LE: loop exit
PB: predicated region body
PF: predicated region fallthrough
CT: control target
= control target key end

     0   :  { %s67_s10 = smov 112   ;;  %s68_s11 = smov 80   ;;  %vm3_vm0 = vcmask 130048   ;;  %vm9_vm1 = vcmask 1048448   ;;  %vm15_vm2 = vcmask 917248   ;;  %vm21_vm3 = vcmask 786048   ;;  %s111_s0 = inlined_call_operand.vmem [shape: f32[8,16], index: 0, kind: input, shape index: {}]   ;;  %s112_s1 = inlined_call_operand.vmem [shape: f32[1,128], index: 1, kind: output, shape index: {}]  }
   0x1   :  { %v53_v0 = vld [vmem:[%s111_s0 + $0x7] sm:$0x1]   ;;  %v55_v1 = vld [vmem:[%s111_s0 + $0x5] sm:$0x1]   ;;  %v54_v2 = vld [vmem:[%s111_s0 + $0x6] sm:$0x1]  }
   0x2   :  { %7 = vrot.lane.b32.xlu0 %v53_v0, %s67_s10  ;;  %19 = vrot.lane.b32.xlu1 %v55_v1, %s68_s11  ;;  %v56_v3 = vld [vmem:[%s111_s0 + $0x4] sm:$0x1]   ;;  %v2_v4 = vld [vmem:[%s111_s0] sm:$0x1]   ;;  %s69_s18 = smov 96   ;;  %s70_s19 = smov 64  }
   0x3   :  { %4 = vst.msk [vmem:[#allocation0] sm:$0x1] %vm3_vm0, %v2_v4   ;;  %v57_v5 = vld [vmem:[%s111_s0 + $0x3] sm:$0x1]   ;;  %v58_v6 = vld [vmem:[%s111_s0 + $0x2] sm:$0x1]  }
   0x4   :  { %s71_s24 = smov 48   ;;  %s72_s25 = smov 32   ;;  %v59_v7 = vld [vmem:[%s111_s0 + $0x1] sm:$0x1]   ;;  %vm27_vm4 = vcmask 654848   ;;  %vm33_vm5 = vcmask 523648  }
   0x5   :  { %s73_s0 = smov 16   ;;  %vm39_vm6 = vcmask 392448   ;;  %vm45_vm7 = vcmask 261248  }
   0x6   :  { %13 = vrot.lane.b32.xlu0 %v54_v2, %s69_s18  ;;  %25 = vrot.lane.b32.xlu1 %v56_v3, %s70_s19 }
   0xa   :  { %31 = vrot.lane.b32.xlu0 %v57_v5, %s71_s24  ;;  %37 = vrot.lane.b32.xlu1 %v58_v6, %s72_s25 }
   0xe   :  { %43 = vrot.lane.b32.xlu0 %v59_v7, %s73_s0 }
  0x74   :  { %v8_v8 = vpop.permute.xlu0 %7   ;;  %v20_v9 = vpop.permute.xlu1 %19  }
  0x75   :  { %10 = vst.msk [vmem:[#allocation0] sm:$0x1] %vm9_vm1, %v8_v8  }
  0x78   :  { %v14_v10 = vpop.permute.xlu0 %13   ;;  %v26_v11 = vpop.permute.xlu1 %25  }
  0x79   :  { %16 = vst.msk [vmem:[#allocation0] sm:$0x1] %vm15_vm2, %v14_v10  }
  0x7a   :  { %22 = vst.msk [vmem:[#allocation0] sm:$0x1] %vm21_vm3, %v20_v9  }
  0x7b   :  { %28 = vst.msk [vmem:[#allocation0] sm:$0x1] %vm27_vm4, %v26_v11  }
  0x7c   :  { %v32_v12 = vpop.permute.xlu0 %31   ;;  %v38_v13 = vpop.permute.xlu1 %37  }
  0x7d   :  { %34 = vst.msk [vmem:[#allocation0] sm:$0x1] %vm33_vm5, %v32_v12  }
  0x7e   :  { %40 = vst.msk [vmem:[#allocation0] sm:$0x1] %vm39_vm6, %v38_v13  }
  0x80   :  { %v44_v14 = vpop.permute.xlu0 %43  }
  0x81   :  { %46 = vst.msk [vmem:[#allocation0] sm:$0x1] %vm45_vm7, %v44_v14  }
  0x88   :  { %v50_v15 = vld [vmem:[#allocation0] sm:$0x1] }
  0x89   :  { %52 = vst [vmem:[%s112_s1] sm:$0x1] %v50_v15 }

// kernel: _lambda_.9
= control target key start
LH: loop header
LB: loop body
LE: loop exit
PB: predicated region body
PF: predicated region fallthrough
CT: control target
= control target key end

     0   :  { %s1943_s12 = smov 0   ;;  %s1945_s13 = smov 0   ;;  %s2371_s0 = inlined_call_operand.vmem [shape: f32[2,18,18,144], index: 0, kind: input, shape index: {}]   ;;  %s2372_s1 = inlined_call_operand.vmem [shape: bf16[9,144,128], index: 1, kind: input, shape index: {}]   ;;  %s2373_s2 = inlined_call_operand.vmem [shape: f32[1,128], index: 2, kind: input, shape index: {}]   ;;  %s2374_s3 = inlined_call_operand.vmem [shape: f32[2,8,8,128], index: 3, kind: output, shape index: {}]  }
   0x1   :  { %s1947_s14 = smov 0   ;;  %s1949_s15 = smov 0  }
   0x2   :  { %s1951_s16 = smov 0  }
   0x3 LB: > { %s22_s17 = sadd.s32 1, %s1912_s14  ;;  %s25_s18 = sadd.s32 1, %s1916_s15  ;;  %s1920_s16 = sphi %s1951_s16, %s13_s16   ;;  %s1916_s15 = sphi %s1949_s15, %s2378_s15   ;;  %s1912_s14 = sphi %s1947_s14, %s2377_s14   ;;  %s1908_s13 = sphi %s1945_s13, %s2376_s13   ;;  %s1904_s12 = sphi %s1943_s12, %s2375_s12  }
   0x4   : > { %p23_p0 = scmp.ge.s32.totalorder %s22_s17, 8  ;;  %p1496_p1 = scmp.ge.s32.totalorder %s1920_s16, 1 }
   0x5   : > { %p151_p2 = scmp.lt.s32.totalorder %s1920_s16, 17 }
   0x6   : > { %s2380_s17 = smov (%p23_p0, %s22_s17), 0  ;;  %s2382_s18 = smov (!%p23_p0, %s25_s18), %s1916_s15 }
   0x7   : > { %p152_p3 = pnand %p1496_p1, %p151_p2  ;;  %p27_p4 = scmp.ge.s32.totalorder %s2382_s18, 2 }
   0x8   : > { %v1801_v0 = vld [vmem:[%s2372_s1 + $0x48] sm:$0xff] (!%p152_p3)   ;;  %v1922_v1 = vmov (!%p152_p3), 0   ;;  %v1802_v2 = vld [vmem:[%s2372_s1] sm:$0xff] (!%p152_p3)   ;;  %p178_p5 = scmp.lt.s32.totalorder (!%p152_p3), %s1908_s13, 1  ;;  %v1803_v3 = vld [vmem:[%s2372_s1 + $0x50] sm:$0xff] (!%p152_p3)   ;;  %s1758_s9 = smul.u32 (!%p152_p3), 48, %s1904_s12 }
   0x9   : > { %s2384_s18 = smov (%p27_p4, %s2382_s18), 0  ;;  %155 = sbr.rel (%p152_p3) target bundleno = 410 (0x19a), region = 32 }
   0xa   : > { %315 = vmatprep.subr.bf16.mxu0 (!%p152_p3), %v1922_v1  ;;  %412 = vmatprep.subr.bf16.mxu1 (!%p152_p3), %v1922_v1  ;;  %v1804_v4 = vld [vmem:[%s2372_s1 + $0x8] sm:$0xff] (!%p152_p3)   ;;  %v1805_v5 = vld [vmem:[%s2372_s1 + $0x58] sm:$0xff] (!%p152_p3)   ;;  %v1806_v6 = vld [vmem:[%s2372_s1 + $0x10] sm:$0xff] (!%p152_p3)   ;;  %vm311_vm0 = vcmask (!%p152_p3), 130048   ;;  %p185_p6 = scmp.lt.s32.totalorder (!%p152_p3), %s1904_s12, 7 }
   0xb   : > { %316 = vmatpush1.bf16.msra.mxu0 (!%p152_p3), %v1801_v0  ;;  %413 = vmatpush1.bf16.msra.mxu1 (!%p152_p3), %v1802_v2  ;;  %v1807_v7 = vld [vmem:[%s2372_s1 + $0x60] sm:$0xff] (!%p152_p3)   ;;  %v1808_v8 = vld [vmem:[%s2372_s1 + $0x18] sm:$0xff] (!%p152_p3)   ;;  %v1809_v9 = vld [vmem:[%s2372_s1 + $0x68] sm:$0xff] (!%p152_p3)  }
   0xc   : > { %317 = vmatprep.subr.bf16.mxu0 (!%p152_p3), %v1922_v1  ;;  %414 = vmatprep.subr.bf16.mxu1 (!%p152_p3), %v1922_v1  ;;  %v1810_v10 = vld [vmem:[%s2372_s1 + $0x20] sm:$0xff] (!%p152_p3)   ;;  %v1811_v11 = vld [vmem:[%s2372_s1 + $0x70] sm:$0xff] (!%p152_p3)   ;;  %v1812_v15 = vld [vmem:[%s2372_s1 + $0x28] sm:$0xff] (!%p152_p3)  }
   0xd   : > { %v1813_v23 = vld [vmem:[%s2372_s1 + $0x78] sm:$0xff] (!%p152_p3)   ;;  %v1814_v24 = vld [vmem:[%s2372_s1 + $0x30] sm:$0xff] (!%p152_p3)   ;;  %v1815_v28 = vld [vmem:[%s2372_s1 + $0x80] sm:$0xff] (!%p152_p3)  }
   0xe   : > { %v1816_v29 = vld [vmem:[%s2372_s1 + $0x38] sm:$0xff] (!%p152_p3)   ;;  %v1817_v30 = vld [vmem:[%s2372_s1 + $0x88] sm:$0xff] (!%p152_p3)   ;;  %v1818_v33 = vld [vmem:[%s2372_s1 + $0x40] sm:$0xff] (!%p152_p3)  }
   0xf   : > { %318 = vmatpush1.bf16.msra.mxu0 (!%p152_p3), %v1803_v3  ;;  %415 = vmatpush1.bf16.msra.mxu1 (!%p152_p3), %v1804_v4  ;;  %v1819_v37 = vld [vmem:[%s2372_s1 + $0x90] sm:$0xff] (!%p152_p3)   ;;  %v1820_v38 = vld [vmem:[%s2372_s1 + $0xd8] sm:$0xff] (!%p152_p3)   ;;  %v1822_v43 = vld [vmem:[%s2372_s1 + $0xe0] sm:$0xff] (!%p152_p3)  }
  0x10   : > { %s2386_s13 = smov (!%p178_p5, %s1908_s13), 1  ;;  %319 = vmatprep.subr.bf16.mxu0 %v1922_v1  ;;  %416 = vmatprep.subr.bf16.mxu1 %v1922_v1  ;;  %v1821_v41 = vld [vmem:[%s2372_s1 + $0x98] sm:$0xff]   ;;  %v1823_v48 = vld [vmem:[%s2372_s1 + $0xa0] sm:$0xff]   ;;  %v1824_v50 = vld [vmem:[%s2372_s1 + $0xe8] sm:$0xff]   ;;  %s2388_s12 = smov (!%p185_p6, %s1904_s12), 7 }
  0x11   : > { %s1759_s4 = smul.u32 864, %s2386_s13  ;;  %v1825_v52 = vld [vmem:[%s2372_s1 + $0xa8] sm:$0xff]   ;;  %v1826_v53 = vld [vmem:[%s2372_s1 + $0xf0] sm:$0xff]   ;;  %v1828_v55 = vld [vmem:[%s2372_s1 + $0xf8] sm:$0xff]   ;;  %s1498_s6 = sshll.u32 %s2386_s13, 3 }
  0x12   : > { %v1827_v54 = vld [vmem:[%s2372_s1 + $0xb0] sm:$0xff]   ;;  %v1829_v56 = vld [vmem:[%s2372_s1 + $0xb8] sm:$0xff]   ;;  %v1830_v59 = vld [vmem:[%s2372_s1 + $0x100] sm:$0xff]   ;;  %s188_s7 = sadd.s32 %s1498_s6, %s2388_s12 }
  0x13   : > { %320 = vmatpush1.bf16.msra.mxu0 %v1805_v5  ;;  %417 = vmatpush1.bf16.msra.mxu1 %v1806_v6  ;;  %s182_s19 = scalar_lea.vmem %s2371_s0, %s1759_s4  ;;  %v1831_v60 = vld [vmem:[%s2372_s1 + $0xc0] sm:$0xff]   ;;  %v1832_v0 = vld [vmem:[%s2372_s1 + $0x108] sm:$0xff]   ;;  %s1499_s10 = sshll.u32 %s188_s7, 3 }
  0x14   : > { %321 = vmatprep.subr.bf16.mxu0 %v1922_v1  ;;  %418 = vmatprep.subr.bf16.mxu1 %v1922_v1  ;;  %s2021_s24 = scalar_lea.vmem %s182_s19, %s1758_s9  ;;  %s190_s20 = scalar_lea.vmem %s2374_s3, %s1499_s10 }
  0x15   : > { %v218_v12 = vld [vmem:[%s2021_s24 + $0x18] sm:$0xfe]  ;;  %v220_v13 = vld [vmem:[%s2021_s24 + $0x28] sm:$0x1]  ;;  %v217_v14 = vld [vmem:[%s2021_s24 + $0x10] sm:$0xfe] }
  0x16   : > { %v222_v16 = vpack.c.bf16 %v220_v13, %v218_v12  ;;  %v219_v17 = vld [vmem:[%s2021_s24 + $0x20] sm:$0x1]  ;;  %v196_v18 = vld [vmem:[%s2021_s24 + $0x8] sm:$0xff]  ;;  %v455_v40 = vld [vmem:[%s2021_s24 + $0x18] sm:$0x1] }
  0x17   : > { %322 = vmatpush1.bf16.msra.mxu0 %v1807_v7  ;;  %419 = vmatpush1.bf16.msra.mxu1 %v1808_v8  ;;  %v221_v19 = vpack.c.bf16 %v219_v17, %v217_v14  ;;  %v198_v20 = vpack.c.bf16 %v196_v18, %v196_v18  ;;  %v195_v34 = vld [vmem:[%s2021_s24] sm:$0xff]  ;;  %v453_v39 = vld [vmem:[%s2021_s24 + $0x8] sm:$0xfe]  ;;  %v1568_v44 = vld [vmem:[%s2021_s24 + $0x1b8] sm:$0xff] }
  0x18   : > { %323 = vmatprep.subr.bf16.mxu0 %v1922_v1  ;;  %420 = vmatprep.subr.bf16.mxu1 %v1922_v1  ;;  %v250_v21 = vshrl.u32 %v222_v16, 16  ;;  %v252_v22 = vshll.u32 %v222_v16, 16  ;;  %v197_v36 = vpack.c.bf16 %v195_v34, %v195_v34  ;;  %v457_v42 = vpack.c.bf16 %v455_v40, %v453_v39  ;;  %v452_v57 = vld [vmem:[%s2021_s24] sm:$0xfe]  ;;  %v454_v58 = vld [vmem:[%s2021_s24 + $0x10] sm:$0x1] }
  0x19   : > { %1538 = vmatprep.mubr.msk.bf16.mxu1 %vm311_vm0, %v198_v20  ;;  %v245_v26 = vshll.u32 %v221_v19, 16  ;;  %v243_v31 = vshrl.u32 %v221_v19, 16  ;;  %v597_v47 = vpack.c.bf16 %v1568_v44, %v1568_v44  ;;  %v456_v61 = vpack.c.bf16 %v454_v58, %v452_v57  ;;  %v1598_v62 = vld [vmem:[%s2021_s24 + $0x1c8] sm:$0xfe]  ;;  %v1600_v63 = vld [vmem:[%s2021_s24 + $0x1d8] sm:$0x1] }
  0x1a   : > { %v254_v25 = vrot.slane %v252_v22, 1  ;;  %v485_v45 = vshrl.u32 %v457_v42, 16  ;;  %v487_v46 = vshll.u32 %v457_v42, 16  ;;  %v720_v2 = vpack.c.bf16 %v1600_v63, %v1598_v62  ;;  %v1630_v3 = vld [vmem:[%s2021_s24 + $0x1b8] sm:$0xfe]  ;;  %v1833_v7 = vld [vmem:[%s2372_s1 + $0xc8] sm:$0xff]  }
  0x1b   : > { %324 = vmatpush1.bf16.msra.mxu0 %v1809_v9  ;;  %421 = vmatpush1.bf16.msra.mxu1 %v1810_v10  ;;  %v247_v32 = vrot.slane %v245_v26, 1  ;;  %v1632_v4 = vld [vmem:[%s2021_s24 + $0x1c8] sm:$0x1]  ;;  %v480_v5 = vshll.u32 %v456_v61, 16  ;;  %v1834_v8 = vld [vmem:[%s2372_s1 + $0x110] sm:$0xff]   ;;  %v478_v9 = vshrl.u32 %v456_v61, 16 }
  0x1c   : > { %325 = vmatprep.subr.bf16.mxu0 %v1922_v1  ;;  %422 = vmatprep.subr.bf16.mxu1 %v1922_v1  ;;  %v255_v27 = vor.u32 %v254_v25, %v250_v21  ;;  %v489_v49 = vrot.slane %v487_v46, 1  ;;  %v858_v6 = vpack.c.bf16 %v1632_v4, %v1630_v3  ;;  %v750_v10 = vshll.u32 %v720_v2, 16  ;;  %v1835_v13 = vld [vmem:[%s2372_s1 + $0xd0] sm:$0xff]   ;;  %v1836_v14 = vld [vmem:[%s2372_s1 + $0x118] sm:$0xff]   ;;  %v1837_v21 = vld [vmem:[%s2372_s1 + $0x120] sm:$0xff]  }
  0x1d   : > { %v248_v35 = vor.u32 %v247_v32, %v243_v31  ;;  %v748_v16 = vshrl.u32 %v720_v2, 16  ;;  %v1839_v26 = vld [vmem:[%s2372_s1 + $0x128] sm:$0xff]   ;;  %v1844_v31 = vld [vmem:[%s2372_s1 + $0x180] sm:$0xff]   ;;  %v1694_v44 = vld [vmem:[%s2021_s24 + $0x58] sm:$0x1] }
  0x1e   : > { %1528 = vmatprep.mubr.msk.bf16.mxu0 %vm311_vm0, %v255_v27  ;;  %v490_v51 = vor.u32 %v489_v49, %v485_v45  ;;  %v888_v12 = vshll.u32 %v858_v6, 16  ;;  %v752_v17 = vrot.slane %v750_v10, 1  ;;  %v886_v19 = vshrl.u32 %v858_v6, 16  ;;  %v1840_v27 = vld [vmem:[%s2372_s1 + $0x170] sm:$0xff]   ;;  %v1845_v32 = vld [vmem:[%s2372_s1 + $0x140] sm:$0xff]   ;;  %v1847_v34 = vld [vmem:[%s2372_s1 + $0x148] sm:$0xff]  }
  0x1f   : > { %326 = vmatpush1.bf16.msra.mxu0 %v1811_v11  ;;  %423 = vmatpush1.bf16.msra.mxu1 %v1812_v15  ;;  %v482_v11 = vrot.slane %v480_v5, 1  ;;  %v1567_v15 = vld [vmem:[%s2021_s24 + $0x1b0] sm:$0xff]  ;;  %v1631_v39 = vld [vmem:[%s2021_s24 + $0x1c0] sm:$0x1]  ;;  %v1850_v45 = vld [vmem:[%s2372_s1 + $0x198] sm:$0xff]  }
  0x20   : > { %327 = vmatprep.subr.bf16.mxu0 %v1922_v1  ;;  %424 = vmatprep.subr.bf16.mxu1 %v1922_v1  ;;  %v890_v20 = vrot.slane %v888_v12, 1  ;;  %v596_v22 = vpack.c.bf16 %v1567_v15, %v1567_v15  ;;  %v1854_v57 = vld [vmem:[%s2372_s1 + $0x1a8] sm:$0xff]   ;;  %v1855_v62 = vld [vmem:[%s2372_s1 + $0x1b0] sm:$0xff]   ;;  %v1857_v4 = vld [vmem:[%s2372_s1 + $0x1b8] sm:$0xff]  }
  0x21   : > { %v483_v18 = vor.u32 %v482_v11, %v478_v9  ;;  %v1858_v5 = vld [vmem:[%s2372_s1 + $0x200] sm:$0xff]   ;;  %v1862_v9 = vld [vmem:[%s2372_s1 + $0x210] sm:$0xff]   ;;  %v1864_v11 = vld [vmem:[%s2372_s1 + $0x218] sm:$0xff]  }
  0x22   : > { %v891_v25 = vor.u32 %v890_v20, %v886_v19  ;;  %v1859_v6 = vld [vmem:[%s2372_s1 + $0x1c0] sm:$0xff]   ;;  %v1863_v10 = vld [vmem:[%s2372_s1 + $0x1d0] sm:$0xff]   ;;  %v1865_v12 = vld [vmem:[%s2372_s1 + $0x1d8] sm:$0xff]  }
  0x23   : > { %328 = vmatpush1.bf16.msra.mxu0 %v1813_v23  ;;  %425 = vmatpush1.bf16.msra.mxu1 %v1814_v24  ;;  %v1838_v23 = vld [vmem:[%s2372_s1 + $0x168] sm:$0xff]   ;;  %v753_v24 = vor.u32 %v752_v17, %v748_v16  ;;  %v1693_v15 = vld [vmem:[%s2021_s24 + $0x50] sm:$0x1]  ;;  %v1724_v16 = vld [vmem:[%s2021_s24 + $0x38] sm:$0xfe] }
  0x24   : > { %329 = vmatprep.subr.bf16.mxu0 %v1922_v1  ;;  %426 = vmatprep.subr.bf16.mxu1 %v1922_v1  ;;  %v1726_v17 = vld [vmem:[%s2021_s24 + $0x48] sm:$0x1] }
  0x25   : > { %v1868_v20 = vld [vmem:[%s2372_s1 + $0x228] sm:$0xff]  }
  0x27   : > { %330 = vmatpush1.bf16.msra.mxu0 %v1815_v28  ;;  %427 = vmatpush1.bf16.msra.mxu1 %v1816_v29  ;;  %v1841_v28 = vld [vmem:[%s2372_s1 + $0x130] sm:$0xff]   ;;  %v1842_v29 = vld [vmem:[%s2372_s1 + $0x178] sm:$0xff]  }
  0x28   : > { %331 = vmatprep.subr.bf16.mxu0 %v1922_v1  ;;  %428 = vmatprep.subr.bf16.mxu1 %v1922_v1 }
  0x2b   : > { %332 = vmatpush1.bf16.msra.mxu0 %v1817_v30  ;;  %429 = vmatpush1.bf16.msra.mxu1 %v1818_v33  ;;  %v1843_v30 = vld [vmem:[%s2372_s1 + $0x138] sm:$0xff]   ;;  %v1846_v33 = vld [vmem:[%s2372_s1 + $0x188] sm:$0xff]  }
  0x2c   : > { %549 = vmatprep.subr.bf16.mxu0 %v1922_v1  ;;  %674 = vmatprep.subr.bf16.mxu1 %v1922_v1 }
  0x2e   : > { %348 = vmatmul.mubr.bf16.vlgmr.msra.gmra.mrb[0].mxu0 %v248_v35  ;;  %445 = vmatmul.mubr.bf16.vlgmr.msra.gmra.mrb[0].mxu1 %v197_v36  ;;  %v1597_v35 = vld [vmem:[%s2021_s24 + $0x1c0] sm:$0xfe]  ;;  %v1599_v36 = vld [vmem:[%s2021_s24 + $0x1d0] sm:$0x1] }
  0x2f   : > { %550 = vmatpush1.bf16.msra.mxu0 %v1819_v37  ;;  %675 = vmatpush1.bf16.msra.mxu1 %v1820_v38  ;;  %v1848_v37 = vld [vmem:[%s2372_s1 + $0x190] sm:$0xff]   ;;  %v719_v40 = vpack.c.bf16 %v1599_v36, %v1597_v35 }
  0x30   : > { %551 = vmatprep.subr.bf16.mxu0 %v1922_v1  ;;  %676 = vmatprep.subr.bf16.mxu1 %v1922_v1  ;;  %v1629_v38 = vld [vmem:[%s2021_s24 + $0x1b0] sm:$0xfe] }
  0x31   : > { %1596 = vmatprep.mubr.msk.bf16.mxu1 %vm311_vm0, %v597_v47  ;;  %1566 = vmatprep.mubr.msk.bf16.mxu0 %vm311_vm0, %v490_v51  ;;  %v857_v42 = vpack.c.bf16 %v1631_v39, %v1629_v38  ;;  %v743_v46 = vshll.u32 %v719_v40, 16  ;;  %v741_v51 = vshrl.u32 %v719_v40, 16  ;;  %v1875_v38 = vld [vmem:[%s2372_s1 + $0x250] sm:$0xff]   ;;  %v1876_v39 = vld [vmem:[%s2372_s1 + $0x258] sm:$0xff]   ;;  %v1877_v40 = vld [vmem:[%s2372_s1 + $0x260] sm:$0xff]  }
  0x33   : > { %552 = vmatpush1.bf16.msra.mxu0 %v1821_v41  ;;  %677 = vmatpush1.bf16.msra.mxu1 %v1822_v43  ;;  %v1849_v41 = vld [vmem:[%s2372_s1 + $0x150] sm:$0xff]   ;;  %v1692_v43 = vld [vmem:[%s2021_s24 + $0x48] sm:$0xfe]  ;;  %v881_v49 = vshll.u32 %v857_v42, 16 }
  0x34   : > { %553 = vmatprep.subr.bf16.mxu0 %v1922_v1  ;;  %678 = vmatprep.subr.bf16.mxu1 %v1922_v1  ;;  %v1121_v47 = vpack.c.bf16 %v1694_v44, %v1692_v43  ;;  %v1725_v43 = vld [vmem:[%s2021_s24 + $0x40] sm:$0x1] }
  0x37   : > { %554 = vmatpush1.bf16.msra.mxu0 %v1823_v48  ;;  %679 = vmatpush1.bf16.msra.mxu1 %v1824_v50  ;;  %v1851_v48 = vld [vmem:[%s2372_s1 + $0x158] sm:$0xff]   ;;  %v1852_v50 = vld [vmem:[%s2372_s1 + $0x1a0] sm:$0xff]  }
  0x38   : > { %555 = vmatprep.subr.bf16.mxu0 %v1922_v1  ;;  %680 = vmatprep.subr.bf16.mxu1 %v1922_v1 }
  0x3b   : > { %556 = vmatpush1.bf16.msra.mxu0 %v1825_v52  ;;  %681 = vmatpush1.bf16.msra.mxu1 %v1826_v53  ;;  %v745_v52 = vrot.slane %v743_v46, 1  ;;  %v1151_v53 = vshll.u32 %v1121_v47, 16 }
  0x3c   : > { %557 = vmatprep.subr.bf16.mxu0 %v1922_v1  ;;  %682 = vmatprep.subr.bf16.mxu1 %v1922_v1 }
  0x3d   : > { %v746_v58 = vor.u32 %v745_v52, %v741_v51  ;;  %v1153_v61 = vrot.slane %v1151_v53, 1 }
  0x3f   : > { %558 = vmatpush1.bf16.msra.mxu0 %v1827_v54  ;;  %683 = vmatpush1.bf16.msra.mxu1 %v1828_v55  ;;  %v1853_v54 = vld [vmem:[%s2372_s1 + $0x160] sm:$0xff]   ;;  %v879_v55 = vshrl.u32 %v857_v42, 16  ;;  %v1723_v42 = vld [vmem:[%s2021_s24 + $0x30] sm:$0xfe] }
  0x40   : > { %559 = vmatprep.subr.bf16.mxu0 %v1922_v1  ;;  %684 = vmatprep.subr.bf16.mxu1 %v1922_v1  ;;  %v1258_v44 = vpack.c.bf16 %v1725_v43, %v1723_v42 }
  0x42   : > { %v1282_v46 = vshll.u32 %v1258_v44, 16 }
  0x43   : > { %560 = vmatpush1.bf16.msra.mxu0 %v1829_v56  ;;  %685 = vmatpush1.bf16.msra.mxu1 %v1830_v59  ;;  %v883_v56 = vrot.slane %v881_v49, 1  ;;  %v1662_v59 = vld [vmem:[%s2021_s24 + $0x38] sm:$0xff] }
  0x44   : > { %561 = vmatprep.subr.bf16.mxu0 %v1922_v1  ;;  %686 = vmatprep.subr.bf16.mxu1 %v1922_v1  ;;  %v998_v2 = vpack.c.bf16 %v1662_v59, %v1662_v59  ;;  %v1284_v49 = vrot.slane %v1282_v46, 1 }
  0x45   : > { %v884_v63 = vor.u32 %v883_v56, %v879_v55 }
  0x47   : > { %562 = vmatpush1.bf16.msra.mxu0 %v1831_v60  ;;  %687 = vmatpush1.bf16.msra.mxu1 %v1832_v0  ;;  %v1149_v60 = vshrl.u32 %v1121_v47, 16  ;;  %v1856_v0 = vld [vmem:[%s2372_s1 + $0x1f8] sm:$0xff]  }
  0x48   : > { %563 = vmatprep.subr.bf16.mxu0 %v1922_v1  ;;  %688 = vmatprep.subr.bf16.mxu1 %v1922_v1  ;;  %v1880_v47 = vld [vmem:[%s2372_s1 + $0x278] sm:$0xff]  }
  0x49   : > { %v1154_v3 = vor.u32 %v1153_v61, %v1149_v60 }
  0x4b   : > { %564 = vmatpush1.bf16.msra.mxu0 %v1833_v7  ;;  %689 = vmatpush1.bf16.msra.mxu1 %v1834_v8  ;;  %v1860_v7 = vld [vmem:[%s2372_s1 + $0x208] sm:$0xff]  }
  0x4c   : > { %565 = vmatprep.subr.bf16.mxu0 %v1922_v1  ;;  %690 = vmatprep.subr.bf16.mxu1 %v1922_v1  ;;  %v1861_v8 = vld [vmem:[%s2372_s1 + $0x1c8] sm:$0xff]  }
  0x4f   : > { %566 = vmatpush1.bf16.msra.mxu0 %v1835_v13  ;;  %691 = vmatpush1.bf16.msra.mxu1 %v1836_v14  ;;  %v1866_v13 = vld [vmem:[%s2372_s1 + $0x220] sm:$0xff]  }
  0x50   : > { %812 = vmatprep.subr.bf16.mxu0 %v1922_v1  ;;  %950 = vmatprep.subr.bf16.mxu1 %v1922_v1  ;;  %v1691_v14 = vld [vmem:[%s2021_s24 + $0x40] sm:$0xfe] }
  0x51   : > { %v1120_v19 = vpack.c.bf16 %v1693_v15, %v1691_v14 }
  0x52   : > { %582 = vmatmul.mubr.bf16.vlgmr.msra.gmra.mrb[4].mxu0 %v483_v18  ;;  %707 = vmatmul.mubr.bf16.vlgmr.msra.gmra.mrb[4].mxu1 %v596_v22  ;;  %v1867_v18 = vld [vmem:[%s2372_s1 + $0x1e0] sm:$0xff]   ;;  %v1869_v22 = vld [vmem:[%s2372_s1 + $0x1e8] sm:$0xff]  }
  0x53   : > { %813 = vmatpush1.bf16.msra.mxu0 %v1837_v21  ;;  %951 = vmatpush1.bf16.msra.mxu1 %v1838_v23  ;;  %v1259_v21 = vpack.c.bf16 %v1726_v17, %v1724_v16  ;;  %v1144_v23 = vshll.u32 %v1120_v19, 16 }
  0x54   : > { %814 = vmatprep.subr.bf16.mxu0 %v1922_v1  ;;  %952 = vmatprep.subr.bf16.mxu1 %v1922_v1 }
  0x55   : > { %1628 = vmatprep.mubr.msk.bf16.mxu0 %vm311_vm0, %v753_v24  ;;  %1660 = vmatprep.mubr.msk.bf16.mxu1 %vm311_vm0, %v891_v25  ;;  %v1870_v24 = vld [vmem:[%s2372_s1 + $0x230] sm:$0xff]   ;;  %v1289_v25 = vshll.u32 %v1259_v21, 16 }
  0x57   : > { %815 = vmatpush1.bf16.msra.mxu0 %v1839_v26  ;;  %953 = vmatpush1.bf16.msra.mxu1 %v1840_v27  ;;  %v1871_v26 = vld [vmem:[%s2372_s1 + $0x1f0] sm:$0xff]  }
  0x58   : > { %816 = vmatprep.subr.bf16.mxu0 %v1922_v1  ;;  %954 = vmatprep.subr.bf16.mxu1 %v1922_v1  ;;  %v1661_v27 = vld [vmem:[%s2021_s24 + $0x30] sm:$0xff] }
  0x5b   : > { %817 = vmatpush1.bf16.msra.mxu0 %v1841_v28  ;;  %955 = vmatpush1.bf16.msra.mxu1 %v1842_v29  ;;  %v1142_v28 = vshrl.u32 %v1120_v19, 16  ;;  %v1146_v29 = vrot.slane %v1144_v23, 1 }
  0x5c   : > { %818 = vmatprep.subr.bf16.mxu0 %v1922_v1  ;;  %956 = vmatprep.subr.bf16.mxu1 %v1922_v1 }
  0x5d   : > { %v1147_v35 = vor.u32 %v1146_v29, %v1142_v28  ;;  %v1755_v28 = vld [vmem:[%s2373_s2] ss:$0 sm:$0xff] }
  0x5f   : > { %819 = vmatpush1.bf16.msra.mxu0 %v1843_v30  ;;  %957 = vmatpush1.bf16.msra.mxu1 %v1844_v31  ;;  %v1872_v30 = vld [vmem:[%s2372_s1 + $0x238] sm:$0xff]   ;;  %v1287_v31 = vshrl.u32 %v1259_v21, 16 }
  0x60   : > { %820 = vmatprep.subr.bf16.mxu0 %v1922_v1  ;;  %958 = vmatprep.subr.bf16.mxu1 %v1922_v1 }
  0x63   : > { %821 = vmatpush1.bf16.msra.mxu0 %v1845_v32  ;;  %959 = vmatpush1.bf16.msra.mxu1 %v1846_v33  ;;  %v1291_v32 = vrot.slane %v1289_v25, 1  ;;  %v997_v33 = vpack.c.bf16 %v1661_v27, %v1661_v27 }
  0x64   : > { %822 = vmatprep.subr.bf16.mxu0 %v1922_v1  ;;  %960 = vmatprep.subr.bf16.mxu1 %v1922_v1 }
  0x65   : > { %v1292_v36 = vor.u32 %v1291_v32, %v1287_v31 }
  0x67   : > { %823 = vmatpush1.bf16.msra.mxu0 %v1847_v34  ;;  %961 = vmatpush1.bf16.msra.mxu1 %v1848_v37  ;;  %v1873_v34 = vld [vmem:[%s2372_s1 + $0x240] sm:$0xff]   ;;  %v1874_v37 = vld [vmem:[%s2372_s1 + $0x248] sm:$0xff]  }
  0x68   : > { %824 = vmatprep.subr.bf16.mxu0 %v1922_v1  ;;  %962 = vmatprep.subr.bf16.mxu1 %v1922_v1 }
  0x6b   : > { %825 = vmatpush1.bf16.msra.mxu0 %v1849_v41  ;;  %963 = vmatpush1.bf16.msra.mxu1 %v1850_v45  ;;  %v1878_v41 = vld [vmem:[%s2372_s1 + $0x268] sm:$0xff]   ;;  %v1879_v45 = vld [vmem:[%s2372_s1 + $0x270] sm:$0xff]  }
  0x6c   : > { %826 = vmatprep.subr.bf16.mxu0 %v1922_v1  ;;  %964 = vmatprep.subr.bf16.mxu1 %v1922_v1 }
  0x6f   : > { %827 = vmatpush1.bf16.msra.mxu0 %v1851_v48  ;;  %965 = vmatpush1.bf16.msra.mxu1 %v1852_v50  ;;  %v1280_v48 = vshrl.u32 %v1258_v44, 16  ;;  %v1881_v50 = vld [vmem:[%s2372_s1 + $0x280] sm:$0xff]  }
  0x70   : > { %828 = vmatprep.subr.bf16.mxu0 %v1922_v1  ;;  %966 = vmatprep.subr.bf16.mxu1 %v1922_v1 }
  0x71   : > { %v1285_v51 = vor.u32 %v1284_v49, %v1280_v48 }
  0x73   : > { %829 = vmatpush1.bf16.msra.mxu0 %v1853_v54  ;;  %967 = vmatpush1.bf16.msra.mxu1 %v1854_v57 }
  0x74   : > { %1075 = vmatprep.subr.bf16.mxu0 %v1922_v1  ;;  %1213 = vmatprep.subr.bf16.mxu1 %v1922_v1 }
  0x76   : > { %845 = vmatmul.mubr.bf16.vlgmr.msra.gmra.mrb[8].mxu0 %v746_v58  ;;  %983 = vmatmul.mubr.bf16.vlgmr.msra.gmra.mrb[8].mxu1 %v884_v63 }
  0x77   : > { %1076 = vmatpush1.bf16.msra.mxu0 %v1855_v62  ;;  %1214 = vmatpush1.bf16.msra.mxu1 %v1856_v0 }
  0x78   : > { %1077 = vmatprep.subr.bf16.mxu0 %v1922_v1  ;;  %1215 = vmatprep.subr.bf16.mxu1 %v1922_v1 }
  0x79   : > { %1690 = vmatprep.mubr.msk.bf16.mxu0 %vm311_vm0, %v998_v2  ;;  %1722 = vmatprep.mubr.msk.bf16.mxu1 %vm311_vm0, %v1154_v3 }
  0x7b   : > { %1078 = vmatpush1.bf16.msra.mxu0 %v1857_v4  ;;  %1216 = vmatpush1.bf16.msra.mxu1 %v1858_v5 }
  0x7c   : > { %1079 = vmatprep.subr.bf16.mxu0 %v1922_v1  ;;  %1217 = vmatprep.subr.bf16.mxu1 %v1922_v1 }
  0x7f   : > { %1080 = vmatpush1.bf16.msra.mxu0 %v1859_v6  ;;  %1218 = vmatpush1.bf16.msra.mxu1 %v1860_v7 }
  0x80   : > { %1081 = vmatprep.subr.bf16.mxu0 %v1922_v1  ;;  %1219 = vmatprep.subr.bf16.mxu1 %v1922_v1 }
  0x83   : > { %1082 = vmatpush1.bf16.msra.mxu0 %v1861_v8  ;;  %1220 = vmatpush1.bf16.msra.mxu1 %v1862_v9 }
  0x84   : > { %1083 = vmatprep.subr.bf16.mxu0 %v1922_v1  ;;  %1221 = vmatprep.subr.bf16.mxu1 %v1922_v1 }
  0x87   : > { %1084 = vmatpush1.bf16.msra.mxu0 %v1863_v10  ;;  %1222 = vmatpush1.bf16.msra.mxu1 %v1864_v11 }
  0x88   : > { %1085 = vmatprep.subr.bf16.mxu0 %v1922_v1  ;;  %1223 = vmatprep.subr.bf16.mxu1 %v1922_v1 }
  0x8b   : > { %1086 = vmatpush1.bf16.msra.mxu0 %v1865_v12  ;;  %1224 = vmatpush1.bf16.msra.mxu1 %v1866_v13 }
  0x8c   : > { %1087 = vmatprep.subr.bf16.mxu0 %v1922_v1  ;;  %1225 = vmatprep.subr.bf16.mxu1 %v1922_v1 }
  0x8f   : > { %1088 = vmatpush1.bf16.msra.mxu0 %v1867_v18  ;;  %1226 = vmatpush1.bf16.msra.mxu1 %v1868_v20 }
  0x90   : > { %1089 = vmatprep.subr.bf16.mxu0 %v1922_v1  ;;  %1227 = vmatprep.subr.bf16.mxu1 %v1922_v1 }
  0x93   : > { %1090 = vmatpush1.bf16.msra.mxu0 %v1869_v22  ;;  %1228 = vmatpush1.bf16.msra.mxu1 %v1870_v24 }
  0x94   : > { %1091 = vmatprep.subr.bf16.mxu0 %v1922_v1  ;;  %1229 = vmatprep.subr.bf16.mxu1 %v1922_v1 }
  0x97   : > { %1092 = vmatpush1.bf16.msra.mxu0 %v1871_v26  ;;  %1230 = vmatpush1.bf16.msra.mxu1 %v1872_v30 }
  0x98   : > { %1351 = vmatprep.subr.bf16.mxu0 %v1922_v1 }
  0x9a   : > { %1108 = vmatmul.mubr.bf16.vlgmr.msra.gmra.mrb[12].mxu0 %v997_v33  ;;  %1246 = vmatmul.mubr.bf16.vlgmr.msra.gmra.mrb[12].mxu1 %v1147_v35 }
  0x9b   : > { %1352 = vmatpush1.bf16.msra.mxu0 %v1873_v34  ;;  %1754 = vmatprep.mubr.msk.bf16.mxu0 %vm311_vm0, %v1292_v36 }
  0x9c   : > { %1353 = vmatprep.subr.bf16.mxu0 %v1922_v1 }
  0x9f   : > { %1354 = vmatpush1.bf16.msra.mxu0 %v1874_v37 }
  0xa0   : > { %1355 = vmatprep.subr.bf16.mxu0 %v1922_v1 }
  0xa3   : > { %1356 = vmatpush1.bf16.msra.mxu0 %v1875_v38 }
  0xa4   : > { %1357 = vmatprep.subr.bf16.mxu0 %v1922_v1 }
  0xa7   : > { %1358 = vmatpush1.bf16.msra.mxu0 %v1876_v39 }
  0xa8   : > { %1359 = vmatprep.subr.bf16.mxu0 %v1922_v1 }
  0xab   : > { %1360 = vmatpush1.bf16.msra.mxu0 %v1877_v40 }
  0xac   : > { %1361 = vmatprep.subr.bf16.mxu0 %v1922_v1 }
  0xaf   : > { %1362 = vmatpush1.bf16.msra.mxu0 %v1878_v41 }
  0xb0   : > { %1363 = vmatprep.subr.bf16.mxu0 %v1922_v1 }
  0xb3   : > { %1364 = vmatpush1.bf16.msra.mxu0 %v1879_v45 }
  0xb4   : > { %1365 = vmatprep.subr.bf16.mxu0 %v1922_v1 }
  0xb7   : > { %1366 = vmatpush1.bf16.msra.mxu0 %v1880_v47 }
  0xb8   : > { %1367 = vmatprep.subr.bf16.mxu0 %v1922_v1 }
  0xbb   : > { %1368 = vmatpush1.bf16.msra.mxu0 %v1881_v50 }
  0xbe   : > { %1384 = vmatmul.mubr.bf16.vlgmr.msra.gmra.mrb[16].mxu0 %v1285_v51 }
 0x101   : > { %v349_v52 = vpop.f32.mrb[0].mxu0  ;;  %v446_v54 = vpop.f32.mrb[0].mxu1 }
 0x102   : > { %v351_v53 = vpop.f32.mrb[1].mxu0  ;;  %v447_v55 = vadd.f32 %v446_v54, %v349_v52  ;;  %v448_v57 = vpop.f32.mrb[1].mxu1 }
 0x103   : > { %v352_v56 = vpop.f32.mrb[2].mxu0  ;;  %v449_v59 = vpop.f32.mrb[2].mxu1 }
 0x104   : > { %v353_v58 = vpop.f32.mrb[3].mxu0  ;;  %v450_v60 = vpop.f32.mrb[3].mxu1 }
 0x125   : > { %v583_v61 = vpop.f32.mrb[4].mxu0  ;;  %v708_v0 = vpop.f32.mrb[4].mxu1 }
 0x126   : > { %v589_v62 = vadd.f32 %v583_v61, %v447_v55  ;;  %v585_v63 = vpop.f32.mrb[5].mxu0  ;;  %v710_v3 = vpop.f32.mrb[5].mxu1 }
 0x127   : > { %v586_v2 = vpop.f32.mrb[6].mxu0  ;;  %v711_v5 = vpop.f32.mrb[6].mxu1 }
 0x128   : > { %v714_v4 = vadd.f32 %v708_v0, %v589_v62  ;;  %v587_v1 = vpop.f32.mrb[7].mxu0  ;;  %v712_v6 = vpop.f32.mrb[7].mxu1 }
 0x149   : > { %v846_v7 = vpop.f32.mrb[8].mxu0  ;;  %v984_v10 = vpop.f32.mrb[8].mxu1 }
 0x14a   : > { %v852_v8 = vadd.f32 %v846_v7, %v714_v4  ;;  %v848_v9 = vpop.f32.mrb[9].mxu0  ;;  %v986_v12 = vpop.f32.mrb[9].mxu1 }
 0x14b   : > { %v849_v11 = vpop.f32.mrb[10].mxu0  ;;  %v987_v15 = vpop.f32.mrb[10].mxu1 }
 0x14c   : > { %v990_v13 = vadd.f32 %v984_v10, %v852_v8  ;;  %v850_v14 = vpop.f32.mrb[11].mxu0  ;;  %v988_v16 = vpop.f32.mrb[11].mxu1 }
 0x16d   : > { %v1109_v17 = vpop.f32.mrb[12].mxu0  ;;  %v1247_v20 = vpop.f32.mrb[12].mxu1 }
 0x16e   : > { %v1115_v18 = vadd.f32 %v1109_v17, %v990_v13  ;;  %v1111_v19 = vpop.f32.mrb[13].mxu0  ;;  %v1249_v22 = vpop.f32.mrb[13].mxu1 }
 0x16f   : > { %v1112_v21 = vpop.f32.mrb[14].mxu0  ;;  %v1250_v25 = vpop.f32.mrb[14].mxu1 }
 0x170   : > { %v1253_v23 = vadd.f32 %v1247_v20, %v1115_v18  ;;  %v1113_v24 = vpop.f32.mrb[15].mxu0  ;;  %v1251_v26 = vpop.f32.mrb[15].mxu1 }
 0x191   : > { %v1385_v27 = vpop.f32.mrb[16].mxu0 }
 0x192   : > { %v1391_v29 = vadd.f32 %v1385_v27, %v1253_v23  ;;  %v1387_v30 = vpop.f32.mrb[17].mxu0 }
 0x193   : > { %v1388_v31 = vpop.f32.mrb[18].mxu0 }
 0x194   : > { %v1399_v32 = vadd.f32 %v1755_v28, %v1391_v29  ;;  %v1389_v33 = vpop.f32.mrb[19].mxu0 }
 0x196   : > { %vm1400_vm1 = vcmp.ge.f32.partialorder %v1399_v32, 0.0  ;;  %v1401_v34 = vmul.f32 0.1, %v1399_v32 }
 0x198   : > { %v1402_v35 = vsel %vm1400_vm1, %v1399_v32, %v1401_v34 }
 0x199   : > { %1403 = vst [vmem:[%s190_s20] sm:$0xff] %v1402_v35 }
 0x19a PF: > { %s13_s16 = sadd.s32 1, %s1920_s16   ;;  %s2375_s12 = smov %s1912_s14 }
 0x19b   : > { %p10_p7 = scmp.ge.s32.totalorder %s13_s16, 18   ;;  %s2376_s13 = smov %s1916_s15 }
 0x19c   : > { %s2377_s14 = smov %s2380_s17  ;;  %s2378_s15 = smov %s2384_s18 }
 0x19d   :  { %12 = sbr.rel (!%p10_p7) target bundleno = 3 (0x3), region = 73 }

// kernel: _lambda_.10
= control target key start
LH: loop header
LB: loop body
LE: loop exit
PB: predicated region body
PF: predicated region fallthrough
CT: control target
= control target key end

     0   :  { %s2022_s12 = smov 0   ;;  %s2024_s13 = smov 0   ;;  %s2486_s0 = inlined_call_operand.vmem [shape: f32[2,10,10,160], index: 0, kind: input, shape index: {}]   ;;  %s2487_s1 = inlined_call_operand.vmem [shape: bf16[9,160,128], index: 1, kind: input, shape index: {}]   ;;  %s2488_s2 = inlined_call_operand.vmem [shape: f32[1,128], index: 2, kind: input, shape index: {}]   ;;  %s2489_s3 = inlined_call_operand.vmem [shape: f32[2,8,8,128], index: 3, kind: output, shape index: {}]  }
   0x1   :  { %s2026_s14 = smov 0   ;;  %s2028_s15 = smov 0  }
   0x2   :  { %s2030_s16 = smov 0  }
   0x3 LB: > { %s22_s17 = sadd.s32 1, %s1991_s14  ;;  %s25_s18 = sadd.s32 1, %s1995_s15  ;;  %s1999_s16 = sphi %s2030_s16, %s13_s16   ;;  %s1995_s15 = sphi %s2028_s15, %s2493_s15   ;;  %s1991_s14 = sphi %s2026_s14, %s2492_s14   ;;  %s1987_s13 = sphi %s2024_s13, %s2491_s13   ;;  %s1983_s12 = sphi %s2022_s12, %s2490_s12  }
   0x4   : > { %p23_p0 = scmp.ge.s32.totalorder %s22_s17, 8  ;;  %p1538_p1 = scmp.ge.s32.totalorder %s1999_s16, 1 }
   0x5   : > { %p151_p2 = scmp.lt.s32.totalorder %s1999_s16, 17 }
   0x6   : > { %s2495_s17 = smov (%p23_p0, %s22_s17), 0  ;;  %s2497_s18 = smov (!%p23_p0, %s25_s18), %s1995_s15 }
   0x7   : > { %p152_p3 = pnand %p1538_p1, %p151_p2  ;;  %p27_p4 = scmp.ge.s32.totalorder %s2497_s18, 2 }
   0x8   : > { %v1871_v0 = vld [vmem:[%s2487_s1 + $0x50] sm:$0xff] (!%p152_p3)   ;;  %v2001_v1 = vmov (!%p152_p3), 0   ;;  %v1872_v2 = vld [vmem:[%s2487_s1] sm:$0xff] (!%p152_p3)   ;;  %v1873_v3 = vld [vmem:[%s2487_s1 + $0x58] sm:$0xff] (!%p152_p3)   ;;  %p178_p5 = scmp.lt.s32.totalorder (!%p152_p3), %s1987_s13, 1  ;;  %s1828_s21 = sshll.u32 (!%p152_p3), %s1983_s12, 5 }
   0x9   : > { %s2499_s18 = smov (%p27_p4, %s2497_s18), 0  ;;  %155 = sbr.rel (%p152_p3) target bundleno = 430 (0x1ae), region = 32 }
   0xa   : > { %325 = vmatprep.subr.bf16.mxu0 (!%p152_p3), %v2001_v1  ;;  %428 = vmatprep.subr.bf16.mxu1 (!%p152_p3), %v2001_v1  ;;  %v1874_v4 = vld [vmem:[%s2487_s1 + $0x8] sm:$0xff] (!%p152_p3)   ;;  %v1875_v5 = vld [vmem:[%s2487_s1 + $0x60] sm:$0xff] (!%p152_p3)   ;;  %v1876_v6 = vld [vmem:[%s2487_s1 + $0x10] sm:$0xff] (!%p152_p3)   ;;  %vm321_vm0 = vcmask (!%p152_p3), 261120   ;;  %p185_p6 = scmp.lt.s32.totalorder (!%p152_p3), %s1983_s12, 7 }
   0xb   : > { %326 = vmatpush1.bf16.msra.mxu0 (!%p152_p3), %v1871_v0  ;;  %429 = vmatpush1.bf16.msra.mxu1 (!%p152_p3), %v1872_v2  ;;  %v1877_v7 = vld [vmem:[%s2487_s1 + $0x68] sm:$0xff] (!%p152_p3)   ;;  %v1878_v8 = vld [vmem:[%s2487_s1 + $0x18] sm:$0xff] (!%p152_p3)   ;;  %v1879_v9 = vld [vmem:[%s2487_s1 + $0x70] sm:$0xff] (!%p152_p3)  }
   0xc   : > { %327 = vmatprep.subr.bf16.mxu0 (!%p152_p3), %v2001_v1  ;;  %430 = vmatprep.subr.bf16.mxu1 (!%p152_p3), %v2001_v1  ;;  %v1880_v10 = vld [vmem:[%s2487_s1 + $0x20] sm:$0xff] (!%p152_p3)   ;;  %v1881_v11 = vld [vmem:[%s2487_s1 + $0x78] sm:$0xff] (!%p152_p3)   ;;  %v1882_v12 = vld [vmem:[%s2487_s1 + $0x28] sm:$0xff] (!%p152_p3)  }
   0xd   : > { %v1883_v13 = vld [vmem:[%s2487_s1 + $0x80] sm:$0xff] (!%p152_p3)   ;;  %v1884_v16 = vld [vmem:[%s2487_s1 + $0x30] sm:$0xff] (!%p152_p3)   ;;  %v1885_v24 = vld [vmem:[%s2487_s1 + $0x88] sm:$0xff] (!%p152_p3)  }
   0xe   : > { %v1886_v27 = vld [vmem:[%s2487_s1 + $0x38] sm:$0xff] (!%p152_p3)   ;;  %v1887_v30 = vld [vmem:[%s2487_s1 + $0x90] sm:$0xff] (!%p152_p3)   ;;  %v1888_v31 = vld [vmem:[%s2487_s1 + $0x40] sm:$0xff] (!%p152_p3)  }
   0xf   : > { %328 = vmatpush1.bf16.msra.mxu0 (!%p152_p3), %v1873_v3  ;;  %431 = vmatpush1.bf16.msra.mxu1 (!%p152_p3), %v1874_v4  ;;  %v1889_v32 = vld [vmem:[%s2487_s1 + $0x98] sm:$0xff] (!%p152_p3)   ;;  %v1890_v35 = vld [vmem:[%s2487_s1 + $0x48] sm:$0xff] (!%p152_p3)   ;;  %v1891_v39 = vld [vmem:[%s2487_s1 + $0xa0] sm:$0xff] (!%p152_p3)  }
  0x10   : > { %s2501_s13 = smov (!%p178_p5, %s1987_s13), 1  ;;  %329 = vmatprep.subr.bf16.mxu0 %v2001_v1  ;;  %432 = vmatprep.subr.bf16.mxu1 %v2001_v1  ;;  %v1892_v40 = vld [vmem:[%s2487_s1 + $0xf0] sm:$0xff]   ;;  %v1893_v43 = vld [vmem:[%s2487_s1 + $0xa8] sm:$0xff]   ;;  %v1894_v45 = vld [vmem:[%s2487_s1 + $0xf8] sm:$0xff]   ;;  %s2503_s12 = smov (!%p185_p6, %s1983_s12), 7 }
  0x11   : > { %s1829_s6 = smul.u32 320, %s2501_s13  ;;  %v1895_v49 = vld [vmem:[%s2487_s1 + $0xb0] sm:$0xff]   ;;  %v1896_v50 = vld [vmem:[%s2487_s1 + $0x100] sm:$0xff]   ;;  %v1897_v51 = vld [vmem:[%s2487_s1 + $0xb8] sm:$0xff]  }
  0x12   : > { %v1898_v52 = vld [vmem:[%s2487_s1 + $0x108] sm:$0xff]   ;;  %v1899_v53 = vld [vmem:[%s2487_s1 + $0xc0] sm:$0xff]   ;;  %v1900_v54 = vld [vmem:[%s2487_s1 + $0x110] sm:$0xff]  }
  0x13   : > { %330 = vmatpush1.bf16.msra.mxu0 %v1875_v5  ;;  %433 = vmatpush1.bf16.msra.mxu1 %v1876_v6  ;;  %s182_s20 = scalar_lea.vmem %s2486_s0, %s1829_s6  ;;  %v1901_v55 = vld [vmem:[%s2487_s1 + $0xc8] sm:$0xff]   ;;  %v1902_v56 = vld [vmem:[%s2487_s1 + $0x118] sm:$0xff]   ;;  %v1903_v57 = vld [vmem:[%s2487_s1 + $0xd0] sm:$0xff]  }
  0x14   : > { %331 = vmatprep.subr.bf16.mxu0 %v2001_v1  ;;  %434 = vmatprep.subr.bf16.mxu1 %v2001_v1  ;;  %s2101_s24 = scalar_lea.vmem %s182_s20, %s1828_s21  ;;  %v1904_v58 = vld [vmem:[%s2487_s1 + $0x120] sm:$0xff]   ;;  %v1905_v61 = vld [vmem:[%s2487_s1 + $0xd8] sm:$0xff]   ;;  %v1906_v62 = vld [vmem:[%s2487_s1 + $0x128] sm:$0xff]  }
  0x15   : > { %v220_v14 = vld [vmem:[%s2101_s24 + $0x8] sm:$0xfe]  ;;  %v222_v15 = vld [vmem:[%s2101_s24 + $0x18] sm:$0x1]  ;;  %v219_v18 = vld [vmem:[%s2101_s24] sm:$0xfe] }
  0x16   : > { %v224_v17 = vpack.c.bf16 %v222_v15, %v220_v14  ;;  %v196_v19 = vld [vmem:[%s2101_s24 + $0x8] sm:$0xff]  ;;  %v221_v20 = vld [vmem:[%s2101_s24 + $0x10] sm:$0x1]  ;;  %v195_v36 = vld [vmem:[%s2101_s24] sm:$0xff] }
  0x17   : > { %332 = vmatpush1.bf16.msra.mxu0 %v1877_v7  ;;  %435 = vmatpush1.bf16.msra.mxu1 %v1878_v8  ;;  %v198_v21 = vpack.c.bf16 %v196_v19, %v196_v19  ;;  %v223_v26 = vpack.c.bf16 %v221_v20, %v219_v18  ;;  %v197_v38 = vpack.c.bf16 %v195_v36, %v195_v36  ;;  %v469_v41 = vld [vmem:[%s2101_s24 + $0x8] sm:$0xfc]  ;;  %v471_v42 = vld [vmem:[%s2101_s24 + $0x18] sm:$0x3]  ;;  %v1907_v0 = vld [vmem:[%s2487_s1 + $0xe0] sm:$0xff]  }
  0x18   : > { %333 = vmatprep.subr.bf16.mxu0 %v2001_v1  ;;  %436 = vmatprep.subr.bf16.mxu1 %v2001_v1  ;;  %v254_v22 = vshrl.u32 %v224_v17, 16  ;;  %v256_v23 = vshll.u32 %v224_v17, 16  ;;  %v473_v44 = vpack.c.bf16 %v471_v42, %v469_v41  ;;  %v1619_v46 = vld [vmem:[%s2101_s24 + $0x28] sm:$0xff]  ;;  %v1654_v60 = vld [vmem:[%s2101_s24 + $0x38] sm:$0x1]  ;;  %v1908_v4 = vld [vmem:[%s2487_s1 + $0x130] sm:$0xff]  }
  0x19   : > { %1585 = vmatprep.mubr.msk.bf16.mxu1 %vm321_vm0, %v198_v21  ;;  %v249_v29 = vshll.u32 %v223_v26, 16  ;;  %v247_v33 = vshrl.u32 %v223_v26, 16  ;;  %v611_v48 = vpack.c.bf16 %v1619_v46, %v1619_v46  ;;  %v1652_v59 = vld [vmem:[%s2101_s24 + $0x28] sm:$0xfe]  ;;  %v468_v2 = vld [vmem:[%s2101_s24] sm:$0xfc] }
  0x1a   : > { %v258_v25 = vrot.slane %v256_v23, 1  ;;  %v498_v47 = vrot.slane %v473_v44, 1  ;;  %v742_v63 = vpack.c.bf16 %v1654_v60, %v1652_v59  ;;  %v470_v3 = vld [vmem:[%s2101_s24 + $0x10] sm:$0x3]  ;;  %v1909_v6 = vld [vmem:[%s2487_s1 + $0xe8] sm:$0xff]   ;;  %v1910_v7 = vld [vmem:[%s2487_s1 + $0x138] sm:$0xff]  }
  0x1b   : > { %334 = vmatpush1.bf16.msra.mxu0 %v1879_v9  ;;  %437 = vmatpush1.bf16.msra.mxu1 %v1880_v10  ;;  %v251_v34 = vrot.slane %v249_v29, 1  ;;  %v472_v8 = vpack.c.bf16 %v470_v3, %v468_v2  ;;  %v1687_v9 = vld [vmem:[%s2101_s24 + $0x28] sm:$0xfc]  ;;  %v1689_v10 = vld [vmem:[%s2101_s24 + $0x38] sm:$0x3]  ;;  %v1912_v18 = vld [vmem:[%s2487_s1 + $0x190] sm:$0xff]  }
  0x1c   : > { %335 = vmatprep.subr.bf16.mxu0 %v2001_v1  ;;  %438 = vmatprep.subr.bf16.mxu1 %v2001_v1  ;;  %v259_v28 = vor.u32 %v258_v25, %v254_v22  ;;  %v774_v5 = vshll.u32 %v742_v63, 16  ;;  %v888_v15 = vpack.c.bf16 %v1689_v10, %v1687_v9  ;;  %v1913_v21 = vld [vmem:[%s2487_s1 + $0x148] sm:$0xff]   ;;  %v1914_v22 = vld [vmem:[%s2487_s1 + $0x198] sm:$0xff]   ;;  %v1915_v23 = vld [vmem:[%s2487_s1 + $0x150] sm:$0xff]  }
  0x1d   : > { %v252_v37 = vor.u32 %v251_v34, %v247_v33  ;;  %v497_v14 = vrot.slane %v472_v8, 1  ;;  %v1917_v25 = vld [vmem:[%s2487_s1 + $0x158] sm:$0xff]   ;;  %v1918_v26 = vld [vmem:[%s2487_s1 + $0x1a8] sm:$0xff]   ;;  %v1653_v33 = vld [vmem:[%s2101_s24 + $0x30] sm:$0x1] }
  0x1e   : > { %1574 = vmatprep.mubr.msk.bf16.mxu0 %vm321_vm0, %v259_v28  ;;  %v913_v20 = vrot.slane %v888_v15, 1  ;;  %v1920_v28 = vld [vmem:[%s2487_s1 + $0x1b0] sm:$0xff]   ;;  %v1921_v29 = vld [vmem:[%s2487_s1 + $0x168] sm:$0xff]   ;;  %v1924_v34 = vld [vmem:[%s2487_s1 + $0x1c0] sm:$0xff]  }
  0x1f   : > { %336 = vmatpush1.bf16.msra.mxu0 %v1881_v11  ;;  %439 = vmatpush1.bf16.msra.mxu1 %v1882_v12  ;;  %v1618_v11 = vld [vmem:[%s2101_s24 + $0x20] sm:$0xff]  ;;  %v772_v12 = vshrl.u32 %v742_v63, 16  ;;  %v1925_v36 = vld [vmem:[%s2487_s1 + $0x178] sm:$0xff]   ;;  %v1935_v63 = vld [vmem:[%s2487_s1 + $0x1f0] sm:$0xff]  }
  0x20   : > { %337 = vmatprep.subr.bf16.mxu0 %v2001_v1  ;;  %440 = vmatprep.subr.bf16.mxu1 %v2001_v1  ;;  %v610_v17 = vpack.c.bf16 %v1618_v11, %v1618_v11  ;;  %v1927_v42 = vld [vmem:[%s2487_s1 + $0x180] sm:$0xff]   ;;  %v1937_v2 = vld [vmem:[%s2487_s1 + $0x1f8] sm:$0xff]   ;;  %v1938_v3 = vld [vmem:[%s2487_s1 + $0x248] sm:$0xff]  }
  0x21   : > { %v1686_v44 = vld [vmem:[%s2101_s24 + $0x20] sm:$0xfc]  ;;  %v1943_v8 = vld [vmem:[%s2487_s1 + $0x210] sm:$0xff]  }
  0x22   : > { %v1944_v9 = vld [vmem:[%s2487_s1 + $0x260] sm:$0xff]   ;;  %v1757_v11 = vld [vmem:[%s2101_s24 + $0x50] sm:$0x1] }
  0x23   : > { %338 = vmatpush1.bf16.msra.mxu0 %v1883_v13  ;;  %441 = vmatpush1.bf16.msra.mxu1 %v1884_v16  ;;  %v776_v13 = vrot.slane %v774_v5, 1  ;;  %v1911_v16 = vld [vmem:[%s2487_s1 + $0x140] sm:$0xff]   ;;  %v1940_v5 = vld [vmem:[%s2487_s1 + $0x250] sm:$0xff]  }
  0x24   : > { %339 = vmatprep.subr.bf16.mxu0 %v2001_v1  ;;  %442 = vmatprep.subr.bf16.mxu1 %v2001_v1  ;;  %v1755_v10 = vld [vmem:[%s2101_s24 + $0x40] sm:$0xfe] }
  0x25   : > { %v777_v19 = vor.u32 %v776_v13, %v772_v12  ;;  %v1945_v12 = vld [vmem:[%s2487_s1 + $0x218] sm:$0xff]   ;;  %v1156_v13 = vpack.c.bf16 %v1757_v11, %v1755_v10  ;;  %v1947_v15 = vld [vmem:[%s2487_s1 + $0x220] sm:$0xff]  }
  0x27   : > { %340 = vmatpush1.bf16.msra.mxu0 %v1885_v24  ;;  %443 = vmatpush1.bf16.msra.mxu1 %v1886_v27  ;;  %v1916_v24 = vld [vmem:[%s2487_s1 + $0x1a0] sm:$0xff]  }
  0x28   : > { %341 = vmatprep.subr.bf16.mxu0 %v2001_v1  ;;  %444 = vmatprep.subr.bf16.mxu1 %v2001_v1  ;;  %v1919_v27 = vld [vmem:[%s2487_s1 + $0x160] sm:$0xff]  }
  0x2b   : > { %342 = vmatpush1.bf16.msra.mxu0 %v1887_v30  ;;  %445 = vmatpush1.bf16.msra.mxu1 %v1888_v31  ;;  %v1922_v30 = vld [vmem:[%s2487_s1 + $0x1b8] sm:$0xff]   ;;  %v1923_v31 = vld [vmem:[%s2487_s1 + $0x170] sm:$0xff]  }
  0x2c   : > { %343 = vmatprep.subr.bf16.mxu0 %v2001_v1  ;;  %446 = vmatprep.subr.bf16.mxu1 %v2001_v1 }
  0x2f   : > { %344 = vmatpush1.bf16.msra.mxu0 %v1889_v32  ;;  %447 = vmatpush1.bf16.msra.mxu1 %v1890_v35  ;;  %v1651_v32 = vld [vmem:[%s2101_s24 + $0x20] sm:$0xfe] }
  0x30   : > { %563 = vmatprep.subr.bf16.mxu0 %v2001_v1  ;;  %696 = vmatprep.subr.bf16.mxu1 %v2001_v1  ;;  %v741_v35 = vpack.c.bf16 %v1653_v33, %v1651_v32  ;;  %v1954_v32 = vld [vmem:[%s2487_s1 + $0x298] sm:$0xff]   ;;  %v1955_v33 = vld [vmem:[%s2487_s1 + $0x2a0] sm:$0xff]  }
  0x32   : > { %358 = vmatmul.mubr.bf16.vlgmr.msra.gmra.mrb[0].mxu0 %v252_v37  ;;  %461 = vmatmul.mubr.bf16.vlgmr.msra.gmra.mrb[0].mxu1 %v197_v38  ;;  %v1756_v37 = vld [vmem:[%s2101_s24 + $0x48] sm:$0xfe]  ;;  %v1758_v38 = vld [vmem:[%s2101_s24 + $0x58] sm:$0x1]  ;;  %v765_v46 = vshrl.u32 %v741_v35, 16 }
  0x33   : > { %564 = vmatpush1.bf16.msra.mxu0 %v1891_v39  ;;  %697 = vmatpush1.bf16.msra.mxu1 %v1892_v40  ;;  %v1926_v39 = vld [vmem:[%s2487_s1 + $0x1c8] sm:$0xff]   ;;  %v767_v40 = vshll.u32 %v741_v35, 16  ;;  %v1157_v41 = vpack.c.bf16 %v1758_v38, %v1756_v37  ;;  %v1957_v35 = vld [vmem:[%s2487_s1 + $0x2b0] sm:$0xff]   ;;  %v1959_v37 = vld [vmem:[%s2487_s1 + $0x2c0] sm:$0xff]  }
  0x34   : > { %565 = vmatprep.subr.bf16.mxu0 %v2001_v1  ;;  %698 = vmatprep.subr.bf16.mxu1 %v2001_v1  ;;  %v1790_v38 = vld [vmem:[%s2101_s24 + $0x40] sm:$0xfc] }
  0x35   : > { %1616 = vmatprep.mubr.msk.bf16.mxu0 %vm321_vm0, %v498_v47  ;;  %1650 = vmatprep.mubr.msk.bf16.mxu1 %vm321_vm0, %v611_v48  ;;  %v769_v47 = vrot.slane %v767_v40, 1  ;;  %v1189_v48 = vshll.u32 %v1157_v41, 16 }
  0x37   : > { %566 = vmatpush1.bf16.msra.mxu0 %v1893_v43  ;;  %699 = vmatpush1.bf16.msra.mxu1 %v1894_v45  ;;  %v1928_v43 = vld [vmem:[%s2487_s1 + $0x1d0] sm:$0xff]  }
  0x38   : > { %567 = vmatprep.subr.bf16.mxu0 %v2001_v1  ;;  %700 = vmatprep.subr.bf16.mxu1 %v2001_v1  ;;  %v1688_v45 = vld [vmem:[%s2101_s24 + $0x30] sm:$0x3] }
  0x3b   : > { %568 = vmatpush1.bf16.msra.mxu0 %v1895_v49  ;;  %701 = vmatpush1.bf16.msra.mxu1 %v1896_v50  ;;  %v1929_v49 = vld [vmem:[%s2487_s1 + $0x188] sm:$0xff]   ;;  %v887_v50 = vpack.c.bf16 %v1688_v45, %v1686_v44 }
  0x3c   : > { %569 = vmatprep.subr.bf16.mxu0 %v2001_v1  ;;  %702 = vmatprep.subr.bf16.mxu1 %v2001_v1 }
  0x3f   : > { %570 = vmatpush1.bf16.msra.mxu0 %v1897_v51  ;;  %703 = vmatpush1.bf16.msra.mxu1 %v1898_v52  ;;  %v1930_v51 = vld [vmem:[%s2487_s1 + $0x1d8] sm:$0xff]   ;;  %v770_v52 = vor.u32 %v769_v47, %v765_v46 }
  0x40   : > { %571 = vmatprep.subr.bf16.mxu0 %v2001_v1  ;;  %704 = vmatprep.subr.bf16.mxu1 %v2001_v1 }
  0x43   : > { %572 = vmatpush1.bf16.msra.mxu0 %v1899_v53  ;;  %705 = vmatpush1.bf16.msra.mxu1 %v1900_v54  ;;  %v1723_v53 = vld [vmem:[%s2101_s24 + $0x48] sm:$0xff]  ;;  %v1187_v54 = vshrl.u32 %v1157_v41, 16 }
  0x44   : > { %573 = vmatprep.subr.bf16.mxu0 %v2001_v1  ;;  %706 = vmatprep.subr.bf16.mxu1 %v2001_v1  ;;  %v1026_v59 = vpack.c.bf16 %v1723_v53, %v1723_v53  ;;  %v1960_v41 = vld [vmem:[%s2487_s1 + $0x2c8] sm:$0xff]  }
  0x47   : > { %574 = vmatpush1.bf16.msra.mxu0 %v1901_v55  ;;  %707 = vmatpush1.bf16.msra.mxu1 %v1902_v56  ;;  %v1191_v55 = vrot.slane %v1189_v48, 1  ;;  %v1931_v56 = vld [vmem:[%s2487_s1 + $0x1e0] sm:$0xff]  }
  0x48   : > { %575 = vmatprep.subr.bf16.mxu0 %v2001_v1  ;;  %708 = vmatprep.subr.bf16.mxu1 %v2001_v1 }
  0x49   : > { %v1192_v60 = vor.u32 %v1191_v55, %v1187_v54 }
  0x4b   : > { %576 = vmatpush1.bf16.msra.mxu0 %v1903_v57  ;;  %709 = vmatpush1.bf16.msra.mxu1 %v1904_v58  ;;  %v912_v57 = vrot.slane %v887_v50, 1  ;;  %v1932_v58 = vld [vmem:[%s2487_s1 + $0x230] sm:$0xff]  }
  0x4c   : > { %577 = vmatprep.subr.bf16.mxu0 %v2001_v1  ;;  %710 = vmatprep.subr.bf16.mxu1 %v2001_v1 }
  0x4f   : > { %578 = vmatpush1.bf16.msra.mxu0 %v1905_v61  ;;  %711 = vmatpush1.bf16.msra.mxu1 %v1906_v62  ;;  %v1933_v61 = vld [vmem:[%s2487_s1 + $0x1e8] sm:$0xff]   ;;  %v1934_v62 = vld [vmem:[%s2487_s1 + $0x238] sm:$0xff]  }
  0x50   : > { %579 = vmatprep.subr.bf16.mxu0 %v2001_v1  ;;  %712 = vmatprep.subr.bf16.mxu1 %v2001_v1 }
  0x53   : > { %580 = vmatpush1.bf16.msra.mxu0 %v1907_v0  ;;  %713 = vmatpush1.bf16.msra.mxu1 %v1908_v4  ;;  %v1936_v0 = vld [vmem:[%s2487_s1 + $0x240] sm:$0xff]  }
  0x54   : > { %581 = vmatprep.subr.bf16.mxu0 %v2001_v1  ;;  %714 = vmatprep.subr.bf16.mxu1 %v2001_v1  ;;  %v1939_v4 = vld [vmem:[%s2487_s1 + $0x200] sm:$0xff]  }
  0x57   : > { %582 = vmatpush1.bf16.msra.mxu0 %v1909_v6  ;;  %715 = vmatpush1.bf16.msra.mxu1 %v1910_v7  ;;  %v1941_v6 = vld [vmem:[%s2487_s1 + $0x208] sm:$0xff]   ;;  %v1942_v7 = vld [vmem:[%s2487_s1 + $0x258] sm:$0xff]  }
  0x58   : > { %842 = vmatprep.subr.bf16.mxu0 %v2001_v1  ;;  %978 = vmatprep.subr.bf16.mxu1 %v2001_v1 }
  0x5a   : > { %596 = vmatmul.mubr.bf16.vlgmr.msra.gmra.mrb[4].mxu0 %v497_v14  ;;  %729 = vmatmul.mubr.bf16.vlgmr.msra.gmra.mrb[4].mxu1 %v610_v17  ;;  %v1946_v14 = vld [vmem:[%s2487_s1 + $0x268] sm:$0xff]   ;;  %v1948_v17 = vld [vmem:[%s2487_s1 + $0x270] sm:$0xff]  }
  0x5b   : > { %843 = vmatpush1.bf16.msra.mxu0 %v1911_v16  ;;  %979 = vmatpush1.bf16.msra.mxu1 %v1912_v18  ;;  %v1182_v16 = vshll.u32 %v1156_v13, 16  ;;  %v1791_v18 = vld [vmem:[%s2101_s24 + $0x48] sm:$0xfc] }
  0x5c   : > { %844 = vmatprep.subr.bf16.mxu0 %v2001_v1  ;;  %980 = vmatprep.subr.bf16.mxu1 %v2001_v1 }
  0x5d   : > { %1685 = vmatprep.mubr.msk.bf16.mxu0 %vm321_vm0, %v777_v19  ;;  %1720 = vmatprep.mubr.msk.bf16.mxu1 %vm321_vm0, %v913_v20  ;;  %v1793_v19 = vld [vmem:[%s2101_s24 + $0x58] sm:$0x3]  ;;  %v1949_v20 = vld [vmem:[%s2487_s1 + $0x228] sm:$0xff]  }
  0x5f   : > { %845 = vmatpush1.bf16.msra.mxu0 %v1913_v21  ;;  %981 = vmatpush1.bf16.msra.mxu1 %v1914_v22  ;;  %v1722_v21 = vld [vmem:[%s2101_s24 + $0x40] sm:$0xff]  ;;  %v1180_v22 = vshrl.u32 %v1156_v13, 16 }
  0x60   : > { %846 = vmatprep.subr.bf16.mxu0 %v2001_v1  ;;  %982 = vmatprep.subr.bf16.mxu1 %v2001_v1 }
  0x63   : > { %847 = vmatpush1.bf16.msra.mxu0 %v1915_v23  ;;  %983 = vmatpush1.bf16.msra.mxu1 %v1916_v24  ;;  %v1184_v23 = vrot.slane %v1182_v16, 1  ;;  %v1950_v24 = vld [vmem:[%s2487_s1 + $0x278] sm:$0xff]  }
  0x64   : > { %848 = vmatprep.subr.bf16.mxu0 %v2001_v1  ;;  %984 = vmatprep.subr.bf16.mxu1 %v2001_v1 }
  0x67   : > { %849 = vmatpush1.bf16.msra.mxu0 %v1917_v25  ;;  %985 = vmatpush1.bf16.msra.mxu1 %v1918_v26  ;;  %v1303_v25 = vpack.c.bf16 %v1793_v19, %v1791_v18  ;;  %v1025_v26 = vpack.c.bf16 %v1722_v21, %v1722_v21  ;;  %v1825_v19 = vld [vmem:[%s2488_s2] ss:$0 sm:$0xff] }
  0x68   : > { %850 = vmatprep.subr.bf16.mxu0 %v2001_v1  ;;  %986 = vmatprep.subr.bf16.mxu1 %v2001_v1 }
  0x6b   : > { %851 = vmatpush1.bf16.msra.mxu0 %v1919_v27  ;;  %987 = vmatpush1.bf16.msra.mxu1 %v1920_v28  ;;  %v1951_v27 = vld [vmem:[%s2487_s1 + $0x280] sm:$0xff]   ;;  %v1185_v28 = vor.u32 %v1184_v23, %v1180_v22 }
  0x6c   : > { %852 = vmatprep.subr.bf16.mxu0 %v2001_v1  ;;  %988 = vmatprep.subr.bf16.mxu1 %v2001_v1 }
  0x6f   : > { %853 = vmatpush1.bf16.msra.mxu0 %v1921_v29  ;;  %989 = vmatpush1.bf16.msra.mxu1 %v1922_v30  ;;  %v1328_v29 = vrot.slane %v1303_v25, 1  ;;  %v1952_v30 = vld [vmem:[%s2487_s1 + $0x288] sm:$0xff]  }
  0x70   : > { %854 = vmatprep.subr.bf16.mxu0 %v2001_v1  ;;  %990 = vmatprep.subr.bf16.mxu1 %v2001_v1 }
  0x73   : > { %855 = vmatpush1.bf16.msra.mxu0 %v1923_v31  ;;  %991 = vmatpush1.bf16.msra.mxu1 %v1924_v34  ;;  %v1953_v31 = vld [vmem:[%s2487_s1 + $0x290] sm:$0xff]   ;;  %v1956_v34 = vld [vmem:[%s2487_s1 + $0x2a8] sm:$0xff]  }
  0x74   : > { %856 = vmatprep.subr.bf16.mxu0 %v2001_v1  ;;  %992 = vmatprep.subr.bf16.mxu1 %v2001_v1 }
  0x77   : > { %857 = vmatpush1.bf16.msra.mxu0 %v1925_v36  ;;  %993 = vmatpush1.bf16.msra.mxu1 %v1926_v39  ;;  %v1958_v36 = vld [vmem:[%s2487_s1 + $0x2b8] sm:$0xff]   ;;  %v1792_v39 = vld [vmem:[%s2101_s24 + $0x50] sm:$0x3]  ;;  %s1540_s24 = sshll.u32 %s2501_s13, 3 }
  0x78   : > { %858 = vmatprep.subr.bf16.mxu0 %v2001_v1  ;;  %994 = vmatprep.subr.bf16.mxu1 %v2001_v1  ;;  %v1302_v40 = vpack.c.bf16 %v1792_v39, %v1790_v38  ;;  %s188_s6 = sadd.s32 %s1540_s24, %s2503_s12 }
  0x79   : > { %s1541_s9 = sshll.u32 %s188_s6, 3 }
  0x7a   : > { %s190_s19 = scalar_lea.vmem %s2489_s3, %s1541_s9 }
  0x7b   : > { %859 = vmatpush1.bf16.msra.mxu0 %v1927_v42  ;;  %995 = vmatpush1.bf16.msra.mxu1 %v1928_v43  ;;  %v1327_v42 = vrot.slane %v1302_v40, 1 }
  0x7c   : > { %860 = vmatprep.subr.bf16.mxu0 %v2001_v1  ;;  %996 = vmatprep.subr.bf16.mxu1 %v2001_v1 }
  0x7f   : > { %861 = vmatpush1.bf16.msra.mxu0 %v1929_v49  ;;  %997 = vmatpush1.bf16.msra.mxu1 %v1930_v51 }
  0x80   : > { %1111 = vmatprep.subr.bf16.mxu0 %v2001_v1  ;;  %1257 = vmatprep.subr.bf16.mxu1 %v2001_v1 }
  0x82   : > { %875 = vmatmul.mubr.bf16.vlgmr.msra.gmra.mrb[8].mxu0 %v770_v52  ;;  %1011 = vmatmul.mubr.bf16.vlgmr.msra.gmra.mrb[8].mxu1 %v912_v57 }
  0x83   : > { %1112 = vmatpush1.bf16.msra.mxu0 %v1931_v56  ;;  %1258 = vmatpush1.bf16.msra.mxu1 %v1932_v58 }
  0x84   : > { %1113 = vmatprep.subr.bf16.mxu0 %v2001_v1  ;;  %1259 = vmatprep.subr.bf16.mxu1 %v2001_v1 }
  0x85   : > { %1754 = vmatprep.mubr.msk.bf16.mxu0 %vm321_vm0, %v1026_v59  ;;  %1789 = vmatprep.mubr.msk.bf16.mxu1 %vm321_vm0, %v1192_v60 }
  0x87   : > { %1114 = vmatpush1.bf16.msra.mxu0 %v1933_v61  ;;  %1260 = vmatpush1.bf16.msra.mxu1 %v1934_v62 }
  0x88   : > { %1115 = vmatprep.subr.bf16.mxu0 %v2001_v1  ;;  %1261 = vmatprep.subr.bf16.mxu1 %v2001_v1 }
  0x8b   : > { %1116 = vmatpush1.bf16.msra.mxu0 %v1935_v63  ;;  %1262 = vmatpush1.bf16.msra.mxu1 %v1936_v0 }
  0x8c   : > { %1117 = vmatprep.subr.bf16.mxu0 %v2001_v1  ;;  %1263 = vmatprep.subr.bf16.mxu1 %v2001_v1 }
  0x8f   : > { %1118 = vmatpush1.bf16.msra.mxu0 %v1937_v2  ;;  %1264 = vmatpush1.bf16.msra.mxu1 %v1938_v3 }
  0x90   : > { %1119 = vmatprep.subr.bf16.mxu0 %v2001_v1  ;;  %1265 = vmatprep.subr.bf16.mxu1 %v2001_v1 }
  0x93   : > { %1120 = vmatpush1.bf16.msra.mxu0 %v1939_v4  ;;  %1266 = vmatpush1.bf16.msra.mxu1 %v1940_v5 }
  0x94   : > { %1121 = vmatprep.subr.bf16.mxu0 %v2001_v1  ;;  %1267 = vmatprep.subr.bf16.mxu1 %v2001_v1 }
  0x97   : > { %1122 = vmatpush1.bf16.msra.mxu0 %v1941_v6  ;;  %1268 = vmatpush1.bf16.msra.mxu1 %v1942_v7 }
  0x98   : > { %1123 = vmatprep.subr.bf16.mxu0 %v2001_v1  ;;  %1269 = vmatprep.subr.bf16.mxu1 %v2001_v1 }
  0x9b   : > { %1124 = vmatpush1.bf16.msra.mxu0 %v1943_v8  ;;  %1270 = vmatpush1.bf16.msra.mxu1 %v1944_v9 }
  0x9c   : > { %1125 = vmatprep.subr.bf16.mxu0 %v2001_v1  ;;  %1271 = vmatprep.subr.bf16.mxu1 %v2001_v1 }
  0x9f   : > { %1126 = vmatpush1.bf16.msra.mxu0 %v1945_v12  ;;  %1272 = vmatpush1.bf16.msra.mxu1 %v1946_v14 }
  0xa0   : > { %1127 = vmatprep.subr.bf16.mxu0 %v2001_v1  ;;  %1273 = vmatprep.subr.bf16.mxu1 %v2001_v1 }
  0xa3   : > { %1128 = vmatpush1.bf16.msra.mxu0 %v1947_v15  ;;  %1274 = vmatpush1.bf16.msra.mxu1 %v1948_v17 }
  0xa4   : > { %1129 = vmatprep.subr.bf16.mxu0 %v2001_v1  ;;  %1275 = vmatprep.subr.bf16.mxu1 %v2001_v1 }
  0xa7   : > { %1130 = vmatpush1.bf16.msra.mxu0 %v1949_v20  ;;  %1276 = vmatpush1.bf16.msra.mxu1 %v1950_v24 }
  0xa8   : > { %1393 = vmatprep.subr.bf16.mxu0 %v2001_v1 }
  0xaa   : > { %1144 = vmatmul.mubr.bf16.vlgmr.msra.gmra.mrb[12].mxu0 %v1025_v26  ;;  %1290 = vmatmul.mubr.bf16.vlgmr.msra.gmra.mrb[12].mxu1 %v1185_v28 }
  0xab   : > { %1394 = vmatpush1.bf16.msra.mxu0 %v1951_v27  ;;  %1824 = vmatprep.mubr.msk.bf16.mxu0 %vm321_vm0, %v1328_v29 }
  0xac   : > { %1395 = vmatprep.subr.bf16.mxu0 %v2001_v1 }
  0xaf   : > { %1396 = vmatpush1.bf16.msra.mxu0 %v1952_v30 }
  0xb0   : > { %1397 = vmatprep.subr.bf16.mxu0 %v2001_v1 }
  0xb3   : > { %1398 = vmatpush1.bf16.msra.mxu0 %v1953_v31 }
  0xb4   : > { %1399 = vmatprep.subr.bf16.mxu0 %v2001_v1 }
  0xb7   : > { %1400 = vmatpush1.bf16.msra.mxu0 %v1954_v32 }
  0xb8   : > { %1401 = vmatprep.subr.bf16.mxu0 %v2001_v1 }
  0xbb   : > { %1402 = vmatpush1.bf16.msra.mxu0 %v1955_v33 }
  0xbc   : > { %1403 = vmatprep.subr.bf16.mxu0 %v2001_v1 }
  0xbf   : > { %1404 = vmatpush1.bf16.msra.mxu0 %v1956_v34 }
  0xc0   : > { %1405 = vmatprep.subr.bf16.mxu0 %v2001_v1 }
  0xc3   : > { %1406 = vmatpush1.bf16.msra.mxu0 %v1957_v35 }
  0xc4   : > { %1407 = vmatprep.subr.bf16.mxu0 %v2001_v1 }
  0xc7   : > { %1408 = vmatpush1.bf16.msra.mxu0 %v1958_v36 }
  0xc8   : > { %1409 = vmatprep.subr.bf16.mxu0 %v2001_v1 }
  0xcb   : > { %1410 = vmatpush1.bf16.msra.mxu0 %v1959_v37 }
  0xcc   : > { %1411 = vmatprep.subr.bf16.mxu0 %v2001_v1 }
  0xcf   : > { %1412 = vmatpush1.bf16.msra.mxu0 %v1960_v41 }
  0xd2   : > { %1426 = vmatmul.mubr.bf16.vlgmr.msra.gmra.mrb[16].mxu0 %v1327_v42 }
 0x105   : > { %v359_v43 = vpop.f32.mrb[0].mxu0  ;;  %v462_v45 = vpop.f32.mrb[0].mxu1 }
 0x106   : > { %v361_v44 = vpop.f32.mrb[1].mxu0  ;;  %v463_v46 = vadd.f32 %v462_v45, %v359_v43  ;;  %v464_v48 = vpop.f32.mrb[1].mxu1 }
 0x107   : > { %v362_v47 = vpop.f32.mrb[2].mxu0  ;;  %v465_v50 = vpop.f32.mrb[2].mxu1 }
 0x108   : > { %v363_v49 = vpop.f32.mrb[3].mxu0  ;;  %v466_v51 = vpop.f32.mrb[3].mxu1 }
 0x12d   : > { %v597_v52 = vpop.f32.mrb[4].mxu0  ;;  %v730_v55 = vpop.f32.mrb[4].mxu1 }
 0x12e   : > { %v603_v53 = vadd.f32 %v597_v52, %v463_v46  ;;  %v599_v54 = vpop.f32.mrb[5].mxu0  ;;  %v732_v57 = vpop.f32.mrb[5].mxu1 }
 0x12f   : > { %v600_v56 = vpop.f32.mrb[6].mxu0  ;;  %v733_v59 = vpop.f32.mrb[6].mxu1 }
 0x130   : > { %v736_v58 = vadd.f32 %v730_v55, %v603_v53  ;;  %v601_v1 = vpop.f32.mrb[7].mxu0  ;;  %v734_v60 = vpop.f32.mrb[7].mxu1 }
 0x155   : > { %v876_v61 = vpop.f32.mrb[8].mxu0  ;;  %v1012_v0 = vpop.f32.mrb[8].mxu1 }
 0x156   : > { %v882_v62 = vadd.f32 %v876_v61, %v736_v58  ;;  %v878_v63 = vpop.f32.mrb[9].mxu0  ;;  %v1014_v3 = vpop.f32.mrb[9].mxu1 }
 0x157   : > { %v879_v2 = vpop.f32.mrb[10].mxu0  ;;  %v1015_v6 = vpop.f32.mrb[10].mxu1 }
 0x158   : > { %v1018_v4 = vadd.f32 %v1012_v0, %v882_v62  ;;  %v880_v5 = vpop.f32.mrb[11].mxu0  ;;  %v1016_v7 = vpop.f32.mrb[11].mxu1 }
 0x17d   : > { %v1145_v8 = vpop.f32.mrb[12].mxu0  ;;  %v1291_v11 = vpop.f32.mrb[12].mxu1 }
 0x17e   : > { %v1151_v9 = vadd.f32 %v1145_v8, %v1018_v4  ;;  %v1147_v10 = vpop.f32.mrb[13].mxu0  ;;  %v1293_v13 = vpop.f32.mrb[13].mxu1 }
 0x17f   : > { %v1148_v12 = vpop.f32.mrb[14].mxu0  ;;  %v1294_v16 = vpop.f32.mrb[14].mxu1 }
 0x180   : > { %v1297_v14 = vadd.f32 %v1291_v11, %v1151_v9  ;;  %v1149_v15 = vpop.f32.mrb[15].mxu0  ;;  %v1295_v17 = vpop.f32.mrb[15].mxu1 }
 0x1a5   : > { %v1427_v18 = vpop.f32.mrb[16].mxu0 }
 0x1a6   : > { %v1433_v20 = vadd.f32 %v1427_v18, %v1297_v14  ;;  %v1429_v21 = vpop.f32.mrb[17].mxu0 }
 0x1a7   : > { %v1430_v22 = vpop.f32.mrb[18].mxu0 }
 0x1a8   : > { %v1441_v23 = vadd.f32 %v1825_v19, %v1433_v20  ;;  %v1431_v24 = vpop.f32.mrb[19].mxu0 }
 0x1aa   : > { %vm1442_vm1 = vcmp.ge.f32.partialorder %v1441_v23, 0.0  ;;  %v1443_v25 = vmul.f32 0.1, %v1441_v23 }
 0x1ac   : > { %v1444_v26 = vsel %vm1442_vm1, %v1441_v23, %v1443_v25 }
 0x1ad   : > { %1445 = vst [vmem:[%s190_s19] sm:$0xff] %v1444_v26 }
 0x1ae PF: > { %s13_s16 = sadd.s32 1, %s1999_s16   ;;  %s2490_s12 = smov %s1991_s14 }
 0x1af   : > { %p10_p7 = scmp.ge.s32.totalorder %s13_s16, 18   ;;  %s2491_s13 = smov %s1995_s15 }
 0x1b0   : > { %s2492_s14 = smov %s2495_s17  ;;  %s2493_s15 = smov %s2499_s18 }
 0x1b1   :  { %12 = sbr.rel (!%p10_p7) target bundleno = 3 (0x3), region = 73 }

// kernel: tile.50
= control target key start
LH: loop header
LB: loop body
LE: loop exit
PB: predicated region body
PF: predicated region fallthrough
CT: control target
= control target key end

     0   :  { %s22_s0 = inlined_call_operand.vmem [shape: f32[32], index: 0, kind: input, shape index: {}]   ;;  %s23_s1 = inlined_call_operand.vmem [shape: f32[4,32], index: 1, kind: output, shape index: {}]  }
   0x1   :  { %v4_v0 = vld [vmem:[%s22_s0] ss:$0 sm:$0xff] }
   0x2   :  { %5 = vst [vmem:[%s23_s1] sm:$0xf] %v4_v0 }

// kernel: tile.51
= control target key start
LH: loop header
LB: loop body
LE: loop exit
PB: predicated region body
PF: predicated region fallthrough
CT: control target
= control target key end

     0   :  { %vm7_vm0 = vcmask 261120   ;;  %s37_s8 = smov 32   ;;  %s38_s9 = smov 64   ;;  %vm13_vm1 = vcmask 1048320   ;;  %vm19_vm2 = vcmask 785920   ;;  %vm25_vm3 = vcmask 523520   ;;  %s55_s0 = inlined_call_operand.vmem [shape: f32[4,32], index: 0, kind: input, shape index: {}]   ;;  %s56_s1 = inlined_call_operand.vmem [shape: f32[1,128], index: 1, kind: output, shape index: {}]  }
   0x1   :  { %v4_v0 = vld [vmem:[%s55_s0] sm:$0xf]  ;;  %s36_s0 = smov 96  }
   0x2   :  { %5 = vst [vmem:[#allocation1] sm:$0xf] %v4_v0 }
   0x9   :  { %v10_v1 = vld [vmem:[#allocation1 + $0x3] sm:$0x1]   ;;  %v22_v2 = vld [vmem:[#allocation1 + $0x1] sm:$0x1]   ;;  %v6_v3 = vld [vmem:[#allocation1] sm:$0x1]  }
   0xa   :  { %11 = vrot.lane.b32.xlu0 %v10_v1, %s36_s0  ;;  %23 = vrot.lane.b32.xlu1 %v22_v2, %s37_s8  ;;  %v16_v4 = vld [vmem:[#allocation1 + $0x2] sm:$0x1]   ;;  %8 = vst.msk [vmem:[#allocation0] sm:$0x1] %vm7_vm0, %v6_v3  }
   0xe   :  { %17 = vrot.lane.b32.xlu0 %v16_v4, %s38_s9 }
  0x7c   :  { %v12_v5 = vpop.permute.xlu0 %11   ;;  %v24_v6 = vpop.permute.xlu1 %23  }
  0x7d   :  { %14 = vst.msk [vmem:[#allocation0] sm:$0x1] %vm13_vm1, %v12_v5  }
  0x80   :  { %v18_v7 = vpop.permute.xlu0 %17  }
  0x81   :  { %20 = vst.msk [vmem:[#allocation0] sm:$0x1] %vm19_vm2, %v18_v7  }
  0x82   :  { %26 = vst.msk [vmem:[#allocation0] sm:$0x1] %vm25_vm3, %v24_v6  }
  0x89   :  { %v30_v8 = vld [vmem:[#allocation0] sm:$0x1] }
  0x8a   :  { %32 = vst [vmem:[%s56_s1] sm:$0x1] %v30_v8 }

// kernel: _lambda_.12
= control target key start
LH: loop header
LB: loop body
LE: loop exit
PB: predicated region body
PF: predicated region fallthrough
CT: control target
= control target key end

     0   :  { %s2048_s12 = smov 0   ;;  %s2050_s13 = smov 0   ;;  %s2506_s0 = inlined_call_operand.vmem [shape: f32[2,10,10,160], index: 0, kind: input, shape index: {}]   ;;  %s2507_s1 = inlined_call_operand.vmem [shape: bf16[9,160,128], index: 1, kind: input, shape index: {}]   ;;  %s2508_s2 = inlined_call_operand.vmem [shape: f32[1,128], index: 2, kind: input, shape index: {}]   ;;  %s2509_s3 = inlined_call_operand.vmem [shape: f32[2,4,4,128], index: 3, kind: output, shape index: {}]  }
   0x1   :  { %s2052_s14 = smov 0   ;;  %s2054_s15 = smov 0  }
   0x2   :  { %s2056_s16 = smov 0  }
   0x3 LB: > { %s22_s17 = sadd.s32 1, %s2017_s14  ;;  %s25_s18 = sadd.s32 1, %s2021_s15  ;;  %s2025_s16 = sphi %s2056_s16, %s13_s16   ;;  %s2021_s15 = sphi %s2054_s15, %s2513_s15   ;;  %s2017_s14 = sphi %s2052_s14, %s2512_s14   ;;  %s2013_s13 = sphi %s2050_s13, %s2511_s13   ;;  %s2009_s12 = sphi %s2048_s12, %s2510_s12  }
   0x4   : > { %p23_p0 = scmp.ge.s32.totalorder %s22_s17, 4  ;;  %p1568_p1 = scmp.ge.s32.totalorder %s2025_s16, 1 }
   0x5   : > { %p151_p2 = scmp.lt.s32.totalorder %s2025_s16, 9 }
   0x6   : > { %s2515_s17 = smov (%p23_p0, %s22_s17), 0  ;;  %s2517_s18 = smov (!%p23_p0, %s25_s18), %s2021_s15 }
   0x7   : > { %p152_p3 = pnand %p1568_p1, %p151_p2  ;;  %p27_p4 = scmp.ge.s32.totalorder %s2517_s18, 2 }
   0x8   : > { %v1897_v0 = vld [vmem:[%s2507_s1 + $0x50] sm:$0xff] (!%p152_p3)   ;;  %v2027_v1 = vmov (!%p152_p3), 0   ;;  %v1898_v2 = vld [vmem:[%s2507_s1] sm:$0xff] (!%p152_p3)   ;;  %v1899_v3 = vld [vmem:[%s2507_s1 + $0x58] sm:$0xff] (!%p152_p3)   ;;  %p178_p5 = scmp.lt.s32.totalorder (!%p152_p3), %s2013_s13, 1  ;;  %s1854_s21 = sshll.u32 (!%p152_p3), %s2009_s12, 5 }
   0x9   : > { %s2519_s18 = smov (%p27_p4, %s2517_s18), 0  ;;  %155 = sbr.rel (%p152_p3) target bundleno = 430 (0x1ae), region = 32 }
   0xa   : > { %327 = vmatprep.subr.bf16.mxu0 (!%p152_p3), %v2027_v1  ;;  %430 = vmatprep.subr.bf16.mxu1 (!%p152_p3), %v2027_v1  ;;  %v1900_v4 = vld [vmem:[%s2507_s1 + $0x8] sm:$0xff] (!%p152_p3)   ;;  %v1901_v5 = vld [vmem:[%s2507_s1 + $0x60] sm:$0xff] (!%p152_p3)   ;;  %v1902_v6 = vld [vmem:[%s2507_s1 + $0x10] sm:$0xff] (!%p152_p3)   ;;  %vm323_vm0 = vcmask (!%p152_p3), 261120   ;;  %p185_p6 = scmp.lt.s32.totalorder (!%p152_p3), %s2009_s12, 3 }
   0xb   : > { %328 = vmatpush1.bf16.msra.mxu0 (!%p152_p3), %v1897_v0  ;;  %431 = vmatpush1.bf16.msra.mxu1 (!%p152_p3), %v1898_v2  ;;  %v1903_v7 = vld [vmem:[%s2507_s1 + $0x68] sm:$0xff] (!%p152_p3)   ;;  %v1904_v8 = vld [vmem:[%s2507_s1 + $0x18] sm:$0xff] (!%p152_p3)   ;;  %v1905_v9 = vld [vmem:[%s2507_s1 + $0x70] sm:$0xff] (!%p152_p3)  }
   0xc   : > { %329 = vmatprep.subr.bf16.mxu0 (!%p152_p3), %v2027_v1  ;;  %432 = vmatprep.subr.bf16.mxu1 (!%p152_p3), %v2027_v1  ;;  %v1906_v10 = vld [vmem:[%s2507_s1 + $0x20] sm:$0xff] (!%p152_p3)   ;;  %v1907_v11 = vld [vmem:[%s2507_s1 + $0x78] sm:$0xff] (!%p152_p3)   ;;  %v1908_v12 = vld [vmem:[%s2507_s1 + $0x28] sm:$0xff] (!%p152_p3)  }
   0xd   : > { %v1909_v13 = vld [vmem:[%s2507_s1 + $0x80] sm:$0xff] (!%p152_p3)   ;;  %v1910_v16 = vld [vmem:[%s2507_s1 + $0x30] sm:$0xff] (!%p152_p3)   ;;  %v1911_v27 = vld [vmem:[%s2507_s1 + $0x88] sm:$0xff] (!%p152_p3)  }
   0xe   : > { %v1912_v28 = vld [vmem:[%s2507_s1 + $0x38] sm:$0xff] (!%p152_p3)   ;;  %v1913_v32 = vld [vmem:[%s2507_s1 + $0x90] sm:$0xff] (!%p152_p3)   ;;  %v1914_v33 = vld [vmem:[%s2507_s1 + $0x40] sm:$0xff] (!%p152_p3)  }
   0xf   : > { %330 = vmatpush1.bf16.msra.mxu0 (!%p152_p3), %v1899_v3  ;;  %433 = vmatpush1.bf16.msra.mxu1 (!%p152_p3), %v1900_v4  ;;  %v1915_v34 = vld [vmem:[%s2507_s1 + $0x98] sm:$0xff] (!%p152_p3)   ;;  %v1916_v37 = vld [vmem:[%s2507_s1 + $0x48] sm:$0xff] (!%p152_p3)   ;;  %v1917_v41 = vld [vmem:[%s2507_s1 + $0xa0] sm:$0xff] (!%p152_p3)  }
  0x10   : > { %s2521_s13 = smov (!%p178_p5, %s2013_s13), 1  ;;  %331 = vmatprep.subr.bf16.mxu0 %v2027_v1  ;;  %434 = vmatprep.subr.bf16.mxu1 %v2027_v1  ;;  %v1918_v42 = vld [vmem:[%s2507_s1 + $0xf0] sm:$0xff]   ;;  %v1919_v44 = vld [vmem:[%s2507_s1 + $0xa8] sm:$0xff]   ;;  %v1920_v46 = vld [vmem:[%s2507_s1 + $0xf8] sm:$0xff]   ;;  %s2523_s12 = smov (!%p185_p6, %s2009_s12), 3 }
  0x11   : > { %s1855_s6 = smul.u32 320, %s2521_s13  ;;  %v1921_v51 = vld [vmem:[%s2507_s1 + $0xb0] sm:$0xff]   ;;  %v1922_v52 = vld [vmem:[%s2507_s1 + $0x100] sm:$0xff]   ;;  %v1923_v55 = vld [vmem:[%s2507_s1 + $0xb8] sm:$0xff]   ;;  %s1570_s5 = sshll.u32 %s2521_s13, 2 }
  0x12   : > { %v1924_v56 = vld [vmem:[%s2507_s1 + $0x108] sm:$0xff]   ;;  %v1925_v57 = vld [vmem:[%s2507_s1 + $0xc0] sm:$0xff]   ;;  %v1926_v58 = vld [vmem:[%s2507_s1 + $0x110] sm:$0xff]  }
  0x13   : > { %332 = vmatpush1.bf16.msra.mxu0 %v1901_v5  ;;  %435 = vmatpush1.bf16.msra.mxu1 %v1902_v6  ;;  %s182_s20 = scalar_lea.vmem %s2506_s0, %s1855_s6  ;;  %v1927_v59 = vld [vmem:[%s2507_s1 + $0xc8] sm:$0xff]   ;;  %v1928_v60 = vld [vmem:[%s2507_s1 + $0x118] sm:$0xff]   ;;  %v1929_v61 = vld [vmem:[%s2507_s1 + $0xd0] sm:$0xff]   ;;  %s188_s6 = sadd.s32 %s1570_s5, %s2523_s12 }
  0x14   : > { %333 = vmatprep.subr.bf16.mxu0 %v2027_v1  ;;  %436 = vmatprep.subr.bf16.mxu1 %v2027_v1  ;;  %s2127_s24 = scalar_lea.vmem %s182_s20, %s1854_s21  ;;  %v1930_v63 = vld [vmem:[%s2507_s1 + $0x120] sm:$0xff]   ;;  %v1931_v0 = vld [vmem:[%s2507_s1 + $0xd8] sm:$0xff]   ;;  %v1932_v6 = vld [vmem:[%s2507_s1 + $0x128] sm:$0xff]   ;;  %s1571_s9 = sshll.u32 %s188_s6, 2 }
  0x15   : > { %v220_v14 = vld [vmem:[%s2127_s24 + $0x8] sm:$0xe0]  ;;  %v222_v15 = vld [vmem:[%s2127_s24 + $0x18] sm:$0x1]  ;;  %v219_v18 = vld [vmem:[%s2127_s24] sm:$0xe0]  ;;  %s190_s19 = scalar_lea.vmem %s2509_s3, %s1571_s9 }
  0x16   : > { %v224_v17 = vpack.c.bf16 %v222_v15, %v220_v14  ;;  %v196_v19 = vld [vmem:[%s2127_s24 + $0x8] sm:$0xf]  ;;  %v221_v20 = vld [vmem:[%s2127_s24 + $0x10] sm:$0x1]  ;;  %v195_v38 = vld [vmem:[%s2127_s24] sm:$0xf] }
  0x17   : > { %334 = vmatpush1.bf16.msra.mxu0 %v1903_v7  ;;  %437 = vmatpush1.bf16.msra.mxu1 %v1904_v8  ;;  %v198_v21 = vpack.c.bf16 %v196_v19, %v196_v19  ;;  %v223_v26 = vpack.c.bf16 %v221_v20, %v219_v18  ;;  %v197_v40 = vpack.c.bf16 %v195_v38, %v195_v38  ;;  %v471_v43 = vld [vmem:[%s2127_s24 + $0x8] sm:$0x1e]  ;;  %v470_v62 = vld [vmem:[%s2127_s24] sm:$0x1e]  ;;  %v1682_v3 = vld [vmem:[%s2127_s24 + $0xa8] sm:$0xe0] }
  0x18   : > { %335 = vmatprep.subr.bf16.mxu0 %v2027_v1  ;;  %438 = vmatprep.subr.bf16.mxu1 %v2027_v1  ;;  %v255_v22 = vshrl.u32 %v224_v17, 16  ;;  %v258_v23 = vshll.u32 %v224_v17, 16  ;;  %v473_v45 = vpack.c.bf16 %v471_v43, %v471_v43  ;;  %v1649_v47 = vld [vmem:[%s2127_s24 + $0xa8] sm:$0xf]  ;;  %v472_v2 = vpack.c.bf16 %v470_v62, %v470_v62  ;;  %v1684_v4 = vld [vmem:[%s2127_s24 + $0xb8] sm:$0x1] }
  0x19   : > { %1615 = vmatprep.mubr.msk.bf16.mxu1 %vm323_vm0, %v198_v21  ;;  %v247_v30 = vshrl.u32 %v223_v26, 16  ;;  %v250_v31 = vshll.u32 %v223_v26, 16  ;;  %v621_v50 = vpack.c.bf16 %v1649_v47, %v1649_v47  ;;  %v1717_v5 = vld [vmem:[%s2127_s24 + $0xa8] sm:$0x1e]  ;;  %v752_v7 = vpack.c.bf16 %v1684_v4, %v1682_v3  ;;  %v1936_v18 = vld [vmem:[%s2507_s1 + $0x138] sm:$0xff]   ;;  %v1950_v43 = vld [vmem:[%s2507_s1 + $0x1c0] sm:$0xff]  }
  0x1a   : > { %v257_v24 = vrot.slane %v255_v22, 2  ;;  %v260_v25 = vrot.slane %v258_v23, 3  ;;  %v503_v48 = vshrl.u32 %v473_v45, 16  ;;  %v505_v49 = vshll.u32 %v473_v45, 16  ;;  %v1648_v19 = vld [vmem:[%s2127_s24 + $0xa0] sm:$0xf] }
  0x1b   : > { %336 = vmatpush1.bf16.msra.mxu0 %v1905_v9  ;;  %439 = vmatpush1.bf16.msra.mxu1 %v1906_v10  ;;  %v249_v35 = vrot.slane %v247_v30, 2  ;;  %v252_v36 = vrot.slane %v250_v31, 3  ;;  %v498_v8 = vshll.u32 %v472_v2, 16  ;;  %v898_v9 = vpack.c.bf16 %v1717_v5, %v1717_v5  ;;  %v1933_v10 = vld [vmem:[%s2507_s1 + $0xe0] sm:$0xff]   ;;  %v1939_v30 = vld [vmem:[%s2507_s1 + $0x148] sm:$0xff]   ;;  %v1940_v31 = vld [vmem:[%s2507_s1 + $0x198] sm:$0xff]  }
  0x1c   : > { %337 = vmatprep.subr.bf16.mxu0 %v2027_v1  ;;  %440 = vmatprep.subr.bf16.mxu1 %v2027_v1  ;;  %v261_v29 = vor.u32 %v260_v25, %v257_v24  ;;  %v507_v53 = vrot.slane %v505_v49, 1  ;;  %v783_v14 = vshrl.u32 %v752_v7, 16  ;;  %v786_v15 = vshll.u32 %v752_v7, 16  ;;  %v1937_v25 = vld [vmem:[%s2507_s1 + $0x140] sm:$0xff]   ;;  %v1947_v38 = vld [vmem:[%s2507_s1 + $0x168] sm:$0xff]  }
  0x1d   : > { %v253_v39 = vor.u32 %v252_v36, %v249_v35  ;;  %v930_v17 = vshll.u32 %v898_v9, 16  ;;  %v928_v23 = vshrl.u32 %v898_v9, 16  ;;  %v620_v26 = vpack.c.bf16 %v1648_v19, %v1648_v19  ;;  %v1944_v35 = vld [vmem:[%s2507_s1 + $0x1a8] sm:$0xff]   ;;  %v1945_v36 = vld [vmem:[%s2507_s1 + $0x160] sm:$0xff]   ;;  %v1786_v49 = vld [vmem:[%s2127_s24 + $0x38] sm:$0x1] }
  0x1e   : > { %1604 = vmatprep.mubr.msk.bf16.mxu0 %vm323_vm0, %v261_v29  ;;  %v508_v54 = vor.u32 %v507_v53, %v503_v48  ;;  %v785_v20 = vrot.slane %v783_v14, 2  ;;  %v788_v21 = vrot.slane %v786_v15, 3  ;;  %v1784_v48 = vld [vmem:[%s2127_s24 + $0x28] sm:$0xe0]  ;;  %v1751_v3 = vld [vmem:[%s2127_s24 + $0x28] sm:$0xf] }
  0x1f   : > { %338 = vmatpush1.bf16.msra.mxu0 %v1907_v11  ;;  %441 = vmatpush1.bf16.msra.mxu1 %v1908_v12  ;;  %v1934_v11 = vld [vmem:[%s2507_s1 + $0x130] sm:$0xff]   ;;  %v496_v12 = vshrl.u32 %v472_v2, 16  ;;  %v932_v24 = vrot.slane %v930_v17, 1  ;;  %v1177_v53 = vpack.c.bf16 %v1786_v49, %v1784_v48  ;;  %v1046_v9 = vpack.c.bf16 %v1751_v3, %v1751_v3  ;;  %v1962_v14 = vld [vmem:[%s2507_s1 + $0x240] sm:$0xff]   ;;  %v1963_v15 = vld [vmem:[%s2507_s1 + $0x1f8] sm:$0xff]  }
  0x20   : > { %339 = vmatprep.subr.bf16.mxu0 %v2027_v1  ;;  %442 = vmatprep.subr.bf16.mxu1 %v2027_v1  ;;  %v1965_v17 = vld [vmem:[%s2507_s1 + $0x200] sm:$0xff]   ;;  %v1967_v19 = vld [vmem:[%s2507_s1 + $0x208] sm:$0xff]   ;;  %v1980_v48 = vld [vmem:[%s2507_s1 + $0x298] sm:$0xff]  }
  0x21   : > { %v933_v29 = vor.u32 %v932_v24, %v928_v23  ;;  %v1783_v23 = vld [vmem:[%s2127_s24 + $0x20] sm:$0xe0]  ;;  %v1785_v24 = vld [vmem:[%s2127_s24 + $0x30] sm:$0x1] }
  0x22   : > { %v1981_v49 = vld [vmem:[%s2507_s1 + $0x2a0] sm:$0xff]  }
  0x23   : > { %340 = vmatpush1.bf16.msra.mxu0 %v1909_v13  ;;  %443 = vmatpush1.bf16.msra.mxu1 %v1910_v16  ;;  %v1935_v13 = vld [vmem:[%s2507_s1 + $0xe8] sm:$0xff]   ;;  %v500_v16 = vrot.slane %v498_v8, 1  ;;  %v1958_v8 = vld [vmem:[%s2507_s1 + $0x230] sm:$0xff]  }
  0x24   : > { %341 = vmatprep.subr.bf16.mxu0 %v2027_v1  ;;  %444 = vmatprep.subr.bf16.mxu1 %v2027_v1 }
  0x25   : > { %v501_v22 = vor.u32 %v500_v16, %v496_v12  ;;  %v1960_v12 = vld [vmem:[%s2507_s1 + $0x238] sm:$0xff]   ;;  %v1964_v16 = vld [vmem:[%s2507_s1 + $0x248] sm:$0xff]  }
  0x27   : > { %342 = vmatpush1.bf16.msra.mxu0 %v1911_v27  ;;  %445 = vmatpush1.bf16.msra.mxu1 %v1912_v28  ;;  %v1938_v27 = vld [vmem:[%s2507_s1 + $0x190] sm:$0xff]   ;;  %v789_v28 = vor.u32 %v788_v21, %v785_v20  ;;  %v1968_v20 = vld [vmem:[%s2507_s1 + $0x258] sm:$0xff]  }
  0x28   : > { %343 = vmatprep.subr.bf16.mxu0 %v2027_v1  ;;  %446 = vmatprep.subr.bf16.mxu1 %v2027_v1  ;;  %v1969_v21 = vld [vmem:[%s2507_s1 + $0x210] sm:$0xff]  }
  0x2b   : > { %344 = vmatpush1.bf16.msra.mxu0 %v1913_v32  ;;  %447 = vmatpush1.bf16.msra.mxu1 %v1914_v33  ;;  %v1941_v32 = vld [vmem:[%s2507_s1 + $0x150] sm:$0xff]   ;;  %v1942_v33 = vld [vmem:[%s2507_s1 + $0x1a0] sm:$0xff]  }
  0x2c   : > { %345 = vmatprep.subr.bf16.mxu0 %v2027_v1  ;;  %448 = vmatprep.subr.bf16.mxu1 %v2027_v1 }
  0x2f   : > { %346 = vmatpush1.bf16.msra.mxu0 %v1915_v34  ;;  %449 = vmatpush1.bf16.msra.mxu1 %v1916_v37  ;;  %v1943_v34 = vld [vmem:[%s2507_s1 + $0x158] sm:$0xff]   ;;  %v1946_v37 = vld [vmem:[%s2507_s1 + $0x1b0] sm:$0xff]  }
  0x30   : > { %573 = vmatprep.subr.bf16.mxu0 %v2027_v1  ;;  %706 = vmatprep.subr.bf16.mxu1 %v2027_v1 }
  0x32   : > { %360 = vmatmul.mubr.bf16.vlgmr.msra.gmra.mrb[0].mxu0 %v253_v39  ;;  %463 = vmatmul.mubr.bf16.vlgmr.msra.gmra.mrb[0].mxu1 %v197_v40  ;;  %v1948_v39 = vld [vmem:[%s2507_s1 + $0x1b8] sm:$0xff]   ;;  %v1949_v40 = vld [vmem:[%s2507_s1 + $0x170] sm:$0xff]  }
  0x33   : > { %574 = vmatpush1.bf16.msra.mxu0 %v1917_v41  ;;  %707 = vmatpush1.bf16.msra.mxu1 %v1918_v42  ;;  %v1681_v41 = vld [vmem:[%s2127_s24 + $0xa0] sm:$0xe0]  ;;  %v1683_v42 = vld [vmem:[%s2127_s24 + $0xb0] sm:$0x1] }
  0x34   : > { %575 = vmatprep.subr.bf16.mxu0 %v2027_v1  ;;  %708 = vmatprep.subr.bf16.mxu1 %v2027_v1  ;;  %v751_v45 = vpack.c.bf16 %v1683_v42, %v1681_v41 }
  0x35   : > { %1680 = vmatprep.mubr.msk.bf16.mxu1 %vm323_vm0, %v621_v50  ;;  %1646 = vmatprep.mubr.msk.bf16.mxu0 %vm323_vm0, %v508_v54  ;;  %v1952_v50 = vld [vmem:[%s2507_s1 + $0x1c8] sm:$0xff]   ;;  %v1953_v54 = vld [vmem:[%s2507_s1 + $0x180] sm:$0xff]  }
  0x37   : > { %576 = vmatpush1.bf16.msra.mxu0 %v1919_v44  ;;  %709 = vmatpush1.bf16.msra.mxu1 %v1920_v46  ;;  %v1716_v44 = vld [vmem:[%s2127_s24 + $0xa0] sm:$0x1e]  ;;  %v1951_v46 = vld [vmem:[%s2507_s1 + $0x178] sm:$0xff]  }
  0x38   : > { %577 = vmatprep.subr.bf16.mxu0 %v2027_v1  ;;  %710 = vmatprep.subr.bf16.mxu1 %v2027_v1  ;;  %v897_v47 = vpack.c.bf16 %v1716_v44, %v1716_v44 }
  0x3a   : > { %v921_v62 = vshrl.u32 %v897_v47, 16 }
  0x3b   : > { %578 = vmatpush1.bf16.msra.mxu0 %v1921_v51  ;;  %711 = vmatpush1.bf16.msra.mxu1 %v1922_v52  ;;  %v775_v51 = vshrl.u32 %v751_v45, 16  ;;  %v778_v52 = vshll.u32 %v751_v45, 16 }
  0x3c   : > { %579 = vmatprep.subr.bf16.mxu0 %v2027_v1  ;;  %712 = vmatprep.subr.bf16.mxu1 %v2027_v1 }
  0x3f   : > { %580 = vmatpush1.bf16.msra.mxu0 %v1923_v55  ;;  %713 = vmatpush1.bf16.msra.mxu1 %v1924_v56  ;;  %v923_v55 = vshll.u32 %v897_v47, 16  ;;  %v1954_v56 = vld [vmem:[%s2507_s1 + $0x1d0] sm:$0xff]  }
  0x40   : > { %581 = vmatprep.subr.bf16.mxu0 %v2027_v1  ;;  %714 = vmatprep.subr.bf16.mxu1 %v2027_v1  ;;  %v1979_v47 = vld [vmem:[%s2507_s1 + $0x290] sm:$0xff]  }
  0x43   : > { %582 = vmatpush1.bf16.msra.mxu0 %v1925_v57  ;;  %715 = vmatpush1.bf16.msra.mxu1 %v1926_v58  ;;  %v777_v57 = vrot.slane %v775_v51, 2  ;;  %v780_v58 = vrot.slane %v778_v52, 3  ;;  %v1983_v51 = vld [vmem:[%s2507_s1 + $0x2b0] sm:$0xff]   ;;  %v1818_v52 = vld [vmem:[%s2127_s24 + $0x20] sm:$0x1e] }
  0x44   : > { %583 = vmatprep.subr.bf16.mxu0 %v2027_v1  ;;  %716 = vmatprep.subr.bf16.mxu1 %v2027_v1 }
  0x45   : > { %v781_v2 = vor.u32 %v780_v58, %v777_v57 }
  0x47   : > { %584 = vmatpush1.bf16.msra.mxu0 %v1927_v59  ;;  %717 = vmatpush1.bf16.msra.mxu1 %v1928_v60  ;;  %v1208_v59 = vshrl.u32 %v1177_v53, 16  ;;  %v1211_v60 = vshll.u32 %v1177_v53, 16  ;;  %v1322_v53 = vpack.c.bf16 %v1818_v52, %v1818_v52 }
  0x48   : > { %585 = vmatprep.subr.bf16.mxu0 %v2027_v1  ;;  %718 = vmatprep.subr.bf16.mxu1 %v2027_v1 }
  0x49   : > { %v1210_v4 = vrot.slane %v1208_v59, 2  ;;  %v1213_v5 = vrot.slane %v1211_v60, 3  ;;  %v1346_v57 = vshrl.u32 %v1322_v53, 16  ;;  %v1986_v59 = vld [vmem:[%s2507_s1 + $0x2c8] sm:$0xff]  }
  0x4b   : > { %586 = vmatpush1.bf16.msra.mxu0 %v1929_v61  ;;  %719 = vmatpush1.bf16.msra.mxu1 %v1930_v63  ;;  %v1955_v61 = vld [vmem:[%s2507_s1 + $0x188] sm:$0xff]   ;;  %v925_v63 = vrot.slane %v923_v55, 1  ;;  %v1348_v55 = vshll.u32 %v1322_v53, 16 }
  0x4c   : > { %587 = vmatprep.subr.bf16.mxu0 %v2027_v1  ;;  %720 = vmatprep.subr.bf16.mxu1 %v2027_v1 }
  0x4d   : > { %v926_v7 = vor.u32 %v925_v63, %v921_v62  ;;  %v1350_v58 = vrot.slane %v1348_v55, 1 }
  0x4f   : > { %588 = vmatpush1.bf16.msra.mxu0 %v1931_v0  ;;  %721 = vmatpush1.bf16.msra.mxu1 %v1932_v6  ;;  %v1956_v0 = vld [vmem:[%s2507_s1 + $0x1d8] sm:$0xff]   ;;  %v1957_v6 = vld [vmem:[%s2507_s1 + $0x1e0] sm:$0xff]   ;;  %v1351_v60 = vor.u32 %v1350_v58, %v1346_v57 }
  0x50   : > { %589 = vmatprep.subr.bf16.mxu0 %v2027_v1  ;;  %722 = vmatprep.subr.bf16.mxu1 %v2027_v1 }
  0x53   : > { %590 = vmatpush1.bf16.msra.mxu0 %v1933_v10  ;;  %723 = vmatpush1.bf16.msra.mxu1 %v1934_v11  ;;  %v1214_v10 = vor.u32 %v1213_v5, %v1210_v4  ;;  %v1959_v11 = vld [vmem:[%s2507_s1 + $0x1e8] sm:$0xff]  }
  0x54   : > { %591 = vmatprep.subr.bf16.mxu0 %v2027_v1  ;;  %724 = vmatprep.subr.bf16.mxu1 %v2027_v1 }
  0x57   : > { %592 = vmatpush1.bf16.msra.mxu0 %v1935_v13  ;;  %725 = vmatpush1.bf16.msra.mxu1 %v1936_v18  ;;  %v1961_v13 = vld [vmem:[%s2507_s1 + $0x1f0] sm:$0xff]  }
  0x58   : > { %854 = vmatprep.subr.bf16.mxu0 %v2027_v1  ;;  %998 = vmatprep.subr.bf16.mxu1 %v2027_v1  ;;  %v1966_v18 = vld [vmem:[%s2507_s1 + $0x250] sm:$0xff]  }
  0x5a   : > { %606 = vmatmul.mubr.bf16.vlgmr.msra.gmra.mrb[4].mxu0 %v501_v22  ;;  %739 = vmatmul.mubr.bf16.vlgmr.msra.gmra.mrb[4].mxu1 %v620_v26  ;;  %v1970_v22 = vld [vmem:[%s2507_s1 + $0x260] sm:$0xff]   ;;  %v1971_v26 = vld [vmem:[%s2507_s1 + $0x218] sm:$0xff]  }
  0x5b   : > { %855 = vmatpush1.bf16.msra.mxu0 %v1937_v25  ;;  %999 = vmatpush1.bf16.msra.mxu1 %v1938_v27  ;;  %v1819_v25 = vld [vmem:[%s2127_s24 + $0x28] sm:$0x1e]  ;;  %v1176_v27 = vpack.c.bf16 %v1785_v24, %v1783_v23 }
  0x5c   : > { %856 = vmatprep.subr.bf16.mxu0 %v2027_v1  ;;  %1000 = vmatprep.subr.bf16.mxu1 %v2027_v1 }
  0x5d   : > { %1715 = vmatprep.mubr.msk.bf16.mxu0 %vm323_vm0, %v789_v28  ;;  %1748 = vmatprep.mubr.msk.bf16.mxu1 %vm323_vm0, %v933_v29  ;;  %v1972_v28 = vld [vmem:[%s2507_s1 + $0x268] sm:$0xff]   ;;  %v1323_v29 = vpack.c.bf16 %v1819_v25, %v1819_v25 }
  0x5f   : > { %857 = vmatpush1.bf16.msra.mxu0 %v1939_v30  ;;  %1001 = vmatpush1.bf16.msra.mxu1 %v1940_v31  ;;  %v1973_v30 = vld [vmem:[%s2507_s1 + $0x220] sm:$0xff]   ;;  %v1200_v31 = vshrl.u32 %v1176_v27, 16 }
  0x60   : > { %858 = vmatprep.subr.bf16.mxu0 %v2027_v1  ;;  %1002 = vmatprep.subr.bf16.mxu1 %v2027_v1 }
  0x63   : > { %859 = vmatpush1.bf16.msra.mxu0 %v1941_v32  ;;  %1003 = vmatpush1.bf16.msra.mxu1 %v1942_v33  ;;  %v1203_v32 = vshll.u32 %v1176_v27, 16  ;;  %v1974_v33 = vld [vmem:[%s2507_s1 + $0x270] sm:$0xff]  }
  0x64   : > { %860 = vmatprep.subr.bf16.mxu0 %v2027_v1  ;;  %1004 = vmatprep.subr.bf16.mxu1 %v2027_v1 }
  0x67   : > { %861 = vmatpush1.bf16.msra.mxu0 %v1943_v34  ;;  %1005 = vmatpush1.bf16.msra.mxu1 %v1944_v35  ;;  %v1355_v34 = vshll.u32 %v1323_v29, 16  ;;  %v1975_v35 = vld [vmem:[%s2507_s1 + $0x228] sm:$0xff]  }
  0x68   : > { %862 = vmatprep.subr.bf16.mxu0 %v2027_v1  ;;  %1006 = vmatprep.subr.bf16.mxu1 %v2027_v1 }
  0x69   : > { %v1357_v41 = vrot.slane %v1355_v34, 1 }
  0x6b   : > { %863 = vmatpush1.bf16.msra.mxu0 %v1945_v36  ;;  %1007 = vmatpush1.bf16.msra.mxu1 %v1946_v37  ;;  %v1750_v36 = vld [vmem:[%s2127_s24 + $0x20] sm:$0xf]  ;;  %v1202_v37 = vrot.slane %v1200_v31, 2 }
  0x6c   : > { %864 = vmatprep.subr.bf16.mxu0 %v2027_v1  ;;  %1008 = vmatprep.subr.bf16.mxu1 %v2027_v1  ;;  %v1045_v42 = vpack.c.bf16 %v1750_v36, %v1750_v36 }
  0x6f   : > { %865 = vmatpush1.bf16.msra.mxu0 %v1947_v38  ;;  %1009 = vmatpush1.bf16.msra.mxu1 %v1948_v39  ;;  %v1205_v38 = vrot.slane %v1203_v32, 3  ;;  %v1976_v39 = vld [vmem:[%s2507_s1 + $0x278] sm:$0xff]  }
  0x70   : > { %866 = vmatprep.subr.bf16.mxu0 %v2027_v1  ;;  %1010 = vmatprep.subr.bf16.mxu1 %v2027_v1 }
  0x71   : > { %v1206_v44 = vor.u32 %v1205_v38, %v1202_v37  ;;  %v1851_v37 = vld [vmem:[%s2508_s2] ss:$0 sm:$0xff] }
  0x73   : > { %867 = vmatpush1.bf16.msra.mxu0 %v1949_v40  ;;  %1011 = vmatpush1.bf16.msra.mxu1 %v1950_v43  ;;  %v1353_v40 = vshrl.u32 %v1323_v29, 16  ;;  %v1977_v43 = vld [vmem:[%s2507_s1 + $0x280] sm:$0xff]  }
  0x74   : > { %868 = vmatprep.subr.bf16.mxu0 %v2027_v1  ;;  %1012 = vmatprep.subr.bf16.mxu1 %v2027_v1 }
  0x75   : > { %v1358_v45 = vor.u32 %v1357_v41, %v1353_v40 }
  0x77   : > { %869 = vmatpush1.bf16.msra.mxu0 %v1951_v46  ;;  %1013 = vmatpush1.bf16.msra.mxu1 %v1952_v50  ;;  %v1978_v46 = vld [vmem:[%s2507_s1 + $0x288] sm:$0xff]  }
  0x78   : > { %870 = vmatprep.subr.bf16.mxu0 %v2027_v1  ;;  %1014 = vmatprep.subr.bf16.mxu1 %v2027_v1  ;;  %v1982_v50 = vld [vmem:[%s2507_s1 + $0x2a8] sm:$0xff]  }
  0x7b   : > { %871 = vmatpush1.bf16.msra.mxu0 %v1953_v54  ;;  %1015 = vmatpush1.bf16.msra.mxu1 %v1954_v56  ;;  %v1984_v54 = vld [vmem:[%s2507_s1 + $0x2b8] sm:$0xff]   ;;  %v1985_v56 = vld [vmem:[%s2507_s1 + $0x2c0] sm:$0xff]  }
  0x7c   : > { %872 = vmatprep.subr.bf16.mxu0 %v2027_v1  ;;  %1016 = vmatprep.subr.bf16.mxu1 %v2027_v1 }
  0x7f   : > { %873 = vmatpush1.bf16.msra.mxu0 %v1955_v61  ;;  %1017 = vmatpush1.bf16.msra.mxu1 %v1956_v0 }
  0x80   : > { %1131 = vmatprep.subr.bf16.mxu0 %v2027_v1  ;;  %1279 = vmatprep.subr.bf16.mxu1 %v2027_v1 }
  0x82   : > { %887 = vmatmul.mubr.bf16.vlgmr.msra.gmra.mrb[8].mxu0 %v781_v2  ;;  %1031 = vmatmul.mubr.bf16.vlgmr.msra.gmra.mrb[8].mxu1 %v926_v7 }
  0x83   : > { %1132 = vmatpush1.bf16.msra.mxu0 %v1957_v6  ;;  %1280 = vmatpush1.bf16.msra.mxu1 %v1958_v8 }
  0x84   : > { %1133 = vmatprep.subr.bf16.mxu0 %v2027_v1  ;;  %1281 = vmatprep.subr.bf16.mxu1 %v2027_v1 }
  0x85   : > { %1782 = vmatprep.mubr.msk.bf16.mxu0 %vm323_vm0, %v1046_v9  ;;  %1817 = vmatprep.mubr.msk.bf16.mxu1 %vm323_vm0, %v1214_v10 }
  0x87   : > { %1134 = vmatpush1.bf16.msra.mxu0 %v1959_v11  ;;  %1282 = vmatpush1.bf16.msra.mxu1 %v1960_v12 }
  0x88   : > { %1135 = vmatprep.subr.bf16.mxu0 %v2027_v1  ;;  %1283 = vmatprep.subr.bf16.mxu1 %v2027_v1 }
  0x8b   : > { %1136 = vmatpush1.bf16.msra.mxu0 %v1961_v13  ;;  %1284 = vmatpush1.bf16.msra.mxu1 %v1962_v14 }
  0x8c   : > { %1137 = vmatprep.subr.bf16.mxu0 %v2027_v1  ;;  %1285 = vmatprep.subr.bf16.mxu1 %v2027_v1 }
  0x8f   : > { %1138 = vmatpush1.bf16.msra.mxu0 %v1963_v15  ;;  %1286 = vmatpush1.bf16.msra.mxu1 %v1964_v16 }
  0x90   : > { %1139 = vmatprep.subr.bf16.mxu0 %v2027_v1  ;;  %1287 = vmatprep.subr.bf16.mxu1 %v2027_v1 }
  0x93   : > { %1140 = vmatpush1.bf16.msra.mxu0 %v1965_v17  ;;  %1288 = vmatpush1.bf16.msra.mxu1 %v1966_v18 }
  0x94   : > { %1141 = vmatprep.subr.bf16.mxu0 %v2027_v1  ;;  %1289 = vmatprep.subr.bf16.mxu1 %v2027_v1 }
  0x97   : > { %1142 = vmatpush1.bf16.msra.mxu0 %v1967_v19  ;;  %1290 = vmatpush1.bf16.msra.mxu1 %v1968_v20 }
  0x98   : > { %1143 = vmatprep.subr.bf16.mxu0 %v2027_v1  ;;  %1291 = vmatprep.subr.bf16.mxu1 %v2027_v1 }
  0x9b   : > { %1144 = vmatpush1.bf16.msra.mxu0 %v1969_v21  ;;  %1292 = vmatpush1.bf16.msra.mxu1 %v1970_v22 }
  0x9c   : > { %1145 = vmatprep.subr.bf16.mxu0 %v2027_v1  ;;  %1293 = vmatprep.subr.bf16.mxu1 %v2027_v1 }
  0x9f   : > { %1146 = vmatpush1.bf16.msra.mxu0 %v1971_v26  ;;  %1294 = vmatpush1.bf16.msra.mxu1 %v1972_v28 }
  0xa0   : > { %1147 = vmatprep.subr.bf16.mxu0 %v2027_v1  ;;  %1295 = vmatprep.subr.bf16.mxu1 %v2027_v1 }
  0xa3   : > { %1148 = vmatpush1.bf16.msra.mxu0 %v1973_v30  ;;  %1296 = vmatpush1.bf16.msra.mxu1 %v1974_v33 }
  0xa4   : > { %1149 = vmatprep.subr.bf16.mxu0 %v2027_v1  ;;  %1297 = vmatprep.subr.bf16.mxu1 %v2027_v1 }
  0xa7   : > { %1150 = vmatpush1.bf16.msra.mxu0 %v1975_v35  ;;  %1298 = vmatpush1.bf16.msra.mxu1 %v1976_v39 }
  0xa8   : > { %1423 = vmatprep.subr.bf16.mxu0 %v2027_v1 }
  0xaa   : > { %1164 = vmatmul.mubr.bf16.vlgmr.msra.gmra.mrb[12].mxu0 %v1045_v42  ;;  %1312 = vmatmul.mubr.bf16.vlgmr.msra.gmra.mrb[12].mxu1 %v1206_v44 }
  0xab   : > { %1424 = vmatpush1.bf16.msra.mxu0 %v1977_v43  ;;  %1850 = vmatprep.mubr.msk.bf16.mxu0 %vm323_vm0, %v1358_v45 }
  0xac   : > { %1425 = vmatprep.subr.bf16.mxu0 %v2027_v1 }
  0xaf   : > { %1426 = vmatpush1.bf16.msra.mxu0 %v1978_v46 }
  0xb0   : > { %1427 = vmatprep.subr.bf16.mxu0 %v2027_v1 }
  0xb3   : > { %1428 = vmatpush1.bf16.msra.mxu0 %v1979_v47 }
  0xb4   : > { %1429 = vmatprep.subr.bf16.mxu0 %v2027_v1 }
  0xb7   : > { %1430 = vmatpush1.bf16.msra.mxu0 %v1980_v48 }
  0xb8   : > { %1431 = vmatprep.subr.bf16.mxu0 %v2027_v1 }
  0xbb   : > { %1432 = vmatpush1.bf16.msra.mxu0 %v1981_v49 }
  0xbc   : > { %1433 = vmatprep.subr.bf16.mxu0 %v2027_v1 }
  0xbf   : > { %1434 = vmatpush1.bf16.msra.mxu0 %v1982_v50 }
  0xc0   : > { %1435 = vmatprep.subr.bf16.mxu0 %v2027_v1 }
  0xc3   : > { %1436 = vmatpush1.bf16.msra.mxu0 %v1983_v51 }
  0xc4   : > { %1437 = vmatprep.subr.bf16.mxu0 %v2027_v1 }
  0xc7   : > { %1438 = vmatpush1.bf16.msra.mxu0 %v1984_v54 }
  0xc8   : > { %1439 = vmatprep.subr.bf16.mxu0 %v2027_v1 }
  0xcb   : > { %1440 = vmatpush1.bf16.msra.mxu0 %v1985_v56 }
  0xcc   : > { %1441 = vmatprep.subr.bf16.mxu0 %v2027_v1 }
  0xcf   : > { %1442 = vmatpush1.bf16.msra.mxu0 %v1986_v59 }
  0xd2   : > { %1456 = vmatmul.mubr.bf16.vlgmr.msra.gmra.mrb[16].mxu0 %v1351_v60 }
 0x105   : > { %v361_v61 = vpop.f32.mrb[0].mxu0  ;;  %v464_v63 = vpop.f32.mrb[0].mxu1 }
 0x106   : > { %v363_v62 = vpop.f32.mrb[1].mxu0  ;;  %v465_v0 = vadd.f32 %v464_v63, %v361_v61  ;;  %v466_v3 = vpop.f32.mrb[1].mxu1 }
 0x107   : > { %v364_v2 = vpop.f32.mrb[2].mxu0  ;;  %v467_v5 = vpop.f32.mrb[2].mxu1 }
 0x108   : > { %v365_v4 = vpop.f32.mrb[3].mxu0  ;;  %v468_v6 = vpop.f32.mrb[3].mxu1 }
 0x12d   : > { %v607_v7 = vpop.f32.mrb[4].mxu0  ;;  %v740_v10 = vpop.f32.mrb[4].mxu1 }
 0x12e   : > { %v613_v8 = vadd.f32 %v607_v7, %v465_v0  ;;  %v609_v9 = vpop.f32.mrb[5].mxu0  ;;  %v742_v12 = vpop.f32.mrb[5].mxu1 }
 0x12f   : > { %v610_v11 = vpop.f32.mrb[6].mxu0  ;;  %v743_v14 = vpop.f32.mrb[6].mxu1 }
 0x130   : > { %v746_v13 = vadd.f32 %v740_v10, %v613_v8  ;;  %v611_v1 = vpop.f32.mrb[7].mxu0  ;;  %v744_v15 = vpop.f32.mrb[7].mxu1 }
 0x155   : > { %v888_v16 = vpop.f32.mrb[8].mxu0  ;;  %v1032_v19 = vpop.f32.mrb[8].mxu1 }
 0x156   : > { %v894_v17 = vadd.f32 %v888_v16, %v746_v13  ;;  %v890_v18 = vpop.f32.mrb[9].mxu0  ;;  %v1034_v21 = vpop.f32.mrb[9].mxu1 }
 0x157   : > { %v891_v20 = vpop.f32.mrb[10].mxu0  ;;  %v1035_v24 = vpop.f32.mrb[10].mxu1 }
 0x158   : > { %v1038_v22 = vadd.f32 %v1032_v19, %v894_v17  ;;  %v892_v23 = vpop.f32.mrb[11].mxu0  ;;  %v1036_v25 = vpop.f32.mrb[11].mxu1 }
 0x17d   : > { %v1165_v26 = vpop.f32.mrb[12].mxu0  ;;  %v1313_v29 = vpop.f32.mrb[12].mxu1 }
 0x17e   : > { %v1171_v27 = vadd.f32 %v1165_v26, %v1038_v22  ;;  %v1167_v28 = vpop.f32.mrb[13].mxu0  ;;  %v1315_v31 = vpop.f32.mrb[13].mxu1 }
 0x17f   : > { %v1168_v30 = vpop.f32.mrb[14].mxu0  ;;  %v1316_v34 = vpop.f32.mrb[14].mxu1 }
 0x180   : > { %v1319_v32 = vadd.f32 %v1313_v29, %v1171_v27  ;;  %v1169_v33 = vpop.f32.mrb[15].mxu0  ;;  %v1317_v35 = vpop.f32.mrb[15].mxu1 }
 0x1a5   : > { %v1457_v36 = vpop.f32.mrb[16].mxu0 }
 0x1a6   : > { %v1463_v38 = vadd.f32 %v1457_v36, %v1319_v32  ;;  %v1459_v39 = vpop.f32.mrb[17].mxu0 }
 0x1a7   : > { %v1460_v40 = vpop.f32.mrb[18].mxu0 }
 0x1a8   : > { %v1471_v41 = vadd.f32 %v1851_v37, %v1463_v38  ;;  %v1461_v42 = vpop.f32.mrb[19].mxu0 }
 0x1aa   : > { %vm1472_vm1 = vcmp.ge.f32.partialorder %v1471_v41, 0.0  ;;  %v1473_v43 = vmul.f32 0.1, %v1471_v41 }
 0x1ac   : > { %v1474_v44 = vsel %vm1472_vm1, %v1471_v41, %v1473_v43 }
 0x1ad   : > { %1475 = vst [vmem:[%s190_s19] sm:$0xf] %v1474_v44 }
 0x1ae PF: > { %s13_s16 = sadd.s32 1, %s2025_s16   ;;  %s2510_s12 = smov %s2017_s14 }
 0x1af   : > { %p10_p7 = scmp.ge.s32.totalorder %s13_s16, 10   ;;  %s2511_s13 = smov %s2021_s15 }
 0x1b0   : > { %s2512_s14 = smov %s2515_s17  ;;  %s2513_s15 = smov %s2519_s18 }
 0x1b1   :  { %12 = sbr.rel (!%p10_p7) target bundleno = 3 (0x3), region = 73 }

// kernel: tile.62
= control target key start
LH: loop header
LB: loop body
LE: loop exit
PB: predicated region body
PF: predicated region fallthrough
CT: control target
= control target key end

     0   :  { %s22_s0 = inlined_call_operand.vmem [shape: f32[64], index: 0, kind: input, shape index: {}]   ;;  %s23_s1 = inlined_call_operand.vmem [shape: f32[2,64], index: 1, kind: output, shape index: {}]  }
   0x1   :  { %v4_v0 = vld [vmem:[%s22_s0] ss:$0 sm:$0xff] }
   0x2   :  { %5 = vst [vmem:[%s23_s1] sm:$0x3] %v4_v0 }

// kernel: tile.63
= control target key start
LH: loop header
LB: loop body
LE: loop exit
PB: predicated region body
PF: predicated region fallthrough
CT: control target
= control target key end

     0   :  { %vm7_vm0 = vcmask 523264   ;;  %vm13_vm1 = vcmask 1048064   ;;  %s39_s0 = inlined_call_operand.vmem [shape: f32[2,64], index: 0, kind: input, shape index: {}]   ;;  %s40_s1 = inlined_call_operand.vmem [shape: f32[1,128], index: 1, kind: output, shape index: {}]  }
   0x1   :  { %v4_v0 = vld [vmem:[%s39_s0] sm:$0x3]  ;;  %s22_s0 = smov 64  }
   0x2   :  { %5 = vst [vmem:[#allocation1] sm:$0x3] %v4_v0 }
   0x9   :  { %v10_v1 = vld [vmem:[#allocation1 + $0x1] sm:$0x1]   ;;  %v6_v2 = vld [vmem:[#allocation1] sm:$0x1]  }
   0xa   :  { %11 = vrot.lane.b32.xlu0 %v10_v1, %s22_s0  ;;  %8 = vst.msk [vmem:[#allocation0] sm:$0x1] %vm7_vm0, %v6_v2  }
  0x7c   :  { %v12_v3 = vpop.permute.xlu0 %11  }
  0x7d   :  { %14 = vst.msk [vmem:[#allocation0] sm:$0x1] %vm13_vm1, %v12_v3  }
  0x84   :  { %v18_v4 = vld [vmem:[#allocation0] sm:$0x1] }
  0x85   :  { %20 = vst [vmem:[%s40_s1] sm:$0x1] %v18_v4 }

// kernel: _lambda_.13
= control target key start
LH: loop header
LB: loop body
LE: loop exit
PB: predicated region body
PF: predicated region fallthrough
CT: control target
= control target key end

     0   :  { %s2214_s12 = smov 0   ;;  %s2216_s13 = smov 0   ;;  %s2742_s0 = inlined_call_operand.vmem [shape: f32[2,6,6,192], index: 0, kind: input, shape index: {}]   ;;  %s2743_s1 = inlined_call_operand.vmem [shape: bf16[9,192,128], index: 1, kind: input, shape index: {}]   ;;  %s2744_s2 = inlined_call_operand.vmem [shape: f32[1,128], index: 2, kind: input, shape index: {}]   ;;  %s2745_s3 = inlined_call_operand.vmem [shape: f32[2,4,4,128], index: 3, kind: output, shape index: {}]  }
   0x1   :  { %s2218_s14 = smov 0   ;;  %s2220_s15 = smov 0  }
   0x2   :  { %s2222_s16 = smov 0  }
   0x3 LB: > { %s22_s17 = sadd.s32 1, %s2183_s14  ;;  %s25_s18 = sadd.s32 1, %s2187_s15  ;;  %s2191_s16 = sphi %s2222_s16, %s13_s16   ;;  %s2187_s15 = sphi %s2220_s15, %s2749_s15   ;;  %s2183_s14 = sphi %s2218_s14, %s2748_s14   ;;  %s2179_s13 = sphi %s2216_s13, %s2747_s13   ;;  %s2175_s12 = sphi %s2214_s12, %s2746_s12  }
   0x4   : > { %p23_p0 = scmp.ge.s32.totalorder %s22_s17, 4  ;;  %p1670_p1 = scmp.ge.s32.totalorder %s2191_s16, 1 }
   0x5   : > { %p151_p2 = scmp.lt.s32.totalorder %s2191_s16, 9 }
   0x6   : > { %s2751_s17 = smov (%p23_p0, %s22_s17), 0  ;;  %s2753_s18 = smov (!%p23_p0, %s25_s18), %s2187_s15 }
   0x7   : > { %p152_p3 = pnand %p1670_p1, %p151_p2  ;;  %p27_p4 = scmp.ge.s32.totalorder %s2753_s18, 2 }
   0x8   : > { %v2045_v0 = vld [vmem:[%s2743_s1 + $0x60] sm:$0xff] (!%p152_p3)   ;;  %v2193_v1 = vmov (!%p152_p3), 0   ;;  %v2047_v3 = vld [vmem:[%s2743_s1 + $0x68] sm:$0xff] (!%p152_p3)   ;;  %v2049_v5 = vld [vmem:[%s2743_s1 + $0x70] sm:$0xff] (!%p152_p3)   ;;  %p178_p5 = scmp.lt.s32.totalorder (!%p152_p3), %s2179_s13, 1  ;;  %s2002_s25 = sshll.u32 (!%p152_p3), %s2175_s12, 4 }
   0x9   : > { %s2755_s18 = smov (%p27_p4, %s2753_s18), 0  ;;  %155 = sbr.rel (%p152_p3) target bundleno = 470 (0x1d6), region = 32 }
   0xa   : > { %343 = vmatprep.subr.bf16.mxu0 (!%p152_p3), %v2193_v1  ;;  %458 = vmatprep.subr.bf16.mxu1 (!%p152_p3), %v2193_v1  ;;  %v2046_v2 = vld [vmem:[%s2743_s1] sm:$0xff] (!%p152_p3)   ;;  %v2048_v4 = vld [vmem:[%s2743_s1 + $0x8] sm:$0xff] (!%p152_p3)   ;;  %v2050_v6 = vld [vmem:[%s2743_s1 + $0x10] sm:$0xff] (!%p152_p3)   ;;  %vm339_vm0 = vcmask (!%p152_p3), 523264   ;;  %p185_p6 = scmp.lt.s32.totalorder (!%p152_p3), %s2175_s12, 3 }
   0xb   : > { %344 = vmatpush1.bf16.msra.mxu0 (!%p152_p3), %v2045_v0  ;;  %459 = vmatpush1.bf16.msra.mxu1 (!%p152_p3), %v2046_v2  ;;  %v2051_v7 = vld [vmem:[%s2743_s1 + $0x78] sm:$0xff] (!%p152_p3)   ;;  %v2053_v9 = vld [vmem:[%s2743_s1 + $0x80] sm:$0xff] (!%p152_p3)   ;;  %v2055_v11 = vld [vmem:[%s2743_s1 + $0x88] sm:$0xff] (!%p152_p3)  }
   0xc   : > { %345 = vmatprep.subr.bf16.mxu0 (!%p152_p3), %v2193_v1  ;;  %460 = vmatprep.subr.bf16.mxu1 (!%p152_p3), %v2193_v1  ;;  %v2052_v8 = vld [vmem:[%s2743_s1 + $0x18] sm:$0xff] (!%p152_p3)   ;;  %v2054_v10 = vld [vmem:[%s2743_s1 + $0x20] sm:$0xff] (!%p152_p3)   ;;  %v2056_v12 = vld [vmem:[%s2743_s1 + $0x28] sm:$0xff] (!%p152_p3)  }
   0xd   : > { %v2057_v13 = vld [vmem:[%s2743_s1 + $0x90] sm:$0xff] (!%p152_p3)   ;;  %v2059_v19 = vld [vmem:[%s2743_s1 + $0x98] sm:$0xff] (!%p152_p3)   ;;  %v2061_v23 = vld [vmem:[%s2743_s1 + $0xa0] sm:$0xff] (!%p152_p3)  }
   0xe   : > { %v2058_v14 = vld [vmem:[%s2743_s1 + $0x30] sm:$0xff] (!%p152_p3)   ;;  %v2060_v20 = vld [vmem:[%s2743_s1 + $0x38] sm:$0xff] (!%p152_p3)   ;;  %v2062_v26 = vld [vmem:[%s2743_s1 + $0x40] sm:$0xff] (!%p152_p3)  }
   0xf   : > { %346 = vmatpush1.bf16.msra.mxu0 (!%p152_p3), %v2047_v3  ;;  %461 = vmatpush1.bf16.msra.mxu1 (!%p152_p3), %v2048_v4  ;;  %v2063_v29 = vld [vmem:[%s2743_s1 + $0xa8] sm:$0xff] (!%p152_p3)   ;;  %v2065_v32 = vld [vmem:[%s2743_s1 + $0xb0] sm:$0xff] (!%p152_p3)   ;;  %v2067_v34 = vld [vmem:[%s2743_s1 + $0xb8] sm:$0xff] (!%p152_p3)  }
  0x10   : > { %347 = vmatprep.subr.bf16.mxu0 %v2193_v1  ;;  %462 = vmatprep.subr.bf16.mxu1 %v2193_v1  ;;  %s2757_s13 = smov (!%p178_p5, %s2179_s13), 1  ;;  %v2064_v30 = vld [vmem:[%s2743_s1 + $0x48] sm:$0xff]   ;;  %v2066_v33 = vld [vmem:[%s2743_s1 + $0x50] sm:$0xff]   ;;  %v2068_v37 = vld [vmem:[%s2743_s1 + $0x58] sm:$0xff]   ;;  %s2759_s12 = smov (!%p185_p6, %s2175_s12), 3 }
  0x11   : > { %s2003_s10 = smul.u32 96, %s2757_s13  ;;  %v2069_v41 = vld [vmem:[%s2743_s1 + $0xc0] sm:$0xff]   ;;  %v2071_v45 = vld [vmem:[%s2743_s1 + $0xc8] sm:$0xff]   ;;  %v2073_v50 = vld [vmem:[%s2743_s1 + $0xd0] sm:$0xff]  }
  0x12   : > { %v2070_v42 = vld [vmem:[%s2743_s1 + $0x120] sm:$0xff]   ;;  %v2072_v47 = vld [vmem:[%s2743_s1 + $0x128] sm:$0xff]   ;;  %v2074_v51 = vld [vmem:[%s2743_s1 + $0x130] sm:$0xff]  }
  0x13   : > { %348 = vmatpush1.bf16.msra.mxu0 %v2049_v5  ;;  %463 = vmatpush1.bf16.msra.mxu1 %v2050_v6  ;;  %s182_s24 = scalar_lea.vmem %s2742_s0, %s2003_s10  ;;  %v2075_v52 = vld [vmem:[%s2743_s1 + $0xd8] sm:$0xff]   ;;  %v2077_v54 = vld [vmem:[%s2743_s1 + $0xe0] sm:$0xff]   ;;  %v2079_v56 = vld [vmem:[%s2743_s1 + $0xe8] sm:$0xff]  }
  0x14   : > { %349 = vmatprep.subr.bf16.mxu0 %v2193_v1  ;;  %464 = vmatprep.subr.bf16.mxu1 %v2193_v1  ;;  %s2305_s28 = scalar_lea.vmem %s182_s24, %s2002_s25  ;;  %v2076_v53 = vld [vmem:[%s2743_s1 + $0x138] sm:$0xff]   ;;  %v2078_v55 = vld [vmem:[%s2743_s1 + $0x140] sm:$0xff]   ;;  %v2080_v57 = vld [vmem:[%s2743_s1 + $0x148] sm:$0xff]  }
  0x15   : > { %v224_v15 = vld [vmem:[%s2305_s28 + $0x8] sm:$0x1e]  ;;  %v223_v25 = vld [vmem:[%s2305_s28] sm:$0x1e]  ;;  %v1765_v46 = vld [vmem:[%s2305_s28 + $0x18] sm:$0xf] }
  0x16   : > { %v196_v16 = vld [vmem:[%s2305_s28 + $0x8] sm:$0xf]  ;;  %v226_v17 = vpack.c.bf16 %v224_v15, %v224_v15  ;;  %v225_v28 = vpack.c.bf16 %v223_v25, %v223_v25  ;;  %v195_v38 = vld [vmem:[%s2305_s28] sm:$0xf]  ;;  %v655_v49 = vpack.c.bf16 %v1765_v46, %v1765_v46  ;;  %v2081_v58 = vld [vmem:[%s2743_s1 + $0xf0] sm:$0xff]  }
  0x17   : > { %350 = vmatpush1.bf16.msra.mxu0 %v2051_v7  ;;  %465 = vmatpush1.bf16.msra.mxu1 %v2052_v8  ;;  %v198_v18 = vpack.c.bf16 %v196_v16, %v196_v16  ;;  %v197_v40 = vpack.c.bf16 %v195_v38, %v195_v38  ;;  %v499_v43 = vld [vmem:[%s2305_s28 + $0x8] sm:$0x3c]  ;;  %v2082_v59 = vld [vmem:[%s2743_s1 + $0x150] sm:$0xff]   ;;  %v2083_v60 = vld [vmem:[%s2743_s1 + $0xf8] sm:$0xff]  }
  0x18   : > { %351 = vmatprep.subr.bf16.mxu0 %v2193_v1  ;;  %466 = vmatprep.subr.bf16.mxu1 %v2193_v1  ;;  %v260_v21 = vshrl.u32 %v226_v17, 16  ;;  %v262_v22 = vshll.u32 %v226_v17, 16  ;;  %v255_v31 = vshll.u32 %v225_v28, 16  ;;  %v253_v35 = vshrl.u32 %v225_v28, 16  ;;  %v2084_v61 = vld [vmem:[%s2743_s1 + $0x158] sm:$0xff]   ;;  %v2085_v62 = vld [vmem:[%s2743_s1 + $0x100] sm:$0xff]  }
  0x19   : > { %1725 = vmatprep.mubr.msk.bf16.mxu1 %vm339_vm0, %v198_v18  ;;  %v501_v44 = vpack.c.bf16 %v499_v43, %v499_v43  ;;  %v2086_v63 = vld [vmem:[%s2743_s1 + $0x160] sm:$0xff]   ;;  %v1804_v0 = vld [vmem:[%s2305_s28 + $0x18] sm:$0x1e]  ;;  %v2087_v2 = vld [vmem:[%s2743_s1 + $0x108] sm:$0xff]  }
  0x1a   : > { %v264_v24 = vrot.slane %v262_v22, 1  ;;  %v257_v36 = vrot.slane %v255_v31, 1  ;;  %v2088_v3 = vld [vmem:[%s2743_s1 + $0x168] sm:$0xff]   ;;  %v800_v4 = vpack.c.bf16 %v1804_v0, %v1804_v0  ;;  %v2089_v5 = vld [vmem:[%s2743_s1 + $0x110] sm:$0xff]   ;;  %v498_v6 = vld [vmem:[%s2305_s28] sm:$0x3c] }
  0x1b   : > { %352 = vmatpush1.bf16.msra.mxu0 %v2053_v9  ;;  %467 = vmatpush1.bf16.msra.mxu1 %v2054_v10  ;;  %v530_v48 = vrot.slane %v501_v44, 1  ;;  %v2090_v7 = vld [vmem:[%s2743_s1 + $0x170] sm:$0xff]   ;;  %v2091_v8 = vld [vmem:[%s2743_s1 + $0x118] sm:$0xff]   ;;  %v2093_v18 = vld [vmem:[%s2743_s1 + $0x180] sm:$0xff]  }
  0x1c   : > { %353 = vmatprep.subr.bf16.mxu0 %v2193_v1  ;;  %468 = vmatprep.subr.bf16.mxu1 %v2193_v1  ;;  %v265_v27 = vor.u32 %v264_v24, %v260_v21  ;;  %v258_v39 = vor.u32 %v257_v36, %v253_v35  ;;  %v836_v9 = vshll.u32 %v800_v4, 16  ;;  %v2092_v10 = vld [vmem:[%s2743_s1 + $0x178] sm:$0xff]   ;;  %v2096_v24 = vld [vmem:[%s2743_s1 + $0x1e8] sm:$0xff]   ;;  %v2097_v25 = vld [vmem:[%s2743_s1 + $0x190] sm:$0xff]  }
  0x1d   : > { %v2100_v28 = vld [vmem:[%s2743_s1 + $0x1f8] sm:$0xff]   ;;  %v2103_v31 = vld [vmem:[%s2743_s1 + $0x1a8] sm:$0xff]   ;;  %v1803_v38 = vld [vmem:[%s2305_s28 + $0x10] sm:$0x1e] }
  0x1e   : > { %1712 = vmatprep.mubr.msk.bf16.mxu0 %vm339_vm0, %v265_v27  ;;  %v838_v15 = vrot.slane %v836_v9, 1  ;;  %v2099_v27 = vld [vmem:[%s2743_s1 + $0x198] sm:$0xff]   ;;  %v2112_v43 = vld [vmem:[%s2743_s1 + $0x228] sm:$0xff]   ;;  %v2113_v46 = vld [vmem:[%s2743_s1 + $0x1d0] sm:$0xff]  }
  0x1f   : > { %354 = vmatpush1.bf16.msra.mxu0 %v2055_v11  ;;  %469 = vmatpush1.bf16.msra.mxu1 %v2056_v12  ;;  %v500_v11 = vpack.c.bf16 %v498_v6, %v498_v6  ;;  %v1843_v12 = vld [vmem:[%s2305_s28 + $0x18] sm:$0x3c]  ;;  %v2119_v0 = vld [vmem:[%s2743_s1 + $0x248] sm:$0xff]  }
  0x20   : > { %355 = vmatprep.subr.bf16.mxu0 %v2193_v1  ;;  %470 = vmatprep.subr.bf16.mxu1 %v2193_v1  ;;  %v960_v17 = vpack.c.bf16 %v1843_v12, %v1843_v12  ;;  %v2107_v35 = vld [vmem:[%s2743_s1 + $0x1b8] sm:$0xff]   ;;  %v2127_v9 = vld [vmem:[%s2743_s1 + $0x268] sm:$0xff]   ;;  %v2130_v12 = vld [vmem:[%s2743_s1 + $0x2d0] sm:$0xff]  }
  0x21   : > { %v529_v16 = vrot.slane %v500_v11, 1  ;;  %v2108_v36 = vld [vmem:[%s2743_s1 + $0x218] sm:$0xff]   ;;  %v2129_v11 = vld [vmem:[%s2743_s1 + $0x270] sm:$0xff]  }
  0x22   : > { %v989_v22 = vrot.slane %v960_v17, 1  ;;  %v2124_v6 = vld [vmem:[%s2743_s1 + $0x2b8] sm:$0xff]   ;;  %v1921_v17 = vld [vmem:[%s2305_s28 + $0x20] sm:$0x1e] }
  0x23   : > { %356 = vmatpush1.bf16.msra.mxu0 %v2057_v13  ;;  %471 = vmatpush1.bf16.msra.mxu1 %v2058_v14  ;;  %v1764_v13 = vld [vmem:[%s2305_s28 + $0x10] sm:$0xf]  ;;  %v834_v14 = vshrl.u32 %v800_v4, 16 }
  0x24   : > { %357 = vmatprep.subr.bf16.mxu0 %v2193_v1  ;;  %472 = vmatprep.subr.bf16.mxu1 %v2193_v1  ;;  %v2122_v4 = vld [vmem:[%s2743_s1 + $0x2b0] sm:$0xff]  }
  0x25   : > { %v839_v21 = vor.u32 %v838_v15, %v834_v14  ;;  %v2132_v14 = vld [vmem:[%s2743_s1 + $0x2d8] sm:$0xff]   ;;  %v2133_v15 = vld [vmem:[%s2743_s1 + $0x280] sm:$0xff]  }
  0x27   : > { %358 = vmatpush1.bf16.msra.mxu0 %v2059_v19  ;;  %473 = vmatpush1.bf16.msra.mxu1 %v2060_v20  ;;  %v654_v19 = vpack.c.bf16 %v1764_v13, %v1764_v13  ;;  %v2094_v20 = vld [vmem:[%s2743_s1 + $0x1e0] sm:$0xff]   ;;  %v2131_v13 = vld [vmem:[%s2743_s1 + $0x278] sm:$0xff]  }
  0x28   : > { %359 = vmatprep.subr.bf16.mxu0 %v2193_v1  ;;  %474 = vmatprep.subr.bf16.mxu1 %v2193_v1 }
  0x2b   : > { %360 = vmatpush1.bf16.msra.mxu0 %v2061_v23  ;;  %475 = vmatpush1.bf16.msra.mxu1 %v2062_v26  ;;  %v2095_v23 = vld [vmem:[%s2743_s1 + $0x188] sm:$0xff]   ;;  %v2098_v26 = vld [vmem:[%s2743_s1 + $0x1f0] sm:$0xff]  }
  0x2c   : > { %361 = vmatprep.subr.bf16.mxu0 %v2193_v1  ;;  %476 = vmatprep.subr.bf16.mxu1 %v2193_v1 }
  0x2f   : > { %362 = vmatpush1.bf16.msra.mxu0 %v2063_v29  ;;  %477 = vmatpush1.bf16.msra.mxu1 %v2064_v30  ;;  %v2101_v29 = vld [vmem:[%s2743_s1 + $0x1a0] sm:$0xff]  }
  0x30   : > { %363 = vmatprep.subr.bf16.mxu0 %v2193_v1  ;;  %478 = vmatprep.subr.bf16.mxu1 %v2193_v1  ;;  %v2102_v30 = vld [vmem:[%s2743_s1 + $0x200] sm:$0xff]  }
  0x33   : > { %364 = vmatpush1.bf16.msra.mxu0 %v2065_v32  ;;  %479 = vmatpush1.bf16.msra.mxu1 %v2066_v33  ;;  %v2104_v32 = vld [vmem:[%s2743_s1 + $0x208] sm:$0xff]   ;;  %v2105_v33 = vld [vmem:[%s2743_s1 + $0x1b0] sm:$0xff]  }
  0x34   : > { %365 = vmatprep.subr.bf16.mxu0 %v2193_v1  ;;  %480 = vmatprep.subr.bf16.mxu1 %v2193_v1 }
  0x37   : > { %366 = vmatpush1.bf16.msra.mxu0 %v2067_v34  ;;  %481 = vmatpush1.bf16.msra.mxu1 %v2068_v37  ;;  %v2106_v34 = vld [vmem:[%s2743_s1 + $0x210] sm:$0xff]   ;;  %v2109_v37 = vld [vmem:[%s2743_s1 + $0x1c0] sm:$0xff]  }
  0x38   : > { %607 = vmatprep.subr.bf16.mxu0 %v2193_v1  ;;  %756 = vmatprep.subr.bf16.mxu1 %v2193_v1 }
  0x3a   : > { %376 = vmatmul.mubr.bf16.vlgmr.msra.gmra.mrb[0].mxu0 %v258_v39  ;;  %491 = vmatmul.mubr.bf16.vlgmr.msra.gmra.mrb[0].mxu1 %v197_v40  ;;  %v2110_v39 = vld [vmem:[%s2743_s1 + $0x220] sm:$0xff]   ;;  %v799_v40 = vpack.c.bf16 %v1803_v38, %v1803_v38 }
  0x3b   : > { %608 = vmatpush1.bf16.msra.mxu0 %v2069_v41  ;;  %757 = vmatpush1.bf16.msra.mxu1 %v2070_v42  ;;  %v2111_v41 = vld [vmem:[%s2743_s1 + $0x1c8] sm:$0xff]   ;;  %v2145_v38 = vld [vmem:[%s2743_s1 + $0x320] sm:$0xff]  }
  0x3c   : > { %609 = vmatprep.subr.bf16.mxu0 %v2193_v1  ;;  %758 = vmatprep.subr.bf16.mxu1 %v2193_v1  ;;  %v1922_v42 = vld [vmem:[%s2305_s28 + $0x28] sm:$0x1e]  ;;  %v829_v44 = vshll.u32 %v799_v40, 16 }
  0x3d   : > { %1762 = vmatprep.mubr.msk.bf16.mxu0 %vm339_vm0, %v530_v48  ;;  %1802 = vmatprep.mubr.msk.bf16.mxu1 %vm339_vm0, %v655_v49  ;;  %v1842_v48 = vld [vmem:[%s2305_s28 + $0x10] sm:$0x3c]  ;;  %v827_v49 = vshrl.u32 %v799_v40, 16 }
  0x3e   : > { %v2147_v40 = vld [vmem:[%s2743_s1 + $0x330] sm:$0xff]  }
  0x3f   : > { %610 = vmatpush1.bf16.msra.mxu0 %v2071_v45  ;;  %759 = vmatpush1.bf16.msra.mxu1 %v2072_v47  ;;  %v1259_v45 = vpack.c.bf16 %v1922_v42, %v1922_v42  ;;  %v2114_v47 = vld [vmem:[%s2743_s1 + $0x230] sm:$0xff]   ;;  %v2149_v42 = vld [vmem:[%s2743_s1 + $0x340] sm:$0xff]  }
  0x40   : > { %611 = vmatprep.subr.bf16.mxu0 %v2193_v1  ;;  %760 = vmatprep.subr.bf16.mxu1 %v2193_v1 }
  0x43   : > { %612 = vmatpush1.bf16.msra.mxu0 %v2073_v50  ;;  %761 = vmatpush1.bf16.msra.mxu1 %v2074_v51  ;;  %v831_v50 = vrot.slane %v829_v44, 1  ;;  %v1295_v51 = vshll.u32 %v1259_v45, 16  ;;  %v2151_v44 = vld [vmem:[%s2743_s1 + $0x350] sm:$0xff]  }
  0x44   : > { %613 = vmatprep.subr.bf16.mxu0 %v2193_v1  ;;  %762 = vmatprep.subr.bf16.mxu1 %v2193_v1 }
  0x47   : > { %614 = vmatpush1.bf16.msra.mxu0 %v2075_v52  ;;  %763 = vmatpush1.bf16.msra.mxu1 %v2076_v53  ;;  %v2115_v52 = vld [vmem:[%s2743_s1 + $0x1d8] sm:$0xff]   ;;  %v959_v53 = vpack.c.bf16 %v1842_v48, %v1842_v48 }
  0x48   : > { %615 = vmatprep.subr.bf16.mxu0 %v2193_v1  ;;  %764 = vmatprep.subr.bf16.mxu1 %v2193_v1 }
  0x4b   : > { %616 = vmatpush1.bf16.msra.mxu0 %v2077_v54  ;;  %765 = vmatpush1.bf16.msra.mxu1 %v2078_v55  ;;  %v2116_v54 = vld [vmem:[%s2743_s1 + $0x238] sm:$0xff]   ;;  %v832_v55 = vor.u32 %v831_v50, %v827_v49 }
  0x4c   : > { %617 = vmatprep.subr.bf16.mxu0 %v2193_v1  ;;  %766 = vmatprep.subr.bf16.mxu1 %v2193_v1 }
  0x4f   : > { %618 = vmatpush1.bf16.msra.mxu0 %v2079_v56  ;;  %767 = vmatpush1.bf16.msra.mxu1 %v2080_v57  ;;  %v1883_v56 = vld [vmem:[%s2305_s28 + $0x28] sm:$0xf]  ;;  %v1293_v57 = vshrl.u32 %v1259_v45, 16  ;;  %v1960_v45 = vld [vmem:[%s2305_s28 + $0x20] sm:$0x3c] }
  0x50   : > { %619 = vmatprep.subr.bf16.mxu0 %v2193_v1  ;;  %768 = vmatprep.subr.bf16.mxu1 %v2193_v1 }
  0x53   : > { %620 = vmatpush1.bf16.msra.mxu0 %v2081_v58  ;;  %769 = vmatpush1.bf16.msra.mxu1 %v2082_v59  ;;  %v1297_v58 = vrot.slane %v1295_v51, 1  ;;  %v2117_v59 = vld [vmem:[%s2743_s1 + $0x240] sm:$0xff]  }
  0x54   : > { %621 = vmatprep.subr.bf16.mxu0 %v2193_v1  ;;  %770 = vmatprep.subr.bf16.mxu1 %v2193_v1 }
  0x57   : > { %622 = vmatpush1.bf16.msra.mxu0 %v2083_v60  ;;  %771 = vmatpush1.bf16.msra.mxu1 %v2084_v61  ;;  %v988_v60 = vrot.slane %v959_v53, 1  ;;  %v2118_v61 = vld [vmem:[%s2743_s1 + $0x2a0] sm:$0xff]  }
  0x58   : > { %623 = vmatprep.subr.bf16.mxu0 %v2193_v1  ;;  %772 = vmatprep.subr.bf16.mxu1 %v2193_v1 }
  0x5b   : > { %624 = vmatpush1.bf16.msra.mxu0 %v2085_v62  ;;  %773 = vmatpush1.bf16.msra.mxu1 %v2086_v63  ;;  %v1114_v62 = vpack.c.bf16 %v1883_v56, %v1883_v56  ;;  %v1298_v63 = vor.u32 %v1297_v58, %v1293_v57 }
  0x5c   : > { %625 = vmatprep.subr.bf16.mxu0 %v2193_v1  ;;  %774 = vmatprep.subr.bf16.mxu1 %v2193_v1 }
  0x5f   : > { %626 = vmatpush1.bf16.msra.mxu0 %v2087_v2  ;;  %775 = vmatpush1.bf16.msra.mxu1 %v2088_v3  ;;  %v2120_v2 = vld [vmem:[%s2743_s1 + $0x2a8] sm:$0xff]   ;;  %v2121_v3 = vld [vmem:[%s2743_s1 + $0x250] sm:$0xff]  }
  0x60   : > { %627 = vmatprep.subr.bf16.mxu0 %v2193_v1  ;;  %776 = vmatprep.subr.bf16.mxu1 %v2193_v1 }
  0x63   : > { %628 = vmatpush1.bf16.msra.mxu0 %v2089_v5  ;;  %777 = vmatpush1.bf16.msra.mxu1 %v2090_v7  ;;  %v2123_v5 = vld [vmem:[%s2743_s1 + $0x258] sm:$0xff]   ;;  %v2125_v7 = vld [vmem:[%s2743_s1 + $0x260] sm:$0xff]  }
  0x64   : > { %629 = vmatprep.subr.bf16.mxu0 %v2193_v1  ;;  %778 = vmatprep.subr.bf16.mxu1 %v2193_v1 }
  0x67   : > { %630 = vmatpush1.bf16.msra.mxu0 %v2091_v8  ;;  %779 = vmatpush1.bf16.msra.mxu1 %v2092_v10  ;;  %v2126_v8 = vld [vmem:[%s2743_s1 + $0x2c0] sm:$0xff]   ;;  %v2128_v10 = vld [vmem:[%s2743_s1 + $0x2c8] sm:$0xff]  }
  0x68   : > { %916 = vmatprep.subr.bf16.mxu0 %v2193_v1  ;;  %1066 = vmatprep.subr.bf16.mxu1 %v2193_v1 }
  0x6a   : > { %640 = vmatmul.mubr.bf16.vlgmr.msra.gmra.mrb[4].mxu0 %v529_v16  ;;  %789 = vmatmul.mubr.bf16.vlgmr.msra.gmra.mrb[4].mxu1 %v654_v19  ;;  %v2134_v16 = vld [vmem:[%s2743_s1 + $0x2e0] sm:$0xff]   ;;  %v1258_v19 = vpack.c.bf16 %v1921_v17, %v1921_v17 }
  0x6b   : > { %917 = vmatpush1.bf16.msra.mxu0 %v2093_v18  ;;  %1067 = vmatpush1.bf16.msra.mxu1 %v2094_v20  ;;  %v2135_v18 = vld [vmem:[%s2743_s1 + $0x288] sm:$0xff]  }
  0x6c   : > { %918 = vmatprep.subr.bf16.mxu0 %v2193_v1  ;;  %1068 = vmatprep.subr.bf16.mxu1 %v2193_v1  ;;  %v2136_v20 = vld [vmem:[%s2743_s1 + $0x2e8] sm:$0xff]  }
  0x6d   : > { %1841 = vmatprep.mubr.msk.bf16.mxu0 %vm339_vm0, %v839_v21  ;;  %1880 = vmatprep.mubr.msk.bf16.mxu1 %vm339_vm0, %v989_v22  ;;  %v2137_v21 = vld [vmem:[%s2743_s1 + $0x290] sm:$0xff]   ;;  %v1288_v22 = vshll.u32 %v1258_v19, 16 }
  0x6f   : > { %919 = vmatpush1.bf16.msra.mxu0 %v2095_v23  ;;  %1069 = vmatpush1.bf16.msra.mxu1 %v2096_v24  ;;  %v2138_v23 = vld [vmem:[%s2743_s1 + $0x2f0] sm:$0xff]   ;;  %v1961_v24 = vld [vmem:[%s2305_s28 + $0x28] sm:$0x3c] }
  0x70   : > { %920 = vmatprep.subr.bf16.mxu0 %v2193_v1  ;;  %1070 = vmatprep.subr.bf16.mxu1 %v2193_v1 }
  0x73   : > { %921 = vmatpush1.bf16.msra.mxu0 %v2097_v25  ;;  %1071 = vmatpush1.bf16.msra.mxu1 %v2098_v26  ;;  %v2139_v25 = vld [vmem:[%s2743_s1 + $0x298] sm:$0xff]   ;;  %v1882_v26 = vld [vmem:[%s2305_s28 + $0x20] sm:$0xf]  ;;  %s1672_s28 = sshll.u32 %s2757_s13, 2 }
  0x74   : > { %922 = vmatprep.subr.bf16.mxu0 %v2193_v1  ;;  %1072 = vmatprep.subr.bf16.mxu1 %v2193_v1  ;;  %s188_s4 = sadd.s32 %s1672_s28, %s2759_s12 }
  0x75   : > { %s1673_s7 = sshll.u32 %s188_s4, 2 }
  0x76   : > { %s190_s10 = scalar_lea.vmem %s2745_s3, %s1673_s7 }
  0x77   : > { %923 = vmatpush1.bf16.msra.mxu0 %v2099_v27  ;;  %1073 = vmatpush1.bf16.msra.mxu1 %v2100_v28  ;;  %v1286_v27 = vshrl.u32 %v1258_v19, 16  ;;  %v1290_v28 = vrot.slane %v1288_v22, 1 }
  0x78   : > { %924 = vmatprep.subr.bf16.mxu0 %v2193_v1  ;;  %1074 = vmatprep.subr.bf16.mxu1 %v2193_v1 }
  0x7b   : > { %925 = vmatpush1.bf16.msra.mxu0 %v2101_v29  ;;  %1075 = vmatpush1.bf16.msra.mxu1 %v2102_v30  ;;  %v2140_v29 = vld [vmem:[%s2743_s1 + $0x2f8] sm:$0xff]   ;;  %v1419_v30 = vpack.c.bf16 %v1961_v24, %v1961_v24 }
  0x7c   : > { %926 = vmatprep.subr.bf16.mxu0 %v2193_v1  ;;  %1076 = vmatprep.subr.bf16.mxu1 %v2193_v1 }
  0x7f   : > { %927 = vmatpush1.bf16.msra.mxu0 %v2103_v31  ;;  %1077 = vmatpush1.bf16.msra.mxu1 %v2104_v32  ;;  %v1113_v31 = vpack.c.bf16 %v1882_v26, %v1882_v26  ;;  %v2141_v32 = vld [vmem:[%s2743_s1 + $0x300] sm:$0xff]  }
  0x80   : > { %928 = vmatprep.subr.bf16.mxu0 %v2193_v1  ;;  %1078 = vmatprep.subr.bf16.mxu1 %v2193_v1 }
  0x83   : > { %929 = vmatpush1.bf16.msra.mxu0 %v2105_v33  ;;  %1079 = vmatpush1.bf16.msra.mxu1 %v2106_v34  ;;  %v1291_v33 = vor.u32 %v1290_v28, %v1286_v27  ;;  %v1448_v34 = vrot.slane %v1419_v30, 1 }
  0x84   : > { %930 = vmatprep.subr.bf16.mxu0 %v2193_v1  ;;  %1080 = vmatprep.subr.bf16.mxu1 %v2193_v1 }
  0x87   : > { %931 = vmatpush1.bf16.msra.mxu0 %v2107_v35  ;;  %1081 = vmatpush1.bf16.msra.mxu1 %v2108_v36  ;;  %v2142_v35 = vld [vmem:[%s2743_s1 + $0x308] sm:$0xff]   ;;  %v2143_v36 = vld [vmem:[%s2743_s1 + $0x310] sm:$0xff]  }
  0x88   : > { %932 = vmatprep.subr.bf16.mxu0 %v2193_v1  ;;  %1082 = vmatprep.subr.bf16.mxu1 %v2193_v1 }
  0x8b   : > { %933 = vmatpush1.bf16.msra.mxu0 %v2109_v37  ;;  %1083 = vmatpush1.bf16.msra.mxu1 %v2110_v39  ;;  %v2144_v37 = vld [vmem:[%s2743_s1 + $0x318] sm:$0xff]   ;;  %v2146_v39 = vld [vmem:[%s2743_s1 + $0x328] sm:$0xff]  }
  0x8c   : > { %934 = vmatprep.subr.bf16.mxu0 %v2193_v1  ;;  %1084 = vmatprep.subr.bf16.mxu1 %v2193_v1 }
  0x8f   : > { %935 = vmatpush1.bf16.msra.mxu0 %v2111_v41  ;;  %1085 = vmatpush1.bf16.msra.mxu1 %v2112_v43  ;;  %v2148_v41 = vld [vmem:[%s2743_s1 + $0x338] sm:$0xff]   ;;  %v2150_v43 = vld [vmem:[%s2743_s1 + $0x348] sm:$0xff]  }
  0x90   : > { %936 = vmatprep.subr.bf16.mxu0 %v2193_v1  ;;  %1086 = vmatprep.subr.bf16.mxu1 %v2193_v1 }
  0x93   : > { %937 = vmatpush1.bf16.msra.mxu0 %v2113_v46  ;;  %1087 = vmatpush1.bf16.msra.mxu1 %v2114_v47  ;;  %v1418_v46 = vpack.c.bf16 %v1960_v45, %v1960_v45  ;;  %v2152_v47 = vld [vmem:[%s2743_s1 + $0x358] sm:$0xff]  }
  0x94   : > { %938 = vmatprep.subr.bf16.mxu0 %v2193_v1  ;;  %1088 = vmatprep.subr.bf16.mxu1 %v2193_v1 }
  0x95   : > { %v1447_v48 = vrot.slane %v1418_v46, 1 }
  0x97   : > { %939 = vmatpush1.bf16.msra.mxu0 %v2115_v52  ;;  %1089 = vmatpush1.bf16.msra.mxu1 %v2116_v54 }
  0x98   : > { %1215 = vmatprep.subr.bf16.mxu0 %v2193_v1  ;;  %1375 = vmatprep.subr.bf16.mxu1 %v2193_v1 }
  0x9a   : > { %949 = vmatmul.mubr.bf16.vlgmr.msra.gmra.mrb[8].mxu0 %v832_v55  ;;  %1099 = vmatmul.mubr.bf16.vlgmr.msra.gmra.mrb[8].mxu1 %v988_v60 }
  0x9b   : > { %1216 = vmatpush1.bf16.msra.mxu0 %v2117_v59  ;;  %1376 = vmatpush1.bf16.msra.mxu1 %v2118_v61 }
  0x9c   : > { %1217 = vmatprep.subr.bf16.mxu0 %v2193_v1  ;;  %1377 = vmatprep.subr.bf16.mxu1 %v2193_v1 }
  0x9d   : > { %1920 = vmatprep.mubr.msk.bf16.mxu0 %vm339_vm0, %v1114_v62  ;;  %1959 = vmatprep.mubr.msk.bf16.mxu1 %vm339_vm0, %v1298_v63 }
  0x9f   : > { %1218 = vmatpush1.bf16.msra.mxu0 %v2119_v0  ;;  %1378 = vmatpush1.bf16.msra.mxu1 %v2120_v2 }
  0xa0   : > { %1219 = vmatprep.subr.bf16.mxu0 %v2193_v1  ;;  %1379 = vmatprep.subr.bf16.mxu1 %v2193_v1 }
  0xa3   : > { %1220 = vmatpush1.bf16.msra.mxu0 %v2121_v3  ;;  %1380 = vmatpush1.bf16.msra.mxu1 %v2122_v4 }
  0xa4   : > { %1221 = vmatprep.subr.bf16.mxu0 %v2193_v1  ;;  %1381 = vmatprep.subr.bf16.mxu1 %v2193_v1 }
  0xa7   : > { %1222 = vmatpush1.bf16.msra.mxu0 %v2123_v5  ;;  %1382 = vmatpush1.bf16.msra.mxu1 %v2124_v6 }
  0xa8   : > { %1223 = vmatprep.subr.bf16.mxu0 %v2193_v1  ;;  %1383 = vmatprep.subr.bf16.mxu1 %v2193_v1 }
  0xab   : > { %1224 = vmatpush1.bf16.msra.mxu0 %v2125_v7  ;;  %1384 = vmatpush1.bf16.msra.mxu1 %v2126_v8 }
  0xac   : > { %1225 = vmatprep.subr.bf16.mxu0 %v2193_v1  ;;  %1385 = vmatprep.subr.bf16.mxu1 %v2193_v1 }
  0xaf   : > { %1226 = vmatpush1.bf16.msra.mxu0 %v2127_v9  ;;  %1386 = vmatpush1.bf16.msra.mxu1 %v2128_v10 }
  0xb0   : > { %1227 = vmatprep.subr.bf16.mxu0 %v2193_v1  ;;  %1387 = vmatprep.subr.bf16.mxu1 %v2193_v1 }
  0xb3   : > { %1228 = vmatpush1.bf16.msra.mxu0 %v2129_v11  ;;  %1388 = vmatpush1.bf16.msra.mxu1 %v2130_v12 }
  0xb4   : > { %1229 = vmatprep.subr.bf16.mxu0 %v2193_v1  ;;  %1389 = vmatprep.subr.bf16.mxu1 %v2193_v1 }
  0xb7   : > { %1230 = vmatpush1.bf16.msra.mxu0 %v2131_v13  ;;  %1390 = vmatpush1.bf16.msra.mxu1 %v2132_v14 }
  0xb8   : > { %1231 = vmatprep.subr.bf16.mxu0 %v2193_v1  ;;  %1391 = vmatprep.subr.bf16.mxu1 %v2193_v1 }
  0xbb   : > { %1232 = vmatpush1.bf16.msra.mxu0 %v2133_v15  ;;  %1392 = vmatpush1.bf16.msra.mxu1 %v2134_v16 }
  0xbc   : > { %1233 = vmatprep.subr.bf16.mxu0 %v2193_v1  ;;  %1393 = vmatprep.subr.bf16.mxu1 %v2193_v1 }
  0xbf   : > { %1234 = vmatpush1.bf16.msra.mxu0 %v2135_v18  ;;  %1394 = vmatpush1.bf16.msra.mxu1 %v2136_v20 }
  0xc0   : > { %1235 = vmatprep.subr.bf16.mxu0 %v2193_v1  ;;  %1395 = vmatprep.subr.bf16.mxu1 %v2193_v1 }
  0xc3   : > { %1236 = vmatpush1.bf16.msra.mxu0 %v2137_v21  ;;  %1396 = vmatpush1.bf16.msra.mxu1 %v2138_v23 }
  0xc4   : > { %1237 = vmatprep.subr.bf16.mxu0 %v2193_v1  ;;  %1397 = vmatprep.subr.bf16.mxu1 %v2193_v1 }
  0xc7   : > { %1238 = vmatpush1.bf16.msra.mxu0 %v2139_v25  ;;  %1398 = vmatpush1.bf16.msra.mxu1 %v2140_v29  ;;  %v1999_v25 = vld [vmem:[%s2744_s2] ss:$0 sm:$0xff] }
  0xc8   : > { %1525 = vmatprep.subr.bf16.mxu0 %v2193_v1 }
  0xca   : > { %1248 = vmatmul.mubr.bf16.vlgmr.msra.gmra.mrb[12].mxu0 %v1113_v31  ;;  %1408 = vmatmul.mubr.bf16.vlgmr.msra.gmra.mrb[12].mxu1 %v1291_v33 }
  0xcb   : > { %1526 = vmatpush1.bf16.msra.mxu0 %v2141_v32  ;;  %1998 = vmatprep.mubr.msk.bf16.mxu0 %vm339_vm0, %v1448_v34 }
  0xcc   : > { %1527 = vmatprep.subr.bf16.mxu0 %v2193_v1 }
  0xcf   : > { %1528 = vmatpush1.bf16.msra.mxu0 %v2142_v35 }
  0xd0   : > { %1529 = vmatprep.subr.bf16.mxu0 %v2193_v1 }
  0xd3   : > { %1530 = vmatpush1.bf16.msra.mxu0 %v2143_v36 }
  0xd4   : > { %1531 = vmatprep.subr.bf16.mxu0 %v2193_v1 }
  0xd7   : > { %1532 = vmatpush1.bf16.msra.mxu0 %v2144_v37 }
  0xd8   : > { %1533 = vmatprep.subr.bf16.mxu0 %v2193_v1 }
  0xdb   : > { %1534 = vmatpush1.bf16.msra.mxu0 %v2145_v38 }
  0xdc   : > { %1535 = vmatprep.subr.bf16.mxu0 %v2193_v1 }
  0xdf   : > { %1536 = vmatpush1.bf16.msra.mxu0 %v2146_v39 }
  0xe0   : > { %1537 = vmatprep.subr.bf16.mxu0 %v2193_v1 }
  0xe3   : > { %1538 = vmatpush1.bf16.msra.mxu0 %v2147_v40 }
  0xe4   : > { %1539 = vmatprep.subr.bf16.mxu0 %v2193_v1 }
  0xe7   : > { %1540 = vmatpush1.bf16.msra.mxu0 %v2148_v41 }
  0xe8   : > { %1541 = vmatprep.subr.bf16.mxu0 %v2193_v1 }
  0xeb   : > { %1542 = vmatpush1.bf16.msra.mxu0 %v2149_v42 }
  0xec   : > { %1543 = vmatprep.subr.bf16.mxu0 %v2193_v1 }
  0xef   : > { %1544 = vmatpush1.bf16.msra.mxu0 %v2150_v43 }
  0xf0   : > { %1545 = vmatprep.subr.bf16.mxu0 %v2193_v1 }
  0xf3   : > { %1546 = vmatpush1.bf16.msra.mxu0 %v2151_v44 }
  0xf4   : > { %1547 = vmatprep.subr.bf16.mxu0 %v2193_v1 }
  0xf7   : > { %1548 = vmatpush1.bf16.msra.mxu0 %v2152_v47 }
  0xfa   : > { %1558 = vmatmul.mubr.bf16.vlgmr.msra.gmra.mrb[16].mxu0 %v1447_v48 }
 0x10d   : > { %v377_v49 = vpop.f32.mrb[0].mxu0  ;;  %v492_v51 = vpop.f32.mrb[0].mxu1 }
 0x10e   : > { %v379_v50 = vpop.f32.mrb[1].mxu0  ;;  %v493_v52 = vadd.f32 %v492_v51, %v377_v49  ;;  %v494_v54 = vpop.f32.mrb[1].mxu1 }
 0x10f   : > { %v380_v53 = vpop.f32.mrb[2].mxu0  ;;  %v495_v56 = vpop.f32.mrb[2].mxu1 }
 0x110   : > { %v381_v55 = vpop.f32.mrb[3].mxu0  ;;  %v496_v57 = vpop.f32.mrb[3].mxu1 }
 0x13d   : > { %v641_v58 = vpop.f32.mrb[4].mxu0  ;;  %v790_v61 = vpop.f32.mrb[4].mxu1 }
 0x13e   : > { %v647_v59 = vadd.f32 %v641_v58, %v493_v52  ;;  %v643_v60 = vpop.f32.mrb[5].mxu0  ;;  %v792_v63 = vpop.f32.mrb[5].mxu1 }
 0x13f   : > { %v644_v62 = vpop.f32.mrb[6].mxu0  ;;  %v793_v2 = vpop.f32.mrb[6].mxu1 }
 0x140   : > { %v796_v0 = vadd.f32 %v790_v61, %v647_v59  ;;  %v645_v1 = vpop.f32.mrb[7].mxu0  ;;  %v794_v3 = vpop.f32.mrb[7].mxu1 }
 0x16d   : > { %v950_v4 = vpop.f32.mrb[8].mxu0  ;;  %v1100_v7 = vpop.f32.mrb[8].mxu1 }
 0x16e   : > { %v956_v5 = vadd.f32 %v950_v4, %v796_v0  ;;  %v952_v6 = vpop.f32.mrb[9].mxu0  ;;  %v1102_v9 = vpop.f32.mrb[9].mxu1 }
 0x16f   : > { %v953_v8 = vpop.f32.mrb[10].mxu0  ;;  %v1103_v12 = vpop.f32.mrb[10].mxu1 }
 0x170   : > { %v1106_v10 = vadd.f32 %v1100_v7, %v956_v5  ;;  %v954_v11 = vpop.f32.mrb[11].mxu0  ;;  %v1104_v13 = vpop.f32.mrb[11].mxu1 }
 0x19d   : > { %v1249_v14 = vpop.f32.mrb[12].mxu0  ;;  %v1409_v17 = vpop.f32.mrb[12].mxu1 }
 0x19e   : > { %v1255_v15 = vadd.f32 %v1249_v14, %v1106_v10  ;;  %v1251_v16 = vpop.f32.mrb[13].mxu0  ;;  %v1411_v19 = vpop.f32.mrb[13].mxu1 }
 0x19f   : > { %v1252_v18 = vpop.f32.mrb[14].mxu0  ;;  %v1412_v22 = vpop.f32.mrb[14].mxu1 }
 0x1a0   : > { %v1415_v20 = vadd.f32 %v1409_v17, %v1255_v15  ;;  %v1253_v21 = vpop.f32.mrb[15].mxu0  ;;  %v1413_v23 = vpop.f32.mrb[15].mxu1 }
 0x1cd   : > { %v1559_v24 = vpop.f32.mrb[16].mxu0 }
 0x1ce   : > { %v1565_v26 = vadd.f32 %v1559_v24, %v1415_v20  ;;  %v1561_v27 = vpop.f32.mrb[17].mxu0 }
 0x1cf   : > { %v1562_v28 = vpop.f32.mrb[18].mxu0 }
 0x1d0   : > { %v1573_v29 = vadd.f32 %v1999_v25, %v1565_v26  ;;  %v1563_v30 = vpop.f32.mrb[19].mxu0 }
 0x1d2   : > { %vm1574_vm1 = vcmp.ge.f32.partialorder %v1573_v29, 0.0  ;;  %v1575_v31 = vmul.f32 0.1, %v1573_v29 }
 0x1d4   : > { %v1576_v32 = vsel %vm1574_vm1, %v1573_v29, %v1575_v31 }
 0x1d5   : > { %1577 = vst [vmem:[%s190_s10] sm:$0xf] %v1576_v32 }
 0x1d6 PF: > { %s13_s16 = sadd.s32 1, %s2191_s16   ;;  %s2746_s12 = smov %s2183_s14 }
 0x1d7   : > { %p10_p7 = scmp.ge.s32.totalorder %s13_s16, 10   ;;  %s2747_s13 = smov %s2187_s15 }
 0x1d8   : > { %s2748_s14 = smov %s2751_s17  ;;  %s2749_s15 = smov %s2755_s18 }
 0x1d9   :  { %12 = sbr.rel (!%p10_p7) target bundleno = 3 (0x3), region = 73 }

// kernel: _lambda_.15
= control target key start
LH: loop header
LB: loop body
LE: loop exit
PB: predicated region body
PF: predicated region fallthrough
CT: control target
= control target key end

     0   :  { %s2250_s12 = smov 0   ;;  %s2252_s13 = smov 0   ;;  %s2778_s0 = inlined_call_operand.vmem [shape: f32[2,6,6,192], index: 0, kind: input, shape index: {}]   ;;  %s2779_s1 = inlined_call_operand.vmem [shape: bf16[9,192,128], index: 1, kind: input, shape index: {}]   ;;  %s2780_s2 = inlined_call_operand.vmem [shape: f32[1,128], index: 2, kind: input, shape index: {}]   ;;  %s2781_s3 = inlined_call_operand.vmem [shape: f32[2,2,2,128], index: 3, kind: output, shape index: {}]  }
   0x1   :  { %s2254_s14 = smov 0   ;;  %s2256_s15 = smov 0  }
   0x2   :  { %s2258_s16 = smov 0  }
   0x3 LB: > { %s22_s17 = sadd.s32 1, %s2219_s14  ;;  %s25_s18 = sadd.s32 1, %s2223_s15  ;;  %s2227_s16 = sphi %s2258_s16, %s13_s16   ;;  %s2223_s15 = sphi %s2256_s15, %s2785_s15   ;;  %s2219_s14 = sphi %s2254_s14, %s2784_s14   ;;  %s2215_s13 = sphi %s2252_s13, %s2783_s13   ;;  %s2211_s12 = sphi %s2250_s12, %s2782_s12  }
   0x4   : > { %p23_p0 = scmp.ge.s32.totalorder %s22_s17, 2  ;;  %p1706_p1 = scmp.ge.s32.totalorder %s2227_s16, 1 }
   0x5   : > { %p151_p2 = scmp.lt.s32.totalorder %s2227_s16, 5 }
   0x6   : > { %s2787_s17 = smov (%p23_p0, %s22_s17), 0  ;;  %s2789_s18 = smov (!%p23_p0, %s25_s18), %s2223_s15 }
   0x7   : > { %p152_p3 = pnand %p1706_p1, %p151_p2  ;;  %p27_p4 = scmp.ge.s32.totalorder %s2789_s18, 2 }
   0x8   : > { %v2081_v0 = vld [vmem:[%s2779_s1 + $0x60] sm:$0xff] (!%p152_p3)   ;;  %v2229_v1 = vmov (!%p152_p3), 0   ;;  %v2083_v3 = vld [vmem:[%s2779_s1 + $0x68] sm:$0xff] (!%p152_p3)   ;;  %v2085_v5 = vld [vmem:[%s2779_s1 + $0x70] sm:$0xff] (!%p152_p3)   ;;  %p178_p5 = scmp.lt.s32.totalorder (!%p152_p3), %s2215_s13, 1  ;;  %s2038_s25 = sshll.u32 (!%p152_p3), %s2211_s12, 4 }
   0x9   : > { %s2791_s18 = smov (%p27_p4, %s2789_s18), 0  ;;  %155 = sbr.rel (%p152_p3) target bundleno = 470 (0x1d6), region = 32 }
   0xa   : > { %345 = vmatprep.subr.bf16.mxu0 (!%p152_p3), %v2229_v1  ;;  %460 = vmatprep.subr.bf16.mxu1 (!%p152_p3), %v2229_v1  ;;  %v2082_v2 = vld [vmem:[%s2779_s1] sm:$0xff] (!%p152_p3)   ;;  %v2084_v4 = vld [vmem:[%s2779_s1 + $0x8] sm:$0xff] (!%p152_p3)   ;;  %v2086_v6 = vld [vmem:[%s2779_s1 + $0x10] sm:$0xff] (!%p152_p3)   ;;  %vm341_vm0 = vcmask (!%p152_p3), 523264   ;;  %p185_p6 = scmp.lt.s32.totalorder (!%p152_p3), %s2211_s12, 1 }
   0xb   : > { %346 = vmatpush1.bf16.msra.mxu0 (!%p152_p3), %v2081_v0  ;;  %461 = vmatpush1.bf16.msra.mxu1 (!%p152_p3), %v2082_v2  ;;  %v2087_v7 = vld [vmem:[%s2779_s1 + $0x78] sm:$0xff] (!%p152_p3)   ;;  %v2089_v9 = vld [vmem:[%s2779_s1 + $0x80] sm:$0xff] (!%p152_p3)   ;;  %v2091_v11 = vld [vmem:[%s2779_s1 + $0x88] sm:$0xff] (!%p152_p3)  }
   0xc   : > { %347 = vmatprep.subr.bf16.mxu0 (!%p152_p3), %v2229_v1  ;;  %462 = vmatprep.subr.bf16.mxu1 (!%p152_p3), %v2229_v1  ;;  %v2088_v8 = vld [vmem:[%s2779_s1 + $0x18] sm:$0xff] (!%p152_p3)   ;;  %v2090_v10 = vld [vmem:[%s2779_s1 + $0x20] sm:$0xff] (!%p152_p3)   ;;  %v2092_v12 = vld [vmem:[%s2779_s1 + $0x28] sm:$0xff] (!%p152_p3)  }
   0xd   : > { %v2093_v13 = vld [vmem:[%s2779_s1 + $0x90] sm:$0xff] (!%p152_p3)   ;;  %v2095_v19 = vld [vmem:[%s2779_s1 + $0x98] sm:$0xff] (!%p152_p3)   ;;  %v2097_v23 = vld [vmem:[%s2779_s1 + $0xa0] sm:$0xff] (!%p152_p3)  }
   0xe   : > { %v2094_v14 = vld [vmem:[%s2779_s1 + $0x30] sm:$0xff] (!%p152_p3)   ;;  %v2096_v20 = vld [vmem:[%s2779_s1 + $0x38] sm:$0xff] (!%p152_p3)   ;;  %v2098_v27 = vld [vmem:[%s2779_s1 + $0x40] sm:$0xff] (!%p152_p3)  }
   0xf   : > { %348 = vmatpush1.bf16.msra.mxu0 (!%p152_p3), %v2083_v3  ;;  %463 = vmatpush1.bf16.msra.mxu1 (!%p152_p3), %v2084_v4  ;;  %v2099_v30 = vld [vmem:[%s2779_s1 + $0xa8] sm:$0xff] (!%p152_p3)   ;;  %v2101_v34 = vld [vmem:[%s2779_s1 + $0xb0] sm:$0xff] (!%p152_p3)   ;;  %v2103_v36 = vld [vmem:[%s2779_s1 + $0xb8] sm:$0xff] (!%p152_p3)  }
  0x10   : > { %349 = vmatprep.subr.bf16.mxu0 %v2229_v1  ;;  %464 = vmatprep.subr.bf16.mxu1 %v2229_v1  ;;  %s2793_s13 = smov (!%p178_p5, %s2215_s13), 1  ;;  %v2100_v31 = vld [vmem:[%s2779_s1 + $0x48] sm:$0xff]   ;;  %v2102_v35 = vld [vmem:[%s2779_s1 + $0x50] sm:$0xff]   ;;  %v2104_v39 = vld [vmem:[%s2779_s1 + $0x58] sm:$0xff]   ;;  %s2795_s12 = smov (!%p185_p6, %s2211_s12), 1 }
  0x11   : > { %s2039_s10 = smul.u32 96, %s2793_s13  ;;  %v2105_v43 = vld [vmem:[%s2779_s1 + $0xc0] sm:$0xff]   ;;  %v2107_v46 = vld [vmem:[%s2779_s1 + $0xc8] sm:$0xff]   ;;  %v2109_v53 = vld [vmem:[%s2779_s1 + $0xd0] sm:$0xff]   ;;  %s1708_s30 = sshll.u32 %s2793_s13, 1 }
  0x12   : > { %v2106_v44 = vld [vmem:[%s2779_s1 + $0x120] sm:$0xff]   ;;  %v2108_v47 = vld [vmem:[%s2779_s1 + $0x128] sm:$0xff]   ;;  %v2110_v55 = vld [vmem:[%s2779_s1 + $0x130] sm:$0xff]   ;;  %s188_s4 = sadd.s32 %s1708_s30, %s2795_s12 }
  0x13   : > { %350 = vmatpush1.bf16.msra.mxu0 %v2085_v5  ;;  %465 = vmatpush1.bf16.msra.mxu1 %v2086_v6  ;;  %s182_s24 = scalar_lea.vmem %s2778_s0, %s2039_s10  ;;  %v2111_v57 = vld [vmem:[%s2779_s1 + $0xd8] sm:$0xff]   ;;  %v2113_v59 = vld [vmem:[%s2779_s1 + $0xe0] sm:$0xff]   ;;  %v2115_v61 = vld [vmem:[%s2779_s1 + $0xe8] sm:$0xff]   ;;  %s1709_s7 = sshll.u32 %s188_s4, 1 }
  0x14   : > { %351 = vmatprep.subr.bf16.mxu0 %v2229_v1  ;;  %466 = vmatprep.subr.bf16.mxu1 %v2229_v1  ;;  %s2341_s28 = scalar_lea.vmem %s182_s24, %s2038_s25  ;;  %v2112_v58 = vld [vmem:[%s2779_s1 + $0x138] sm:$0xff]   ;;  %v2114_v60 = vld [vmem:[%s2779_s1 + $0x140] sm:$0xff]   ;;  %v2116_v62 = vld [vmem:[%s2779_s1 + $0x148] sm:$0xff]   ;;  %s190_s10 = scalar_lea.vmem %s2781_s3, %s1709_s7 }
  0x15   : > { %v224_v15 = vld [vmem:[%s2341_s28 + $0x8] sm:$0x18]  ;;  %v196_v16 = vld [vmem:[%s2341_s28 + $0x8] sm:$0x3]  ;;  %v223_v26 = vld [vmem:[%s2341_s28] sm:$0x18] }
  0x16   : > { %v226_v17 = vpack.c.bf16 %v224_v15, %v224_v15  ;;  %v198_v18 = vpack.c.bf16 %v196_v16, %v196_v16  ;;  %v225_v29 = vpack.c.bf16 %v223_v26, %v223_v26  ;;  %v195_v40 = vld [vmem:[%s2341_s28] sm:$0x3]  ;;  %v501_v45 = vld [vmem:[%s2341_s28 + $0x8] sm:$0x6]  ;;  %v1801_v49 = vld [vmem:[%s2341_s28 + $0x38] sm:$0x3] }
  0x17   : > { %352 = vmatpush1.bf16.msra.mxu0 %v2087_v7  ;;  %467 = vmatpush1.bf16.msra.mxu1 %v2088_v8  ;;  %v197_v42 = vpack.c.bf16 %v195_v40, %v195_v40  ;;  %v503_v48 = vpack.c.bf16 %v501_v45, %v501_v45  ;;  %v667_v52 = vpack.c.bf16 %v1801_v49, %v1801_v49  ;;  %v2117_v63 = vld [vmem:[%s2779_s1 + $0xf0] sm:$0xff]   ;;  %v2119_v2 = vld [vmem:[%s2779_s1 + $0xf8] sm:$0xff]   ;;  %v2121_v4 = vld [vmem:[%s2779_s1 + $0x100] sm:$0xff]  }
  0x18   : > { %353 = vmatprep.subr.bf16.mxu0 %v2229_v1  ;;  %468 = vmatprep.subr.bf16.mxu1 %v2229_v1  ;;  %v261_v21 = vshrl.u32 %v226_v17, 16  ;;  %v264_v22 = vshll.u32 %v226_v17, 16  ;;  %v253_v32 = vshrl.u32 %v225_v29, 16  ;;  %v256_v33 = vshll.u32 %v225_v29, 16  ;;  %v2118_v0 = vld [vmem:[%s2779_s1 + $0x150] sm:$0xff]   ;;  %v2120_v3 = vld [vmem:[%s2779_s1 + $0x158] sm:$0xff]  }
  0x19   : > { %1761 = vmatprep.mubr.msk.bf16.mxu1 %vm341_vm0, %v198_v18  ;;  %v537_v50 = vshrl.u32 %v503_v48, 16  ;;  %v539_v51 = vshll.u32 %v503_v48, 16  ;;  %v500_v5 = vld [vmem:[%s2341_s28] sm:$0x6]  ;;  %v2123_v7 = vld [vmem:[%s2779_s1 + $0x108] sm:$0xff]   ;;  %v2125_v15 = vld [vmem:[%s2779_s1 + $0x110] sm:$0xff]  }
  0x1a   : > { %v263_v24 = vrot.slane %v261_v21, 1  ;;  %v266_v25 = vrot.slane %v264_v22, 2  ;;  %v255_v37 = vrot.slane %v253_v32, 1  ;;  %v258_v38 = vrot.slane %v256_v33, 2  ;;  %v2122_v6 = vld [vmem:[%s2779_s1 + $0x160] sm:$0xff]   ;;  %v2126_v16 = vld [vmem:[%s2779_s1 + $0x170] sm:$0xff]  }
  0x1b   : > { %354 = vmatpush1.bf16.msra.mxu0 %v2089_v9  ;;  %469 = vmatpush1.bf16.msra.mxu1 %v2090_v10  ;;  %v541_v54 = vrot.slane %v539_v51, 1  ;;  %v502_v8 = vpack.c.bf16 %v500_v5, %v500_v5  ;;  %v1840_v9 = vld [vmem:[%s2341_s28 + $0x38] sm:$0x18]  ;;  %v1879_v10 = vld [vmem:[%s2341_s28 + $0x38] sm:$0x6]  ;;  %v2130_v32 = vld [vmem:[%s2779_s1 + $0x1e0] sm:$0xff]  }
  0x1c   : > { %355 = vmatprep.subr.bf16.mxu0 %v2229_v1  ;;  %470 = vmatprep.subr.bf16.mxu1 %v2229_v1  ;;  %v267_v28 = vor.u32 %v266_v25, %v263_v24  ;;  %v259_v41 = vor.u32 %v258_v38, %v255_v37  ;;  %v2127_v18 = vld [vmem:[%s2779_s1 + $0x118] sm:$0xff]   ;;  %v1800_v24 = vld [vmem:[%s2341_s28 + $0x30] sm:$0x3]  ;;  %v2145_v49 = vld [vmem:[%s2779_s1 + $0x1c0] sm:$0xff]  }
  0x1d   : > { %v542_v56 = vor.u32 %v541_v54, %v537_v50  ;;  %v530_v17 = vshrl.u32 %v502_v8, 16  ;;  %v2133_v37 = vld [vmem:[%s2779_s1 + $0x190] sm:$0xff]   ;;  %v2136_v40 = vld [vmem:[%s2779_s1 + $0x1f8] sm:$0xff]   ;;  %v2146_v51 = vld [vmem:[%s2779_s1 + $0x220] sm:$0xff]  }
  0x1e   : > { %1748 = vmatprep.mubr.msk.bf16.mxu0 %vm341_vm0, %v267_v28  ;;  %v2134_v38 = vld [vmem:[%s2779_s1 + $0x1f0] sm:$0xff]   ;;  %v2144_v48 = vld [vmem:[%s2779_s1 + $0x218] sm:$0xff]   ;;  %v2147_v54 = vld [vmem:[%s2779_s1 + $0x1c8] sm:$0xff]  }
  0x1f   : > { %356 = vmatpush1.bf16.msra.mxu0 %v2091_v11  ;;  %471 = vmatpush1.bf16.msra.mxu1 %v2092_v12  ;;  %v2124_v11 = vld [vmem:[%s2779_s1 + $0x168] sm:$0xff]   ;;  %v812_v12 = vpack.c.bf16 %v1840_v9, %v1840_v9  ;;  %v2141_v45 = vld [vmem:[%s2779_s1 + $0x1b0] sm:$0xff]   ;;  %v2151_v5 = vld [vmem:[%s2779_s1 + $0x1d8] sm:$0xff]  }
  0x20   : > { %357 = vmatprep.subr.bf16.mxu0 %v2229_v1  ;;  %472 = vmatprep.subr.bf16.mxu1 %v2229_v1  ;;  %v1839_v50 = vld [vmem:[%s2341_s28 + $0x30] sm:$0x18] }
  0x23   : > { %358 = vmatpush1.bf16.msra.mxu0 %v2093_v13  ;;  %473 = vmatpush1.bf16.msra.mxu1 %v2094_v14  ;;  %v532_v13 = vshll.u32 %v502_v8, 16  ;;  %v974_v14 = vpack.c.bf16 %v1879_v10, %v1879_v10  ;;  %v2152_v8 = vld [vmem:[%s2779_s1 + $0x238] sm:$0xff]  }
  0x24   : > { %359 = vmatprep.subr.bf16.mxu0 %v2229_v1  ;;  %474 = vmatprep.subr.bf16.mxu1 %v2229_v1  ;;  %v1919_v10 = vld [vmem:[%s2341_s28 + $0x18] sm:$0x3] }
  0x25   : > { %v534_v21 = vrot.slane %v532_v13, 1  ;;  %v1010_v22 = vshll.u32 %v974_v14, 16  ;;  %v1008_v28 = vshrl.u32 %v974_v14, 16  ;;  %v2153_v13 = vld [vmem:[%s2779_s1 + $0x240] sm:$0xff]  }
  0x27   : > { %360 = vmatpush1.bf16.msra.mxu0 %v2095_v19  ;;  %475 = vmatpush1.bf16.msra.mxu1 %v2096_v20  ;;  %v847_v19 = vshrl.u32 %v812_v12, 16  ;;  %v850_v20 = vshll.u32 %v812_v12, 16  ;;  %v1012_v29 = vrot.slane %v1010_v22, 1  ;;  %v2159_v22 = vld [vmem:[%s2779_s1 + $0x258] sm:$0xff]  }
  0x28   : > { %361 = vmatprep.subr.bf16.mxu0 %v2229_v1  ;;  %476 = vmatprep.subr.bf16.mxu1 %v2229_v1 }
  0x29   : > { %v849_v25 = vrot.slane %v847_v19, 1  ;;  %v852_v26 = vrot.slane %v850_v20, 2  ;;  %v2156_v19 = vld [vmem:[%s2779_s1 + $0x2a8] sm:$0xff]   ;;  %v2157_v20 = vld [vmem:[%s2779_s1 + $0x250] sm:$0xff]  }
  0x2b   : > { %362 = vmatpush1.bf16.msra.mxu0 %v2097_v23  ;;  %477 = vmatpush1.bf16.msra.mxu1 %v2098_v27  ;;  %v2128_v23 = vld [vmem:[%s2779_s1 + $0x178] sm:$0xff]   ;;  %v535_v27 = vor.u32 %v534_v21, %v530_v17  ;;  %v853_v33 = vor.u32 %v852_v26, %v849_v25  ;;  %v2158_v21 = vld [vmem:[%s2779_s1 + $0x2b0] sm:$0xff]   ;;  %v2162_v25 = vld [vmem:[%s2779_s1 + $0x2c0] sm:$0xff]  }
  0x2c   : > { %363 = vmatprep.subr.bf16.mxu0 %v2229_v1  ;;  %478 = vmatprep.subr.bf16.mxu1 %v2229_v1  ;;  %v2163_v26 = vld [vmem:[%s2779_s1 + $0x268] sm:$0xff]  }
  0x2f   : > { %364 = vmatpush1.bf16.msra.mxu0 %v2099_v30  ;;  %479 = vmatpush1.bf16.msra.mxu1 %v2100_v31  ;;  %v2129_v30 = vld [vmem:[%s2779_s1 + $0x180] sm:$0xff]   ;;  %v666_v31 = vpack.c.bf16 %v1800_v24, %v1800_v24 }
  0x30   : > { %365 = vmatprep.subr.bf16.mxu0 %v2229_v1  ;;  %480 = vmatprep.subr.bf16.mxu1 %v2229_v1  ;;  %v2161_v24 = vld [vmem:[%s2779_s1 + $0x260] sm:$0xff]  }
  0x33   : > { %366 = vmatpush1.bf16.msra.mxu0 %v2101_v34  ;;  %481 = vmatpush1.bf16.msra.mxu1 %v2102_v35  ;;  %v1013_v34 = vor.u32 %v1012_v29, %v1008_v28  ;;  %v2131_v35 = vld [vmem:[%s2779_s1 + $0x188] sm:$0xff]   ;;  %v2165_v28 = vld [vmem:[%s2779_s1 + $0x270] sm:$0xff]  }
  0x34   : > { %367 = vmatprep.subr.bf16.mxu0 %v2229_v1  ;;  %482 = vmatprep.subr.bf16.mxu1 %v2229_v1  ;;  %v2166_v29 = vld [vmem:[%s2779_s1 + $0x2d0] sm:$0xff]  }
  0x37   : > { %368 = vmatpush1.bf16.msra.mxu0 %v2103_v36  ;;  %483 = vmatpush1.bf16.msra.mxu1 %v2104_v39  ;;  %v2132_v36 = vld [vmem:[%s2779_s1 + $0x1e8] sm:$0xff]   ;;  %v2135_v39 = vld [vmem:[%s2779_s1 + $0x198] sm:$0xff]  }
  0x38   : > { %619 = vmatprep.subr.bf16.mxu0 %v2229_v1  ;;  %768 = vmatprep.subr.bf16.mxu1 %v2229_v1 }
  0x3a   : > { %378 = vmatmul.mubr.bf16.vlgmr.msra.gmra.mrb[0].mxu0 %v259_v41  ;;  %493 = vmatmul.mubr.bf16.vlgmr.msra.gmra.mrb[0].mxu1 %v197_v42  ;;  %v2137_v41 = vld [vmem:[%s2779_s1 + $0x1a0] sm:$0xff]  }
  0x3b   : > { %620 = vmatpush1.bf16.msra.mxu0 %v2105_v43  ;;  %769 = vmatpush1.bf16.msra.mxu1 %v2106_v44  ;;  %v2138_v42 = vld [vmem:[%s2779_s1 + $0x200] sm:$0xff]   ;;  %v2139_v43 = vld [vmem:[%s2779_s1 + $0x1a8] sm:$0xff]  }
  0x3c   : > { %621 = vmatprep.subr.bf16.mxu0 %v2229_v1  ;;  %770 = vmatprep.subr.bf16.mxu1 %v2229_v1  ;;  %v2140_v44 = vld [vmem:[%s2779_s1 + $0x208] sm:$0xff]  }
  0x3d   : > { %1838 = vmatprep.mubr.msk.bf16.mxu1 %vm341_vm0, %v667_v52  ;;  %1798 = vmatprep.mubr.msk.bf16.mxu0 %vm341_vm0, %v542_v56  ;;  %v1878_v52 = vld [vmem:[%s2341_s28 + $0x30] sm:$0x6]  ;;  %v1958_v56 = vld [vmem:[%s2341_s28 + $0x18] sm:$0x18] }
  0x3f   : > { %622 = vmatpush1.bf16.msra.mxu0 %v2107_v46  ;;  %771 = vmatpush1.bf16.msra.mxu1 %v2108_v47  ;;  %v2142_v46 = vld [vmem:[%s2779_s1 + $0x210] sm:$0xff]   ;;  %v2143_v47 = vld [vmem:[%s2779_s1 + $0x1b8] sm:$0xff]  }
  0x40   : > { %623 = vmatprep.subr.bf16.mxu0 %v2229_v1  ;;  %772 = vmatprep.subr.bf16.mxu1 %v2229_v1 }
  0x43   : > { %624 = vmatpush1.bf16.msra.mxu0 %v2109_v53  ;;  %773 = vmatpush1.bf16.msra.mxu1 %v2110_v55  ;;  %v811_v53 = vpack.c.bf16 %v1839_v50, %v1839_v50  ;;  %v973_v55 = vpack.c.bf16 %v1878_v52, %v1878_v52 }
  0x44   : > { %625 = vmatprep.subr.bf16.mxu0 %v2229_v1  ;;  %774 = vmatprep.subr.bf16.mxu1 %v2229_v1 }
  0x47   : > { %626 = vmatpush1.bf16.msra.mxu0 %v2111_v57  ;;  %775 = vmatpush1.bf16.msra.mxu1 %v2112_v58  ;;  %v2148_v57 = vld [vmem:[%s2779_s1 + $0x228] sm:$0xff]   ;;  %v839_v58 = vshrl.u32 %v811_v53, 16 }
  0x48   : > { %627 = vmatprep.subr.bf16.mxu0 %v2229_v1  ;;  %776 = vmatprep.subr.bf16.mxu1 %v2229_v1 }
  0x4b   : > { %628 = vmatpush1.bf16.msra.mxu0 %v2113_v59  ;;  %777 = vmatpush1.bf16.msra.mxu1 %v2114_v60  ;;  %v842_v59 = vshll.u32 %v811_v53, 16  ;;  %v1283_v60 = vpack.c.bf16 %v1958_v56, %v1958_v56  ;;  %v2177_v53 = vld [vmem:[%s2779_s1 + $0x300] sm:$0xff]   ;;  %v2178_v56 = vld [vmem:[%s2779_s1 + $0x308] sm:$0xff]  }
  0x4c   : > { %629 = vmatprep.subr.bf16.mxu0 %v2229_v1  ;;  %778 = vmatprep.subr.bf16.mxu1 %v2229_v1 }
  0x4f   : > { %630 = vmatpush1.bf16.msra.mxu0 %v2115_v61  ;;  %779 = vmatpush1.bf16.msra.mxu1 %v2116_v62  ;;  %v2149_v61 = vld [vmem:[%s2779_s1 + $0x1d0] sm:$0xff]   ;;  %v1003_v62 = vshll.u32 %v973_v55, 16 }
  0x50   : > { %631 = vmatprep.subr.bf16.mxu0 %v2229_v1  ;;  %780 = vmatprep.subr.bf16.mxu1 %v2229_v1 }
  0x53   : > { %632 = vmatpush1.bf16.msra.mxu0 %v2117_v63  ;;  %781 = vmatpush1.bf16.msra.mxu1 %v2118_v0  ;;  %v2150_v63 = vld [vmem:[%s2779_s1 + $0x230] sm:$0xff]   ;;  %v841_v0 = vrot.slane %v839_v58, 1  ;;  %v2180_v58 = vld [vmem:[%s2779_s1 + $0x318] sm:$0xff]  }
  0x54   : > { %633 = vmatprep.subr.bf16.mxu0 %v2229_v1  ;;  %782 = vmatprep.subr.bf16.mxu1 %v2229_v1 }
  0x57   : > { %634 = vmatpush1.bf16.msra.mxu0 %v2119_v2  ;;  %783 = vmatpush1.bf16.msra.mxu1 %v2120_v3  ;;  %v844_v2 = vrot.slane %v842_v59, 2  ;;  %v1318_v3 = vshrl.u32 %v1283_v60, 16  ;;  %v2181_v59 = vld [vmem:[%s2779_s1 + $0x320] sm:$0xff]  }
  0x58   : > { %635 = vmatprep.subr.bf16.mxu0 %v2229_v1  ;;  %784 = vmatprep.subr.bf16.mxu1 %v2229_v1 }
  0x59   : > { %v845_v9 = vor.u32 %v844_v2, %v841_v0  ;;  %v1996_v0 = vld [vmem:[%s2341_s28 + $0x10] sm:$0x6] }
  0x5a   : > { %v1444_v2 = vpack.c.bf16 %v1996_v0, %v1996_v0 }
  0x5b   : > { %636 = vmatpush1.bf16.msra.mxu0 %v2121_v4  ;;  %785 = vmatpush1.bf16.msra.mxu1 %v2122_v6  ;;  %v1321_v4 = vshll.u32 %v1283_v60, 16  ;;  %v1001_v6 = vshrl.u32 %v973_v55, 16  ;;  %v2182_v60 = vld [vmem:[%s2779_s1 + $0x328] sm:$0xff]  }
  0x5c   : > { %637 = vmatprep.subr.bf16.mxu0 %v2229_v1  ;;  %786 = vmatprep.subr.bf16.mxu1 %v2229_v1 }
  0x5d   : > { %v1323_v12 = vrot.slane %v1321_v4, 2  ;;  %v1474_v4 = vshll.u32 %v1444_v2, 16 }
  0x5f   : > { %638 = vmatpush1.bf16.msra.mxu0 %v2123_v7  ;;  %787 = vmatpush1.bf16.msra.mxu1 %v2124_v11  ;;  %v1005_v7 = vrot.slane %v1003_v62, 1  ;;  %v1320_v11 = vrot.slane %v1318_v3, 1  ;;  %v2184_v62 = vld [vmem:[%s2779_s1 + $0x338] sm:$0xff]   ;;  %v2186_v3 = vld [vmem:[%s2779_s1 + $0x348] sm:$0xff]  }
  0x60   : > { %639 = vmatprep.subr.bf16.mxu0 %v2229_v1  ;;  %788 = vmatprep.subr.bf16.mxu1 %v2229_v1 }
  0x61   : > { %v1006_v14 = vor.u32 %v1005_v7, %v1001_v6  ;;  %v1324_v17 = vor.u32 %v1323_v12, %v1320_v11  ;;  %v1472_v6 = vshrl.u32 %v1444_v2, 16  ;;  %v1476_v7 = vrot.slane %v1474_v4, 1 }
  0x63   : > { %640 = vmatpush1.bf16.msra.mxu0 %v2125_v15  ;;  %789 = vmatpush1.bf16.msra.mxu1 %v2126_v16  ;;  %v2154_v15 = vld [vmem:[%s2779_s1 + $0x2a0] sm:$0xff]   ;;  %v1138_v16 = vpack.c.bf16 %v1919_v10, %v1919_v10 }
  0x64   : > { %641 = vmatprep.subr.bf16.mxu0 %v2229_v1  ;;  %790 = vmatprep.subr.bf16.mxu1 %v2229_v1 }
  0x67   : > { %642 = vmatpush1.bf16.msra.mxu0 %v2127_v18  ;;  %791 = vmatpush1.bf16.msra.mxu1 %v2128_v23  ;;  %v2155_v18 = vld [vmem:[%s2779_s1 + $0x248] sm:$0xff]   ;;  %v2160_v23 = vld [vmem:[%s2779_s1 + $0x2b8] sm:$0xff]  }
  0x68   : > { %930 = vmatprep.subr.bf16.mxu0 %v2229_v1  ;;  %1090 = vmatprep.subr.bf16.mxu1 %v2229_v1 }
  0x6a   : > { %652 = vmatmul.mubr.bf16.vlgmr.msra.gmra.mrb[4].mxu0 %v535_v27  ;;  %801 = vmatmul.mubr.bf16.vlgmr.msra.gmra.mrb[4].mxu1 %v666_v31  ;;  %v2164_v27 = vld [vmem:[%s2779_s1 + $0x2c8] sm:$0xff]   ;;  %v2168_v31 = vld [vmem:[%s2779_s1 + $0x2d8] sm:$0xff]  }
  0x6b   : > { %931 = vmatpush1.bf16.msra.mxu0 %v2129_v30  ;;  %1091 = vmatpush1.bf16.msra.mxu1 %v2130_v32  ;;  %v2167_v30 = vld [vmem:[%s2779_s1 + $0x278] sm:$0xff]   ;;  %v2169_v32 = vld [vmem:[%s2779_s1 + $0x280] sm:$0xff]  }
  0x6c   : > { %932 = vmatprep.subr.bf16.mxu0 %v2229_v1  ;;  %1092 = vmatprep.subr.bf16.mxu1 %v2229_v1 }
  0x6d   : > { %1877 = vmatprep.mubr.msk.bf16.mxu0 %vm341_vm0, %v853_v33  ;;  %1916 = vmatprep.mubr.msk.bf16.mxu1 %vm341_vm0, %v1013_v34  ;;  %v2170_v33 = vld [vmem:[%s2779_s1 + $0x2e0] sm:$0xff]   ;;  %v1957_v34 = vld [vmem:[%s2341_s28 + $0x10] sm:$0x18] }
  0x6f   : > { %933 = vmatpush1.bf16.msra.mxu0 %v2131_v35  ;;  %1093 = vmatpush1.bf16.msra.mxu1 %v2132_v36  ;;  %v1997_v35 = vld [vmem:[%s2341_s28 + $0x18] sm:$0x6]  ;;  %v2171_v36 = vld [vmem:[%s2779_s1 + $0x288] sm:$0xff]  }
  0x70   : > { %934 = vmatprep.subr.bf16.mxu0 %v2229_v1  ;;  %1094 = vmatprep.subr.bf16.mxu1 %v2229_v1 }
  0x73   : > { %935 = vmatpush1.bf16.msra.mxu0 %v2133_v37  ;;  %1095 = vmatpush1.bf16.msra.mxu1 %v2134_v38  ;;  %v1282_v37 = vpack.c.bf16 %v1957_v34, %v1957_v34  ;;  %v2172_v38 = vld [vmem:[%s2779_s1 + $0x2e8] sm:$0xff]  }
  0x74   : > { %936 = vmatprep.subr.bf16.mxu0 %v2229_v1  ;;  %1096 = vmatprep.subr.bf16.mxu1 %v2229_v1 }
  0x77   : > { %937 = vmatpush1.bf16.msra.mxu0 %v2135_v39  ;;  %1097 = vmatpush1.bf16.msra.mxu1 %v2136_v40  ;;  %v1445_v39 = vpack.c.bf16 %v1997_v35, %v1997_v35  ;;  %v2173_v40 = vld [vmem:[%s2779_s1 + $0x290] sm:$0xff]  }
  0x78   : > { %938 = vmatprep.subr.bf16.mxu0 %v2229_v1  ;;  %1098 = vmatprep.subr.bf16.mxu1 %v2229_v1 }
  0x79   : > { %v1479_v50 = vshrl.u32 %v1445_v39, 16 }
  0x7b   : > { %939 = vmatpush1.bf16.msra.mxu0 %v2137_v41  ;;  %1099 = vmatpush1.bf16.msra.mxu1 %v2138_v42  ;;  %v1310_v41 = vshrl.u32 %v1282_v37, 16  ;;  %v1313_v42 = vshll.u32 %v1282_v37, 16 }
  0x7c   : > { %940 = vmatprep.subr.bf16.mxu0 %v2229_v1  ;;  %1100 = vmatprep.subr.bf16.mxu1 %v2229_v1 }
  0x7f   : > { %941 = vmatpush1.bf16.msra.mxu0 %v2139_v43  ;;  %1101 = vmatpush1.bf16.msra.mxu1 %v2140_v44  ;;  %v2174_v43 = vld [vmem:[%s2779_s1 + $0x2f0] sm:$0xff]   ;;  %v1481_v44 = vshll.u32 %v1445_v39, 16 }
  0x80   : > { %942 = vmatprep.subr.bf16.mxu0 %v2229_v1  ;;  %1102 = vmatprep.subr.bf16.mxu1 %v2229_v1 }
  0x83   : > { %943 = vmatpush1.bf16.msra.mxu0 %v2141_v45  ;;  %1103 = vmatpush1.bf16.msra.mxu1 %v2142_v46  ;;  %v2175_v45 = vld [vmem:[%s2779_s1 + $0x298] sm:$0xff]   ;;  %v1918_v46 = vld [vmem:[%s2341_s28 + $0x10] sm:$0x3] }
  0x84   : > { %944 = vmatprep.subr.bf16.mxu0 %v2229_v1  ;;  %1104 = vmatprep.subr.bf16.mxu1 %v2229_v1  ;;  %v1137_v52 = vpack.c.bf16 %v1918_v46, %v1918_v46 }
  0x87   : > { %945 = vmatpush1.bf16.msra.mxu0 %v2143_v47  ;;  %1105 = vmatpush1.bf16.msra.mxu1 %v2144_v48  ;;  %v1312_v47 = vrot.slane %v1310_v41, 1  ;;  %v1315_v48 = vrot.slane %v1313_v42, 2 }
  0x88   : > { %946 = vmatprep.subr.bf16.mxu0 %v2229_v1  ;;  %1106 = vmatprep.subr.bf16.mxu1 %v2229_v1 }
  0x8b   : > { %947 = vmatpush1.bf16.msra.mxu0 %v2145_v49  ;;  %1107 = vmatpush1.bf16.msra.mxu1 %v2146_v51  ;;  %v2176_v49 = vld [vmem:[%s2779_s1 + $0x2f8] sm:$0xff]   ;;  %v1483_v51 = vrot.slane %v1481_v44, 1 }
  0x8c   : > { %948 = vmatprep.subr.bf16.mxu0 %v2229_v1  ;;  %1108 = vmatprep.subr.bf16.mxu1 %v2229_v1 }
  0x8d   : > { %v1484_v55 = vor.u32 %v1483_v51, %v1479_v50 }
  0x8f   : > { %949 = vmatpush1.bf16.msra.mxu0 %v2147_v54  ;;  %1109 = vmatpush1.bf16.msra.mxu1 %v2148_v57  ;;  %v1316_v54 = vor.u32 %v1315_v48, %v1312_v47  ;;  %v2179_v57 = vld [vmem:[%s2779_s1 + $0x310] sm:$0xff]  }
  0x90   : > { %950 = vmatprep.subr.bf16.mxu0 %v2229_v1  ;;  %1110 = vmatprep.subr.bf16.mxu1 %v2229_v1 }
  0x93   : > { %951 = vmatpush1.bf16.msra.mxu0 %v2149_v61  ;;  %1111 = vmatpush1.bf16.msra.mxu1 %v2150_v63  ;;  %v2183_v61 = vld [vmem:[%s2779_s1 + $0x330] sm:$0xff]   ;;  %v2185_v63 = vld [vmem:[%s2779_s1 + $0x340] sm:$0xff]  }
  0x94   : > { %952 = vmatprep.subr.bf16.mxu0 %v2229_v1  ;;  %1112 = vmatprep.subr.bf16.mxu1 %v2229_v1 }
  0x97   : > { %953 = vmatpush1.bf16.msra.mxu0 %v2151_v5  ;;  %1113 = vmatpush1.bf16.msra.mxu1 %v2152_v8  ;;  %v2187_v5 = vld [vmem:[%s2779_s1 + $0x350] sm:$0xff]   ;;  %v2188_v8 = vld [vmem:[%s2779_s1 + $0x358] sm:$0xff]  }
  0x98   : > { %1239 = vmatprep.subr.bf16.mxu0 %v2229_v1  ;;  %1401 = vmatprep.subr.bf16.mxu1 %v2229_v1 }
  0x9a   : > { %963 = vmatmul.mubr.bf16.vlgmr.msra.gmra.mrb[8].mxu0 %v845_v9  ;;  %1123 = vmatmul.mubr.bf16.vlgmr.msra.gmra.mrb[8].mxu1 %v1006_v14  ;;  %v1477_v9 = vor.u32 %v1476_v7, %v1472_v6 }
  0x9b   : > { %1240 = vmatpush1.bf16.msra.mxu0 %v2153_v13  ;;  %1402 = vmatpush1.bf16.msra.mxu1 %v2154_v15 }
  0x9c   : > { %1241 = vmatprep.subr.bf16.mxu0 %v2229_v1  ;;  %1403 = vmatprep.subr.bf16.mxu1 %v2229_v1 }
  0x9d   : > { %1956 = vmatprep.mubr.msk.bf16.mxu0 %vm341_vm0, %v1138_v16  ;;  %1995 = vmatprep.mubr.msk.bf16.mxu1 %vm341_vm0, %v1324_v17 }
  0x9f   : > { %1242 = vmatpush1.bf16.msra.mxu0 %v2155_v18  ;;  %1404 = vmatpush1.bf16.msra.mxu1 %v2156_v19 }
  0xa0   : > { %1243 = vmatprep.subr.bf16.mxu0 %v2229_v1  ;;  %1405 = vmatprep.subr.bf16.mxu1 %v2229_v1 }
  0xa3   : > { %1244 = vmatpush1.bf16.msra.mxu0 %v2157_v20  ;;  %1406 = vmatpush1.bf16.msra.mxu1 %v2158_v21 }
  0xa4   : > { %1245 = vmatprep.subr.bf16.mxu0 %v2229_v1  ;;  %1407 = vmatprep.subr.bf16.mxu1 %v2229_v1 }
  0xa7   : > { %1246 = vmatpush1.bf16.msra.mxu0 %v2159_v22  ;;  %1408 = vmatpush1.bf16.msra.mxu1 %v2160_v23 }
  0xa8   : > { %1247 = vmatprep.subr.bf16.mxu0 %v2229_v1  ;;  %1409 = vmatprep.subr.bf16.mxu1 %v2229_v1 }
  0xab   : > { %1248 = vmatpush1.bf16.msra.mxu0 %v2161_v24  ;;  %1410 = vmatpush1.bf16.msra.mxu1 %v2162_v25 }
  0xac   : > { %1249 = vmatprep.subr.bf16.mxu0 %v2229_v1  ;;  %1411 = vmatprep.subr.bf16.mxu1 %v2229_v1 }
  0xaf   : > { %1250 = vmatpush1.bf16.msra.mxu0 %v2163_v26  ;;  %1412 = vmatpush1.bf16.msra.mxu1 %v2164_v27 }
  0xb0   : > { %1251 = vmatprep.subr.bf16.mxu0 %v2229_v1  ;;  %1413 = vmatprep.subr.bf16.mxu1 %v2229_v1 }
  0xb3   : > { %1252 = vmatpush1.bf16.msra.mxu0 %v2165_v28  ;;  %1414 = vmatpush1.bf16.msra.mxu1 %v2166_v29 }
  0xb4   : > { %1253 = vmatprep.subr.bf16.mxu0 %v2229_v1  ;;  %1415 = vmatprep.subr.bf16.mxu1 %v2229_v1 }
  0xb7   : > { %1254 = vmatpush1.bf16.msra.mxu0 %v2167_v30  ;;  %1416 = vmatpush1.bf16.msra.mxu1 %v2168_v31 }
  0xb8   : > { %1255 = vmatprep.subr.bf16.mxu0 %v2229_v1  ;;  %1417 = vmatprep.subr.bf16.mxu1 %v2229_v1 }
  0xbb   : > { %1256 = vmatpush1.bf16.msra.mxu0 %v2169_v32  ;;  %1418 = vmatpush1.bf16.msra.mxu1 %v2170_v33 }
  0xbc   : > { %1257 = vmatprep.subr.bf16.mxu0 %v2229_v1  ;;  %1419 = vmatprep.subr.bf16.mxu1 %v2229_v1 }
  0xbf   : > { %1258 = vmatpush1.bf16.msra.mxu0 %v2171_v36  ;;  %1420 = vmatpush1.bf16.msra.mxu1 %v2172_v38 }
  0xc0   : > { %1259 = vmatprep.subr.bf16.mxu0 %v2229_v1  ;;  %1421 = vmatprep.subr.bf16.mxu1 %v2229_v1 }
  0xc3   : > { %1260 = vmatpush1.bf16.msra.mxu0 %v2173_v40  ;;  %1422 = vmatpush1.bf16.msra.mxu1 %v2174_v43 }
  0xc4   : > { %1261 = vmatprep.subr.bf16.mxu0 %v2229_v1  ;;  %1423 = vmatprep.subr.bf16.mxu1 %v2229_v1 }
  0xc7   : > { %1262 = vmatpush1.bf16.msra.mxu0 %v2175_v45  ;;  %1424 = vmatpush1.bf16.msra.mxu1 %v2176_v49  ;;  %v2035_v49 = vld [vmem:[%s2780_s2] ss:$0 sm:$0xff] }
  0xc8   : > { %1561 = vmatprep.subr.bf16.mxu0 %v2229_v1 }
  0xca   : > { %1272 = vmatmul.mubr.bf16.vlgmr.msra.gmra.mrb[12].mxu0 %v1137_v52  ;;  %1434 = vmatmul.mubr.bf16.vlgmr.msra.gmra.mrb[12].mxu1 %v1316_v54 }
  0xcb   : > { %1562 = vmatpush1.bf16.msra.mxu0 %v2177_v53  ;;  %2034 = vmatprep.mubr.msk.bf16.mxu0 %vm341_vm0, %v1484_v55 }
  0xcc   : > { %1563 = vmatprep.subr.bf16.mxu0 %v2229_v1 }
  0xcf   : > { %1564 = vmatpush1.bf16.msra.mxu0 %v2178_v56 }
  0xd0   : > { %1565 = vmatprep.subr.bf16.mxu0 %v2229_v1 }
  0xd3   : > { %1566 = vmatpush1.bf16.msra.mxu0 %v2179_v57 }
  0xd4   : > { %1567 = vmatprep.subr.bf16.mxu0 %v2229_v1 }
  0xd7   : > { %1568 = vmatpush1.bf16.msra.mxu0 %v2180_v58 }
  0xd8   : > { %1569 = vmatprep.subr.bf16.mxu0 %v2229_v1 }
  0xdb   : > { %1570 = vmatpush1.bf16.msra.mxu0 %v2181_v59 }
  0xdc   : > { %1571 = vmatprep.subr.bf16.mxu0 %v2229_v1 }
  0xdf   : > { %1572 = vmatpush1.bf16.msra.mxu0 %v2182_v60 }
  0xe0   : > { %1573 = vmatprep.subr.bf16.mxu0 %v2229_v1 }
  0xe3   : > { %1574 = vmatpush1.bf16.msra.mxu0 %v2183_v61 }
  0xe4   : > { %1575 = vmatprep.subr.bf16.mxu0 %v2229_v1 }
  0xe7   : > { %1576 = vmatpush1.bf16.msra.mxu0 %v2184_v62 }
  0xe8   : > { %1577 = vmatprep.subr.bf16.mxu0 %v2229_v1 }
  0xeb   : > { %1578 = vmatpush1.bf16.msra.mxu0 %v2185_v63 }
  0xec   : > { %1579 = vmatprep.subr.bf16.mxu0 %v2229_v1 }
  0xef   : > { %1580 = vmatpush1.bf16.msra.mxu0 %v2186_v3 }
  0xf0   : > { %1581 = vmatprep.subr.bf16.mxu0 %v2229_v1 }
  0xf3   : > { %1582 = vmatpush1.bf16.msra.mxu0 %v2187_v5 }
  0xf4   : > { %1583 = vmatprep.subr.bf16.mxu0 %v2229_v1 }
  0xf7   : > { %1584 = vmatpush1.bf16.msra.mxu0 %v2188_v8 }
  0xfa   : > { %1594 = vmatmul.mubr.bf16.vlgmr.msra.gmra.mrb[16].mxu0 %v1477_v9 }
 0x10d   : > { %v379_v10 = vpop.f32.mrb[0].mxu0  ;;  %v494_v12 = vpop.f32.mrb[0].mxu1 }
 0x10e   : > { %v381_v11 = vpop.f32.mrb[1].mxu0  ;;  %v495_v13 = vadd.f32 %v494_v12, %v379_v10  ;;  %v496_v15 = vpop.f32.mrb[1].mxu1 }
 0x10f   : > { %v382_v14 = vpop.f32.mrb[2].mxu0  ;;  %v497_v17 = vpop.f32.mrb[2].mxu1 }
 0x110   : > { %v383_v16 = vpop.f32.mrb[3].mxu0  ;;  %v498_v18 = vpop.f32.mrb[3].mxu1 }
 0x13d   : > { %v653_v19 = vpop.f32.mrb[4].mxu0  ;;  %v802_v22 = vpop.f32.mrb[4].mxu1 }
 0x13e   : > { %v659_v20 = vadd.f32 %v653_v19, %v495_v13  ;;  %v655_v21 = vpop.f32.mrb[5].mxu0  ;;  %v804_v24 = vpop.f32.mrb[5].mxu1 }
 0x13f   : > { %v656_v23 = vpop.f32.mrb[6].mxu0  ;;  %v805_v26 = vpop.f32.mrb[6].mxu1 }
 0x140   : > { %v808_v25 = vadd.f32 %v802_v22, %v659_v20  ;;  %v657_v1 = vpop.f32.mrb[7].mxu0  ;;  %v806_v27 = vpop.f32.mrb[7].mxu1 }
 0x16d   : > { %v964_v28 = vpop.f32.mrb[8].mxu0  ;;  %v1124_v31 = vpop.f32.mrb[8].mxu1 }
 0x16e   : > { %v970_v29 = vadd.f32 %v964_v28, %v808_v25  ;;  %v966_v30 = vpop.f32.mrb[9].mxu0  ;;  %v1126_v33 = vpop.f32.mrb[9].mxu1 }
 0x16f   : > { %v967_v32 = vpop.f32.mrb[10].mxu0  ;;  %v1127_v36 = vpop.f32.mrb[10].mxu1 }
 0x170   : > { %v1130_v34 = vadd.f32 %v1124_v31, %v970_v29  ;;  %v968_v35 = vpop.f32.mrb[11].mxu0  ;;  %v1128_v37 = vpop.f32.mrb[11].mxu1 }
 0x19d   : > { %v1273_v38 = vpop.f32.mrb[12].mxu0  ;;  %v1435_v41 = vpop.f32.mrb[12].mxu1 }
 0x19e   : > { %v1279_v39 = vadd.f32 %v1273_v38, %v1130_v34  ;;  %v1275_v40 = vpop.f32.mrb[13].mxu0  ;;  %v1437_v43 = vpop.f32.mrb[13].mxu1 }
 0x19f   : > { %v1276_v42 = vpop.f32.mrb[14].mxu0  ;;  %v1438_v46 = vpop.f32.mrb[14].mxu1 }
 0x1a0   : > { %v1441_v44 = vadd.f32 %v1435_v41, %v1279_v39  ;;  %v1277_v45 = vpop.f32.mrb[15].mxu0  ;;  %v1439_v47 = vpop.f32.mrb[15].mxu1 }
 0x1cd   : > { %v1595_v48 = vpop.f32.mrb[16].mxu0 }
 0x1ce   : > { %v1601_v50 = vadd.f32 %v1595_v48, %v1441_v44  ;;  %v1597_v51 = vpop.f32.mrb[17].mxu0 }
 0x1cf   : > { %v1598_v52 = vpop.f32.mrb[18].mxu0 }
 0x1d0   : > { %v1609_v53 = vadd.f32 %v2035_v49, %v1601_v50  ;;  %v1599_v54 = vpop.f32.mrb[19].mxu0 }
 0x1d2   : > { %vm1610_vm1 = vcmp.ge.f32.partialorder %v1609_v53, 0.0  ;;  %v1611_v55 = vmul.f32 0.1, %v1609_v53 }
 0x1d4   : > { %v1612_v56 = vsel %vm1610_vm1, %v1609_v53, %v1611_v55 }
 0x1d5   : > { %1613 = vst [vmem:[%s190_s10] sm:$0x3] %v1612_v56 }
 0x1d6 PF: > { %s13_s16 = sadd.s32 1, %s2227_s16   ;;  %s2782_s12 = smov %s2219_s14 }
 0x1d7   : > { %p10_p7 = scmp.ge.s32.totalorder %s13_s16, 6   ;;  %s2783_s13 = smov %s2223_s15 }
 0x1d8   : > { %s2784_s14 = smov %s2787_s17  ;;  %s2785_s15 = smov %s2791_s18 }
 0x1d9   :  { %12 = sbr.rel (!%p10_p7) target bundleno = 3 (0x3), region = 73 }

// kernel: _lambda_.16
= control target key start
LH: loop header
LB: loop body
LE: loop exit
PB: predicated region body
PF: predicated region fallthrough
CT: control target
= control target key end

     0   :  { %s2825_s12 = smov 0   ;;  %s2827_s13 = smov 0   ;;  %s3335_s0 = inlined_call_operand.vmem [shape: f32[2,4,4,256], index: 0, kind: input, shape index: {}]   ;;  %s3336_s1 = inlined_call_operand.vmem [shape: bf16[9,256,128], index: 1, kind: input, shape index: {}]   ;;  %s3337_s2 = inlined_call_operand.vmem [shape: f32[1,128], index: 2, kind: input, shape index: {}]   ;;  %s3338_s3 = inlined_call_operand.vmem [shape: f32[2,2,2,128], index: 3, kind: output, shape index: {}]  }
   0x1   :  { %s2829_s14 = smov 0   ;;  %s2831_s15 = smov 0  }
   0x2   :  { %s2833_s16 = smov 0  }
   0x3 LB: > { %s22_s17 = sadd.s32 1, %s2795_s14  ;;  %s25_s18 = sadd.s32 1, %s2799_s15  ;;  %s2803_s16 = sphi %s2833_s16, %s13_s16   ;;  %s2799_s15 = sphi %s2831_s15, %s3342_s15   ;;  %s2795_s14 = sphi %s2829_s14, %s3341_s14   ;;  %s2791_s13 = sphi %s2827_s13, %s3340_s13   ;;  %s2787_s12 = sphi %s2825_s12, %s3339_s12  }
   0x4   : > { %p23_p0 = scmp.ge.s32.totalorder %s22_s17, 2  ;;  %p1954_p1 = scmp.ge.s32.totalorder %s2803_s16, 1 }
   0x5   : > { %p151_p2 = scmp.lt.s32.totalorder %s2803_s16, 5 }
   0x6   : > { %s3344_s17 = smov (%p23_p0, %s22_s17), 0  ;;  %s3346_s18 = smov (!%p23_p0, %s25_s18), %s2799_s15 }
   0x7   : > { %p152_p3 = pnand %p1954_p1, %p151_p2  ;;  %p27_p4 = scmp.ge.s32.totalorder %s3346_s18, 2 }
   0x8   : > { %v2612_v0 = vld [vmem:[%s3336_s1 + $0xc0] sm:$0xff] (!%p152_p3)   ;;  %v2616_v4 = vld [vmem:[%s3336_s1 + $0xc8] sm:$0xff] (!%p152_p3)   ;;  %v2620_v8 = vld [vmem:[%s3336_s1 + $0xd0] sm:$0xff] (!%p152_p3)   ;;  %p178_p5 = scmp.lt.s32.totalorder (!%p152_p3), %s2791_s13, 1  ;;  %s2373_s10 = sshll.u32 (!%p152_p3), %s2787_s12, 3 }
   0x9   : > { %s3348_s18 = smov (%p27_p4, %s3346_s18), 0  ;;  %155 = sbr.rel (%p152_p3) target bundleno = 394 (0x18a), region = 32 }
   0xa   : > { %v2613_v1 = vld [vmem:[%s3336_s1 + $0x40] sm:$0xff] (!%p152_p3)   ;;  %2374 = vmatprep.subr.bf16.mxu0 (!%p152_p3), %v2612_v0  ;;  %v2617_v5 = vld [vmem:[%s3336_s1 + $0x48] sm:$0xff] (!%p152_p3)   ;;  %v2621_v9 = vld [vmem:[%s3336_s1 + $0x50] sm:$0xff] (!%p152_p3)   ;;  %p185_p6 = scmp.lt.s32.totalorder (!%p152_p3), %s2787_s12, 1 }
   0xb   : > { %v2614_v2 = vld [vmem:[%s3336_s1 + $0x80] sm:$0xff] (!%p152_p3)   ;;  %2396 = vmatprep.subr.bf16.mxu1 (!%p152_p3), %v2613_v1  ;;  %v2618_v6 = vld [vmem:[%s3336_s1 + $0x88] sm:$0xff] (!%p152_p3)   ;;  %v2622_v10 = vld [vmem:[%s3336_s1 + $0x90] sm:$0xff] (!%p152_p3)  }
   0xc   : > { %v2615_v3 = vld [vmem:[%s3336_s1] sm:$0xff] (!%p152_p3)   ;;  %2375 = vmatpush3.bf16.msra.mxu0 (!%p152_p3), %v2614_v2  ;;  %v2619_v7 = vld [vmem:[%s3336_s1 + $0x8] sm:$0xff] (!%p152_p3)   ;;  %v2623_v11 = vld [vmem:[%s3336_s1 + $0x10] sm:$0xff] (!%p152_p3)  }
   0xd   : > { %2397 = vmatpush3.bf16.msra.mxu1 (!%p152_p3), %v2615_v3  ;;  %2376 = vmatprep.subr.bf16.mxu0 (!%p152_p3), %v2616_v4  ;;  %v2624_v12 = vld [vmem:[%s3336_s1 + $0xd8] sm:$0xff] (!%p152_p3)   ;;  %v2628_v16 = vld [vmem:[%s3336_s1 + $0xe0] sm:$0xff] (!%p152_p3)   ;;  %v2632_v20 = vld [vmem:[%s3336_s1 + $0xe8] sm:$0xff] (!%p152_p3)  }
   0xe   : > { %2398 = vmatprep.subr.bf16.mxu1 (!%p152_p3), %v2617_v5  ;;  %v2625_v13 = vld [vmem:[%s3336_s1 + $0x58] sm:$0xff] (!%p152_p3)   ;;  %v2629_v17 = vld [vmem:[%s3336_s1 + $0x60] sm:$0xff] (!%p152_p3)   ;;  %v2633_v21 = vld [vmem:[%s3336_s1 + $0x68] sm:$0xff] (!%p152_p3)  }
   0xf   : > { %v2626_v14 = vld [vmem:[%s3336_s1 + $0x98] sm:$0xff] (!%p152_p3)   ;;  %v2630_v18 = vld [vmem:[%s3336_s1 + $0xa0] sm:$0xff] (!%p152_p3)   ;;  %v2634_v22 = vld [vmem:[%s3336_s1 + $0xa8] sm:$0xff] (!%p152_p3)  }
  0x10   : > { %2377 = vmatpush3.bf16.msra.mxu0 %v2618_v6  ;;  %v2627_v15 = vld [vmem:[%s3336_s1 + $0x18] sm:$0xff]   ;;  %v2631_v19 = vld [vmem:[%s3336_s1 + $0x20] sm:$0xff]   ;;  %s3350_s13 = smov (!%p178_p5, %s2791_s13), 1  ;;  %v2635_v23 = vld [vmem:[%s3336_s1 + $0x28] sm:$0xff]   ;;  %s3352_s12 = smov (!%p185_p6, %s2787_s12), 1 }
  0x11   : > { %2399 = vmatpush3.bf16.msra.mxu1 %v2619_v7  ;;  %2378 = vmatprep.subr.bf16.mxu0 %v2620_v8  ;;  %s2372_s27 = sshll.u32 %s3350_s13, 5  ;;  %v2636_v24 = vld [vmem:[%s3336_s1 + $0xf0] sm:$0xff]   ;;  %v2640_v28 = vld [vmem:[%s3336_s1 + $0xf8] sm:$0xff]   ;;  %v2646_v37 = vld [vmem:[%s3336_s1 + $0x140] sm:$0xff]   ;;  %s1957_s23 = sshll.u32 %s3350_s13, 1 }
  0x12   : > { %2400 = vmatprep.subr.bf16.mxu1 %v2621_v9  ;;  %v2637_v25 = vld [vmem:[%s3336_s1 + $0x70] sm:$0xff]   ;;  %s182_s9 = scalar_lea.vmem %s3335_s0, %s2372_s27  ;;  %v2641_v29 = vld [vmem:[%s3336_s1 + $0x78] sm:$0xff]   ;;  %v2648_v43 = vld [vmem:[%s3336_s1 + $0x1c0] sm:$0xff]   ;;  %s188_s25 = sadd.s32 %s1957_s23, %s3352_s12 }
  0x13   : > { %v2638_v26 = vld [vmem:[%s3336_s1 + $0xb0] sm:$0xff]   ;;  %s2958_s24 = scalar_lea.vmem %s182_s9, %s2373_s10  ;;  %v2642_v30 = vld [vmem:[%s3336_s1 + $0xb8] sm:$0xff]   ;;  %v2649_v44 = vld [vmem:[%s3336_s1 + $0x180] sm:$0xff]   ;;  %s1958_s28 = sshll.u32 %s188_s25, 1 }
  0x14   : > { %2379 = vmatpush3.bf16.msra.mxu0 %v2622_v10  ;;  %v2639_v27 = vld [vmem:[%s3336_s1 + $0x30] sm:$0xff]   ;;  %v2643_v31 = vld [vmem:[%s3336_s1 + $0x38] sm:$0xff]   ;;  %v233_v32 = vld [vmem:[%s2958_s24] sm:$0x66]  ;;  %s190_s4 = scalar_lea.vmem %s3338_s3, %s1958_s28 }
  0x15   : > { %2401 = vmatpush3.bf16.msra.mxu1 %v2623_v11  ;;  %2380 = vmatprep.subr.bf16.mxu0 %v2624_v12  ;;  %v195_v33 = vld [vmem:[%s2958_s24] sm:$0x33]  ;;  %v235_v34 = vcombine.high %v233_v32, %v233_v32  ;;  %v237_v35 = vpack.c.bf16 %v233_v32, %v233_v32  ;;  %v2652_v49 = vld [vmem:[%s3336_s1 + $0x1c8] sm:$0xff]   ;;  %v2656_v55 = vld [vmem:[%s3336_s1 + $0x1d0] sm:$0xff]  }
  0x16   : > { %2402 = vmatprep.subr.bf16.mxu1 %v2625_v13  ;;  %v197_v36 = vcombine.high %v195_v33, %v195_v33  ;;  %v199_v38 = vpack.c.bf16 %v195_v33, %v195_v33  ;;  %v2653_v51 = vld [vmem:[%s3336_s1 + $0x188] sm:$0xff]   ;;  %v2647_v53 = vld [vmem:[%s3336_s1 + $0x100] sm:$0xff]   ;;  %v2657_v56 = vld [vmem:[%s3336_s1 + $0x190] sm:$0xff]  }
  0x17   : > { %v238_v39 = vpack.c.bf16 %v235_v34, %v235_v34  ;;  %v273_v41 = vshrl.u32 %v237_v35, 16  ;;  %v275_v42 = vshll.u32 %v237_v35, 16  ;;  %v2650_v54 = vld [vmem:[%s3336_s1 + $0x148] sm:$0xff]   ;;  %v2654_v58 = vld [vmem:[%s3336_s1 + $0x150] sm:$0xff]   ;;  %v2660_v59 = vld [vmem:[%s3336_s1 + $0x1d8] sm:$0xff]  }
  0x18   : > { %2381 = vmatpush3.bf16.msra.mxu0 %v2626_v14  ;;  %v200_v40 = vpack.c.bf16 %v197_v36, %v197_v36  ;;  %v2651_v57 = vld [vmem:[%s3336_s1 + $0x108] sm:$0xff]   ;;  %v2661_v60 = vld [vmem:[%s3336_s1 + $0x198] sm:$0xff]   ;;  %v2655_v61 = vld [vmem:[%s3336_s1 + $0x110] sm:$0xff]  }
  0x19   : > { %2403 = vmatpush3.bf16.msra.mxu1 %v2627_v15  ;;  %2382 = vmatprep.subr.bf16.mxu0 %v2628_v16  ;;  %v280_v45 = vshrl.u32 %v238_v39, 16  ;;  %v282_v46 = vshll.u32 %v238_v39, 16  ;;  %v277_v47 = vrot.slane %v275_v42, 1  ;;  %v2658_v62 = vld [vmem:[%s3336_s1 + $0x158] sm:$0xff]   ;;  %v2664_v63 = vld [vmem:[%s3336_s1 + $0x1e0] sm:$0xff]   ;;  %v2668_v3 = vld [vmem:[%s3336_s1 + $0x1e8] sm:$0xff]  }
  0x1a   : > { %2404 = vmatprep.subr.bf16.mxu1 %v2629_v17  ;;  %552 = vmatprep.mubr.bf16.mxu1 %v200_v40  ;;  %v2665_v0 = vld [vmem:[%s3336_s1 + $0x1a0] sm:$0xff]   ;;  %v2659_v1 = vld [vmem:[%s3336_s1 + $0x118] sm:$0xff]   ;;  %v2669_v4 = vld [vmem:[%s3336_s1 + $0x1a8] sm:$0xff]  }
  0x1b   : > { %v284_v48 = vrot.slane %v282_v46, 1  ;;  %v278_v50 = vor.u32 %v277_v47, %v273_v41  ;;  %v2662_v2 = vld [vmem:[%s3336_s1 + $0x160] sm:$0xff]   ;;  %v2666_v6 = vld [vmem:[%s3336_s1 + $0x168] sm:$0xff]   ;;  %v2672_v7 = vld [vmem:[%s3336_s1 + $0x1f0] sm:$0xff]  }
  0x1c   : > { %2383 = vmatpush3.bf16.msra.mxu0 %v2630_v18  ;;  %v2663_v5 = vld [vmem:[%s3336_s1 + $0x120] sm:$0xff]   ;;  %v2673_v8 = vld [vmem:[%s3336_s1 + $0x1b0] sm:$0xff]   ;;  %v2667_v9 = vld [vmem:[%s3336_s1 + $0x128] sm:$0xff]  }
  0x1d   : > { %2405 = vmatpush3.bf16.msra.mxu1 %v2631_v19  ;;  %2384 = vmatprep.subr.bf16.mxu0 %v2632_v20  ;;  %v285_v52 = vor.u32 %v284_v48, %v280_v45  ;;  %v2670_v10 = vld [vmem:[%s3336_s1 + $0x170] sm:$0xff]   ;;  %v2676_v12 = vld [vmem:[%s3336_s1 + $0x1f8] sm:$0xff]   ;;  %v560_v13 = vld [vmem:[%s2958_s24] sm:$0xcc] }
  0x1e   : > { %2406 = vmatprep.subr.bf16.mxu1 %v2633_v21  ;;  %v2671_v11 = vld [vmem:[%s3336_s1 + $0x130] sm:$0xff]   ;;  %v562_v14 = vcombine.high %v560_v13, %v560_v13  ;;  %v2678_v15 = vld [vmem:[%s3336_s1 + $0x1b8] sm:$0xff]   ;;  %v2074_v17 = vld [vmem:[%s2958_s24 + $0x8] sm:$0x33]  ;;  %v564_v21 = vpack.c.bf16 %v560_v13, %v560_v13 }
  0x1f   : > { %416 = vmatprep.mubr.bf16.mxu0 %v285_v52  ;;  %v2674_v16 = vld [vmem:[%s3336_s1 + $0x178] sm:$0xff]   ;;  %v748_v20 = vcombine.high %v2074_v17, %v2074_v17  ;;  %v2684_v32 = vld [vmem:[%s3336_s1 + $0x248] sm:$0xff]   ;;  %v2690_v34 = vld [vmem:[%s3336_s1 + $0x2d0] sm:$0xff]  }
  0x20   : > { %2385 = vmatpush3.bf16.msra.mxu0 %v2634_v22  ;;  %v2675_v18 = vld [vmem:[%s3336_s1 + $0x138] sm:$0xff]   ;;  %v565_v19 = vpack.c.bf16 %v562_v14, %v562_v14  ;;  %v750_v22 = vpack.c.bf16 %v2074_v17, %v2074_v17  ;;  %v2685_v33 = vld [vmem:[%s3336_s1 + $0x208] sm:$0xff]   ;;  %v2691_v35 = vld [vmem:[%s3336_s1 + $0x290] sm:$0xff]  }
  0x21   : > { %2407 = vmatpush3.bf16.msra.mxu1 %v2635_v23  ;;  %2386 = vmatprep.subr.bf16.mxu0 %v2636_v24  ;;  %v2682_v23 = vld [vmem:[%s3336_s1 + $0x2c0] sm:$0xff]   ;;  %v2688_v36 = vld [vmem:[%s3336_s1 + $0x250] sm:$0xff]   ;;  %v2695_v39 = vld [vmem:[%s3336_s1 + $0x298] sm:$0xff]  }
  0x22   : > { %2408 = vmatprep.subr.bf16.mxu1 %v2637_v25  ;;  %v602_v24 = vrot.slane %v565_v19, 1  ;;  %v751_v25 = vpack.c.bf16 %v748_v20, %v748_v20  ;;  %v2692_v40 = vld [vmem:[%s3336_s1 + $0x258] sm:$0xff]   ;;  %v2698_v42 = vld [vmem:[%s3336_s1 + $0x2e0] sm:$0xff]   ;;  %v2702_v46 = vld [vmem:[%s3336_s1 + $0x2e8] sm:$0xff]  }
  0x23   : > { %v2693_v41 = vld [vmem:[%s3336_s1 + $0x218] sm:$0xff]   ;;  %v2697_v45 = vld [vmem:[%s3336_s1 + $0x220] sm:$0xff]   ;;  %v2703_v47 = vld [vmem:[%s3336_s1 + $0x2a8] sm:$0xff]  }
  0x24   : > { %2387 = vmatpush3.bf16.msra.mxu0 %v2638_v26  ;;  %v2683_v26 = vld [vmem:[%s3336_s1 + $0x280] sm:$0xff]   ;;  %v2700_v48 = vld [vmem:[%s3336_s1 + $0x268] sm:$0xff]   ;;  %v2704_v52 = vld [vmem:[%s3336_s1 + $0x270] sm:$0xff]  }
  0x25   : > { %2409 = vmatpush3.bf16.msra.mxu1 %v2639_v27  ;;  %2388 = vmatprep.subr.bf16.mxu0 %v2640_v28  ;;  %v2679_v27 = vld [vmem:[%s3336_s1 + $0x240] sm:$0xff]   ;;  %v2718_v17 = vld [vmem:[%s3336_s1 + $0x348] sm:$0xff]   ;;  %v2724_v20 = vld [vmem:[%s3336_s1 + $0x3d0] sm:$0xff]  }
  0x26   : > { %2410 = vmatprep.subr.bf16.mxu1 %v2641_v29  ;;  %v2681_v28 = vld [vmem:[%s3336_s1 + $0x200] sm:$0xff]   ;;  %v601_v29 = vrot.slane %v564_v21, 1  ;;  %v2721_v19 = vld [vmem:[%s3336_s1 + $0x388] sm:$0xff]   ;;  %v2722_v21 = vld [vmem:[%s3336_s1 + $0x350] sm:$0xff]  }
  0x27   : > { %v2717_v14 = vld [vmem:[%s3336_s1 + $0x380] sm:$0xff]  }
  0x28   : > { %2389 = vmatpush3.bf16.msra.mxu0 %v2642_v30  ;;  %v2686_v30 = vld [vmem:[%s3336_s1 + $0x2c8] sm:$0xff]  }
  0x29   : > { %2411 = vmatpush3.bf16.msra.mxu1 %v2643_v31  ;;  %2418 = vmatprep.subr.bf16.mxu0 %v2646_v37  ;;  %v2687_v31 = vld [vmem:[%s3336_s1 + $0x288] sm:$0xff]   ;;  %v2689_v37 = vld [vmem:[%s3336_s1 + $0x210] sm:$0xff]  }
  0x2a   : > { %2440 = vmatprep.subr.bf16.mxu1 %v2648_v43  ;;  %v2699_v43 = vld [vmem:[%s3336_s1 + $0x2a0] sm:$0xff]  }
  0x2b   : > { %417 = vmatmul.mubr.bf16.vlgmr.msra.gmra.mrb[0].mxu0 %v278_v50  ;;  %v2706_v50 = vld [vmem:[%s3336_s1 + $0x2f0] sm:$0xff]  }
  0x2c   : > { %553 = vmatmul.mubr.bf16.vlgmr.msra.gmra.mrb[0].mxu1 %v199_v38  ;;  %2419 = vmatpush3.bf16.msra.mxu0 %v2647_v53  ;;  %v2694_v38 = vld [vmem:[%s3336_s1 + $0x2d8] sm:$0xff]   ;;  %v2705_v53 = vld [vmem:[%s3336_s1 + $0x230] sm:$0xff]  }
  0x2d   : > { %2441 = vmatpush3.bf16.msra.mxu1 %v2649_v44  ;;  %2420 = vmatprep.subr.bf16.mxu0 %v2650_v54  ;;  %v2696_v44 = vld [vmem:[%s3336_s1 + $0x260] sm:$0xff]   ;;  %v2710_v54 = vld [vmem:[%s3336_s1 + $0x2f8] sm:$0xff]  }
  0x2e   : > { %2442 = vmatprep.subr.bf16.mxu1 %v2652_v49  ;;  %733 = vmatprep.mubr.bf16.mxu0 %v602_v24  ;;  %v2701_v49 = vld [vmem:[%s3336_s1 + $0x228] sm:$0xff]   ;;  %v2728_v24 = vld [vmem:[%s3336_s1 + $0x3d8] sm:$0xff]  }
  0x2f   : > { %913 = vmatprep.mubr.bf16.mxu1 %v751_v25  ;;  %v2726_v25 = vld [vmem:[%s3336_s1 + $0x358] sm:$0xff]  }
  0x30   : > { %2421 = vmatpush3.bf16.msra.mxu0 %v2651_v57 }
  0x31   : > { %2443 = vmatpush3.bf16.msra.mxu1 %v2653_v51  ;;  %2422 = vmatprep.subr.bf16.mxu0 %v2654_v58  ;;  %v2707_v51 = vld [vmem:[%s3336_s1 + $0x2b0] sm:$0xff]   ;;  %v2712_v58 = vld [vmem:[%s3336_s1 + $0x2b8] sm:$0xff]  }
  0x32   : > { %2444 = vmatprep.subr.bf16.mxu1 %v2656_v55  ;;  %v2123_v55 = vld [vmem:[%s2958_s24 + $0x8] sm:$0x66] }
  0x33   : > { %v926_v57 = vpack.c.bf16 %v2123_v55, %v2123_v55 }
  0x34   : > { %2423 = vmatpush3.bf16.msra.mxu0 %v2655_v61 }
  0x35   : > { %2445 = vmatpush3.bf16.msra.mxu1 %v2657_v56  ;;  %2424 = vmatprep.subr.bf16.mxu0 %v2658_v62  ;;  %v924_v56 = vcombine.high %v2123_v55, %v2123_v55  ;;  %v964_v61 = vshll.u32 %v926_v57, 16  ;;  %v2172_v62 = vld [vmem:[%s2958_s24 + $0x8] sm:$0xcc] }
  0x36   : > { %2446 = vmatprep.subr.bf16.mxu1 %v2660_v59  ;;  %v2708_v59 = vld [vmem:[%s3336_s1 + $0x278] sm:$0xff]  }
  0x38   : > { %2425 = vmatpush3.bf16.msra.mxu0 %v2659_v1  ;;  %v1116_v1 = vcombine.high %v2172_v62, %v2172_v62 }
  0x39   : > { %2447 = vmatpush3.bf16.msra.mxu1 %v2661_v60  ;;  %2426 = vmatprep.subr.bf16.mxu0 %v2662_v2  ;;  %v927_v60 = vpack.c.bf16 %v924_v56, %v924_v56  ;;  %v1118_v2 = vpack.c.bf16 %v2172_v62, %v2172_v62 }
  0x3a   : > { %2448 = vmatprep.subr.bf16.mxu1 %v2664_v63  ;;  %v2709_v63 = vld [vmem:[%s3336_s1 + $0x238] sm:$0xff]  }
  0x3c   : > { %2427 = vmatpush3.bf16.msra.mxu0 %v2663_v5  ;;  %v966_v5 = vrot.slane %v964_v61, 1 }
  0x3d   : > { %2449 = vmatpush3.bf16.msra.mxu1 %v2665_v0  ;;  %2428 = vmatprep.subr.bf16.mxu0 %v2666_v6  ;;  %v962_v0 = vshrl.u32 %v926_v57, 16  ;;  %v2716_v6 = vld [vmem:[%s3336_s1 + $0x3c0] sm:$0xff]  }
  0x3e   : > { %2450 = vmatprep.subr.bf16.mxu1 %v2668_v3  ;;  %v969_v3 = vshrl.u32 %v927_v60, 16  ;;  %v2749_v57 = vld [vmem:[%s3336_s1 + $0x400] sm:$0xff]  }
  0x40   : > { %2429 = vmatpush3.bf16.msra.mxu0 %v2667_v9 }
  0x41   : > { %2451 = vmatpush3.bf16.msra.mxu1 %v2669_v4  ;;  %2430 = vmatprep.subr.bf16.mxu0 %v2670_v10  ;;  %v971_v4 = vshll.u32 %v927_v60, 16  ;;  %v2715_v10 = vld [vmem:[%s3336_s1 + $0x300] sm:$0xff]  }
  0x42   : > { %2452 = vmatprep.subr.bf16.mxu1 %v2672_v7  ;;  %v2713_v7 = vld [vmem:[%s3336_s1 + $0x340] sm:$0xff]  }
  0x43   : > { %v973_v9 = vrot.slane %v971_v4, 1  ;;  %v2755_v4 = vld [vmem:[%s3336_s1 + $0x418] sm:$0xff]  }
  0x44   : > { %2431 = vmatpush3.bf16.msra.mxu0 %v2671_v11  ;;  %v1155_v11 = vrot.slane %v1118_v2, 1  ;;  %v2754_v2 = vld [vmem:[%s3336_s1 + $0x458] sm:$0xff]  }
  0x45   : > { %2453 = vmatpush3.bf16.msra.mxu1 %v2673_v8  ;;  %2432 = vmatprep.subr.bf16.mxu0 %v2674_v16  ;;  %v1119_v8 = vpack.c.bf16 %v1116_v1, %v1116_v1  ;;  %v2720_v16 = vld [vmem:[%s3336_s1 + $0x3c8] sm:$0xff]   ;;  %v2753_v1 = vld [vmem:[%s3336_s1 + $0x410] sm:$0xff]  }
  0x46   : > { %2454 = vmatprep.subr.bf16.mxu1 %v2676_v12  ;;  %v967_v12 = vor.u32 %v966_v5, %v962_v0  ;;  %v2752_v0 = vld [vmem:[%s3336_s1 + $0x450] sm:$0xff]  }
  0x47   : > { %v1156_v13 = vrot.slane %v1119_v8, 1  ;;  %v2757_v8 = vld [vmem:[%s3336_s1 + $0x420] sm:$0xff]  }
  0x48   : > { %2433 = vmatpush3.bf16.msra.mxu0 %v2675_v18  ;;  %v2719_v18 = vld [vmem:[%s3336_s1 + $0x308] sm:$0xff]  }
  0x49   : > { %2455 = vmatpush3.bf16.msra.mxu1 %v2678_v15  ;;  %2462 = vmatprep.subr.bf16.mxu0 %v2679_v27  ;;  %v974_v15 = vor.u32 %v973_v9, %v969_v3  ;;  %v2729_v27 = vld [vmem:[%s3336_s1 + $0x398] sm:$0xff]   ;;  %v2320_v3 = vld [vmem:[%s2958_s24 + $0x10] sm:$0xcc] }
  0x4a   : > { %2484 = vmatprep.subr.bf16.mxu1 %v2682_v23  ;;  %v2725_v23 = vld [vmem:[%s3336_s1 + $0x390] sm:$0xff]   ;;  %v1670_v5 = vcombine.high %v2320_v3, %v2320_v3 }
  0x4b   : > { %734 = vmatmul.mubr.bf16.vlgmr.msra.gmra.mrb[4].mxu0 %v601_v29  ;;  %v2730_v29 = vld [vmem:[%s3336_s1 + $0x360] sm:$0xff]  }
  0x4c   : > { %914 = vmatmul.mubr.bf16.vlgmr.msra.gmra.mrb[4].mxu1 %v750_v22  ;;  %2463 = vmatpush3.bf16.msra.mxu0 %v2681_v28  ;;  %v2723_v22 = vld [vmem:[%s3336_s1 + $0x310] sm:$0xff]   ;;  %v2732_v28 = vld [vmem:[%s3336_s1 + $0x3e0] sm:$0xff]  }
  0x4d   : > { %2485 = vmatpush3.bf16.msra.mxu1 %v2683_v26  ;;  %2464 = vmatprep.subr.bf16.mxu0 %v2684_v32  ;;  %v2727_v26 = vld [vmem:[%s3336_s1 + $0x318] sm:$0xff]   ;;  %v2736_v32 = vld [vmem:[%s3336_s1 + $0x3e8] sm:$0xff]  }
  0x4e   : > { %2486 = vmatprep.subr.bf16.mxu1 %v2686_v30  ;;  %1287 = vmatprep.mubr.bf16.mxu1 %v1156_v13  ;;  %v2731_v30 = vld [vmem:[%s3336_s1 + $0x320] sm:$0xff]   ;;  %v2761_v13 = vld [vmem:[%s3336_s1 + $0x430] sm:$0xff]  }
  0x4f   : > { %1105 = vmatprep.mubr.bf16.mxu0 %v974_v15  ;;  %v1672_v15 = vpack.c.bf16 %v2320_v3, %v2320_v3 }
  0x50   : > { %2465 = vmatpush3.bf16.msra.mxu0 %v2685_v33  ;;  %v2734_v33 = vld [vmem:[%s3336_s1 + $0x368] sm:$0xff]  }
  0x51   : > { %2487 = vmatpush3.bf16.msra.mxu1 %v2687_v31  ;;  %2466 = vmatprep.subr.bf16.mxu0 %v2688_v36  ;;  %v2733_v31 = vld [vmem:[%s3336_s1 + $0x3a0] sm:$0xff]   ;;  %v2740_v36 = vld [vmem:[%s3336_s1 + $0x3f0] sm:$0xff]  }
  0x52   : > { %2488 = vmatprep.subr.bf16.mxu1 %v2690_v34  ;;  %v2735_v34 = vld [vmem:[%s3336_s1 + $0x328] sm:$0xff]  }
  0x54   : > { %2467 = vmatpush3.bf16.msra.mxu0 %v2689_v37  ;;  %v2738_v37 = vld [vmem:[%s3336_s1 + $0x370] sm:$0xff]  }
  0x55   : > { %2489 = vmatpush3.bf16.msra.mxu1 %v2691_v35  ;;  %2468 = vmatprep.subr.bf16.mxu0 %v2692_v40  ;;  %v2737_v35 = vld [vmem:[%s3336_s1 + $0x3a8] sm:$0xff]   ;;  %v2742_v40 = vld [vmem:[%s3336_s1 + $0x378] sm:$0xff]  }
  0x56   : > { %2490 = vmatprep.subr.bf16.mxu1 %v2694_v38  ;;  %v2739_v38 = vld [vmem:[%s3336_s1 + $0x330] sm:$0xff]  }
  0x58   : > { %2469 = vmatpush3.bf16.msra.mxu0 %v2693_v41  ;;  %v2744_v41 = vld [vmem:[%s3336_s1 + $0x3f8] sm:$0xff]  }
  0x59   : > { %2491 = vmatpush3.bf16.msra.mxu1 %v2695_v39  ;;  %2470 = vmatprep.subr.bf16.mxu0 %v2696_v44  ;;  %v2741_v39 = vld [vmem:[%s3336_s1 + $0x3b0] sm:$0xff]   ;;  %v2746_v44 = vld [vmem:[%s3336_s1 + $0x3b8] sm:$0xff]  }
  0x5a   : > { %2492 = vmatprep.subr.bf16.mxu1 %v2698_v42  ;;  %v2222_v42 = vld [vmem:[%s2958_s24 + $0x10] sm:$0x33] }
  0x5c   : > { %2471 = vmatpush3.bf16.msra.mxu0 %v2697_v45  ;;  %v2271_v45 = vld [vmem:[%s2958_s24 + $0x10] sm:$0x66] }
  0x5d   : > { %2493 = vmatpush3.bf16.msra.mxu1 %v2699_v43  ;;  %2472 = vmatprep.subr.bf16.mxu0 %v2700_v48  ;;  %v1302_v43 = vcombine.high %v2222_v42, %v2222_v42  ;;  %v1478_v48 = vcombine.high %v2271_v45, %v2271_v45 }
  0x5e   : > { %2494 = vmatprep.subr.bf16.mxu1 %v2702_v46  ;;  %v2743_v46 = vld [vmem:[%s3336_s1 + $0x338] sm:$0xff]  }
  0x60   : > { %2473 = vmatpush3.bf16.msra.mxu0 %v2701_v49  ;;  %v1480_v49 = vpack.c.bf16 %v2271_v45, %v2271_v45 }
  0x61   : > { %2495 = vmatpush3.bf16.msra.mxu1 %v2703_v47  ;;  %2474 = vmatprep.subr.bf16.mxu0 %v2704_v52  ;;  %v1305_v47 = vpack.c.bf16 %v1302_v43, %v1302_v43 }
  0x62   : > { %2496 = vmatprep.subr.bf16.mxu1 %v2706_v50  ;;  %v2747_v50 = vld [vmem:[%s3336_s1 + $0x440] sm:$0xff]   ;;  %v1516_v52 = vshrl.u32 %v1480_v49, 16 }
  0x64   : > { %2475 = vmatpush3.bf16.msra.mxu0 %v2705_v53  ;;  %v1518_v53 = vshll.u32 %v1480_v49, 16 }
  0x65   : > { %2497 = vmatpush3.bf16.msra.mxu1 %v2707_v51  ;;  %2476 = vmatprep.subr.bf16.mxu0 %v2708_v59  ;;  %v1481_v51 = vpack.c.bf16 %v1478_v48, %v1478_v48  ;;  %v2750_v59 = vld [vmem:[%s3336_s1 + $0x448] sm:$0xff]  }
  0x66   : > { %2498 = vmatprep.subr.bf16.mxu1 %v2710_v54  ;;  %v1304_v54 = vpack.c.bf16 %v2222_v42, %v2222_v42 }
  0x67   : > { %v1523_v55 = vshrl.u32 %v1481_v51, 16  ;;  %v1525_v56 = vshll.u32 %v1481_v51, 16 }
  0x68   : > { %2477 = vmatpush3.bf16.msra.mxu0 %v2709_v63  ;;  %v2751_v63 = vld [vmem:[%s3336_s1 + $0x408] sm:$0xff]  }
  0x69   : > { %2499 = vmatpush3.bf16.msra.mxu1 %v2712_v58  ;;  %2506 = vmatprep.subr.bf16.mxu0 %v2713_v7  ;;  %v1520_v58 = vrot.slane %v1518_v53, 1  ;;  %v1527_v60 = vrot.slane %v1525_v56, 1  ;;  %v1673_v7 = vpack.c.bf16 %v1670_v5, %v1670_v5  ;;  %v2369_v5 = vld [vmem:[%s3337_s2] ss:$0 sm:$0xff] }
  0x6a   : > { %2528 = vmatprep.subr.bf16.mxu1 %v2716_v6  ;;  %v2756_v6 = vld [vmem:[%s3336_s1 + $0x460] sm:$0xff]  }
  0x6b   : > { %1106 = vmatmul.mubr.bf16.vlgmr.msra.gmra.mrb[8].mxu0 %v967_v12  ;;  %v1521_v61 = vor.u32 %v1520_v58, %v1516_v52  ;;  %v1528_v62 = vor.u32 %v1527_v60, %v1523_v55  ;;  %v1710_v9 = vrot.slane %v1673_v7, 1  ;;  %v2760_v12 = vld [vmem:[%s3336_s1 + $0x470] sm:$0xff]  }
  0x6c   : > { %1288 = vmatmul.mubr.bf16.vlgmr.msra.gmra.mrb[8].mxu1 %v1155_v11  ;;  %2507 = vmatpush3.bf16.msra.mxu0 %v2715_v10  ;;  %v2758_v10 = vld [vmem:[%s3336_s1 + $0x468] sm:$0xff]  }
  0x6d   : > { %2529 = vmatpush3.bf16.msra.mxu1 %v2717_v14  ;;  %2508 = vmatprep.subr.bf16.mxu0 %v2718_v17  ;;  %v2759_v11 = vld [vmem:[%s3336_s1 + $0x428] sm:$0xff]   ;;  %v2762_v14 = vld [vmem:[%s3336_s1 + $0x478] sm:$0xff]   ;;  %v1709_v17 = vrot.slane %v1672_v15, 1 }
  0x6e   : > { %2530 = vmatprep.subr.bf16.mxu1 %v2720_v16  ;;  %1467 = vmatprep.mubr.bf16.mxu0 %v1305_v47  ;;  %v2763_v16 = vld [vmem:[%s3336_s1 + $0x438] sm:$0xff]  }
  0x6f   : > { %1659 = vmatprep.mubr.bf16.mxu1 %v1528_v62 }
  0x70   : > { %2509 = vmatpush3.bf16.msra.mxu0 %v2719_v18 }
  0x71   : > { %2531 = vmatpush3.bf16.msra.mxu1 %v2721_v19  ;;  %2510 = vmatprep.subr.bf16.mxu0 %v2722_v21 }
  0x72   : > { %2532 = vmatprep.subr.bf16.mxu1 %v2724_v20 }
  0x74   : > { %2511 = vmatpush3.bf16.msra.mxu0 %v2723_v22 }
  0x75   : > { %2533 = vmatpush3.bf16.msra.mxu1 %v2725_v23  ;;  %2512 = vmatprep.subr.bf16.mxu0 %v2726_v25 }
  0x76   : > { %2534 = vmatprep.subr.bf16.mxu1 %v2728_v24 }
  0x78   : > { %2513 = vmatpush3.bf16.msra.mxu0 %v2727_v26 }
  0x79   : > { %2535 = vmatpush3.bf16.msra.mxu1 %v2729_v27  ;;  %2514 = vmatprep.subr.bf16.mxu0 %v2730_v29 }
  0x7a   : > { %2536 = vmatprep.subr.bf16.mxu1 %v2732_v28 }
  0x7c   : > { %2515 = vmatpush3.bf16.msra.mxu0 %v2731_v30 }
  0x7d   : > { %2537 = vmatpush3.bf16.msra.mxu1 %v2733_v31  ;;  %2516 = vmatprep.subr.bf16.mxu0 %v2734_v33 }
  0x7e   : > { %2538 = vmatprep.subr.bf16.mxu1 %v2736_v32 }
  0x80   : > { %2517 = vmatpush3.bf16.msra.mxu0 %v2735_v34 }
  0x81   : > { %2539 = vmatpush3.bf16.msra.mxu1 %v2737_v35  ;;  %2518 = vmatprep.subr.bf16.mxu0 %v2738_v37 }
  0x82   : > { %2540 = vmatprep.subr.bf16.mxu1 %v2740_v36 }
  0x84   : > { %2519 = vmatpush3.bf16.msra.mxu0 %v2739_v38 }
  0x85   : > { %2541 = vmatpush3.bf16.msra.mxu1 %v2741_v39  ;;  %2520 = vmatprep.subr.bf16.mxu0 %v2742_v40 }
  0x86   : > { %2542 = vmatprep.subr.bf16.mxu1 %v2744_v41 }
  0x88   : > { %2521 = vmatpush3.bf16.msra.mxu0 %v2743_v46 }
  0x89   : > { %2543 = vmatpush3.bf16.msra.mxu1 %v2746_v44  ;;  %2550 = vmatprep.subr.bf16.mxu0 %v2747_v50 }
  0x8b   : > { %1468 = vmatmul.mubr.bf16.vlgmr.msra.gmra.mrb[12].mxu0 %v1304_v54 }
  0x8c   : > { %2551 = vmatpush3.bf16.msra.mxu0 %v2749_v57  ;;  %1660 = vmatmul.mubr.bf16.vlgmr.msra.gmra.mrb[12].mxu1 %v1521_v61 }
  0x8d   : > { %2552 = vmatprep.subr.bf16.mxu0 %v2750_v59  ;;  %1841 = vmatprep.mubr.bf16.mxu0 %v1710_v9 }
  0x90   : > { %2553 = vmatpush3.bf16.msra.mxu0 %v2751_v63 }
  0x91   : > { %2554 = vmatprep.subr.bf16.mxu0 %v2752_v0 }
  0x94   : > { %2555 = vmatpush3.bf16.msra.mxu0 %v2753_v1 }
  0x95   : > { %2556 = vmatprep.subr.bf16.mxu0 %v2754_v2 }
  0x98   : > { %2557 = vmatpush3.bf16.msra.mxu0 %v2755_v4 }
  0x99   : > { %2558 = vmatprep.subr.bf16.mxu0 %v2756_v6 }
  0x9c   : > { %2559 = vmatpush3.bf16.msra.mxu0 %v2757_v8 }
  0x9d   : > { %2560 = vmatprep.subr.bf16.mxu0 %v2758_v10 }
  0xa0   : > { %2561 = vmatpush3.bf16.msra.mxu0 %v2759_v11 }
  0xa1   : > { %2562 = vmatprep.subr.bf16.mxu0 %v2760_v12 }
  0xa4   : > { %2563 = vmatpush3.bf16.msra.mxu0 %v2761_v13 }
  0xa5   : > { %2564 = vmatprep.subr.bf16.mxu0 %v2762_v14 }
  0xa8   : > { %2565 = vmatpush3.bf16.msra.mxu0 %v2763_v16 }
  0xab   : > { %1842 = vmatmul.mubr.bf16.vlgmr.msra.gmra.mrb[16].mxu0 %v1709_v17 }
  0xfe   : > { %v2390_v23 = vpop.f32.mrb[0].mxu0 }
  0xff   : > { %v2412_v18 = vpop.f32.mrb[0].mxu1  ;;  %v2391_v24 = vpop.f32.mrb[1].mxu0 }
 0x100   : > { %v2413_v19 = vpop.f32.mrb[1].mxu1  ;;  %v2392_v25 = vadd.f32 %v2391_v24, %v2390_v23  ;;  %v2393_v26 = vpop.f32.mrb[2].mxu0 }
 0x101   : > { %v2414_v20 = vadd.f32 %v2413_v19, %v2412_v18  ;;  %v2415_v21 = vpop.f32.mrb[2].mxu1  ;;  %v2394_v27 = vpop.f32.mrb[3].mxu0 }
 0x102   : > { %v2416_v22 = vpop.f32.mrb[3].mxu1 }
 0x103   : > { %v555_v28 = vadd.f32 %v2414_v20, %v2392_v25 }
 0x11e   : > { %v2434_v34 = vpop.f32.mrb[4].mxu0 }
 0x11f   : > { %v2456_v29 = vpop.f32.mrb[4].mxu1  ;;  %v2435_v35 = vpop.f32.mrb[5].mxu0 }
 0x120   : > { %v2457_v30 = vpop.f32.mrb[5].mxu1  ;;  %v2436_v36 = vadd.f32 %v2435_v35, %v2434_v34  ;;  %v2437_v37 = vpop.f32.mrb[6].mxu0 }
 0x121   : > { %v2458_v31 = vadd.f32 %v2457_v30, %v2456_v29  ;;  %v2459_v32 = vpop.f32.mrb[6].mxu1  ;;  %v2438_v38 = vpop.f32.mrb[7].mxu0 }
 0x122   : > { %v2460_v33 = vpop.f32.mrb[7].mxu1  ;;  %v741_v39 = vadd.f32 %v2436_v36, %v555_v28 }
 0x124   : > { %v921_v40 = vadd.f32 %v2458_v31, %v741_v39 }
 0x13e   : > { %v2478_v42 = vpop.f32.mrb[8].mxu0 }
 0x13f   : > { %v2500_v41 = vpop.f32.mrb[8].mxu1  ;;  %v2479_v44 = vpop.f32.mrb[9].mxu0 }
 0x140   : > { %v2501_v43 = vpop.f32.mrb[9].mxu1  ;;  %v2480_v47 = vadd.f32 %v2479_v44, %v2478_v42  ;;  %v2481_v48 = vpop.f32.mrb[10].mxu0 }
 0x141   : > { %v2502_v45 = vadd.f32 %v2501_v43, %v2500_v41  ;;  %v2503_v46 = vpop.f32.mrb[10].mxu1  ;;  %v2482_v50 = vpop.f32.mrb[11].mxu0 }
 0x142   : > { %v2504_v49 = vpop.f32.mrb[11].mxu1  ;;  %v1113_v51 = vadd.f32 %v2480_v47, %v921_v40 }
 0x144   : > { %v1295_v52 = vadd.f32 %v2502_v45, %v1113_v51 }
 0x15e   : > { %v2522_v53 = vpop.f32.mrb[12].mxu0 }
 0x15f   : > { %v2523_v54 = vpop.f32.mrb[13].mxu0  ;;  %v2544_v59 = vpop.f32.mrb[12].mxu1 }
 0x160   : > { %v2524_v55 = vadd.f32 %v2523_v54, %v2522_v53  ;;  %v2525_v56 = vpop.f32.mrb[14].mxu0  ;;  %v2545_v60 = vpop.f32.mrb[13].mxu1 }
 0x161   : > { %v2526_v57 = vpop.f32.mrb[15].mxu0  ;;  %v2546_v61 = vadd.f32 %v2545_v60, %v2544_v59  ;;  %v2547_v62 = vpop.f32.mrb[14].mxu1 }
 0x162   : > { %v1475_v58 = vadd.f32 %v2524_v55, %v1295_v52  ;;  %v2548_v63 = vpop.f32.mrb[15].mxu1 }
 0x164   : > { %v1667_v0 = vadd.f32 %v2546_v61, %v1475_v58 }
 0x17e   : > { %v2566_v1 = vpop.f32.mrb[16].mxu0 }
 0x17f   : > { %v2567_v2 = vpop.f32.mrb[17].mxu0 }
 0x180   : > { %v2568_v3 = vadd.f32 %v2567_v2, %v2566_v1  ;;  %v2569_v4 = vpop.f32.mrb[18].mxu0 }
 0x181   : > { %v2570_v6 = vpop.f32.mrb[19].mxu0 }
 0x182   : > { %v1849_v7 = vadd.f32 %v2568_v3, %v1667_v0 }
 0x184   : > { %v1857_v8 = vadd.f32 %v2369_v5, %v1849_v7 }
 0x186   : > { %vm1858_vm0 = vcmp.ge.f32.partialorder %v1857_v8, 0.0  ;;  %v1859_v9 = vmul.f32 0.1, %v1857_v8 }
 0x188   : > { %v1860_v10 = vsel %vm1858_vm0, %v1857_v8, %v1859_v9 }
 0x189   : > { %1861 = vst [vmem:[%s190_s4] sm:$0x3] %v1860_v10 }
 0x18a PF: > { %s13_s16 = sadd.s32 1, %s2803_s16   ;;  %s3339_s12 = smov %s2795_s14 }
 0x18b   : > { %p10_p7 = scmp.ge.s32.totalorder %s13_s16, 6   ;;  %s3340_s13 = smov %s2799_s15 }
 0x18c   : > { %s3341_s14 = smov %s3344_s17  ;;  %s3342_s15 = smov %s3348_s18 }
 0x18d   :  { %12 = sbr.rel (!%p10_p7) target bundleno = 3 (0x3), region = 73 }

</bundles_post_ra>
